<compile_context>
chip_gen: v7x
topology: tpu7x:2x2x1
jax: 0.10.0
libtpu: 0.0.40
codegen_flags: <defaults>
</compile_context>

<pallas_src>
import functools
import numpy as np
import jax
import jax.numpy as jnp
from jax.experimental import pallas as pl
from jax.experimental.pallas import tpu as pltpu

BN_EPS = 1e-5


def _round_up(x, m):
    return (x + m - 1) // m * m


# --------------------------------------------------------------------------
# Pallas kernels: fused matmul (BN scale pre-folded into W) + shift + act
# --------------------------------------------------------------------------
def _mm_bias_act_kernel(x_ref, w_ref, b_ref, o_ref, *, activation):
    acc = jnp.dot(x_ref[...], w_ref[...], preferred_element_type=jnp.float32)
    y = acc + b_ref[...]
    if activation == "relu":
        y = jnp.maximum(y, 0.0)
    elif activation == "relu_sigmoid":
        y = jax.nn.sigmoid(jnp.maximum(y, 0.0))
    o_ref[...] = y.astype(o_ref.dtype)


def _mm_bias_add_relu_kernel(x_ref, w_ref, b_ref, r_ref, o_ref):
    acc = jnp.dot(x_ref[...], w_ref[...], preferred_element_type=jnp.float32)
    y = acc + b_ref[...] + r_ref[...].astype(jnp.float32)
    o_ref[...] = jnp.maximum(y, 0.0).astype(o_ref.dtype)


# --------------------------------------------------------------------------
# Tile selection (review items 4/7/9)
# --------------------------------------------------------------------------
def _choose_tiles(M, Np):
    # TN: <=256 (v5e MXU / VMEM friendly) and >=2 blocks along N when possible
    if Np >= 512 and Np % 256 == 0:
        TN = 256
    elif Np >= 256 and Np % 128 == 0:
        TN = 128
    else:
        TN = Np
    # TM: multiple of 16/32 for bf16 sublane packing, minimize M padding
    if M < 16:
        TM = _round_up(M, 8)
    else:
        cands = (256, 128) if M >= 128 else (64, 32, 16)
        best = None
        for c in cands:
            if c > _round_up(M, 16):
                continue
            mp = _round_up(M, c)
            if best is None or mp < best[0] or (mp == best[0] and c > best[1]):
                best = (mp, c)
        TM = best[1]
    # v7x: make sure there are >= 2 grid blocks so both TensorCores get work
    if (_round_up(M, TM) // TM) * (Np // TN) < 2 and TM >= 16:
        TM //= 2
    return TM, TN


# --------------------------------------------------------------------------
# Wrapper around the fused matmul kernel
# --------------------------------------------------------------------------
def fused_matmul(x, w, shift, *, activation=None, residual=None,
                 n_valid=None, out_dtype=jnp.bfloat16):
    """act((x @ w) + shift [+ residual]) with bf16 MXU operands, f32 accum.

    x:        (M, K)   activations (K may be < w.shape[0]; zero-padded then)
    w:        (Kp, Np) bfloat16, BN scale pre-folded, padded at prep time
    shift:    (1, Np)  float32 folded BN shift (+ conv bias)
    residual: (M, n_valid) optional; added before a final ReLU
    """
    M, K = x.shape
    Kp, Np = w.shape
    n_valid = Np if n_valid is None else n_valid

    if x.dtype != jnp.bfloat16:
        x = x.astype(jnp.bfloat16)
    if K < Kp:                       # only the 7x7 stem conv (147 -> 256)
        x = jnp.pad(x, ((0, 0), (0, Kp - K)))

    TM, TN = _choose_tiles(M, Np)
    Mp = _round_up(M, TM)
    if Mp > M:
        x = jnp.pad(x, ((0, Mp - M), (0, 0)))
    gi, gj = Mp // TM, Np // TN

    # Grid order: keep the larger operand resident / streamed once (review 6).
    w_bytes = Kp * Np * 2
    a_bytes = Mp * Kp * 2
    m_inner = (gi > 1) and (w_bytes * (gi - 1) > a_bytes * (gj - 1))
    if m_inner:            # weight-stationary: M innermost
        grid = (gj, gi)
        x_map = lambda j, i: (i, 0)
        w_map = lambda j, i: (0, j)
        b_map = lambda j, i: (0, j)
        o_map = lambda j, i: (i, j)
    else:                  # activation-stationary: N innermost
        grid = (gi, gj)
        x_map = lambda i, j: (i, 0)
        w_map = lambda i, j: (0, j)
        b_map = lambda i, j: (0, j)
        o_map = lambda i, j: (i, j)

    in_specs = [
        pl.BlockSpec((TM, Kp), x_map),
        pl.BlockSpec((Kp, TN), w_map),
        pl.BlockSpec((1, TN), b_map),
    ]
    args = [x, w, shift]

    if residual is None:
        kernel = functools.partial(_mm_bias_act_kernel, activation=activation)
    else:
        r = residual
        if r.dtype != jnp.bfloat16:
            r = r.astype(jnp.bfloat16)
        if r.shape != (Mp, Np):
            r = jnp.pad(r, ((0, Mp - r.shape[0]), (0, Np - r.shape[1])))
        in_specs.append(pl.BlockSpec((TM, TN), o_map))
        args.append(r)
        kernel = _mm_bias_add_relu_kernel

    out = pl.pallas_call(
        kernel,
        out_shape=jax.ShapeDtypeStruct((Mp, Np), out_dtype),
        grid=grid,
        in_specs=in_specs,
        out_specs=pl.BlockSpec((TM, TN), o_map),
        compiler_params=pltpu.CompilerParams(
            dimension_semantics=("parallel", "parallel")),
    )(*args)
    if Mp > M or Np > n_valid:       # skip identity slices (review 5)
        out = out[:M, :n_valid]
    return out


# --------------------------------------------------------------------------
# Conv / ConvTranspose / MaxPool lowering (thin glue around the kernel)
# --------------------------------------------------------------------------
def im2col(x, kh, kw, stride, padding):
    """NHWC -> (N*Ho*Wo, kh*kw*C) patches (zero padding == conv padding)."""
    # TODO(synk): replace with implicit-GEMM (kh*kw grid axis, shifted-window
    # index_map, f32 VMEM accumulator) to avoid the kh*kw HBM duplication.
    N, H, W, C = x.shape
    xp = jnp.pad(x, ((0, 0), (padding, padding), (padding, padding), (0, 0)))
    Ho = (H + 2 * padding - kh) // stride + 1
    Wo = (W + 2 * padding - kw) // stride + 1
    cols = []
    for i in range(kh):
        for j in range(kw):
            cols.append(xp[:, i:i + stride * (Ho - 1) + 1:stride,
                            j:j + stride * (Wo - 1) + 1:stride, :])
    patches = jnp.stack(cols, axis=3)                  # (N, Ho, Wo, kh*kw, C)
    return patches.reshape(N * Ho * Wo, kh * kw * C), (N, Ho, Wo)


def conv_bn_act(x, layer, *, activation=None, residual=None,
                out_dtype=jnp.bfloat16):
    kh, kw = layer["kh"], layer["kw"]
    stride, pad = layer["stride"], layer["pad"]
    if kh == 1 and kw == 1:
        if stride > 1:
            x = x[:, ::stride, ::stride, :]
        N, Ho, Wo, _ = x.shape
        cols = x.reshape(N * Ho * Wo, x.shape[-1])
    else:
        cols, (N, Ho, Wo) = im2col(x, kh, kw, stride, pad)
    res = None
    if residual is not None:
        res = residual.reshape(N * Ho * Wo, residual.shape[-1])
    y = fused_matmul(cols, layer["w"], layer["b"],
                     activation=activation, residual=res,
                     n_valid=layer["cout"], out_dtype=out_dtype)
    return y.reshape(N, Ho, Wo, layer["cout"])


def convT2x2_bn_relu(x, layer, out_dtype=jnp.bfloat16):
    """ConvTranspose2d(k=2, s=2) + bias + BN + ReLU, fused in the kernel."""
    # TODO(synk): pixel-shuffle (reshape+transpose) epilogue is still XLA glue;
    # an in-kernel lane-dense store into the upsampled layout would save one
    # activation-sized HBM round trip per up-block.
    N, H, W, Cin = x.shape
    cout = layer["cout"]
    y = fused_matmul(x.reshape(N * H * W, Cin), layer["w"], layer["b"],
                     activation="relu", n_valid=4 * cout, out_dtype=out_dtype)
    y = y.reshape(N, H, W, 2, 2, cout).transpose(0, 1, 3, 2, 4, 5)
    return y.reshape(N, 2 * H, 2 * W, cout)


def maxpool_3x3_s2_p1(x):
    """MaxPool2d(3, stride=2, padding=1) on NHWC, separable (H then W)."""
    # TODO(synk): still XLA glue; ~4.5x reads instead of 9x of the 2-D form.
    N, H, W, C = x.shape
    Ho = (H - 1) // 2 + 1
    Wo = (W - 1) // 2 + 1
    xp = jnp.pad(x, ((0, 0), (1, 1), (0, 0), (0, 0)),
                 constant_values=-jnp.inf)
    h = None
    for i in range(3):
        s = xp[:, i:i + 2 * (Ho - 1) + 1:2, :, :]
        h = s if h is None else jnp.maximum(h, s)
    hp = jnp.pad(h, ((0, 0), (0, 0), (1, 1), (0, 0)),
                 constant_values=-jnp.inf)
    out = None
    for j in range(3):
        s = hp[:, :, j:j + 2 * (Wo - 1) + 1:2, :]
        out = s if out is None else jnp.maximum(out, s)
    return out


# --------------------------------------------------------------------------
# Model blocks / forward
# --------------------------------------------------------------------------
def bottleneck(x, p):
    # TODO(synk): whole-bottleneck fusion (c1->c2->c3 in one pallas_call with
    # VMEM-resident intermediates) is not implemented.
    out = conv_bn_act(x, p["c1"], activation="relu")
    out = conv_bn_act(out, p["c2"], activation="relu")
    identity = conv_bn_act(x, p["down"]) if "down" in p else x
    # residual add + ReLU fused into the third conv's epilogue
    return conv_bn_act(out, p["c3"], residual=identity)


def forward_fn(params, x_nchw):
    x = jnp.transpose(x_nchw, (0, 2, 3, 1)).astype(jnp.bfloat16)   # NHWC
    # resnet encoder: conv1/bn1/relu, maxpool, layer1 (x3), layer2 (x4)
    x = conv_bn_act(x, params["conv1"], activation="relu")          # /2
    x = maxpool_3x3_s2_p1(x)                                        # /4
    for p in params["layer1"]:
        x = bottleneck(x, p)                                        # /4, 256ch
    for p in params["layer2"]:
        x = bottleneck(x, p)                                        # /8, 512ch
    # upnet: 3x aux_up_block (ConvT 2x2/2 + BN + ReLU), then squeeze + Sigmoid
    for p in params["upnet"]:
        x = convT2x2_bn_relu(x, p)                                  # x2 each
    x = conv_bn_act(x, params["squeeze"], activation="relu_sigmoid",
                    out_dtype=jnp.float32)
    return jnp.transpose(x, (0, 3, 1, 2))                           # NCHW


# --------------------------------------------------------------------------
# Deterministic synthetic parameters, pre-baked into matmul layout
# --------------------------------------------------------------------------
class PRNG:
    def __init__(self, key):
        self.key = key

    def next(self):
        self.key, sub = jax.random.split(self.key)
        return sub


def _conv_w(rng, cout, cin, kh, kw):
    fan_in = cin * kh * kw
    return jax.random.normal(rng.next(), (cout, cin, kh, kw),
                             jnp.float32) / np.sqrt(fan_in)


def _convT_w(rng, cin, cout):
    return jax.random.normal(rng.next(), (cin, cout, 2, 2),
                             jnp.float32) / np.sqrt(cin * 4)


def _bias(rng, c):
    return 0.01 * jax.random.normal(rng.next(), (c,), jnp.float32)


def _bn(rng, c):
    return dict(
        gamma=1.0 + 0.1 * jax.random.normal(rng.next(), (c,), jnp.float32),
        beta=0.1 * jax.random.normal(rng.next(), (c,), jnp.float32),
        rm=0.1 * jax.random.normal(rng.next(), (c,), jnp.float32),
        rv=1.0 + 0.1 * jax.random.uniform(rng.next(), (c,), jnp.float32),
    )


def _fold_bn(bn, conv_bias=None):
    s = bn["gamma"] / jnp.sqrt(bn["rv"] + BN_EPS)
    b0 = conv_bias if conv_bias is not None else 0.0
    return s, (b0 - bn["rm"]) * s + bn["beta"]


def _prep_conv(w, bn, bias=None, stride=1, pad=0):
    """torch (Cout,Cin,kh,kw) conv + BN -> bf16 (Kp,Np) scaled weight + shift."""
    cout, cin, kh, kw = w.shape
    K = kh * kw * cin
    wm = jnp.transpose(w, (2, 3, 1, 0)).reshape(K, cout)
    s, b = _fold_bn(bn, bias)
    wm = wm * s[None, :]                         # fold BN scale into weights
    # Keep K unpadded when it is already sublane-friendly (full-dim blocks);
    # pad the output channel dim only when it is not lane-friendly.
    Kp = K if K % 8 == 0 else _round_up(K, 128)
    Np = cout if (cout % 128 == 0 or cout == 64) else _round_up(cout, 128)
    wm = jnp.pad(wm, ((0, Kp - K), (0, Np - cout))).astype(jnp.bfloat16)
    b = jnp.pad(b, (0, Np - cout)).reshape(1, Np).astype(jnp.float32)
    return dict(w=wm, b=b, kh=kh, kw=kw, stride=stride, pad=pad, cout=cout)


def _prep_convT(w, bias, bn):
    """torch (Cin,Cout,2,2) ConvT + bias + BN -> bf16 (Cin, 4*Cout) layout."""
    cin, cout = w.shape[0], w.shape[1]
    wm = jnp.transpose(w, (0, 2, 3, 1)).reshape(cin, 4 * cout)
    s, b = _fold_bn(bn, bias)
    wm = wm * jnp.tile(s, 4)[None, :]            # fold BN scale into weights
    b4 = jnp.tile(b, 4)
    Np = 4 * cout                                # cin/4*cout already aligned
    return dict(w=wm.astype(jnp.bfloat16),
                b=b4.reshape(1, Np).astype(jnp.float32), cout=cout)


def _bottleneck_params(rng, inplanes, width, outplanes, stride, downsample):
    p = dict(
        c1=_prep_conv(_conv_w(rng, width, inplanes, 1, 1), _bn(rng, width)),
        c2=_prep_conv(_conv_w(rng, width, width, 3, 3), _bn(rng, width),
                      stride=stride, pad=1),
        c3=_prep_conv(_conv_w(rng, outplanes, width, 1, 1), _bn(rng, outplanes)),
    )
    if downsample:
        p["down"] = _prep_conv(_conv_w(rng, outplanes, inplanes, 1, 1),
                               _bn(rng, outplanes), stride=stride)
    return p


def build_params(key):
    """wide_resnet101_2[:-4] encoder (conv1, layer1 x3, layer2 x4) + upnet."""
    rng = PRNG(key)
    P = {}
    P["conv1"] = _prep_conv(_conv_w(rng, 64, 3, 7, 7), _bn(rng, 64),
                            stride=2, pad=3)
    # layer1: 3 wide bottlenecks (width 128), 64 -> 256
    layer1 = [_bottleneck_params(rng, 64, 128, 256, 1, True)]
    layer1 += [_bottleneck_params(rng, 256, 128, 256, 1, False) for _ in range(2)]
    P["layer1"] = layer1
    # layer2: 4 wide bottlenecks (width 256), 256 -> 512, first block stride 2
    layer2 = [_bottleneck_params(rng, 256, 256, 512, 2, True)]
    layer2 += [_bottleneck_params(rng, 512, 256, 512, 1, False) for _ in range(3)]
    P["layer2"] = layer2
    # upnet: aux_up_block(512), aux_up_block(256), aux_up_block(128)
    P["upnet"] = [
        _prep_convT(_convT_w(rng, cin, cin // 2), _bias(rng, cin // 2),
                    _bn(rng, cin // 2))
        for cin in (512, 256, 128)
    ]
    # squeeze_block(64, 1): Conv3x3 + BN + ReLU, then the model-level Sigmoid
    # (both fused into the kernel epilogue, matching the PyTorch reference)
    P["squeeze"] = _prep_conv(_conv_w(rng, 1, 64, 3, 3), _bn(rng, 1),
                              bias=_bias(rng, 1), pad=1)
    return P


# --------------------------------------------------------------------------
if __name__ == "__main__":
    key = jax.random.PRNGKey(0)
    k_params, k_input = jax.random.split(key)

    # One-time parameter preparation (layout, padding, BN folding).
    params = build_params(k_params)

    # Input: NCHW RGB image batch; spatial must be divisible by 8.
    x = jax.random.normal(k_input, (2, 3, 32, 32), jnp.float32)

    forward = jax.jit(functools.partial(forward_fn, params))
    out = jax.block_until_ready(forward(x))

    assert out.shape == (2, 1, 32, 32), out.shape
    assert bool(jnp.all(jnp.isfinite(out)))
    print("KERNEL_OK")
</pallas_src>

<mosaic_0001>
module attributes {stable_mosaic.version = 11 : i64} {
  func.func @_mm_bias_act_kernel(%arg0: i32, %arg1: i32, %arg2: memref<256x256xbf16, #tpu.memory_space<vmem>>, %arg3: memref<256x64xbf16, #tpu.memory_space<vmem>>, %arg4: memref<1x64xf32, #tpu.memory_space<vmem>>, %arg5: memref<256x64xbf16, #tpu.memory_space<vmem>>) attributes {dimension_semantics = [#tpu.dimension_semantics<parallel>, #tpu.dimension_semantics<parallel>], iteration_bounds = array<i64: 1, 2>, scalar_prefetch = 0 : i64, scratch_operands = 0 : i64, tpu.core_type = #tpu.core_type<tc>, window_params = [{transform_indices = @transform_0, window_bounds = array<i64: 256, 256>}, {transform_indices = @transform_1, window_bounds = array<i64: 256, 64>}, {transform_indices = @transform_2, window_bounds = array<i64: 1, 64>}, {transform_indices = @transform_3, window_bounds = array<i64: 256, 64>}]} {
    %c0 = arith.constant 0 : index
    %c0_0 = arith.constant 0 : index
    %0 = vector.load %arg2[%c0, %c0_0] : memref<256x256xbf16, #tpu.memory_space<vmem>>, vector<256x256xbf16>
    %c0_1 = arith.constant 0 : index
    %c0_2 = arith.constant 0 : index
    %1 = vector.load %arg3[%c0_1, %c0_2] : memref<256x64xbf16, #tpu.memory_space<vmem>>, vector<256x64xbf16>
    %cst = arith.constant dense<0.000000e+00> : vector<256x64xf32>
    %2 = tpu.matmul %0, %1, %cst {dimension_numbers = #tpu.dot_dimension_numbers<[1], [0], [0], [1], [0, 0, 1, 1], [], []>} : vector<256x256xbf16>, vector<256x64xbf16>, vector<256x64xf32> -> vector<256x64xf32>
    %c0_3 = arith.constant 0 : index
    %c0_4 = arith.constant 0 : index
    %3 = vector.load %arg4[%c0_3, %c0_4] : memref<1x64xf32, #tpu.memory_space<vmem>>, vector<1x64xf32>
    %4 = vector.broadcast %3 : vector<1x64xf32> to vector<256x64xf32>
    %5 = arith.addf %2, %4 : vector<256x64xf32>
    %cst_5 = arith.constant 0.000000e+00 : f32
    %6 = vector.broadcast %cst_5 : f32 to vector<256x64xf32>
    %7 = arith.maximumf %5, %6 : vector<256x64xf32>
    %8 = arith.truncf %7 : vector<256x64xf32> to vector<256x64xbf16>
    %c0_6 = arith.constant 0 : index
    %c0_7 = arith.constant 0 : index
    %9 = vector.load %arg5[%c0_6, %c0_7] : memref<256x64xbf16, #tpu.memory_space<vmem>>, vector<256x64xbf16>
    tpu.vector_store %arg5[%c0_6, %c0_7], %8 {strides = array<i32>} : memref<256x64xbf16, #tpu.memory_space<vmem>>, vector<256x64xbf16>,
    return
  }
  func.func @transform_0(%arg0: i32, %arg1: i32) -> (i32, i32) {
    %c0_i32 = arith.constant 0 : i32
    %c0_i32_0 = arith.constant 0 : i32
    return %arg1, %c0_i32 : i32, i32
  }
  func.func @transform_1(%arg0: i32, %arg1: i32) -> (i32, i32) {
    %c0_i32 = arith.constant 0 : i32
    %c0_i32_0 = arith.constant 0 : i32
    return %c0_i32, %arg0 : i32, i32
  }
  func.func @transform_2(%arg0: i32, %arg1: i32) -> (i32, i32) {
    %c0_i32 = arith.constant 0 : i32
    %c0_i32_0 = arith.constant 0 : i32
    return %c0_i32, %arg0 : i32, i32
  }
  func.func @transform_3(%arg0: i32, %arg1: i32) -> (i32, i32) {
    %c0_i32 = arith.constant 0 : i32
    return %arg1, %arg0 : i32, i32
  }
}

module attributes {stable_mosaic.version = 11 : i64} {
  func.func @_mm_bias_act_kernel(%arg0: i32, %arg1: i32, %arg2: memref<64x64xbf16, #tpu.memory_space<vmem>>, %arg3: memref<64x128xbf16, #tpu.memory_space<vmem>>, %arg4: memref<1x128xf32, #tpu.memory_space<vmem>>, %arg5: memref<64x128xbf16, #tpu.memory_space<vmem>>) attributes {dimension_semantics = [#tpu.dimension_semantics<parallel>, #tpu.dimension_semantics<parallel>], iteration_bounds = array<i64: 1, 2>, scalar_prefetch = 0 : i64, scratch_operands = 0 : i64, tpu.core_type = #tpu.core_type<tc>, window_params = [{transform_indices = @transform_0, window_bounds = array<i64: 64, 64>}, {transform_indices = @transform_1, window_bounds = array<i64: 64, 128>}, {transform_indices = @transform_2, window_bounds = array<i64: 1, 128>}, {transform_indices = @transform_3, window_bounds = array<i64: 64, 128>}]} {
    %c0 = arith.constant 0 : index
    %c0_0 = arith.constant 0 : index
    %0 = vector.load %arg2[%c0, %c0_0] : memref<64x64xbf16, #tpu.memory_space<vmem>>, vector<64x64xbf16>
    %c0_1 = arith.constant 0 : index
    %c0_2 = arith.constant 0 : index
    %1 = vector.load %arg3[%c0_1, %c0_2] : memref<64x128xbf16, #tpu.memory_space<vmem>>, vector<64x128xbf16>
    %cst = arith.constant dense<0.000000e+00> : vector<64x128xf32>
    %2 = tpu.matmul %0, %1, %cst {dimension_numbers = #tpu.dot_dimension_numbers<[1], [0], [0], [1], [0, 0, 1, 1], [], []>} : vector<64x64xbf16>, vector<64x128xbf16>, vector<64x128xf32> -> vector<64x128xf32>
    %c0_3 = arith.constant 0 : index
    %c0_4 = arith.constant 0 : index
    %3 = vector.load %arg4[%c0_3, %c0_4] : memref<1x128xf32, #tpu.memory_space<vmem>>, vector<1x128xf32>
    %4 = vector.broadcast %3 : vector<1x128xf32> to vector<64x128xf32>
    %5 = arith.addf %2, %4 : vector<64x128xf32>
    %cst_5 = arith.constant 0.000000e+00 : f32
    %6 = vector.broadcast %cst_5 : f32 to vector<64x128xf32>
    %7 = arith.maximumf %5, %6 : vector<64x128xf32>
    %8 = arith.truncf %7 : vector<64x128xf32> to vector<64x128xbf16>
    %c0_6 = arith.constant 0 : index
    %c0_7 = arith.constant 0 : index
    %9 = vector.load %arg5[%c0_6, %c0_7] : memref<64x128xbf16, #tpu.memory_space<vmem>>, vector<64x128xbf16>
    tpu.vector_store %arg5[%c0_6, %c0_7], %8 {strides = array<i32>} : memref<64x128xbf16, #tpu.memory_space<vmem>>, vector<64x128xbf16>,
    return
  }
  func.func @transform_0(%arg0: i32, %arg1: i32) -> (i32, i32) {
    %c0_i32 = arith.constant 0 : i32
    %c0_i32_0 = arith.constant 0 : i32
    return %arg1, %c0_i32 : i32, i32
  }
  func.func @transform_1(%arg0: i32, %arg1: i32) -> (i32, i32) {
    %c0_i32 = arith.constant 0 : i32
    %c0_i32_0 = arith.constant 0 : i32
    return %c0_i32, %arg0 : i32, i32
  }
  func.func @transform_2(%arg0: i32, %arg1: i32) -> (i32, i32) {
    %c0_i32 = arith.constant 0 : i32
    %c0_i32_0 = arith.constant 0 : i32
    return %c0_i32, %arg0 : i32, i32
  }
  func.func @transform_3(%arg0: i32, %arg1: i32) -> (i32, i32) {
    %c0_i32 = arith.constant 0 : i32
    return %arg1, %arg0 : i32, i32
  }
}

module attributes {stable_mosaic.version = 11 : i64} {
  func.func @_mm_bias_act_kernel(%arg0: i32, %arg1: i32, %arg2: memref<128x64xbf16, #tpu.memory_space<vmem>>, %arg3: memref<64x128xbf16, #tpu.memory_space<vmem>>, %arg4: memref<1x128xf32, #tpu.memory_space<vmem>>, %arg5: memref<128x128xbf16, #tpu.memory_space<vmem>>) attributes {dimension_semantics = [#tpu.dimension_semantics<parallel>, #tpu.dimension_semantics<parallel>], iteration_bounds = array<i64: 1, 2>, scalar_prefetch = 0 : i64, scratch_operands = 0 : i64, tpu.core_type = #tpu.core_type<tc>, window_params = [{transform_indices = @transform_0, window_bounds = array<i64: 128, 64>}, {transform_indices = @transform_1, window_bounds = array<i64: 64, 128>}, {transform_indices = @transform_2, window_bounds = array<i64: 1, 128>}, {transform_indices = @transform_3, window_bounds = array<i64: 128, 128>}]} {
    %c0 = arith.constant 0 : index
    %c0_0 = arith.constant 0 : index
    %0 = vector.load %arg2[%c0, %c0_0] : memref<128x64xbf16, #tpu.memory_space<vmem>>, vector<128x64xbf16>
    %c0_1 = arith.constant 0 : index
    %c0_2 = arith.constant 0 : index
    %1 = vector.load %arg3[%c0_1, %c0_2] : memref<64x128xbf16, #tpu.memory_space<vmem>>, vector<64x128xbf16>
    %cst = arith.constant dense<0.000000e+00> : vector<128x128xf32>
    %2 = tpu.matmul %0, %1, %cst {dimension_numbers = #tpu.dot_dimension_numbers<[1], [0], [0], [1], [0, 0, 1, 1], [], []>} : vector<128x64xbf16>, vector<64x128xbf16>, vector<128x128xf32> -> vector<128x128xf32>
    %c0_3 = arith.constant 0 : index
    %c0_4 = arith.constant 0 : index
    %3 = vector.load %arg4[%c0_3, %c0_4] : memref<1x128xf32, #tpu.memory_space<vmem>>, vector<1x128xf32>
    %4 = vector.broadcast %3 : vector<1x128xf32> to vector<128x128xf32>
    %5 = arith.addf %2, %4 : vector<128x128xf32>
    %6 = arith.truncf %5 : vector<128x128xf32> to vector<128x128xbf16>
    %c0_5 = arith.constant 0 : index
    %c0_6 = arith.constant 0 : index
    %7 = vector.load %arg5[%c0_5, %c0_6] : memref<128x128xbf16, #tpu.memory_space<vmem>>, vector<128x128xbf16>
    tpu.vector_store %arg5[%c0_5, %c0_6], %6 {strides = array<i32>} : memref<128x128xbf16, #tpu.memory_space<vmem>>, vector<128x128xbf16>,
    return
  }
  func.func @transform_0(%arg0: i32, %arg1: i32) -> (i32, i32) {
    %c0_i32 = arith.constant 0 : i32
    %c0_i32_0 = arith.constant 0 : i32
    return %arg0, %c0_i32 : i32, i32
  }
  func.func @transform_1(%arg0: i32, %arg1: i32) -> (i32, i32) {
    %c0_i32 = arith.constant 0 : i32
    %c0_i32_0 = arith.constant 0 : i32
    return %c0_i32, %arg1 : i32, i32
  }
  func.func @transform_2(%arg0: i32, %arg1: i32) -> (i32, i32) {
    %c0_i32 = arith.constant 0 : i32
    %c0_i32_0 = arith.constant 0 : i32
    return %c0_i32, %arg1 : i32, i32
  }
  func.func @transform_3(%arg0: i32, %arg1: i32) -> (i32, i32) {
    %c0_i32 = arith.constant 0 : i32
    return %arg0, %arg1 : i32, i32
  }
}

module attributes {stable_mosaic.version = 11 : i64} {
  func.func @_mm_bias_act_kernel(%arg0: i32, %arg1: i32, %arg2: memref<64x1152xbf16, #tpu.memory_space<vmem>>, %arg3: memref<1152x128xbf16, #tpu.memory_space<vmem>>, %arg4: memref<1x128xf32, #tpu.memory_space<vmem>>, %arg5: memref<64x128xbf16, #tpu.memory_space<vmem>>) attributes {dimension_semantics = [#tpu.dimension_semantics<parallel>, #tpu.dimension_semantics<parallel>], iteration_bounds = array<i64: 1, 2>, scalar_prefetch = 0 : i64, scratch_operands = 0 : i64, tpu.core_type = #tpu.core_type<tc>, window_params = [{transform_indices = @transform_0, window_bounds = array<i64: 64, 1152>}, {transform_indices = @transform_1, window_bounds = array<i64: 1152, 128>}, {transform_indices = @transform_2, window_bounds = array<i64: 1, 128>}, {transform_indices = @transform_3, window_bounds = array<i64: 64, 128>}]} {
    %c0 = arith.constant 0 : index
    %c0_0 = arith.constant 0 : index
    %0 = vector.load %arg2[%c0, %c0_0] : memref<64x1152xbf16, #tpu.memory_space<vmem>>, vector<64x1152xbf16>
    %c0_1 = arith.constant 0 : index
    %c0_2 = arith.constant 0 : index
    %1 = vector.load %arg3[%c0_1, %c0_2] : memref<1152x128xbf16, #tpu.memory_space<vmem>>, vector<1152x128xbf16>
    %cst = arith.constant dense<0.000000e+00> : vector<64x128xf32>
    %2 = tpu.matmul %0, %1, %cst {dimension_numbers = #tpu.dot_dimension_numbers<[1], [0], [0], [1], [0, 0, 1, 1], [], []>} : vector<64x1152xbf16>, vector<1152x128xbf16>, vector<64x128xf32> -> vector<64x128xf32>
    %c0_3 = arith.constant 0 : index
    %c0_4 = arith.constant 0 : index
    %3 = vector.load %arg4[%c0_3, %c0_4] : memref<1x128xf32, #tpu.memory_space<vmem>>, vector<1x128xf32>
    %4 = vector.broadcast %3 : vector<1x128xf32> to vector<64x128xf32>
    %5 = arith.addf %2, %4 : vector<64x128xf32>
    %cst_5 = arith.constant 0.000000e+00 : f32
    %6 = vector.broadcast %cst_5 : f32 to vector<64x128xf32>
    %7 = arith.maximumf %5, %6 : vector<64x128xf32>
    %8 = arith.truncf %7 : vector<64x128xf32> to vector<64x128xbf16>
    %c0_6 = arith.constant 0 : index
    %c0_7 = arith.constant 0 : index
    %9 = vector.load %arg5[%c0_6, %c0_7] : memref<64x128xbf16, #tpu.memory_space<vmem>>, vector<64x128xbf16>
    tpu.vector_store %arg5[%c0_6, %c0_7], %8 {strides = array<i32>} : memref<64x128xbf16, #tpu.memory_space<vmem>>, vector<64x128xbf16>,
    return
  }
  func.func @transform_0(%arg0: i32, %arg1: i32) -> (i32, i32) {
    %c0_i32 = arith.constant 0 : i32
    %c0_i32_0 = arith.constant 0 : i32
    return %arg1, %c0_i32 : i32, i32
  }
  func.func @transform_1(%arg0: i32, %arg1: i32) -> (i32, i32) {
    %c0_i32 = arith.constant 0 : i32
    %c0_i32_0 = arith.constant 0 : i32
    return %c0_i32, %arg0 : i32, i32
  }
  func.func @transform_2(%arg0: i32, %arg1: i32) -> (i32, i32) {
    %c0_i32 = arith.constant 0 : i32
    %c0_i32_0 = arith.constant 0 : i32
    return %c0_i32, %arg0 : i32, i32
  }
  func.func @transform_3(%arg0: i32, %arg1: i32) -> (i32, i32) {
    %c0_i32 = arith.constant 0 : i32
    return %arg1, %arg0 : i32, i32
  }
}

module attributes {stable_mosaic.version = 11 : i64} {
  func.func @_mm_bias_act_kernel(%arg0: i32, %arg1: i32, %arg2: memref<64x256xbf16, #tpu.memory_space<vmem>>, %arg3: memref<256x128xbf16, #tpu.memory_space<vmem>>, %arg4: memref<1x128xf32, #tpu.memory_space<vmem>>, %arg5: memref<64x128xbf16, #tpu.memory_space<vmem>>) attributes {dimension_semantics = [#tpu.dimension_semantics<parallel>, #tpu.dimension_semantics<parallel>], iteration_bounds = array<i64: 1, 2>, scalar_prefetch = 0 : i64, scratch_operands = 0 : i64, tpu.core_type = #tpu.core_type<tc>, window_params = [{transform_indices = @transform_0, window_bounds = array<i64: 64, 256>}, {transform_indices = @transform_1, window_bounds = array<i64: 256, 128>}, {transform_indices = @transform_2, window_bounds = array<i64: 1, 128>}, {transform_indices = @transform_3, window_bounds = array<i64: 64, 128>}]} {
    %c0 = arith.constant 0 : index
    %c0_0 = arith.constant 0 : index
    %0 = vector.load %arg2[%c0, %c0_0] : memref<64x256xbf16, #tpu.memory_space<vmem>>, vector<64x256xbf16>
    %c0_1 = arith.constant 0 : index
    %c0_2 = arith.constant 0 : index
    %1 = vector.load %arg3[%c0_1, %c0_2] : memref<256x128xbf16, #tpu.memory_space<vmem>>, vector<256x128xbf16>
    %cst = arith.constant dense<0.000000e+00> : vector<64x128xf32>
    %2 = tpu.matmul %0, %1, %cst {dimension_numbers = #tpu.dot_dimension_numbers<[1], [0], [0], [1], [0, 0, 1, 1], [], []>} : vector<64x256xbf16>, vector<256x128xbf16>, vector<64x128xf32> -> vector<64x128xf32>
    %c0_3 = arith.constant 0 : index
    %c0_4 = arith.constant 0 : index
    %3 = vector.load %arg4[%c0_3, %c0_4] : memref<1x128xf32, #tpu.memory_space<vmem>>, vector<1x128xf32>
    %4 = vector.broadcast %3 : vector<1x128xf32> to vector<64x128xf32>
    %5 = arith.addf %2, %4 : vector<64x128xf32>
    %cst_5 = arith.constant 0.000000e+00 : f32
    %6 = vector.broadcast %cst_5 : f32 to vector<64x128xf32>
    %7 = arith.maximumf %5, %6 : vector<64x128xf32>
    %8 = arith.truncf %7 : vector<64x128xf32> to vector<64x128xbf16>
    %c0_6 = arith.constant 0 : index
    %c0_7 = arith.constant 0 : index
    %9 = vector.load %arg5[%c0_6, %c0_7] : memref<64x128xbf16, #tpu.memory_space<vmem>>, vector<64x128xbf16>
    tpu.vector_store %arg5[%c0_6, %c0_7], %8 {strides = array<i32>} : memref<64x128xbf16, #tpu.memory_space<vmem>>, vector<64x128xbf16>,
    return
  }
  func.func @transform_0(%arg0: i32, %arg1: i32) -> (i32, i32) {
    %c0_i32 = arith.constant 0 : i32
    %c0_i32_0 = arith.constant 0 : i32
    return %arg1, %c0_i32 : i32, i32
  }
  func.func @transform_1(%arg0: i32, %arg1: i32) -> (i32, i32) {
    %c0_i32 = arith.constant 0 : i32
    %c0_i32_0 = arith.constant 0 : i32
    return %c0_i32, %arg0 : i32, i32
  }
  func.func @transform_2(%arg0: i32, %arg1: i32) -> (i32, i32) {
    %c0_i32 = arith.constant 0 : i32
    %c0_i32_0 = arith.constant 0 : i32
    return %c0_i32, %arg0 : i32, i32
  }
  func.func @transform_3(%arg0: i32, %arg1: i32) -> (i32, i32) {
    %c0_i32 = arith.constant 0 : i32
    return %arg1, %arg0 : i32, i32
  }
}

module attributes {stable_mosaic.version = 11 : i64} {
  func.func @_mm_bias_add_relu_kernel(%arg0: i32, %arg1: i32, %arg2: memref<128x128xbf16, #tpu.memory_space<vmem>>, %arg3: memref<128x128xbf16, #tpu.memory_space<vmem>>, %arg4: memref<1x128xf32, #tpu.memory_space<vmem>>, %arg5: memref<128x128xbf16, #tpu.memory_space<vmem>>, %arg6: memref<128x128xbf16, #tpu.memory_space<vmem>>) attributes {dimension_semantics = [#tpu.dimension_semantics<parallel>, #tpu.dimension_semantics<parallel>], iteration_bounds = array<i64: 1, 2>, scalar_prefetch = 0 : i64, scratch_operands = 0 : i64, tpu.core_type = #tpu.core_type<tc>, window_params = [{transform_indices = @transform_0, window_bounds = array<i64: 128, 128>}, {transform_indices = @transform_1, window_bounds = array<i64: 128, 128>}, {transform_indices = @transform_2, window_bounds = array<i64: 1, 128>}, {transform_indices = @transform_3, window_bounds = array<i64: 128, 128>}, {transform_indices = @transform_4, window_bounds = array<i64: 128, 128>}]} {
    %c0 = arith.constant 0 : index
    %c0_0 = arith.constant 0 : index
    %0 = vector.load %arg2[%c0, %c0_0] : memref<128x128xbf16, #tpu.memory_space<vmem>>, vector<128x128xbf16>
    %c0_1 = arith.constant 0 : index
    %c0_2 = arith.constant 0 : index
    %1 = vector.load %arg3[%c0_1, %c0_2] : memref<128x128xbf16, #tpu.memory_space<vmem>>, vector<128x128xbf16>
    %cst = arith.constant dense<0.000000e+00> : vector<128x128xf32>
    %2 = tpu.matmul %0, %1, %cst {dimension_numbers = #tpu.dot_dimension_numbers<[1], [0], [0], [1], [0, 0, 1, 1], [], []>} : vector<128x128xbf16>, vector<128x128xbf16>, vector<128x128xf32> -> vector<128x128xf32>
    %c0_3 = arith.constant 0 : index
    %c0_4 = arith.constant 0 : index
    %3 = vector.load %arg4[%c0_3, %c0_4] : memref<1x128xf32, #tpu.memory_space<vmem>>, vector<1x128xf32>
    %4 = vector.broadcast %3 : vector<1x128xf32> to vector<128x128xf32>
    %5 = arith.addf %2, %4 : vector<128x128xf32>
    %c0_5 = arith.constant 0 : index
    %c0_6 = arith.constant 0 : index
    %6 = vector.load %arg5[%c0_5, %c0_6] : memref<128x128xbf16, #tpu.memory_space<vmem>>, vector<128x128xbf16>
    %7 = arith.extf %6 : vector<128x128xbf16> to vector<128x128xf32>
    %8 = arith.addf %5, %7 : vector<128x128xf32>
    %cst_7 = arith.constant 0.000000e+00 : f32
    %9 = vector.broadcast %cst_7 : f32 to vector<128x128xf32>
    %10 = arith.maximumf %8, %9 : vector<128x128xf32>
    %11 = arith.truncf %10 : vector<128x128xf32> to vector<128x128xbf16>
    %c0_8 = arith.constant 0 : index
    %c0_9 = arith.constant 0 : index
    %12 = vector.load %arg6[%c0_8, %c0_9] : memref<128x128xbf16, #tpu.memory_space<vmem>>, vector<128x128xbf16>
    tpu.vector_store %arg6[%c0_8, %c0_9], %11 {strides = array<i32>} : memref<128x128xbf16, #tpu.memory_space<vmem>>, vector<128x128xbf16>,
    return
  }
  func.func @transform_0(%arg0: i32, %arg1: i32) -> (i32, i32) {
    %c0_i32 = arith.constant 0 : i32
    %c0_i32_0 = arith.constant 0 : i32
    return %arg0, %c0_i32 : i32, i32
  }
  func.func @transform_1(%arg0: i32, %arg1: i32) -> (i32, i32) {
    %c0_i32 = arith.constant 0 : i32
    %c0_i32_0 = arith.constant 0 : i32
    return %c0_i32, %arg1 : i32, i32
  }
  func.func @transform_2(%arg0: i32, %arg1: i32) -> (i32, i32) {
    %c0_i32 = arith.constant 0 : i32
    %c0_i32_0 = arith.constant 0 : i32
    return %c0_i32, %arg1 : i32, i32
  }
  func.func @transform_3(%arg0: i32, %arg1: i32) -> (i32, i32) {
    %c0_i32 = arith.constant 0 : i32
    return %arg0, %arg1 : i32, i32
  }
  func.func @transform_4(%arg0: i32, %arg1: i32) -> (i32, i32) {
    %c0_i32 = arith.constant 0 : i32
    return %arg0, %arg1 : i32, i32
  }
}

module attributes {stable_mosaic.version = 11 : i64} {
  func.func @_mm_bias_act_kernel(%arg0: i32, %arg1: i32, %arg2: memref<128x256xbf16, #tpu.memory_space<vmem>>, %arg3: memref<256x128xbf16, #tpu.memory_space<vmem>>, %arg4: memref<1x128xf32, #tpu.memory_space<vmem>>, %arg5: memref<128x128xbf16, #tpu.memory_space<vmem>>) attributes {dimension_semantics = [#tpu.dimension_semantics<parallel>, #tpu.dimension_semantics<parallel>], iteration_bounds = array<i64: 1, 2>, scalar_prefetch = 0 : i64, scratch_operands = 0 : i64, tpu.core_type = #tpu.core_type<tc>, window_params = [{transform_indices = @transform_0, window_bounds = array<i64: 128, 256>}, {transform_indices = @transform_1, window_bounds = array<i64: 256, 128>}, {transform_indices = @transform_2, window_bounds = array<i64: 1, 128>}, {transform_indices = @transform_3, window_bounds = array<i64: 128, 128>}]} {
    %c0 = arith.constant 0 : index
    %c0_0 = arith.constant 0 : index
    %0 = vector.load %arg2[%c0, %c0_0] : memref<128x256xbf16, #tpu.memory_space<vmem>>, vector<128x256xbf16>
    %c0_1 = arith.constant 0 : index
    %c0_2 = arith.constant 0 : index
    %1 = vector.load %arg3[%c0_1, %c0_2] : memref<256x128xbf16, #tpu.memory_space<vmem>>, vector<256x128xbf16>
    %cst = arith.constant dense<0.000000e+00> : vector<128x128xf32>
    %2 = tpu.matmul %0, %1, %cst {dimension_numbers = #tpu.dot_dimension_numbers<[1], [0], [0], [1], [0, 0, 1, 1], [], []>} : vector<128x256xbf16>, vector<256x128xbf16>, vector<128x128xf32> -> vector<128x128xf32>
    %c0_3 = arith.constant 0 : index
    %c0_4 = arith.constant 0 : index
    %3 = vector.load %arg4[%c0_3, %c0_4] : memref<1x128xf32, #tpu.memory_space<vmem>>, vector<1x128xf32>
    %4 = vector.broadcast %3 : vector<1x128xf32> to vector<128x128xf32>
    %5 = arith.addf %2, %4 : vector<128x128xf32>
    %cst_5 = arith.constant 0.000000e+00 : f32
    %6 = vector.broadcast %cst_5 : f32 to vector<128x128xf32>
    %7 = arith.maximumf %5, %6 : vector<128x128xf32>
    %8 = arith.truncf %7 : vector<128x128xf32> to vector<128x128xbf16>
    %c0_6 = arith.constant 0 : index
    %c0_7 = arith.constant 0 : index
    %9 = vector.load %arg5[%c0_6, %c0_7] : memref<128x128xbf16, #tpu.memory_space<vmem>>, vector<128x128xbf16>
    tpu.vector_store %arg5[%c0_6, %c0_7], %8 {strides = array<i32>} : memref<128x128xbf16, #tpu.memory_space<vmem>>, vector<128x128xbf16>,
    return
  }
  func.func @transform_0(%arg0: i32, %arg1: i32) -> (i32, i32) {
    %c0_i32 = arith.constant 0 : i32
    %c0_i32_0 = arith.constant 0 : i32
    return %arg0, %c0_i32 : i32, i32
  }
  func.func @transform_1(%arg0: i32, %arg1: i32) -> (i32, i32) {
    %c0_i32 = arith.constant 0 : i32
    %c0_i32_0 = arith.constant 0 : i32
    return %c0_i32, %arg1 : i32, i32
  }
  func.func @transform_2(%arg0: i32, %arg1: i32) -> (i32, i32) {
    %c0_i32 = arith.constant 0 : i32
    %c0_i32_0 = arith.constant 0 : i32
    return %c0_i32, %arg1 : i32, i32
  }
  func.func @transform_3(%arg0: i32, %arg1: i32) -> (i32, i32) {
    %c0_i32 = arith.constant 0 : i32
    return %arg0, %arg1 : i32, i32
  }
}

module attributes {stable_mosaic.version = 11 : i64} {
  func.func @_mm_bias_act_kernel(%arg0: i32, %arg1: i32, %arg2: memref<32x256xbf16, #tpu.memory_space<vmem>>, %arg3: memref<256x256xbf16, #tpu.memory_space<vmem>>, %arg4: memref<1x256xf32, #tpu.memory_space<vmem>>, %arg5: memref<32x256xbf16, #tpu.memory_space<vmem>>) attributes {dimension_semantics = [#tpu.dimension_semantics<parallel>, #tpu.dimension_semantics<parallel>], iteration_bounds = array<i64: 1, 2>, scalar_prefetch = 0 : i64, scratch_operands = 0 : i64, tpu.core_type = #tpu.core_type<tc>, window_params = [{transform_indices = @transform_0, window_bounds = array<i64: 32, 256>}, {transform_indices = @transform_1, window_bounds = array<i64: 256, 256>}, {transform_indices = @transform_2, window_bounds = array<i64: 1, 256>}, {transform_indices = @transform_3, window_bounds = array<i64: 32, 256>}]} {
    %c0 = arith.constant 0 : index
    %c0_0 = arith.constant 0 : index
    %0 = vector.load %arg2[%c0, %c0_0] : memref<32x256xbf16, #tpu.memory_space<vmem>>, vector<32x256xbf16>
    %c0_1 = arith.constant 0 : index
    %c0_2 = arith.constant 0 : index
    %1 = vector.load %arg3[%c0_1, %c0_2] : memref<256x256xbf16, #tpu.memory_space<vmem>>, vector<256x256xbf16>
    %cst = arith.constant dense<0.000000e+00> : vector<32x256xf32>
    %2 = tpu.matmul %0, %1, %cst {dimension_numbers = #tpu.dot_dimension_numbers<[1], [0], [0], [1], [0, 0, 1, 1], [], []>} : vector<32x256xbf16>, vector<256x256xbf16>, vector<32x256xf32> -> vector<32x256xf32>
    %c0_3 = arith.constant 0 : index
    %c0_4 = arith.constant 0 : index
    %3 = vector.load %arg4[%c0_3, %c0_4] : memref<1x256xf32, #tpu.memory_space<vmem>>, vector<1x256xf32>
    %4 = vector.broadcast %3 : vector<1x256xf32> to vector<32x256xf32>
    %5 = arith.addf %2, %4 : vector<32x256xf32>
    %6 = arith.truncf %5 : vector<32x256xf32> to vector<32x256xbf16>
    %c0_5 = arith.constant 0 : index
    %c0_6 = arith.constant 0 : index
    %7 = vector.load %arg5[%c0_5, %c0_6] : memref<32x256xbf16, #tpu.memory_space<vmem>>, vector<32x256xbf16>
    tpu.vector_store %arg5[%c0_5, %c0_6], %6 {strides = array<i32>} : memref<32x256xbf16, #tpu.memory_space<vmem>>, vector<32x256xbf16>,
    return
  }
  func.func @transform_0(%arg0: i32, %arg1: i32) -> (i32, i32) {
    %c0_i32 = arith.constant 0 : i32
    %c0_i32_0 = arith.constant 0 : i32
    return %arg0, %c0_i32 : i32, i32
  }
  func.func @transform_1(%arg0: i32, %arg1: i32) -> (i32, i32) {
    %c0_i32 = arith.constant 0 : i32
    %c0_i32_0 = arith.constant 0 : i32
    return %c0_i32, %arg1 : i32, i32
  }
  func.func @transform_2(%arg0: i32, %arg1: i32) -> (i32, i32) {
    %c0_i32 = arith.constant 0 : i32
    %c0_i32_0 = arith.constant 0 : i32
    return %c0_i32, %arg1 : i32, i32
  }
  func.func @transform_3(%arg0: i32, %arg1: i32) -> (i32, i32) {
    %c0_i32 = arith.constant 0 : i32
    return %arg0, %arg1 : i32, i32
  }
}

module attributes {stable_mosaic.version = 11 : i64} {
  func.func @_mm_bias_act_kernel(%arg0: i32, %arg1: i32, %arg2: memref<32x2304xbf16, #tpu.memory_space<vmem>>, %arg3: memref<2304x128xbf16, #tpu.memory_space<vmem>>, %arg4: memref<1x128xf32, #tpu.memory_space<vmem>>, %arg5: memref<32x128xbf16, #tpu.memory_space<vmem>>) attributes {dimension_semantics = [#tpu.dimension_semantics<parallel>, #tpu.dimension_semantics<parallel>], iteration_bounds = array<i64: 1, 2>, scalar_prefetch = 0 : i64, scratch_operands = 0 : i64, tpu.core_type = #tpu.core_type<tc>, window_params = [{transform_indices = @transform_0, window_bounds = array<i64: 32, 2304>}, {transform_indices = @transform_1, window_bounds = array<i64: 2304, 128>}, {transform_indices = @transform_2, window_bounds = array<i64: 1, 128>}, {transform_indices = @transform_3, window_bounds = array<i64: 32, 128>}]} {
    %c0 = arith.constant 0 : index
    %c0_0 = arith.constant 0 : index
    %0 = vector.load %arg2[%c0, %c0_0] : memref<32x2304xbf16, #tpu.memory_space<vmem>>, vector<32x2304xbf16>
    %c0_1 = arith.constant 0 : index
    %c0_2 = arith.constant 0 : index
    %1 = vector.load %arg3[%c0_1, %c0_2] : memref<2304x128xbf16, #tpu.memory_space<vmem>>, vector<2304x128xbf16>
    %cst = arith.constant dense<0.000000e+00> : vector<32x128xf32>
    %2 = tpu.matmul %0, %1, %cst {dimension_numbers = #tpu.dot_dimension_numbers<[1], [0], [0], [1], [0, 0, 1, 1], [], []>} : vector<32x2304xbf16>, vector<2304x128xbf16>, vector<32x128xf32> -> vector<32x128xf32>
    %c0_3 = arith.constant 0 : index
    %c0_4 = arith.constant 0 : index
    %3 = vector.load %arg4[%c0_3, %c0_4] : memref<1x128xf32, #tpu.memory_space<vmem>>, vector<1x128xf32>
    %4 = vector.broadcast %3 : vector<1x128xf32> to vector<32x128xf32>
    %5 = arith.addf %2, %4 : vector<32x128xf32>
    %cst_5 = arith.constant 0.000000e+00 : f32
    %6 = vector.broadcast %cst_5 : f32 to vector<32x128xf32>
    %7 = arith.maximumf %5, %6 : vector<32x128xf32>
    %8 = arith.truncf %7 : vector<32x128xf32> to vector<32x128xbf16>
    %c0_6 = arith.constant 0 : index
    %c0_7 = arith.constant 0 : index
    %9 = vector.load %arg5[%c0_6, %c0_7] : memref<32x128xbf16, #tpu.memory_space<vmem>>, vector<32x128xbf16>
    tpu.vector_store %arg5[%c0_6, %c0_7], %8 {strides = array<i32>} : memref<32x128xbf16, #tpu.memory_space<vmem>>, vector<32x128xbf16>,
    return
  }
  func.func @transform_0(%arg0: i32, %arg1: i32) -> (i32, i32) {
    %c0_i32 = arith.constant 0 : i32
    %c0_i32_0 = arith.constant 0 : i32
    return %arg0, %c0_i32 : i32, i32
  }
  func.func @transform_1(%arg0: i32, %arg1: i32) -> (i32, i32) {
    %c0_i32 = arith.constant 0 : i32
    %c0_i32_0 = arith.constant 0 : i32
    return %c0_i32, %arg1 : i32, i32
  }
  func.func @transform_2(%arg0: i32, %arg1: i32) -> (i32, i32) {
    %c0_i32 = arith.constant 0 : i32
    %c0_i32_0 = arith.constant 0 : i32
    return %c0_i32, %arg1 : i32, i32
  }
  func.func @transform_3(%arg0: i32, %arg1: i32) -> (i32, i32) {
    %c0_i32 = arith.constant 0 : i32
    return %arg0, %arg1 : i32, i32
  }
}

module attributes {stable_mosaic.version = 11 : i64} {
  func.func @_mm_bias_add_relu_kernel(%arg0: i32, %arg1: i32, %arg2: memref<32x256xbf16, #tpu.memory_space<vmem>>, %arg3: memref<256x256xbf16, #tpu.memory_space<vmem>>, %arg4: memref<1x256xf32, #tpu.memory_space<vmem>>, %arg5: memref<32x256xbf16, #tpu.memory_space<vmem>>, %arg6: memref<32x256xbf16, #tpu.memory_space<vmem>>) attributes {dimension_semantics = [#tpu.dimension_semantics<parallel>, #tpu.dimension_semantics<parallel>], iteration_bounds = array<i64: 1, 2>, scalar_prefetch = 0 : i64, scratch_operands = 0 : i64, tpu.core_type = #tpu.core_type<tc>, window_params = [{transform_indices = @transform_0, window_bounds = array<i64: 32, 256>}, {transform_indices = @transform_1, window_bounds = array<i64: 256, 256>}, {transform_indices = @transform_2, window_bounds = array<i64: 1, 256>}, {transform_indices = @transform_3, window_bounds = array<i64: 32, 256>}, {transform_indices = @transform_4, window_bounds = array<i64: 32, 256>}]} {
    %c0 = arith.constant 0 : index
    %c0_0 = arith.constant 0 : index
    %0 = vector.load %arg2[%c0, %c0_0] : memref<32x256xbf16, #tpu.memory_space<vmem>>, vector<32x256xbf16>
    %c0_1 = arith.constant 0 : index
    %c0_2 = arith.constant 0 : index
    %1 = vector.load %arg3[%c0_1, %c0_2] : memref<256x256xbf16, #tpu.memory_space<vmem>>, vector<256x256xbf16>
    %cst = arith.constant dense<0.000000e+00> : vector<32x256xf32>
    %2 = tpu.matmul %0, %1, %cst {dimension_numbers = #tpu.dot_dimension_numbers<[1], [0], [0], [1], [0, 0, 1, 1], [], []>} : vector<32x256xbf16>, vector<256x256xbf16>, vector<32x256xf32> -> vector<32x256xf32>
    %c0_3 = arith.constant 0 : index
    %c0_4 = arith.constant 0 : index
    %3 = vector.load %arg4[%c0_3, %c0_4] : memref<1x256xf32, #tpu.memory_space<vmem>>, vector<1x256xf32>
    %4 = vector.broadcast %3 : vector<1x256xf32> to vector<32x256xf32>
    %5 = arith.addf %2, %4 : vector<32x256xf32>
    %c0_5 = arith.constant 0 : index
    %c0_6 = arith.constant 0 : index
    %6 = vector.load %arg5[%c0_5, %c0_6] : memref<32x256xbf16, #tpu.memory_space<vmem>>, vector<32x256xbf16>
    %7 = arith.extf %6 : vector<32x256xbf16> to vector<32x256xf32>
    %8 = arith.addf %5, %7 : vector<32x256xf32>
    %cst_7 = arith.constant 0.000000e+00 : f32
    %9 = vector.broadcast %cst_7 : f32 to vector<32x256xf32>
    %10 = arith.maximumf %8, %9 : vector<32x256xf32>
    %11 = arith.truncf %10 : vector<32x256xf32> to vector<32x256xbf16>
    %c0_8 = arith.constant 0 : index
    %c0_9 = arith.constant 0 : index
    %12 = vector.load %arg6[%c0_8, %c0_9] : memref<32x256xbf16, #tpu.memory_space<vmem>>, vector<32x256xbf16>
    tpu.vector_store %arg6[%c0_8, %c0_9], %11 {strides = array<i32>} : memref<32x256xbf16, #tpu.memory_space<vmem>>, vector<32x256xbf16>,
    return
  }
  func.func @transform_0(%arg0: i32, %arg1: i32) -> (i32, i32) {
    %c0_i32 = arith.constant 0 : i32
    %c0_i32_0 = arith.constant 0 : i32
    return %arg0, %c0_i32 : i32, i32
  }
  func.func @transform_1(%arg0: i32, %arg1: i32) -> (i32, i32) {
    %c0_i32 = arith.constant 0 : i32
    %c0_i32_0 = arith.constant 0 : i32
    return %c0_i32, %arg1 : i32, i32
  }
  func.func @transform_2(%arg0: i32, %arg1: i32) -> (i32, i32) {
    %c0_i32 = arith.constant 0 : i32
    %c0_i32_0 = arith.constant 0 : i32
    return %c0_i32, %arg1 : i32, i32
  }
  func.func @transform_3(%arg0: i32, %arg1: i32) -> (i32, i32) {
    %c0_i32 = arith.constant 0 : i32
    return %arg0, %arg1 : i32, i32
  }
  func.func @transform_4(%arg0: i32, %arg1: i32) -> (i32, i32) {
    %c0_i32 = arith.constant 0 : i32
    return %arg0, %arg1 : i32, i32
  }
}

module attributes {stable_mosaic.version = 11 : i64} {
  func.func @_mm_bias_act_kernel(%arg0: i32, %arg1: i32, %arg2: memref<32x512xbf16, #tpu.memory_space<vmem>>, %arg3: memref<512x128xbf16, #tpu.memory_space<vmem>>, %arg4: memref<1x128xf32, #tpu.memory_space<vmem>>, %arg5: memref<32x128xbf16, #tpu.memory_space<vmem>>) attributes {dimension_semantics = [#tpu.dimension_semantics<parallel>, #tpu.dimension_semantics<parallel>], iteration_bounds = array<i64: 1, 2>, scalar_prefetch = 0 : i64, scratch_operands = 0 : i64, tpu.core_type = #tpu.core_type<tc>, window_params = [{transform_indices = @transform_0, window_bounds = array<i64: 32, 512>}, {transform_indices = @transform_1, window_bounds = array<i64: 512, 128>}, {transform_indices = @transform_2, window_bounds = array<i64: 1, 128>}, {transform_indices = @transform_3, window_bounds = array<i64: 32, 128>}]} {
    %c0 = arith.constant 0 : index
    %c0_0 = arith.constant 0 : index
    %0 = vector.load %arg2[%c0, %c0_0] : memref<32x512xbf16, #tpu.memory_space<vmem>>, vector<32x512xbf16>
    %c0_1 = arith.constant 0 : index
    %c0_2 = arith.constant 0 : index
    %1 = vector.load %arg3[%c0_1, %c0_2] : memref<512x128xbf16, #tpu.memory_space<vmem>>, vector<512x128xbf16>
    %cst = arith.constant dense<0.000000e+00> : vector<32x128xf32>
    %2 = tpu.matmul %0, %1, %cst {dimension_numbers = #tpu.dot_dimension_numbers<[1], [0], [0], [1], [0, 0, 1, 1], [], []>} : vector<32x512xbf16>, vector<512x128xbf16>, vector<32x128xf32> -> vector<32x128xf32>
    %c0_3 = arith.constant 0 : index
    %c0_4 = arith.constant 0 : index
    %3 = vector.load %arg4[%c0_3, %c0_4] : memref<1x128xf32, #tpu.memory_space<vmem>>, vector<1x128xf32>
    %4 = vector.broadcast %3 : vector<1x128xf32> to vector<32x128xf32>
    %5 = arith.addf %2, %4 : vector<32x128xf32>
    %cst_5 = arith.constant 0.000000e+00 : f32
    %6 = vector.broadcast %cst_5 : f32 to vector<32x128xf32>
    %7 = arith.maximumf %5, %6 : vector<32x128xf32>
    %8 = arith.truncf %7 : vector<32x128xf32> to vector<32x128xbf16>
    %c0_6 = arith.constant 0 : index
    %c0_7 = arith.constant 0 : index
    %9 = vector.load %arg5[%c0_6, %c0_7] : memref<32x128xbf16, #tpu.memory_space<vmem>>, vector<32x128xbf16>
    tpu.vector_store %arg5[%c0_6, %c0_7], %8 {strides = array<i32>} : memref<32x128xbf16, #tpu.memory_space<vmem>>, vector<32x128xbf16>,
    return
  }
  func.func @transform_0(%arg0: i32, %arg1: i32) -> (i32, i32) {
    %c0_i32 = arith.constant 0 : i32
    %c0_i32_0 = arith.constant 0 : i32
    return %arg0, %c0_i32 : i32, i32
  }
  func.func @transform_1(%arg0: i32, %arg1: i32) -> (i32, i32) {
    %c0_i32 = arith.constant 0 : i32
    %c0_i32_0 = arith.constant 0 : i32
    return %c0_i32, %arg1 : i32, i32
  }
  func.func @transform_2(%arg0: i32, %arg1: i32) -> (i32, i32) {
    %c0_i32 = arith.constant 0 : i32
    %c0_i32_0 = arith.constant 0 : i32
    return %c0_i32, %arg1 : i32, i32
  }
  func.func @transform_3(%arg0: i32, %arg1: i32) -> (i32, i32) {
    %c0_i32 = arith.constant 0 : i32
    return %arg0, %arg1 : i32, i32
  }
}

module attributes {stable_mosaic.version = 11 : i64} {
  func.func @_mm_bias_act_kernel(%arg0: i32, %arg1: i32, %arg2: memref<32x512xbf16, #tpu.memory_space<vmem>>, %arg3: memref<512x256xbf16, #tpu.memory_space<vmem>>, %arg4: memref<1x256xf32, #tpu.memory_space<vmem>>, %arg5: memref<32x256xbf16, #tpu.memory_space<vmem>>) attributes {dimension_semantics = [#tpu.dimension_semantics<parallel>, #tpu.dimension_semantics<parallel>], iteration_bounds = array<i64: 1, 4>, scalar_prefetch = 0 : i64, scratch_operands = 0 : i64, tpu.core_type = #tpu.core_type<tc>, window_params = [{transform_indices = @transform_0, window_bounds = array<i64: 32, 512>}, {transform_indices = @transform_1, window_bounds = array<i64: 512, 256>}, {transform_indices = @transform_2, window_bounds = array<i64: 1, 256>}, {transform_indices = @transform_3, window_bounds = array<i64: 32, 256>}]} {
    %c0 = arith.constant 0 : index
    %c0_0 = arith.constant 0 : index
    %0 = vector.load %arg2[%c0, %c0_0] : memref<32x512xbf16, #tpu.memory_space<vmem>>, vector<32x512xbf16>
    %c0_1 = arith.constant 0 : index
    %c0_2 = arith.constant 0 : index
    %1 = vector.load %arg3[%c0_1, %c0_2] : memref<512x256xbf16, #tpu.memory_space<vmem>>, vector<512x256xbf16>
    %cst = arith.constant dense<0.000000e+00> : vector<32x256xf32>
    %2 = tpu.matmul %0, %1, %cst {dimension_numbers = #tpu.dot_dimension_numbers<[1], [0], [0], [1], [0, 0, 1, 1], [], []>} : vector<32x512xbf16>, vector<512x256xbf16>, vector<32x256xf32> -> vector<32x256xf32>
    %c0_3 = arith.constant 0 : index
    %c0_4 = arith.constant 0 : index
    %3 = vector.load %arg4[%c0_3, %c0_4] : memref<1x256xf32, #tpu.memory_space<vmem>>, vector<1x256xf32>
    %4 = vector.broadcast %3 : vector<1x256xf32> to vector<32x256xf32>
    %5 = arith.addf %2, %4 : vector<32x256xf32>
    %cst_5 = arith.constant 0.000000e+00 : f32
    %6 = vector.broadcast %cst_5 : f32 to vector<32x256xf32>
    %7 = arith.maximumf %5, %6 : vector<32x256xf32>
    %8 = arith.truncf %7 : vector<32x256xf32> to vector<32x256xbf16>
    %c0_6 = arith.constant 0 : index
    %c0_7 = arith.constant 0 : index
    %9 = vector.load %arg5[%c0_6, %c0_7] : memref<32x256xbf16, #tpu.memory_space<vmem>>, vector<32x256xbf16>
    tpu.vector_store %arg5[%c0_6, %c0_7], %8 {strides = array<i32>} : memref<32x256xbf16, #tpu.memory_space<vmem>>, vector<32x256xbf16>,
    return
  }
  func.func @transform_0(%arg0: i32, %arg1: i32) -> (i32, i32) {
    %c0_i32 = arith.constant 0 : i32
    %c0_i32_0 = arith.constant 0 : i32
    return %arg0, %c0_i32 : i32, i32
  }
  func.func @transform_1(%arg0: i32, %arg1: i32) -> (i32, i32) {
    %c0_i32 = arith.constant 0 : i32
    %c0_i32_0 = arith.constant 0 : i32
    return %c0_i32, %arg1 : i32, i32
  }
  func.func @transform_2(%arg0: i32, %arg1: i32) -> (i32, i32) {
    %c0_i32 = arith.constant 0 : i32
    %c0_i32_0 = arith.constant 0 : i32
    return %c0_i32, %arg1 : i32, i32
  }
  func.func @transform_3(%arg0: i32, %arg1: i32) -> (i32, i32) {
    %c0_i32 = arith.constant 0 : i32
    return %arg0, %arg1 : i32, i32
  }
}

module attributes {stable_mosaic.version = 11 : i64} {
  func.func @_mm_bias_act_kernel(%arg0: i32, %arg1: i32, %arg2: memref<128x256xbf16, #tpu.memory_space<vmem>>, %arg3: memref<256x256xbf16, #tpu.memory_space<vmem>>, %arg4: memref<1x256xf32, #tpu.memory_space<vmem>>, %arg5: memref<128x256xbf16, #tpu.memory_space<vmem>>) attributes {dimension_semantics = [#tpu.dimension_semantics<parallel>, #tpu.dimension_semantics<parallel>], iteration_bounds = array<i64: 1, 2>, scalar_prefetch = 0 : i64, scratch_operands = 0 : i64, tpu.core_type = #tpu.core_type<tc>, window_params = [{transform_indices = @transform_0, window_bounds = array<i64: 128, 256>}, {transform_indices = @transform_1, window_bounds = array<i64: 256, 256>}, {transform_indices = @transform_2, window_bounds = array<i64: 1, 256>}, {transform_indices = @transform_3, window_bounds = array<i64: 128, 256>}]} {
    %c0 = arith.constant 0 : index
    %c0_0 = arith.constant 0 : index
    %0 = vector.load %arg2[%c0, %c0_0] : memref<128x256xbf16, #tpu.memory_space<vmem>>, vector<128x256xbf16>
    %c0_1 = arith.constant 0 : index
    %c0_2 = arith.constant 0 : index
    %1 = vector.load %arg3[%c0_1, %c0_2] : memref<256x256xbf16, #tpu.memory_space<vmem>>, vector<256x256xbf16>
    %cst = arith.constant dense<0.000000e+00> : vector<128x256xf32>
    %2 = tpu.matmul %0, %1, %cst {dimension_numbers = #tpu.dot_dimension_numbers<[1], [0], [0], [1], [0, 0, 1, 1], [], []>} : vector<128x256xbf16>, vector<256x256xbf16>, vector<128x256xf32> -> vector<128x256xf32>
    %c0_3 = arith.constant 0 : index
    %c0_4 = arith.constant 0 : index
    %3 = vector.load %arg4[%c0_3, %c0_4] : memref<1x256xf32, #tpu.memory_space<vmem>>, vector<1x256xf32>
    %4 = vector.broadcast %3 : vector<1x256xf32> to vector<128x256xf32>
    %5 = arith.addf %2, %4 : vector<128x256xf32>
    %cst_5 = arith.constant 0.000000e+00 : f32
    %6 = vector.broadcast %cst_5 : f32 to vector<128x256xf32>
    %7 = arith.maximumf %5, %6 : vector<128x256xf32>
    %8 = arith.truncf %7 : vector<128x256xf32> to vector<128x256xbf16>
    %c0_6 = arith.constant 0 : index
    %c0_7 = arith.constant 0 : index
    %9 = vector.load %arg5[%c0_6, %c0_7] : memref<128x256xbf16, #tpu.memory_space<vmem>>, vector<128x256xbf16>
    tpu.vector_store %arg5[%c0_6, %c0_7], %8 {strides = array<i32>} : memref<128x256xbf16, #tpu.memory_space<vmem>>, vector<128x256xbf16>,
    return
  }
  func.func @transform_0(%arg0: i32, %arg1: i32) -> (i32, i32) {
    %c0_i32 = arith.constant 0 : i32
    %c0_i32_0 = arith.constant 0 : i32
    return %arg0, %c0_i32 : i32, i32
  }
  func.func @transform_1(%arg0: i32, %arg1: i32) -> (i32, i32) {
    %c0_i32 = arith.constant 0 : i32
    %c0_i32_0 = arith.constant 0 : i32
    return %c0_i32, %arg1 : i32, i32
  }
  func.func @transform_2(%arg0: i32, %arg1: i32) -> (i32, i32) {
    %c0_i32 = arith.constant 0 : i32
    %c0_i32_0 = arith.constant 0 : i32
    return %c0_i32, %arg1 : i32, i32
  }
  func.func @transform_3(%arg0: i32, %arg1: i32) -> (i32, i32) {
    %c0_i32 = arith.constant 0 : i32
    return %arg0, %arg1 : i32, i32
  }
}

module attributes {stable_mosaic.version = 11 : i64} {
  func.func @_mm_bias_act_kernel(%arg0: i32, %arg1: i32, %arg2: memref<256x128xbf16, #tpu.memory_space<vmem>>, %arg3: memref<128x128xbf16, #tpu.memory_space<vmem>>, %arg4: memref<1x128xf32, #tpu.memory_space<vmem>>, %arg5: memref<256x128xbf16, #tpu.memory_space<vmem>>) attributes {dimension_semantics = [#tpu.dimension_semantics<parallel>, #tpu.dimension_semantics<parallel>], iteration_bounds = array<i64: 2, 2>, scalar_prefetch = 0 : i64, scratch_operands = 0 : i64, tpu.core_type = #tpu.core_type<tc>, window_params = [{transform_indices = @transform_0, window_bounds = array<i64: 256, 128>}, {transform_indices = @transform_1, window_bounds = array<i64: 128, 128>}, {transform_indices = @transform_2, window_bounds = array<i64: 1, 128>}, {transform_indices = @transform_3, window_bounds = array<i64: 256, 128>}]} {
    %c0 = arith.constant 0 : index
    %c0_0 = arith.constant 0 : index
    %0 = vector.load %arg2[%c0, %c0_0] : memref<256x128xbf16, #tpu.memory_space<vmem>>, vector<256x128xbf16>
    %c0_1 = arith.constant 0 : index
    %c0_2 = arith.constant 0 : index
    %1 = vector.load %arg3[%c0_1, %c0_2] : memref<128x128xbf16, #tpu.memory_space<vmem>>, vector<128x128xbf16>
    %cst = arith.constant dense<0.000000e+00> : vector<256x128xf32>
    %2 = tpu.matmul %0, %1, %cst {dimension_numbers = #tpu.dot_dimension_numbers<[1], [0], [0], [1], [0, 0, 1, 1], [], []>} : vector<256x128xbf16>, vector<128x128xbf16>, vector<256x128xf32> -> vector<256x128xf32>
    %c0_3 = arith.constant 0 : index
    %c0_4 = arith.constant 0 : index
    %3 = vector.load %arg4[%c0_3, %c0_4] : memref<1x128xf32, #tpu.memory_space<vmem>>, vector<1x128xf32>
    %4 = vector.broadcast %3 : vector<1x128xf32> to vector<256x128xf32>
    %5 = arith.addf %2, %4 : vector<256x128xf32>
    %cst_5 = arith.constant 0.000000e+00 : f32
    %6 = vector.broadcast %cst_5 : f32 to vector<256x128xf32>
    %7 = arith.maximumf %5, %6 : vector<256x128xf32>
    %8 = arith.truncf %7 : vector<256x128xf32> to vector<256x128xbf16>
    %c0_6 = arith.constant 0 : index
    %c0_7 = arith.constant 0 : index
    %9 = vector.load %arg5[%c0_6, %c0_7] : memref<256x128xbf16, #tpu.memory_space<vmem>>, vector<256x128xbf16>
    tpu.vector_store %arg5[%c0_6, %c0_7], %8 {strides = array<i32>} : memref<256x128xbf16, #tpu.memory_space<vmem>>, vector<256x128xbf16>,
    return
  }
  func.func @transform_0(%arg0: i32, %arg1: i32) -> (i32, i32) {
    %c0_i32 = arith.constant 0 : i32
    %c0_i32_0 = arith.constant 0 : i32
    return %arg0, %c0_i32 : i32, i32
  }
  func.func @transform_1(%arg0: i32, %arg1: i32) -> (i32, i32) {
    %c0_i32 = arith.constant 0 : i32
    %c0_i32_0 = arith.constant 0 : i32
    return %c0_i32, %arg1 : i32, i32
  }
  func.func @transform_2(%arg0: i32, %arg1: i32) -> (i32, i32) {
    %c0_i32 = arith.constant 0 : i32
    %c0_i32_0 = arith.constant 0 : i32
    return %c0_i32, %arg1 : i32, i32
  }
  func.func @transform_3(%arg0: i32, %arg1: i32) -> (i32, i32) {
    %c0_i32 = arith.constant 0 : i32
    return %arg0, %arg1 : i32, i32
  }
}

module attributes {stable_mosaic.version = 11 : i64} {
  func.func @_mm_bias_act_kernel(%arg0: i32, %arg1: i32, %arg2: memref<256x576xbf16, #tpu.memory_space<vmem>>, %arg3: memref<576x128xbf16, #tpu.memory_space<vmem>>, %arg4: memref<1x128xf32, #tpu.memory_space<vmem>>, %arg5: memref<256x128xf32, #tpu.memory_space<vmem>>) attributes {dimension_semantics = [#tpu.dimension_semantics<parallel>, #tpu.dimension_semantics<parallel>], iteration_bounds = array<i64: 1, 8>, scalar_prefetch = 0 : i64, scratch_operands = 0 : i64, tpu.core_type = #tpu.core_type<tc>, window_params = [{transform_indices = @transform_0, window_bounds = array<i64: 256, 576>}, {transform_indices = @transform_1, window_bounds = array<i64: 576, 128>}, {transform_indices = @transform_2, window_bounds = array<i64: 1, 128>}, {transform_indices = @transform_3, window_bounds = array<i64: 256, 128>}]} {
    %c0 = arith.constant 0 : index
    %c0_0 = arith.constant 0 : index
    %0 = vector.load %arg2[%c0, %c0_0] : memref<256x576xbf16, #tpu.memory_space<vmem>>, vector<256x576xbf16>
    %c0_1 = arith.constant 0 : index
    %c0_2 = arith.constant 0 : index
    %1 = vector.load %arg3[%c0_1, %c0_2] : memref<576x128xbf16, #tpu.memory_space<vmem>>, vector<576x128xbf16>
    %cst = arith.constant dense<0.000000e+00> : vector<256x128xf32>
    %2 = tpu.matmul %0, %1, %cst {dimension_numbers = #tpu.dot_dimension_numbers<[1], [0], [0], [1], [0, 0, 1, 1], [], []>} : vector<256x576xbf16>, vector<576x128xbf16>, vector<256x128xf32> -> vector<256x128xf32>
    %c0_3 = arith.constant 0 : index
    %c0_4 = arith.constant 0 : index
    %3 = vector.load %arg4[%c0_3, %c0_4] : memref<1x128xf32, #tpu.memory_space<vmem>>, vector<1x128xf32>
    %4 = vector.broadcast %3 : vector<1x128xf32> to vector<256x128xf32>
    %5 = arith.addf %2, %4 : vector<256x128xf32>
    %cst_5 = arith.constant 0.000000e+00 : f32
    %6 = vector.broadcast %cst_5 : f32 to vector<256x128xf32>
    %7 = arith.maximumf %5, %6 : vector<256x128xf32>
    %8 = arith.negf %7 : vector<256x128xf32>
    %9 = math.exp %8 : vector<256x128xf32>
    %cst_6 = arith.constant 1.000000e+00 : f32
    %10 = vector.broadcast %cst_6 : f32 to vector<256x128xf32>
    %11 = arith.addf %10, %9 : vector<256x128xf32>
    %12 = arith.divf %10, %11 : vector<256x128xf32>
    %c0_7 = arith.constant 0 : index
    %c0_8 = arith.constant 0 : index
    %13 = vector.load %arg5[%c0_7, %c0_8] : memref<256x128xf32, #tpu.memory_space<vmem>>, vector<256x128xf32>
    tpu.vector_store %arg5[%c0_7, %c0_8], %12 {strides = array<i32>} : memref<256x128xf32, #tpu.memory_space<vmem>>, vector<256x128xf32>,
    return
  }
  func.func @transform_0(%arg0: i32, %arg1: i32) -> (i32, i32) {
    %c0_i32 = arith.constant 0 : i32
    %c0_i32_0 = arith.constant 0 : i32
    return %arg1, %c0_i32 : i32, i32
  }
  func.func @transform_1(%arg0: i32, %arg1: i32) -> (i32, i32) {
    %c0_i32 = arith.constant 0 : i32
    %c0_i32_0 = arith.constant 0 : i32
    return %c0_i32, %arg0 : i32, i32
  }
  func.func @transform_2(%arg0: i32, %arg1: i32) -> (i32, i32) {
    %c0_i32 = arith.constant 0 : i32
    %c0_i32_0 = arith.constant 0 : i32
    return %c0_i32, %arg0 : i32, i32
  }
  func.func @transform_3(%arg0: i32, %arg1: i32) -> (i32, i32) {
    %c0_i32 = arith.constant 0 : i32
    return %arg1, %arg0 : i32, i32
  }
}

</mosaic_0001>

<bundles_post_ra>
// kernel: forward_fn.29
= control target key start
LH: loop header
LB: loop body
LE: loop exit
PB: predicated region body
PF: predicated region fallthrough
CT: control target
= control target key end

     0   :  { %s694_s12 = smov 0   ;;  %s696_s13 = smov 0   ;;  %s753_s0 = inlined_call_operand.vmem [shape: bf16[128,64], index: 0, kind: input, shape index: {}]   ;;  %s754_s1 = inlined_call_operand.vmem [shape: bf16[64,128], index: 1, kind: input, shape index: {}]   ;;  %s755_s2 = inlined_call_operand.vmem [shape: f32[1,128], index: 2, kind: input, shape index: {}]   ;;  %s756_s3 = inlined_call_operand.vmem [shape: bf16[128,128], index: 3, kind: output, shape index: {}]  }
   0x1   :  { %s698_s14 = smov 0  }
   0x2 LB: > { %s22_s15 = sadd.s32 1, %s668_s13  ;;  %p527_p0 = scmp.ge.s32.totalorder %s672_s14, 1  ;;  %s672_s14 = sphi %s698_s14, %s13_s14   ;;  %s668_s13 = sphi %s696_s13, %s758_s13   ;;  %s664_s12 = sphi %s694_s12, %s757_s12  }
   0x3   : > { %p23_p1 = scmp.ge.s32.totalorder %s22_s15, 2  ;;  %p169_p2 = scmp.lt.s32.totalorder %s672_s14, 3 }
   0x5   : > { %s760_s15 = smov (%p23_p1, %s22_s15), 0  ;;  %p170_p3 = pnand %p527_p0, %p169_p2 }
   0x6   : > { %v642_v0 = vld [vmem:[%s754_s1] sm:$0xff] (!%p170_p3)   ;;  %s528_s18 = sshll.u32 (!%p170_p3), %s664_s12, 3  ;;  %v643_v1 = vld [vmem:[%s754_s1 + $0x8] sm:$0xff] (!%p170_p3)   ;;  %v644_v2 = vld [vmem:[%s754_s1 + $0x10] sm:$0xff] (!%p170_p3)   ;;  %vm293_vm0 = vcmask (!%p170_p3), 523264  }
   0x7   : > { %173 = sbr.rel (%p170_p3) target bundleno = 245 (0xf5), region = 32  ;;  %p204_p4 = scmp.lt.s32.totalorder (!%p170_p3), %s528_s18, 15  ;;  %594 = vmatprep.subr.bf16.mxu0 (!%p170_p3), %v642_v0  ;;  %610 = vmatprep.subr.bf16.mxu1 (!%p170_p3), %v642_v0  ;;  %v645_v3 = vld [vmem:[%s754_s1 + $0x18] sm:$0xff] (!%p170_p3)   ;;  %v532_v8 = vld [vmem:[%s755_s2] ss:$0 sm:$0xff] (!%p170_p3) }
   0x8   : > { %595 = vmatpush3.bf16.msra.mxu0 (!%p170_p3), %v642_v0  ;;  %614 = vmatpush3.bf16.msra.mxu1 (!%p170_p3), %v642_v0 }
   0x9   : > { %596 = vmatprep.subr.bf16.mxu0 (!%p170_p3), %v643_v1  ;;  %611 = vmatprep.subr.bf16.mxu1 (!%p170_p3), %v643_v1 }
   0xc   : > { %597 = vmatpush3.bf16.msra.mxu0 (!%p170_p3), %v643_v1  ;;  %615 = vmatpush3.bf16.msra.mxu1 (!%p170_p3), %v643_v1 }
   0xd   : > { %598 = vmatprep.subr.bf16.mxu0 (!%p170_p3), %v644_v2  ;;  %612 = vmatprep.subr.bf16.mxu1 (!%p170_p3), %v644_v2 }
   0xe   : > { %s762_s18 = smov (!%p204_p4, %s528_s18), 15 }
   0xf   : > { %s529_s23 = sshll.u32 %s762_s18, 2 }
  0x10   : > { %s207_s28 = scalar_lea.vmem %s753_s0, %s529_s23  ;;  %599 = vmatpush3.bf16.msra.mxu0 %v644_v2  ;;  %616 = vmatpush3.bf16.msra.mxu1 %v644_v2  ;;  %s223_s6 = scalar_lea.vmem %s756_s3, %s529_s23 }
  0x11   : > { %v646_v4 = vld [vmem:[%s207_s28] sm:$0xff]   ;;  %v647_v5 = vld [vmem:[%s207_s28 + $0x10] sm:$0xff]   ;;  %600 = vmatprep.subr.bf16.mxu0 %v645_v3  ;;  %613 = vmatprep.subr.bf16.mxu1 %v645_v3  ;;  %v648_v6 = vld [vmem:[%s207_s28 + $0x8] sm:$0xff]  }
  0x12   : > { %602 = vmatprep.mubr.msk.bf16.mxu0 %vm293_vm0, %v646_v4  ;;  %606 = vmatprep.mubr.msk.bf16.mxu1 %vm293_vm0, %v647_v5  ;;  %v649_v7 = vld [vmem:[%s207_s28 + $0x18] sm:$0xff]  }
  0x14   : > { %601 = vmatpush3.bf16.msra.mxu0 %v645_v3  ;;  %617 = vmatpush3.bf16.msra.mxu1 %v645_v3 }
  0x17   : > { %603 = vmatmul.mubr.msk.bf16.vlgmr.msra.gmra.mrb[0].mxu0 %vm293_vm0, %v648_v6  ;;  %607 = vmatmul.mubr.msk.bf16.vlgmr.msra.gmra.mrb[0].mxu1 %vm293_vm0, %v649_v7 }
  0xea   : > { %v604_v9 = vpop.f32.mrb[0].mxu0  ;;  %v608_v10 = vpop.f32.mrb[0].mxu1 }
  0xeb   : > { %v349_v11 = vadd.f32 %v604_v9, %v532_v8  ;;  %v365_v12 = vadd.f32 %v608_v10, %v532_v8  ;;  %v340_v13 = vpop.f32.mrb[1].mxu0  ;;  %v356_v14 = vpop.f32.mrb[1].mxu1 }
  0xec   : > { %v341_v15 = vadd.f32 %v532_v8, %v340_v13  ;;  %v357_v16 = vadd.f32 %v532_v8, %v356_v14  ;;  %v605_v17 = vpop.f32.mrb[2].mxu0  ;;  %v609_v18 = vpop.f32.mrb[2].mxu1 }
  0xed   : > { %v352_v19 = vadd.f32 %v605_v17, %v532_v8  ;;  %v368_v20 = vadd.f32 %v609_v18, %v532_v8  ;;  %v343_v21 = vpop.f32.mrb[3].mxu0  ;;  %v359_v22 = vpop.f32.mrb[3].mxu1  ;;  %v373_v25 = vmax.f32 %v349_v11, 0.0  ;;  %v377_v26 = vmax.f32 %v365_v12, 0.0 }
  0xee   : > { %v344_v23 = vadd.f32 %v532_v8, %v343_v21  ;;  %v360_v24 = vadd.f32 %v532_v8, %v359_v22  ;;  %v371_v29 = vmax.f32 %v341_v15, 0.0  ;;  %v375_v30 = vmax.f32 %v357_v16, 0.0 }
  0xef   : > { %v374_v27 = vmax.f32 %v352_v19, 0.0  ;;  %v378_v28 = vmax.f32 %v368_v20, 0.0 }
  0xf0   : > { %v372_v31 = vmax.f32 %v344_v23, 0.0  ;;  %v376_v32 = vmax.f32 %v360_v24, 0.0 }
  0xf1   : > { %v571_v33 = vpack.c.bf16 %v374_v27, %v373_v25  ;;  %v581_v34 = vpack.c.bf16 %v378_v28, %v377_v26 }
  0xf2   : > { %v566_v35 = vpack.c.bf16 %v372_v31, %v371_v29  ;;  %v576_v36 = vpack.c.bf16 %v376_v32, %v375_v30 }
  0xf3   : > { %583 = vst [vmem:[%s223_s6 + $0x8] sm:$0xff] %v571_v33   ;;  %585 = vst [vmem:[%s223_s6 + $0x18] sm:$0xff] %v581_v34  }
  0xf4   : > { %567 = vst [vmem:[%s223_s6] sm:$0xff] %v566_v35   ;;  %584 = vst [vmem:[%s223_s6 + $0x10] sm:$0xff] %v576_v36  }
  0xf5 PF: > { %s13_s14 = sadd.s32 1, %s672_s14   ;;  %s757_s12 = smov %s668_s13 }
  0xf6   : > { %p10_p5 = scmp.ge.s32.totalorder %s13_s14, 4   ;;  %s758_s13 = smov %s760_s15 }
  0xf8   :  { %12 = sbr.rel (!%p10_p5) target bundleno = 2 (0x2), region = 68 }

// kernel: forward_fn.31
= control target key start
LH: loop header
LB: loop body
LE: loop exit
PB: predicated region body
PF: predicated region fallthrough
CT: control target
= control target key end

     0   :  { %s1055_s12 = smov 0   ;;  %s1057_s13 = smov 0   ;;  %s1194_s0 = inlined_call_operand.vmem [shape: bf16[128,64], index: 0, kind: input, shape index: {}]   ;;  %s1195_s1 = inlined_call_operand.vmem [shape: bf16[64,256], index: 1, kind: input, shape index: {}]   ;;  %s1196_s2 = inlined_call_operand.vmem [shape: f32[1,256], index: 2, kind: input, shape index: {}]   ;;  %s1197_s3 = inlined_call_operand.vmem [shape: bf16[128,256], index: 3, kind: output, shape index: {}]  }
   0x1   :  { %s1059_s14 = smov 0   ;;  %s1061_s15 = smov 0  }
   0x2   :  { %s1063_s16 = smov 0  }
   0x3 LB: > { %s22_s17 = sadd.s32 1, %s1029_s15  ;;  %s785_s18 = sadd.s32 4294967295, %s1033_s16   ;;  %s1033_s16 = sphi %s1063_s16, %s13_s16   ;;  %s1029_s15 = sphi %s1061_s15, %s1202_s15   ;;  %s1025_s14 = sphi %s1059_s14, %s1201_s14   ;;  %s1021_s13 = sphi %s1057_s13, %s1200_s13   ;;  %s1017_s12 = sphi %s1055_s12, %s1199_s12  }
   0x4   : > { %p23_p0 = scmp.ge.s32.totalorder %s22_s17, 2  ;;  %p65_p1 = scmp.ne.s32.totalorder %s1021_s13, %s1017_s12 }
   0x5   : > { %p66_p2 = scmp.eq.s32.totalorder %s1033_s16, 0  ;;  %p123_p4 = scmp.eq.s32.totalorder %s785_s18, 1 }
   0x6   : > { %s1204_s17 = smov (%p23_p0, %s22_s17), 0  ;;  %s58_s20 = sadd.s32 1, %s1021_s13 }
   0x7   : > { %p67_p3 = por %p66_p2, %p65_p1  ;;  %s55_s19 = ssub.s32 %s1029_s15, %s1204_s17 }
   0x8   : > { %p56_p5 = scmp.eq.s32.totalorder %s55_s19, 0  ;;  %p1090_p6 = por %p123_p4, %p65_p1 }
   0x9   : > { %p789_p7 = scmp.ge.s32.totalorder %s1033_s16, 2 }
   0xa   : > { %s1095_s22 = scalar_select %p56_p5, %s1021_s13, %s58_s20  }
   0xb   : > { %154 = sbr.rel (%p789_p7) target bundleno = 27 (0x1b), region = 20 }
  0x12   : > { %157 = sbr.rel (!%p67_p3) target bundleno = 27 (0x1b), region = 24  ;;  %s159_s23 = sand.u32 (%p67_p3), 1, %s1021_s13  }
  0x13   : > { %s791_s24 = sshll.u32 (%p67_p3), %s1029_s15, 2  ;;  %s790_s25 = sshll.u32 (%p67_p3), %s159_s23, 5 }
  0x14   : > { %s163_s28 = scalar_lea.vmem (%p67_p3), %s1195_s1, %s791_s24  ;;  %s161_s29 = scalar_lea.vmem (%p67_p3), [#allocation2], %s790_s25 }
  0x15   : > { %v179_v0 = vld [vmem:[%s163_s28] sm:$0xf] (%p67_p3)  ;;  %v181_v1 = vld [vmem:[%s163_s28 + $0x8] sm:$0xf] (%p67_p3)  ;;  %v183_v2 = vld [vmem:[%s163_s28 + $0x10] sm:$0xf] (%p67_p3) }
  0x16   : > { %180 = vst [vmem:[%s161_s29] sm:$0xf] (%p67_p3), %v179_v0  ;;  %182 = vst [vmem:[%s161_s29 + $0x4] sm:$0xf] (%p67_p3), %v181_v1  ;;  %v185_v3 = vld [vmem:[%s163_s28 + $0x18] sm:$0xf] (%p67_p3) }
  0x17   : > { %v187_v4 = vld [vmem:[%s163_s28 + $0x20] sm:$0xf] (%p67_p3)  ;;  %184 = vst [vmem:[%s161_s29 + $0x8] sm:$0xf] (%p67_p3), %v183_v2  ;;  %186 = vst [vmem:[%s161_s29 + $0xc] sm:$0xf] (%p67_p3), %v185_v3 }
  0x18   : > { %188 = vst [vmem:[%s161_s29 + $0x10] sm:$0xf] (%p67_p3), %v187_v4  ;;  %v189_v5 = vld [vmem:[%s163_s28 + $0x28] sm:$0xf] (%p67_p3)  ;;  %v191_v6 = vld [vmem:[%s163_s28 + $0x30] sm:$0xf] (%p67_p3) }
  0x19   : > { %v193_v7 = vld [vmem:[%s163_s28 + $0x38] sm:$0xf]  ;;  %190 = vst [vmem:[%s161_s29 + $0x14] sm:$0xf] %v189_v5  ;;  %192 = vst [vmem:[%s161_s29 + $0x18] sm:$0xf] %v191_v6 }
  0x1a   : > { %194 = vst [vmem:[%s161_s29 + $0x1c] sm:$0xf] %v193_v7 }
  0x1b PF: > { %p792_p8 = scmp.ge.s32.totalorder %s1033_s16, 1  ;;  %p238_p9 = scmp.lt.s32.totalorder %s1033_s16, 3 }
  0x1d   : > { %p239_p10 = pnand %p792_p8, %p238_p9 }
  0x1e   : > { %s245_s30 = sand.u32 (!%p239_p10), 1, %s1017_s12   ;;  %v987_v8 = vld [vmem:[%s1194_s0] sm:$0xff] (!%p239_p10)   ;;  %vm381_vm0 = vcmask (!%p239_p10), 523264   ;;  %v989_v14 = vld [vmem:[%s1194_s0 + $0x8] sm:$0xff] (!%p239_p10)   ;;  %v991_v16 = vld [vmem:[%s1194_s0 + $0x10] sm:$0xff] (!%p239_p10)   ;;  %p281_p11 = scmp.lt.s32.totalorder (!%p239_p10), %s1025_s14, 1 }
  0x1f   : > { %242 = sbr.rel (%p239_p10) target bundleno = 289 (0x121), region = 69  ;;  %s793_s6 = sshll.u32 (!%p239_p10), %s245_s30, 5  ;;  %919 = vmatprep.mubr.msk.bf16.mxu0 (!%p239_p10), %vm381_vm0, %v987_v8  ;;  %v988_v9 = vld [vmem:[%s1194_s0 + $0x20] sm:$0xff] (!%p239_p10)   ;;  %v990_v15 = vld [vmem:[%s1194_s0 + $0x28] sm:$0xff] (!%p239_p10)   ;;  %v992_v17 = vld [vmem:[%s1194_s0 + $0x30] sm:$0xff] (!%p239_p10)  }
  0x20   : > { %s247_s9 = scalar_lea.vmem (!%p239_p10), [#allocation2], %s793_s6  ;;  %927 = vmatprep.mubr.msk.bf16.mxu1 (!%p239_p10), %vm381_vm0, %v988_v9  ;;  %v993_v18 = vld [vmem:[%s1194_s0 + $0x18] sm:$0xff] (!%p239_p10)   ;;  %s794_s8 = sshll.u32 (!%p239_p10), %s245_s30, 6 }
  0x21   : > { %v983_v10 = vld [vmem:[%s247_s9] sm:$0xff] (!%p239_p10)   ;;  %v984_v11 = vld [vmem:[%s247_s9 + $0x8] sm:$0xff] (!%p239_p10)   ;;  %v985_v12 = vld [vmem:[%s247_s9 + $0x10] sm:$0xff] (!%p239_p10)  }
  0x22   : > { %911 = vmatprep.subr.bf16.mxu0 (!%p239_p10), %v983_v10  ;;  %935 = vmatprep.subr.bf16.mxu1 (!%p239_p10), %v983_v10  ;;  %v986_v13 = vld [vmem:[%s247_s9 + $0x18] sm:$0xff] (!%p239_p10)   ;;  %s1147_s9 = scalar_lea.vmem (!%p239_p10), [#allocation3], %s794_s8 }
  0x23   : > { %912 = vmatpush3.bf16.msra.mxu0 (!%p239_p10), %v983_v10  ;;  %939 = vmatpush3.bf16.msra.mxu1 (!%p239_p10), %v983_v10  ;;  %v994_v19 = vld [vmem:[%s1194_s0 + $0x38] sm:$0xff] (!%p239_p10)  }
  0x24   : > { %913 = vmatprep.subr.bf16.mxu0 (!%p239_p10), %v984_v11  ;;  %936 = vmatprep.subr.bf16.mxu1 (!%p239_p10), %v984_v11 }
  0x26   : > { %s282_s4 = scalar_select %p281_p11, %s1025_s14, 1 }
  0x27   : > { %914 = vmatpush3.bf16.msra.mxu0 %v984_v11  ;;  %940 = vmatpush3.bf16.msra.mxu1 %v984_v11  ;;  %s833_s12 = sshll.u32 (%p1090_p6), %s1025_s14, 2 }
  0x28   : > { %915 = vmatprep.subr.bf16.mxu0 %v985_v12  ;;  %937 = vmatprep.subr.bf16.mxu1 %v985_v12  ;;  %s283_s7 = scalar_lea.vmem %s1196_s2, %s282_s4  ;;  %s594_s11 = scalar_lea.vmem (%p1090_p6), %s1197_s3, %s833_s12 }
  0x29   : > { %v795_v21 = vld [vmem:[%s283_s7] ss:$0 sm:$0xff] }
  0x2b   : > { %916 = vmatpush3.bf16.msra.mxu0 %v985_v12  ;;  %941 = vmatpush3.bf16.msra.mxu1 %v985_v12 }
  0x2c   : > { %917 = vmatprep.subr.bf16.mxu0 %v986_v13  ;;  %938 = vmatprep.subr.bf16.mxu1 %v986_v13 }
  0x2f   : > { %918 = vmatpush3.bf16.msra.mxu0 %v986_v13  ;;  %942 = vmatpush3.bf16.msra.mxu1 %v986_v13 }
  0x32   : > { %920 = vmatmul.mubr.msk.bf16.vlgmr.msra.gmra.mrb[0].mxu0 %vm381_vm0, %v989_v14  ;;  %928 = vmatmul.mubr.msk.bf16.vlgmr.msra.gmra.mrb[0].mxu1 %vm381_vm0, %v990_v15 }
  0x33   : > { %923 = vmatprep.mubr.msk.bf16.mxu0 %vm381_vm0, %v991_v16  ;;  %931 = vmatprep.mubr.msk.bf16.mxu1 %vm381_vm0, %v992_v17 }
  0x3a   : > { %924 = vmatmul.mubr.msk.bf16.gmra.mrb[4].mxu0 %vm381_vm0, %v993_v18  ;;  %932 = vmatmul.mubr.msk.bf16.gmra.mrb[4].mxu1 %vm381_vm0, %v994_v19 }
 0x105   : > { %v921_v20 = vpop.f32.mrb[0].mxu0  ;;  %v929_v22 = vpop.f32.mrb[0].mxu1 }
 0x106   : > { %v440_v23 = vpop.f32.mrb[1].mxu0  ;;  %v472_v24 = vpop.f32.mrb[1].mxu1  ;;  %v449_v27 = vadd.f32 %v921_v20, %v795_v21  ;;  %v481_v28 = vadd.f32 %v929_v22, %v795_v21 }
 0x107   : > { %v922_v25 = vpop.f32.mrb[2].mxu0  ;;  %v930_v26 = vpop.f32.mrb[2].mxu1  ;;  %v441_v33 = vadd.f32 %v795_v21, %v440_v23  ;;  %v473_v34 = vadd.f32 %v795_v21, %v472_v24 }
 0x108   : > { %v452_v29 = vadd.f32 %v922_v25, %v795_v21  ;;  %v484_v30 = vadd.f32 %v930_v26, %v795_v21  ;;  %v443_v31 = vpop.f32.mrb[3].mxu0  ;;  %v475_v32 = vpop.f32.mrb[3].mxu1 }
 0x109   : > { %v444_v35 = vadd.f32 %v795_v21, %v443_v31  ;;  %v476_v36 = vadd.f32 %v795_v21, %v475_v32 }
 0x10a   : > { %v860_v37 = vpack.c.bf16 %v452_v29, %v449_v27  ;;  %v880_v38 = vpack.c.bf16 %v484_v30, %v481_v28 }
 0x10b   : > { %v855_v39 = vpack.c.bf16 %v444_v35, %v441_v33  ;;  %v875_v40 = vpack.c.bf16 %v476_v36, %v473_v34 }
 0x10c   : > { %892 = vst [vmem:[%s1147_s9 + $0x8] sm:$0xff] %v860_v37   ;;  %896 = vst [vmem:[%s1147_s9 + $0x28] sm:$0xff] %v880_v38  }
 0x10d   : > { %856 = vst [vmem:[%s1147_s9] sm:$0xff] %v855_v39   ;;  %895 = vst [vmem:[%s1147_s9 + $0x20] sm:$0xff] %v875_v40   ;;  %v925_v41 = vpop.f32.mrb[4].mxu0  ;;  %v933_v42 = vpop.f32.mrb[4].mxu1 }
 0x10e   : > { %v456_v43 = vpop.f32.mrb[5].mxu0  ;;  %v488_v44 = vpop.f32.mrb[5].mxu1  ;;  %v465_v47 = vadd.f32 %v925_v41, %v795_v21  ;;  %v497_v48 = vadd.f32 %v933_v42, %v795_v21 }
 0x10f   : > { %v926_v45 = vpop.f32.mrb[6].mxu0  ;;  %v934_v46 = vpop.f32.mrb[6].mxu1  ;;  %v457_v53 = vadd.f32 %v795_v21, %v456_v43  ;;  %v489_v54 = vadd.f32 %v795_v21, %v488_v44  ;;  %589 = sbr.rel (!%p1090_p6) target bundleno = 289 (0x121), region = 77 }
 0x110   : > { %v468_v49 = vadd.f32 %v926_v45, %v795_v21  ;;  %v500_v50 = vadd.f32 %v934_v46, %v795_v21  ;;  %v459_v51 = vpop.f32.mrb[7].mxu0  ;;  %v491_v52 = vpop.f32.mrb[7].mxu1 }
 0x111   : > { %v460_v55 = vadd.f32 %v795_v21, %v459_v51  ;;  %v492_v56 = vadd.f32 %v795_v21, %v491_v52 }
 0x112   : > { %v870_v57 = vpack.c.bf16 %v468_v49, %v465_v47  ;;  %v890_v58 = vpack.c.bf16 %v500_v50, %v497_v48 }
 0x113   : > { %v865_v59 = vpack.c.bf16 %v460_v55, %v457_v53  ;;  %v885_v60 = vpack.c.bf16 %v492_v56, %v489_v54  ;;  %v614_v63 = vld [vmem:[%s1147_s9 + $0x8] sm:$0xf] (%p1090_p6)  ;;  %v616_v0 = vld [vmem:[%s1147_s9 + $0xc] sm:$0xf] (%p1090_p6) }
 0x114   : > { %894 = vst [vmem:[%s1147_s9 + $0x18] sm:$0xff] %v870_v57   ;;  %898 = vst [vmem:[%s1147_s9 + $0x38] sm:$0xff] %v890_v58   ;;  %v610_v61 = vld [vmem:[%s1147_s9] sm:$0xf] (%p1090_p6)  ;;  %v612_v62 = vld [vmem:[%s1147_s9 + $0x4] sm:$0xf] (%p1090_p6) }
 0x115   : > { %893 = vst [vmem:[%s1147_s9 + $0x10] sm:$0xff] %v865_v59   ;;  %897 = vst [vmem:[%s1147_s9 + $0x30] sm:$0xff] %v885_v60   ;;  %v626_v5 = vld [vmem:[%s1147_s9 + $0x20] sm:$0xf] (%p1090_p6)  ;;  %v628_v6 = vld [vmem:[%s1147_s9 + $0x24] sm:$0xf] (%p1090_p6) }
 0x116   : > { %611 = vst [vmem:[%s594_s11] sm:$0xf] %v610_v61  ;;  %613 = vst [vmem:[%s594_s11 + $0x8] sm:$0xf] %v612_v62  ;;  %v630_v7 = vld [vmem:[%s1147_s9 + $0x28] sm:$0xf] }
 0x117   : > { %615 = vst [vmem:[%s594_s11 + $0x10] sm:$0xf] %v614_v63  ;;  %617 = vst [vmem:[%s594_s11 + $0x18] sm:$0xf] %v616_v0  ;;  %v632_v8 = vld [vmem:[%s1147_s9 + $0x2c] sm:$0xf] }
 0x118   : > { %627 = vst [vmem:[%s594_s11 + $0x40] sm:$0xf] %v626_v5  ;;  %629 = vst [vmem:[%s594_s11 + $0x48] sm:$0xf] %v628_v6 }
 0x119   : > { %631 = vst [vmem:[%s594_s11 + $0x50] sm:$0xf] %v630_v7  ;;  %633 = vst [vmem:[%s594_s11 + $0x58] sm:$0xf] %v632_v8 }
 0x11b   : > { %v622_v3 = vld [vmem:[%s1147_s9 + $0x18] sm:$0xf]  ;;  %v624_v4 = vld [vmem:[%s1147_s9 + $0x1c] sm:$0xf] }
 0x11c   : > { %v618_v1 = vld [vmem:[%s1147_s9 + $0x10] sm:$0xf]  ;;  %v620_v2 = vld [vmem:[%s1147_s9 + $0x14] sm:$0xf]  ;;  %623 = vst [vmem:[%s594_s11 + $0x30] sm:$0xf] %v622_v3 }
 0x11d   : > { %619 = vst [vmem:[%s594_s11 + $0x20] sm:$0xf] %v618_v1  ;;  %621 = vst [vmem:[%s594_s11 + $0x28] sm:$0xf] %v620_v2  ;;  %v634_v9 = vld [vmem:[%s1147_s9 + $0x30] sm:$0xf] }
 0x11e   : > { %625 = vst [vmem:[%s594_s11 + $0x38] sm:$0xf] %v624_v4  ;;  %v636_v10 = vld [vmem:[%s1147_s9 + $0x34] sm:$0xf]  ;;  %635 = vst [vmem:[%s594_s11 + $0x60] sm:$0xf] %v634_v9 }
 0x11f   : > { %637 = vst [vmem:[%s594_s11 + $0x68] sm:$0xf] %v636_v10  ;;  %v638_v11 = vld [vmem:[%s1147_s9 + $0x38] sm:$0xf]  ;;  %v640_v12 = vld [vmem:[%s1147_s9 + $0x3c] sm:$0xf] }
 0x120   : > { %639 = vst [vmem:[%s594_s11 + $0x70] sm:$0xf] %v638_v11  ;;  %641 = vst [vmem:[%s594_s11 + $0x78] sm:$0xf] %v640_v12 }
 0x121 PF: > { %s13_s16 = sadd.s32 1, %s1033_s16   ;;  %s1199_s12 = smov %s1021_s13 }
 0x122   : > { %p10_p12 = scmp.ge.s32.totalorder %s13_s16, 4   ;;  %s1200_s13 = smov %s1095_s22 }
 0x123   : > { %s1201_s14 = smov %s1029_s15  ;;  %s1202_s15 = smov %s1204_s17 }
 0x124   :  { %12 = sbr.rel (!%p10_p12) target bundleno = 3 (0x3), region = 155 }

// kernel: forward_fn.28
= control target key start
LH: loop header
LB: loop body
LE: loop exit
PB: predicated region body
PF: predicated region fallthrough
CT: control target
= control target key end

     0   :  { %s1400_s12 = smov 0   ;;  %s1402_s13 = smov 0   ;;  %s1622_s0 = inlined_call_operand.vmem [shape: bf16[512,256], index: 0, kind: input, shape index: {}]   ;;  %s1623_s1 = inlined_call_operand.vmem [shape: bf16[256,64], index: 1, kind: input, shape index: {}]   ;;  %s1624_s2 = inlined_call_operand.vmem [shape: f32[1,64], index: 2, kind: input, shape index: {}]   ;;  %s1625_s3 = inlined_call_operand.vmem [shape: bf16[512,64], index: 3, kind: output, shape index: {}]  }
   0x1   :  { %s1404_s14 = smov 0  }
   0x2 LB: > { %s22_s15 = sadd.s32 1, %s1374_s13  ;;  %p1018_p0 = scmp.ge.s32.totalorder %s1378_s14, 1  ;;  %s1378_s14 = sphi %s1404_s14, %s13_s14   ;;  %s1374_s13 = sphi %s1402_s13, %s1627_s13   ;;  %s1370_s12 = sphi %s1400_s12, %s1626_s12  }
   0x3   : > { %p23_p1 = scmp.ge.s32.totalorder %s22_s15, 2  ;;  %p170_p2 = scmp.lt.s32.totalorder %s1378_s14, 3 }
   0x5   : > { %s1629_s15 = smov (%p23_p1, %s22_s15), 0  ;;  %p171_p3 = pnand %p1018_p0, %p170_p2 }
   0x6   : > { %v1292_v0 = vld [vmem:[%s1623_s1 + $0x40] sm:$0xff] (!%p171_p3)   ;;  %s1019_s18 = sshll.u32 (!%p171_p3), %s1370_s12, 5  ;;  %v1294_v2 = vld [vmem:[%s1623_s1 + $0x48] sm:$0xff] (!%p171_p3)   ;;  %v1296_v4 = vld [vmem:[%s1623_s1 + $0x50] sm:$0xff] (!%p171_p3)   ;;  %vm877_vm0 = vcmask (!%p171_p3), 519168  }
   0x7   : > { %174 = sbr.rel (%p171_p3) target bundleno = 319 (0x13f), region = 32  ;;  %v1293_v1 = vld [vmem:[%s1623_s1] sm:$0xff] (!%p171_p3)   ;;  %1140 = vmatprep.subr.bf16.mxu0 (!%p171_p3), %v1292_v0  ;;  %1252 = vmatprep.subr.bf16.mxu1 (!%p171_p3), %v1292_v0  ;;  %v1295_v3 = vld [vmem:[%s1623_s1 + $0x8] sm:$0xff] (!%p171_p3)   ;;  %p206_p4 = scmp.lt.s32.totalorder (!%p171_p3), %s1019_s18, 63  ;;  %v1297_v5 = vld [vmem:[%s1623_s1 + $0x10] sm:$0xff] (!%p171_p3)  }
   0x8   : > { %1141 = vmatpush3.bf16.msra.mxu0 (!%p171_p3), %v1293_v1  ;;  %1260 = vmatpush3.bf16.msra.mxu1 (!%p171_p3), %v1293_v1  ;;  %v1298_v6 = vld [vmem:[%s1623_s1 + $0x58] sm:$0xff] (!%p171_p3)   ;;  %v1300_v8 = vld [vmem:[%s1623_s1 + $0x60] sm:$0xff] (!%p171_p3)   ;;  %v1302_v10 = vld [vmem:[%s1623_s1 + $0x68] sm:$0xff] (!%p171_p3)  }
   0x9   : > { %1142 = vmatprep.subr.bf16.mxu0 (!%p171_p3), %v1294_v2  ;;  %1253 = vmatprep.subr.bf16.mxu1 (!%p171_p3), %v1294_v2  ;;  %v1299_v7 = vld [vmem:[%s1623_s1 + $0x18] sm:$0xff] (!%p171_p3)   ;;  %v1301_v9 = vld [vmem:[%s1623_s1 + $0x20] sm:$0xff] (!%p171_p3)   ;;  %v1303_v13 = vld [vmem:[%s1623_s1 + $0x28] sm:$0xff] (!%p171_p3)  }
   0xa   : > { %v1304_v14 = vld [vmem:[%s1623_s1 + $0x70] sm:$0xff] (!%p171_p3)   ;;  %v1306_v16 = vld [vmem:[%s1623_s1 + $0x78] sm:$0xff] (!%p171_p3)   ;;  %v1509_v50 = vld [vmem:[%s1624_s2] ss:$0 sm:$0xff] (!%p171_p3) }
   0xb   : > { %v1305_v15 = vld [vmem:[%s1623_s1 + $0x30] sm:$0xff] (!%p171_p3)   ;;  %v1307_v17 = vld [vmem:[%s1623_s1 + $0x38] sm:$0xff] (!%p171_p3)  }
   0xc   : > { %1143 = vmatpush3.bf16.msra.mxu0 (!%p171_p3), %v1295_v3  ;;  %1261 = vmatpush3.bf16.msra.mxu1 (!%p171_p3), %v1295_v3 }
   0xd   : > { %1144 = vmatprep.subr.bf16.mxu0 (!%p171_p3), %v1296_v4  ;;  %1254 = vmatprep.subr.bf16.mxu1 (!%p171_p3), %v1296_v4 }
   0xe   : > { %s1631_s18 = smov (!%p206_p4, %s1019_s18), 63 }
   0xf   : > { %s1107_s6 = sshll.u32 %s1631_s18, 3  ;;  %s1023_s5 = sshll.u32 %s1631_s18, 2 }
  0x10   : > { %1145 = vmatpush3.bf16.msra.mxu0 %v1297_v5  ;;  %1262 = vmatpush3.bf16.msra.mxu1 %v1297_v5  ;;  %s1451_s11 = scalar_lea.vmem %s1622_s0, %s1107_s6  ;;  %s1519_s8 = scalar_lea.vmem %s1625_s3, %s1023_s5 }
  0x11   : > { %1146 = vmatprep.subr.bf16.mxu0 %v1298_v6  ;;  %1255 = vmatprep.subr.bf16.mxu1 %v1298_v6  ;;  %v1310_v11 = vld [vmem:[%s1451_s11 + $0x4] ss:$8 sps:$4 sm:$0xff]   ;;  %v1308_v18 = vld [vmem:[%s1451_s11] ss:$8 sps:$4 sm:$0xff]   ;;  %v1314_v20 = vld [vmem:[%s1451_s11 + $0x14] ss:$8 sps:$4 sm:$0xff]  }
  0x12   : > { %v1313_v12 = vld [vmem:[%s1451_s11 + $0x84] ss:$8 sps:$4 sm:$0xff]   ;;  %588 = vmatprep.mubr.bf16.mxu0 %v1310_v11  ;;  %v1311_v19 = vld [vmem:[%s1451_s11 + $0x80] ss:$8 sps:$4 sm:$0xff]   ;;  %v1316_v21 = vld [vmem:[%s1451_s11 + $0x94] ss:$8 sps:$4 sm:$0xff]  }
  0x13   : > { %652 = vmatprep.mubr.bf16.mxu1 %v1313_v12  ;;  %v1318_v22 = vld [vmem:[%s1451_s11 + $0x10] ss:$8 sps:$4 sm:$0xff]   ;;  %v1320_v24 = vld [vmem:[%s1451_s11 + $0x24] ss:$8 sps:$4 sm:$0xff]   ;;  %v1324_v26 = vld [vmem:[%s1451_s11 + $0x20] ss:$8 sps:$4 sm:$0xff]  }
  0x14   : > { %1147 = vmatpush3.bf16.msra.mxu0 %v1299_v7  ;;  %1263 = vmatpush3.bf16.msra.mxu1 %v1299_v7  ;;  %v1319_v23 = vld [vmem:[%s1451_s11 + $0x90] ss:$8 sps:$4 sm:$0xff]   ;;  %v1322_v25 = vld [vmem:[%s1451_s11 + $0xa4] ss:$8 sps:$4 sm:$0xff]   ;;  %v1325_v27 = vld [vmem:[%s1451_s11 + $0xa0] ss:$8 sps:$4 sm:$0xff]  }
  0x15   : > { %1148 = vmatprep.subr.bf16.mxu0 %v1300_v8  ;;  %1256 = vmatprep.subr.bf16.mxu1 %v1300_v8  ;;  %v1326_v28 = vld [vmem:[%s1451_s11 + $0x34] ss:$8 sps:$4 sm:$0xff]   ;;  %v1330_v30 = vld [vmem:[%s1451_s11 + $0x30] ss:$8 sps:$4 sm:$0xff]   ;;  %v1332_v32 = vld [vmem:[%s1451_s11 + $0x44] ss:$8 sps:$4 sm:$0xff]  }
  0x16   : > { %v1328_v29 = vld [vmem:[%s1451_s11 + $0xb4] ss:$8 sps:$4 sm:$0xff]   ;;  %v1331_v31 = vld [vmem:[%s1451_s11 + $0xb0] ss:$8 sps:$4 sm:$0xff]   ;;  %v1334_v33 = vld [vmem:[%s1451_s11 + $0xc4] ss:$8 sps:$4 sm:$0xff]  }
  0x17   : > { %v1336_v34 = vld [vmem:[%s1451_s11 + $0x40] ss:$8 sps:$4 sm:$0xff]   ;;  %v1338_v36 = vld [vmem:[%s1451_s11 + $0x54] ss:$8 sps:$4 sm:$0xff]   ;;  %v1342_v38 = vld [vmem:[%s1451_s11 + $0x50] ss:$8 sps:$4 sm:$0xff]  }
  0x18   : > { %1149 = vmatpush3.bf16.msra.mxu0 %v1301_v9  ;;  %1264 = vmatpush3.bf16.msra.mxu1 %v1301_v9  ;;  %v1337_v35 = vld [vmem:[%s1451_s11 + $0xc0] ss:$8 sps:$4 sm:$0xff]   ;;  %v1340_v37 = vld [vmem:[%s1451_s11 + $0xd4] ss:$8 sps:$4 sm:$0xff]   ;;  %v1343_v39 = vld [vmem:[%s1451_s11 + $0xd0] ss:$8 sps:$4 sm:$0xff]  }
  0x19   : > { %1150 = vmatprep.subr.bf16.mxu0 %v1302_v10  ;;  %1257 = vmatprep.subr.bf16.mxu1 %v1302_v10  ;;  %v1344_v40 = vld [vmem:[%s1451_s11 + $0x64] ss:$8 sps:$4 sm:$0xff]   ;;  %v1348_v42 = vld [vmem:[%s1451_s11 + $0x60] ss:$8 sps:$4 sm:$0xff]   ;;  %v1350_v44 = vld [vmem:[%s1451_s11 + $0x74] ss:$8 sps:$4 sm:$0xff]  }
  0x1a   : > { %v1346_v41 = vld [vmem:[%s1451_s11 + $0xe4] ss:$8 sps:$4 sm:$0xff]   ;;  %v1349_v43 = vld [vmem:[%s1451_s11 + $0xe0] ss:$8 sps:$4 sm:$0xff]   ;;  %v1352_v45 = vld [vmem:[%s1451_s11 + $0xf4] ss:$8 sps:$4 sm:$0xff]  }
  0x1b   : > { %v1354_v46 = vld [vmem:[%s1451_s11 + $0x70] ss:$8 sps:$4 sm:$0xff]  }
  0x1c   : > { %1151 = vmatpush3.bf16.msra.mxu0 %v1303_v13  ;;  %1265 = vmatpush3.bf16.msra.mxu1 %v1303_v13  ;;  %v1355_v47 = vld [vmem:[%s1451_s11 + $0xf0] ss:$8 sps:$4 sm:$0xff]  }
  0x1d   : > { %1152 = vmatprep.subr.bf16.mxu0 %v1304_v14  ;;  %1258 = vmatprep.subr.bf16.mxu1 %v1304_v14 }
  0x20   : > { %1153 = vmatpush3.bf16.msra.mxu0 %v1305_v15  ;;  %1266 = vmatpush3.bf16.msra.mxu1 %v1305_v15 }
  0x21   : > { %1154 = vmatprep.subr.bf16.mxu0 %v1306_v16  ;;  %1259 = vmatprep.subr.bf16.mxu1 %v1306_v16 }
  0x24   : > { %1155 = vmatpush3.bf16.msra.mxu0 %v1307_v17  ;;  %1267 = vmatpush3.bf16.msra.mxu1 %v1307_v17 }
  0x27   : > { %589 = vmatmul.mubr.bf16.vlgmr.msra.gmra.mrb[0].mxu0 %v1308_v18  ;;  %653 = vmatmul.mubr.bf16.vlgmr.msra.gmra.mrb[0].mxu1 %v1311_v19 }
  0x28   : > { %596 = vmatprep.mubr.bf16.mxu0 %v1314_v20  ;;  %660 = vmatprep.mubr.bf16.mxu1 %v1316_v21 }
  0x2f   : > { %597 = vmatmul.mubr.bf16.gmra.mrb[4].mxu0 %v1318_v22  ;;  %661 = vmatmul.mubr.bf16.gmra.mrb[4].mxu1 %v1319_v23 }
  0x30   : > { %604 = vmatprep.mubr.bf16.mxu0 %v1320_v24  ;;  %668 = vmatprep.mubr.bf16.mxu1 %v1322_v25 }
  0x37   : > { %605 = vmatmul.mubr.bf16.gmra.mrb[8].mxu0 %v1324_v26  ;;  %669 = vmatmul.mubr.bf16.gmra.mrb[8].mxu1 %v1325_v27 }
  0x38   : > { %612 = vmatprep.mubr.bf16.mxu0 %v1326_v28  ;;  %676 = vmatprep.mubr.bf16.mxu1 %v1328_v29 }
  0x3f   : > { %613 = vmatmul.mubr.bf16.gmra.mrb[12].mxu0 %v1330_v30  ;;  %677 = vmatmul.mubr.bf16.gmra.mrb[12].mxu1 %v1331_v31 }
  0x40   : > { %620 = vmatprep.mubr.bf16.mxu0 %v1332_v32  ;;  %684 = vmatprep.mubr.bf16.mxu1 %v1334_v33 }
  0x47   : > { %621 = vmatmul.mubr.bf16.gmra.mrb[16].mxu0 %v1336_v34  ;;  %685 = vmatmul.mubr.bf16.gmra.mrb[16].mxu1 %v1337_v35 }
  0x48   : > { %628 = vmatprep.mubr.bf16.mxu0 %v1338_v36  ;;  %692 = vmatprep.mubr.bf16.mxu1 %v1340_v37 }
  0x4f   : > { %629 = vmatmul.mubr.bf16.gmra.mrb[20].mxu0 %v1342_v38  ;;  %693 = vmatmul.mubr.bf16.gmra.mrb[20].mxu1 %v1343_v39 }
  0x50   : > { %636 = vmatprep.mubr.bf16.mxu0 %v1344_v40  ;;  %700 = vmatprep.mubr.bf16.mxu1 %v1346_v41 }
  0x57   : > { %637 = vmatmul.mubr.bf16.gmra.mrb[24].mxu0 %v1348_v42  ;;  %701 = vmatmul.mubr.bf16.gmra.mrb[24].mxu1 %v1349_v43 }
  0x58   : > { %644 = vmatprep.mubr.bf16.mxu0 %v1350_v44  ;;  %708 = vmatprep.mubr.bf16.mxu1 %v1352_v45 }
  0x5f   : > { %645 = vmatmul.mubr.bf16.gmra.mrb[28].mxu0 %v1354_v46  ;;  %709 = vmatmul.mubr.bf16.gmra.mrb[28].mxu1 %v1355_v47 }
  0xfa   : > { %v1156_v48 = vpop.f32.mrb[0].mxu0  ;;  %v1204_v49 = vpop.f32.mrb[0].mxu1 }
  0xfb   : > { %v1157_v51 = vpop.f32.mrb[1].mxu0  ;;  %v1205_v52 = vpop.f32.mrb[1].mxu1 }
  0xfc   : > { %v1158_v53 = vadd.f32 %v1157_v51, %v1156_v48  ;;  %v1206_v54 = vadd.f32 %v1205_v52, %v1204_v49  ;;  %v1159_v55 = vpop.f32.mrb[2].mxu0  ;;  %v1207_v56 = vpop.f32.mrb[2].mxu1 }
  0xfd   : > { %v1160_v57 = vpop.f32.mrb[3].mxu0  ;;  %v1208_v58 = vpop.f32.mrb[3].mxu1 }
  0xfe   : > { %v591_v59 = vadd.f32 %v1158_v53, %v1509_v50  ;;  %v655_v60 = vadd.f32 %v1206_v54, %v1509_v50  ;;  %v1161_v61 = vadd.f32 %v1160_v57, %v1159_v55  ;;  %v1209_v62 = vadd.f32 %v1208_v58, %v1207_v56 }
 0x100   : > { %v717_v63 = vmax.f32 %v591_v59, 0.0  ;;  %v733_v0 = vmax.f32 %v655_v60, 0.0  ;;  %v594_v1 = vadd.f32 %v1161_v61, %v1509_v50  ;;  %v658_v2 = vadd.f32 %v1209_v62, %v1509_v50 }
 0x102   : > { %v1108_v3 = vpack.c.bf16 %v717_v63, %v717_v63  ;;  %v1124_v4 = vpack.c.bf16 %v733_v0, %v733_v0  ;;  %v718_v5 = vmax.f32 %v594_v1, 0.0  ;;  %v734_v6 = vmax.f32 %v658_v2, 0.0  ;;  %v1162_v7 = vpop.f32.mrb[4].mxu0  ;;  %v1210_v8 = vpop.f32.mrb[4].mxu1 }
 0x103   : > { %v1163_v9 = vpop.f32.mrb[5].mxu0  ;;  %v1211_v10 = vpop.f32.mrb[5].mxu1 }
 0x104   : > { %878 = vst.msk [vmem:[%s1519_s8] sm:$0xf] %vm877_vm0, %v1108_v3  ;;  %894 = vst.msk [vmem:[%s1519_s8 + $0x40] sm:$0xf] %vm877_vm0, %v1124_v4  ;;  %v1109_v11 = vpack.c.bf16 %v718_v5, %v718_v5  ;;  %v1125_v12 = vpack.c.bf16 %v734_v6, %v734_v6  ;;  %v1164_v13 = vadd.f32 %v1163_v9, %v1162_v7  ;;  %v1165_v15 = vpop.f32.mrb[6].mxu0  ;;  %v1213_v16 = vpop.f32.mrb[6].mxu1 }
 0x105   : > { %v1212_v14 = vadd.f32 %v1211_v10, %v1210_v8  ;;  %v1166_v17 = vpop.f32.mrb[7].mxu0  ;;  %v1214_v18 = vpop.f32.mrb[7].mxu1 }
 0x106   : > { %879 = vst.msk [vmem:[%s1519_s8 + $0x4] sm:$0xf] %vm877_vm0, %v1109_v11  ;;  %895 = vst.msk [vmem:[%s1519_s8 + $0x44] sm:$0xf] %vm877_vm0, %v1125_v12  ;;  %v599_v19 = vadd.f32 %v1164_v13, %v1509_v50  ;;  %v1167_v21 = vadd.f32 %v1166_v17, %v1165_v15  ;;  %v1215_v22 = vadd.f32 %v1214_v18, %v1213_v16 }
 0x107   : > { %v663_v20 = vadd.f32 %v1212_v14, %v1509_v50 }
 0x108   : > { %v719_v23 = vmax.f32 %v599_v19, 0.0  ;;  %v602_v25 = vadd.f32 %v1167_v21, %v1509_v50  ;;  %v666_v26 = vadd.f32 %v1215_v22, %v1509_v50 }
 0x109   : > { %v735_v24 = vmax.f32 %v663_v20, 0.0 }
 0x10a   : > { %v1110_v27 = vpack.c.bf16 %v719_v23, %v719_v23  ;;  %v720_v29 = vmax.f32 %v602_v25, 0.0  ;;  %v736_v30 = vmax.f32 %v666_v26, 0.0  ;;  %v1168_v31 = vpop.f32.mrb[8].mxu0  ;;  %v1216_v32 = vpop.f32.mrb[8].mxu1 }
 0x10b   : > { %v1126_v28 = vpack.c.bf16 %v735_v24, %v735_v24  ;;  %v1169_v33 = vpop.f32.mrb[9].mxu0  ;;  %v1217_v34 = vpop.f32.mrb[9].mxu1 }
 0x10c   : > { %880 = vst.msk [vmem:[%s1519_s8 + $0x8] sm:$0xf] %vm877_vm0, %v1110_v27  ;;  %v1111_v35 = vpack.c.bf16 %v720_v29, %v720_v29  ;;  %v1127_v36 = vpack.c.bf16 %v736_v30, %v736_v30  ;;  %v1170_v37 = vadd.f32 %v1169_v33, %v1168_v31  ;;  %v1218_v38 = vadd.f32 %v1217_v34, %v1216_v32  ;;  %v1171_v39 = vpop.f32.mrb[10].mxu0  ;;  %v1219_v40 = vpop.f32.mrb[10].mxu1 }
 0x10d   : > { %896 = vst.msk [vmem:[%s1519_s8 + $0x48] sm:$0xf] %vm877_vm0, %v1126_v28  ;;  %v1172_v41 = vpop.f32.mrb[11].mxu0  ;;  %v1220_v42 = vpop.f32.mrb[11].mxu1 }
 0x10e   : > { %881 = vst.msk [vmem:[%s1519_s8 + $0xc] sm:$0xf] %vm877_vm0, %v1111_v35  ;;  %897 = vst.msk [vmem:[%s1519_s8 + $0x4c] sm:$0xf] %vm877_vm0, %v1127_v36  ;;  %v607_v43 = vadd.f32 %v1170_v37, %v1509_v50  ;;  %v671_v44 = vadd.f32 %v1218_v38, %v1509_v50  ;;  %v1173_v45 = vadd.f32 %v1172_v41, %v1171_v39 }
 0x10f   : > { %v1221_v46 = vadd.f32 %v1220_v42, %v1219_v40 }
 0x110   : > { %v721_v47 = vmax.f32 %v607_v43, 0.0  ;;  %v737_v48 = vmax.f32 %v671_v44, 0.0  ;;  %v610_v49 = vadd.f32 %v1173_v45, %v1509_v50 }
 0x111   : > { %v674_v51 = vadd.f32 %v1221_v46, %v1509_v50 }
 0x112   : > { %v1112_v52 = vpack.c.bf16 %v721_v47, %v721_v47  ;;  %v1128_v53 = vpack.c.bf16 %v737_v48, %v737_v48  ;;  %v722_v54 = vmax.f32 %v610_v49, 0.0  ;;  %v1174_v56 = vpop.f32.mrb[12].mxu0  ;;  %v1222_v57 = vpop.f32.mrb[12].mxu1 }
 0x113   : > { %v738_v55 = vmax.f32 %v674_v51, 0.0  ;;  %v1175_v58 = vpop.f32.mrb[13].mxu0  ;;  %v1223_v59 = vpop.f32.mrb[13].mxu1 }
 0x114   : > { %882 = vst.msk [vmem:[%s1519_s8 + $0x10] sm:$0xf] %vm877_vm0, %v1112_v52  ;;  %898 = vst.msk [vmem:[%s1519_s8 + $0x50] sm:$0xf] %vm877_vm0, %v1128_v53  ;;  %v1113_v60 = vpack.c.bf16 %v722_v54, %v722_v54  ;;  %v1176_v62 = vadd.f32 %v1175_v58, %v1174_v56  ;;  %v1224_v63 = vadd.f32 %v1223_v59, %v1222_v57  ;;  %v1177_v0 = vpop.f32.mrb[14].mxu0  ;;  %v1225_v1 = vpop.f32.mrb[14].mxu1 }
 0x115   : > { %v1129_v61 = vpack.c.bf16 %v738_v55, %v738_v55  ;;  %v1178_v2 = vpop.f32.mrb[15].mxu0  ;;  %v1226_v3 = vpop.f32.mrb[15].mxu1 }
 0x116   : > { %883 = vst.msk [vmem:[%s1519_s8 + $0x14] sm:$0xf] %vm877_vm0, %v1113_v60  ;;  %v615_v4 = vadd.f32 %v1176_v62, %v1509_v50  ;;  %v679_v5 = vadd.f32 %v1224_v63, %v1509_v50  ;;  %v1179_v6 = vadd.f32 %v1178_v2, %v1177_v0  ;;  %v1227_v7 = vadd.f32 %v1226_v3, %v1225_v1 }
 0x117   : > { %899 = vst.msk [vmem:[%s1519_s8 + $0x54] sm:$0xf] %vm877_vm0, %v1129_v61 }
 0x118   : > { %v723_v8 = vmax.f32 %v615_v4, 0.0  ;;  %v739_v9 = vmax.f32 %v679_v5, 0.0  ;;  %v618_v10 = vadd.f32 %v1179_v6, %v1509_v50  ;;  %v682_v11 = vadd.f32 %v1227_v7, %v1509_v50 }
 0x11a   : > { %v1114_v12 = vpack.c.bf16 %v723_v8, %v723_v8  ;;  %v1130_v13 = vpack.c.bf16 %v739_v9, %v739_v9  ;;  %v724_v14 = vmax.f32 %v618_v10, 0.0  ;;  %v740_v15 = vmax.f32 %v682_v11, 0.0  ;;  %v1180_v16 = vpop.f32.mrb[16].mxu0  ;;  %v1228_v17 = vpop.f32.mrb[16].mxu1 }
 0x11b   : > { %v1181_v18 = vpop.f32.mrb[17].mxu0  ;;  %v1229_v19 = vpop.f32.mrb[17].mxu1 }
 0x11c   : > { %884 = vst.msk [vmem:[%s1519_s8 + $0x18] sm:$0xf] %vm877_vm0, %v1114_v12  ;;  %900 = vst.msk [vmem:[%s1519_s8 + $0x58] sm:$0xf] %vm877_vm0, %v1130_v13  ;;  %v1115_v20 = vpack.c.bf16 %v724_v14, %v724_v14  ;;  %v1131_v21 = vpack.c.bf16 %v740_v15, %v740_v15  ;;  %v1182_v22 = vadd.f32 %v1181_v18, %v1180_v16  ;;  %v1183_v24 = vpop.f32.mrb[18].mxu0  ;;  %v1231_v25 = vpop.f32.mrb[18].mxu1 }
 0x11d   : > { %v1230_v23 = vadd.f32 %v1229_v19, %v1228_v17  ;;  %v1184_v26 = vpop.f32.mrb[19].mxu0  ;;  %v1232_v27 = vpop.f32.mrb[19].mxu1 }
 0x11e   : > { %885 = vst.msk [vmem:[%s1519_s8 + $0x1c] sm:$0xf] %vm877_vm0, %v1115_v20  ;;  %901 = vst.msk [vmem:[%s1519_s8 + $0x5c] sm:$0xf] %vm877_vm0, %v1131_v21  ;;  %v623_v28 = vadd.f32 %v1182_v22, %v1509_v50  ;;  %v1185_v30 = vadd.f32 %v1184_v26, %v1183_v24  ;;  %v1233_v31 = vadd.f32 %v1232_v27, %v1231_v25 }
 0x11f   : > { %v687_v29 = vadd.f32 %v1230_v23, %v1509_v50 }
 0x120   : > { %v725_v32 = vmax.f32 %v623_v28, 0.0  ;;  %v626_v34 = vadd.f32 %v1185_v30, %v1509_v50  ;;  %v690_v35 = vadd.f32 %v1233_v31, %v1509_v50 }
 0x121   : > { %v741_v33 = vmax.f32 %v687_v29, 0.0 }
 0x122   : > { %v1116_v36 = vpack.c.bf16 %v725_v32, %v725_v32  ;;  %v726_v38 = vmax.f32 %v626_v34, 0.0  ;;  %v742_v39 = vmax.f32 %v690_v35, 0.0  ;;  %v1186_v40 = vpop.f32.mrb[20].mxu0  ;;  %v1234_v41 = vpop.f32.mrb[20].mxu1 }
 0x123   : > { %v1132_v37 = vpack.c.bf16 %v741_v33, %v741_v33  ;;  %v1187_v42 = vpop.f32.mrb[21].mxu0  ;;  %v1235_v43 = vpop.f32.mrb[21].mxu1 }
 0x124   : > { %886 = vst.msk [vmem:[%s1519_s8 + $0x20] sm:$0xf] %vm877_vm0, %v1116_v36  ;;  %v1117_v44 = vpack.c.bf16 %v726_v38, %v726_v38  ;;  %v1133_v45 = vpack.c.bf16 %v742_v39, %v742_v39  ;;  %v1188_v46 = vadd.f32 %v1187_v42, %v1186_v40  ;;  %v1236_v47 = vadd.f32 %v1235_v43, %v1234_v41  ;;  %v1189_v48 = vpop.f32.mrb[22].mxu0  ;;  %v1237_v49 = vpop.f32.mrb[22].mxu1 }
 0x125   : > { %902 = vst.msk [vmem:[%s1519_s8 + $0x60] sm:$0xf] %vm877_vm0, %v1132_v37  ;;  %v1190_v51 = vpop.f32.mrb[23].mxu0  ;;  %v1238_v52 = vpop.f32.mrb[23].mxu1 }
 0x126   : > { %887 = vst.msk [vmem:[%s1519_s8 + $0x24] sm:$0xf] %vm877_vm0, %v1117_v44  ;;  %903 = vst.msk [vmem:[%s1519_s8 + $0x64] sm:$0xf] %vm877_vm0, %v1133_v45  ;;  %v631_v53 = vadd.f32 %v1188_v46, %v1509_v50  ;;  %v695_v54 = vadd.f32 %v1236_v47, %v1509_v50  ;;  %v1191_v55 = vadd.f32 %v1190_v51, %v1189_v48 }
 0x127   : > { %v1239_v56 = vadd.f32 %v1238_v52, %v1237_v49 }
 0x128   : > { %v727_v57 = vmax.f32 %v631_v53, 0.0  ;;  %v743_v58 = vmax.f32 %v695_v54, 0.0  ;;  %v634_v59 = vadd.f32 %v1191_v55, %v1509_v50 }
 0x129   : > { %v698_v60 = vadd.f32 %v1239_v56, %v1509_v50 }
 0x12a   : > { %v1118_v61 = vpack.c.bf16 %v727_v57, %v727_v57  ;;  %v1134_v62 = vpack.c.bf16 %v743_v58, %v743_v58  ;;  %v728_v63 = vmax.f32 %v634_v59, 0.0  ;;  %v1192_v1 = vpop.f32.mrb[24].mxu0  ;;  %v1240_v2 = vpop.f32.mrb[24].mxu1 }
 0x12b   : > { %v744_v0 = vmax.f32 %v698_v60, 0.0  ;;  %v1193_v3 = vpop.f32.mrb[25].mxu0  ;;  %v1241_v4 = vpop.f32.mrb[25].mxu1 }
 0x12c   : > { %888 = vst.msk [vmem:[%s1519_s8 + $0x28] sm:$0xf] %vm877_vm0, %v1118_v61  ;;  %904 = vst.msk [vmem:[%s1519_s8 + $0x68] sm:$0xf] %vm877_vm0, %v1134_v62  ;;  %v1119_v5 = vpack.c.bf16 %v728_v63, %v728_v63  ;;  %v1194_v7 = vadd.f32 %v1193_v3, %v1192_v1  ;;  %v1242_v8 = vadd.f32 %v1241_v4, %v1240_v2  ;;  %v1195_v9 = vpop.f32.mrb[26].mxu0  ;;  %v1243_v10 = vpop.f32.mrb[26].mxu1 }
 0x12d   : > { %v1135_v6 = vpack.c.bf16 %v744_v0, %v744_v0  ;;  %v1196_v11 = vpop.f32.mrb[27].mxu0  ;;  %v1244_v12 = vpop.f32.mrb[27].mxu1 }
 0x12e   : > { %889 = vst.msk [vmem:[%s1519_s8 + $0x2c] sm:$0xf] %vm877_vm0, %v1119_v5  ;;  %v639_v13 = vadd.f32 %v1194_v7, %v1509_v50  ;;  %v703_v14 = vadd.f32 %v1242_v8, %v1509_v50  ;;  %v1197_v15 = vadd.f32 %v1196_v11, %v1195_v9  ;;  %v1245_v16 = vadd.f32 %v1244_v12, %v1243_v10 }
 0x12f   : > { %905 = vst.msk [vmem:[%s1519_s8 + $0x6c] sm:$0xf] %vm877_vm0, %v1135_v6 }
 0x130   : > { %v729_v17 = vmax.f32 %v639_v13, 0.0  ;;  %v745_v18 = vmax.f32 %v703_v14, 0.0  ;;  %v642_v19 = vadd.f32 %v1197_v15, %v1509_v50  ;;  %v706_v20 = vadd.f32 %v1245_v16, %v1509_v50 }
 0x132   : > { %v1120_v21 = vpack.c.bf16 %v729_v17, %v729_v17  ;;  %v1136_v22 = vpack.c.bf16 %v745_v18, %v745_v18  ;;  %v730_v23 = vmax.f32 %v642_v19, 0.0  ;;  %v746_v24 = vmax.f32 %v706_v20, 0.0  ;;  %v1198_v25 = vpop.f32.mrb[28].mxu0  ;;  %v1246_v26 = vpop.f32.mrb[28].mxu1 }
 0x133   : > { %v1199_v27 = vpop.f32.mrb[29].mxu0  ;;  %v1247_v28 = vpop.f32.mrb[29].mxu1 }
 0x134   : > { %890 = vst.msk [vmem:[%s1519_s8 + $0x30] sm:$0xf] %vm877_vm0, %v1120_v21  ;;  %906 = vst.msk [vmem:[%s1519_s8 + $0x70] sm:$0xf] %vm877_vm0, %v1136_v22  ;;  %v1121_v29 = vpack.c.bf16 %v730_v23, %v730_v23  ;;  %v1137_v30 = vpack.c.bf16 %v746_v24, %v746_v24  ;;  %v1200_v31 = vadd.f32 %v1199_v27, %v1198_v25  ;;  %v1201_v33 = vpop.f32.mrb[30].mxu0  ;;  %v1249_v34 = vpop.f32.mrb[30].mxu1 }
 0x135   : > { %v1248_v32 = vadd.f32 %v1247_v28, %v1246_v26  ;;  %v1202_v35 = vpop.f32.mrb[31].mxu0  ;;  %v1250_v36 = vpop.f32.mrb[31].mxu1 }
 0x136   : > { %891 = vst.msk [vmem:[%s1519_s8 + $0x34] sm:$0xf] %vm877_vm0, %v1121_v29  ;;  %907 = vst.msk [vmem:[%s1519_s8 + $0x74] sm:$0xf] %vm877_vm0, %v1137_v30  ;;  %v647_v37 = vadd.f32 %v1200_v31, %v1509_v50  ;;  %v1203_v39 = vadd.f32 %v1202_v35, %v1201_v33  ;;  %v1251_v40 = vadd.f32 %v1250_v36, %v1249_v34 }
 0x137   : > { %v711_v38 = vadd.f32 %v1248_v32, %v1509_v50 }
 0x138   : > { %v731_v41 = vmax.f32 %v647_v37, 0.0  ;;  %v650_v43 = vadd.f32 %v1203_v39, %v1509_v50  ;;  %v714_v44 = vadd.f32 %v1251_v40, %v1509_v50 }
 0x139   : > { %v747_v42 = vmax.f32 %v711_v38, 0.0 }
 0x13a   : > { %v1122_v45 = vpack.c.bf16 %v731_v41, %v731_v41  ;;  %v732_v47 = vmax.f32 %v650_v43, 0.0  ;;  %v748_v48 = vmax.f32 %v714_v44, 0.0 }
 0x13b   : > { %v1138_v46 = vpack.c.bf16 %v747_v42, %v747_v42 }
 0x13c   : > { %892 = vst.msk [vmem:[%s1519_s8 + $0x38] sm:$0xf] %vm877_vm0, %v1122_v45  ;;  %v1123_v49 = vpack.c.bf16 %v732_v47, %v732_v47  ;;  %v1139_v51 = vpack.c.bf16 %v748_v48, %v748_v48 }
 0x13d   : > { %908 = vst.msk [vmem:[%s1519_s8 + $0x78] sm:$0xf] %vm877_vm0, %v1138_v46 }
 0x13e   : > { %893 = vst.msk [vmem:[%s1519_s8 + $0x3c] sm:$0xf] %vm877_vm0, %v1123_v49  ;;  %909 = vst.msk [vmem:[%s1519_s8 + $0x7c] sm:$0xf] %vm877_vm0, %v1139_v51 }
 0x13f PF: > { %s13_s14 = sadd.s32 1, %s1378_s14   ;;  %s1626_s12 = smov %s1374_s13 }
 0x140   : > { %p10_p5 = scmp.ge.s32.totalorder %s13_s14, 4   ;;  %s1627_s13 = smov %s1629_s15 }
 0x142   :  { %12 = sbr.rel (!%p10_p5) target bundleno = 2 (0x2), region = 68 }

// kernel: forward_fn.33
= control target key start
LH: loop header
LB: loop body
LE: loop exit
PB: predicated region body
PF: predicated region fallthrough
CT: control target
= control target key end

     0   :  { %s858_s12 = smov 0   ;;  %s860_s13 = smov 0   ;;  %s956_s0 = inlined_call_operand.vmem [shape: bf16[128,256], index: 0, kind: input, shape index: {}]   ;;  %s957_s1 = inlined_call_operand.vmem [shape: bf16[256,128], index: 1, kind: input, shape index: {}]   ;;  %s958_s2 = inlined_call_operand.vmem [shape: f32[1,128], index: 2, kind: input, shape index: {}]   ;;  %s959_s3 = inlined_call_operand.vmem [shape: bf16[128,128], index: 3, kind: output, shape index: {}]  }
   0x1   :  { %s862_s14 = smov 0  }
   0x2 LB: > { %s22_s15 = sadd.s32 1, %s832_s13  ;;  %p633_p0 = scmp.ge.s32.totalorder %s836_s14, 1  ;;  %s836_s14 = sphi %s862_s14, %s13_s14   ;;  %s832_s13 = sphi %s860_s13, %s961_s13   ;;  %s828_s12 = sphi %s858_s12, %s960_s12  }
   0x3   : > { %p23_p1 = scmp.ge.s32.totalorder %s22_s15, 2  ;;  %p170_p2 = scmp.lt.s32.totalorder %s836_s14, 3 }
   0x5   : > { %s963_s15 = smov (%p23_p1, %s22_s15), 0  ;;  %p171_p3 = pnand %p633_p0, %p170_p2 }
   0x6   : > { %v786_v0 = vld [vmem:[%s957_s1 + $0x40] sm:$0xff] (!%p171_p3)   ;;  %s634_s18 = sshll.u32 (!%p171_p3), %s828_s12, 3  ;;  %v788_v2 = vld [vmem:[%s957_s1 + $0x48] sm:$0xff] (!%p171_p3)   ;;  %v790_v4 = vld [vmem:[%s957_s1 + $0x50] sm:$0xff] (!%p171_p3)  }
   0x7   : > { %174 = sbr.rel (%p171_p3) target bundleno = 272 (0x110), region = 32  ;;  %v787_v1 = vld [vmem:[%s957_s1] sm:$0xff] (!%p171_p3)   ;;  %706 = vmatprep.subr.bf16.mxu0 (!%p171_p3), %v786_v0  ;;  %746 = vmatprep.subr.bf16.mxu1 (!%p171_p3), %v786_v0  ;;  %v789_v3 = vld [vmem:[%s957_s1 + $0x8] sm:$0xff] (!%p171_p3)   ;;  %p206_p4 = scmp.lt.s32.totalorder (!%p171_p3), %s634_s18, 15  ;;  %v791_v5 = vld [vmem:[%s957_s1 + $0x10] sm:$0xff] (!%p171_p3)  }
   0x8   : > { %707 = vmatpush3.bf16.msra.mxu0 (!%p171_p3), %v787_v1  ;;  %754 = vmatpush3.bf16.msra.mxu1 (!%p171_p3), %v787_v1  ;;  %v792_v6 = vld [vmem:[%s957_s1 + $0x58] sm:$0xff] (!%p171_p3)   ;;  %v794_v8 = vld [vmem:[%s957_s1 + $0x60] sm:$0xff] (!%p171_p3)   ;;  %v796_v10 = vld [vmem:[%s957_s1 + $0x68] sm:$0xff] (!%p171_p3)  }
   0x9   : > { %708 = vmatprep.subr.bf16.mxu0 (!%p171_p3), %v788_v2  ;;  %747 = vmatprep.subr.bf16.mxu1 (!%p171_p3), %v788_v2  ;;  %v793_v7 = vld [vmem:[%s957_s1 + $0x18] sm:$0xff] (!%p171_p3)   ;;  %v795_v9 = vld [vmem:[%s957_s1 + $0x20] sm:$0xff] (!%p171_p3)   ;;  %v797_v13 = vld [vmem:[%s957_s1 + $0x28] sm:$0xff] (!%p171_p3)  }
   0xa   : > { %v798_v14 = vld [vmem:[%s957_s1 + $0x70] sm:$0xff] (!%p171_p3)   ;;  %v800_v16 = vld [vmem:[%s957_s1 + $0x78] sm:$0xff] (!%p171_p3)   ;;  %v639_v26 = vld [vmem:[%s958_s2] ss:$0 sm:$0xff] (!%p171_p3) }
   0xb   : > { %v799_v15 = vld [vmem:[%s957_s1 + $0x30] sm:$0xff] (!%p171_p3)   ;;  %v801_v17 = vld [vmem:[%s957_s1 + $0x38] sm:$0xff] (!%p171_p3)  }
   0xc   : > { %709 = vmatpush3.bf16.msra.mxu0 (!%p171_p3), %v789_v3  ;;  %755 = vmatpush3.bf16.msra.mxu1 (!%p171_p3), %v789_v3 }
   0xd   : > { %710 = vmatprep.subr.bf16.mxu0 (!%p171_p3), %v790_v4  ;;  %748 = vmatprep.subr.bf16.mxu1 (!%p171_p3), %v790_v4 }
   0xe   : > { %s965_s18 = smov (!%p206_p4, %s634_s18), 15 }
   0xf   : > { %s674_s6 = sshll.u32 %s965_s18, 3  ;;  %s638_s5 = sshll.u32 %s965_s18, 2 }
  0x10   : > { %711 = vmatpush3.bf16.msra.mxu0 %v791_v5  ;;  %756 = vmatpush3.bf16.msra.mxu1 %v791_v5  ;;  %s909_s11 = scalar_lea.vmem %s956_s0, %s674_s6  ;;  %s226_s8 = scalar_lea.vmem %s959_s3, %s638_s5 }
  0x11   : > { %712 = vmatprep.subr.bf16.mxu0 %v792_v6  ;;  %749 = vmatprep.subr.bf16.mxu1 %v792_v6  ;;  %v804_v11 = vld [vmem:[%s909_s11 + $0x4] ss:$8 sps:$4 sm:$0xff]   ;;  %v802_v18 = vld [vmem:[%s909_s11] ss:$8 sps:$4 sm:$0xff]   ;;  %v808_v20 = vld [vmem:[%s909_s11 + $0x14] ss:$8 sps:$4 sm:$0xff]  }
  0x12   : > { %v807_v12 = vld [vmem:[%s909_s11 + $0x24] ss:$8 sps:$4 sm:$0xff]   ;;  %444 = vmatprep.mubr.bf16.mxu0 %v804_v11  ;;  %v805_v19 = vld [vmem:[%s909_s11 + $0x20] ss:$8 sps:$4 sm:$0xff]   ;;  %v810_v21 = vld [vmem:[%s909_s11 + $0x34] ss:$8 sps:$4 sm:$0xff]  }
  0x13   : > { %460 = vmatprep.mubr.bf16.mxu1 %v807_v12  ;;  %v812_v22 = vld [vmem:[%s909_s11 + $0x10] ss:$8 sps:$4 sm:$0xff]  }
  0x14   : > { %713 = vmatpush3.bf16.msra.mxu0 %v793_v7  ;;  %757 = vmatpush3.bf16.msra.mxu1 %v793_v7  ;;  %v813_v23 = vld [vmem:[%s909_s11 + $0x30] ss:$8 sps:$4 sm:$0xff]  }
  0x15   : > { %714 = vmatprep.subr.bf16.mxu0 %v794_v8  ;;  %750 = vmatprep.subr.bf16.mxu1 %v794_v8 }
  0x18   : > { %715 = vmatpush3.bf16.msra.mxu0 %v795_v9  ;;  %758 = vmatpush3.bf16.msra.mxu1 %v795_v9 }
  0x19   : > { %716 = vmatprep.subr.bf16.mxu0 %v796_v10  ;;  %751 = vmatprep.subr.bf16.mxu1 %v796_v10 }
  0x1c   : > { %717 = vmatpush3.bf16.msra.mxu0 %v797_v13  ;;  %759 = vmatpush3.bf16.msra.mxu1 %v797_v13 }
  0x1d   : > { %718 = vmatprep.subr.bf16.mxu0 %v798_v14  ;;  %752 = vmatprep.subr.bf16.mxu1 %v798_v14 }
  0x20   : > { %719 = vmatpush3.bf16.msra.mxu0 %v799_v15  ;;  %760 = vmatpush3.bf16.msra.mxu1 %v799_v15 }
  0x21   : > { %720 = vmatprep.subr.bf16.mxu0 %v800_v16  ;;  %753 = vmatprep.subr.bf16.mxu1 %v800_v16 }
  0x24   : > { %721 = vmatpush3.bf16.msra.mxu0 %v801_v17  ;;  %761 = vmatpush3.bf16.msra.mxu1 %v801_v17 }
  0x27   : > { %445 = vmatmul.mubr.bf16.vlgmr.msra.gmra.mrb[0].mxu0 %v802_v18  ;;  %461 = vmatmul.mubr.bf16.vlgmr.msra.gmra.mrb[0].mxu1 %v805_v19 }
  0x28   : > { %452 = vmatprep.mubr.bf16.mxu0 %v808_v20  ;;  %468 = vmatprep.mubr.bf16.mxu1 %v810_v21 }
  0x2f   : > { %453 = vmatmul.mubr.bf16.gmra.mrb[4].mxu0 %v812_v22  ;;  %469 = vmatmul.mubr.bf16.gmra.mrb[4].mxu1 %v813_v23 }
  0xfa   : > { %v722_v24 = vpop.f32.mrb[0].mxu0  ;;  %v734_v25 = vpop.f32.mrb[0].mxu1 }
  0xfb   : > { %v723_v27 = vpop.f32.mrb[1].mxu0  ;;  %v735_v28 = vpop.f32.mrb[1].mxu1 }
  0xfc   : > { %v724_v29 = vadd.f32 %v723_v27, %v722_v24  ;;  %v736_v30 = vadd.f32 %v735_v28, %v734_v25  ;;  %v725_v31 = vpop.f32.mrb[2].mxu0  ;;  %v737_v32 = vpop.f32.mrb[2].mxu1 }
  0xfd   : > { %v726_v33 = vpop.f32.mrb[3].mxu0  ;;  %v738_v34 = vpop.f32.mrb[3].mxu1 }
  0xfe   : > { %v447_v35 = vadd.f32 %v724_v29, %v639_v26  ;;  %v463_v36 = vadd.f32 %v736_v30, %v639_v26  ;;  %v727_v37 = vadd.f32 %v726_v33, %v725_v31  ;;  %v739_v38 = vadd.f32 %v738_v34, %v737_v32 }
 0x100   : > { %v450_v39 = vadd.f32 %v727_v37, %v639_v26  ;;  %v466_v40 = vadd.f32 %v739_v38, %v639_v26  ;;  %v477_v41 = vmax.f32 %v447_v35, 0.0  ;;  %v481_v42 = vmax.f32 %v463_v36, 0.0 }
 0x102   : > { %v478_v43 = vmax.f32 %v450_v39, 0.0  ;;  %v482_v44 = vmax.f32 %v466_v40, 0.0  ;;  %v728_v45 = vpop.f32.mrb[4].mxu0  ;;  %v740_v46 = vpop.f32.mrb[4].mxu1 }
 0x103   : > { %v729_v47 = vpop.f32.mrb[5].mxu0  ;;  %v741_v48 = vpop.f32.mrb[5].mxu1 }
 0x104   : > { %v686_v49 = vpack.c.bf16 %v478_v43, %v477_v41  ;;  %v696_v50 = vpack.c.bf16 %v482_v44, %v481_v42  ;;  %v730_v51 = vadd.f32 %v729_v47, %v728_v45  ;;  %v742_v52 = vadd.f32 %v741_v48, %v740_v46  ;;  %v731_v53 = vpop.f32.mrb[6].mxu0  ;;  %v743_v54 = vpop.f32.mrb[6].mxu1 }
 0x105   : > { %v732_v55 = vpop.f32.mrb[7].mxu0  ;;  %v744_v56 = vpop.f32.mrb[7].mxu1 }
 0x106   : > { %687 = vst [vmem:[%s226_s8] sm:$0xff] %v686_v49   ;;  %704 = vst [vmem:[%s226_s8 + $0x10] sm:$0xff] %v696_v50   ;;  %v455_v57 = vadd.f32 %v730_v51, %v639_v26  ;;  %v471_v58 = vadd.f32 %v742_v52, %v639_v26  ;;  %v733_v59 = vadd.f32 %v732_v55, %v731_v53 }
 0x107   : > { %v745_v60 = vadd.f32 %v744_v56, %v743_v54 }
 0x108   : > { %v458_v61 = vadd.f32 %v733_v59, %v639_v26  ;;  %v479_v63 = vmax.f32 %v455_v57, 0.0  ;;  %v483_v0 = vmax.f32 %v471_v58, 0.0 }
 0x109   : > { %v474_v62 = vadd.f32 %v745_v60, %v639_v26 }
 0x10a   : > { %v480_v1 = vmax.f32 %v458_v61, 0.0 }
 0x10b   : > { %v484_v2 = vmax.f32 %v474_v62, 0.0 }
 0x10c   : > { %v691_v3 = vpack.c.bf16 %v480_v1, %v479_v63 }
 0x10d   : > { %v701_v4 = vpack.c.bf16 %v484_v2, %v483_v0 }
 0x10e   : > { %703 = vst [vmem:[%s226_s8 + $0x8] sm:$0xff] %v691_v3  }
 0x10f   : > { %705 = vst [vmem:[%s226_s8 + $0x18] sm:$0xff] %v701_v4  }
 0x110 PF: > { %s13_s14 = sadd.s32 1, %s836_s14   ;;  %s960_s12 = smov %s832_s13 }
 0x111   : > { %p10_p5 = scmp.ge.s32.totalorder %s13_s14, 4   ;;  %s961_s13 = smov %s963_s15 }
 0x113   :  { %12 = sbr.rel (!%p10_p5) target bundleno = 2 (0x2), region = 68 }

// kernel: forward_fn.32
= control target key start
LH: loop header
LB: loop body
LE: loop exit
PB: predicated region body
PF: predicated region fallthrough
CT: control target
= control target key end

     0   :  { %s1407_s15 = smov 0   ;;  %s1409_s16 = smov 0   ;;  %s1632_s0 = inlined_call_operand.vmem [shape: bf16[128,128], index: 0, kind: input, shape index: {}]   ;;  %s1633_s1 = inlined_call_operand.vmem [shape: bf16[128,256], index: 1, kind: input, shape index: {}]   ;;  %s1634_s2 = inlined_call_operand.vmem [shape: f32[1,256], index: 2, kind: input, shape index: {}]   ;;  %s1635_s3 = inlined_call_operand.vmem [shape: bf16[128,256], index: 3, kind: input, shape index: {}]   ;;  %s1636_s4 = inlined_call_operand.vmem [shape: bf16[128,256], index: 4, kind: output, shape index: {}]  }
   0x1   :  { %s1411_s17 = smov 0   ;;  %s1413_s18 = smov 0  }
   0x2   :  { %s1415_s19 = smov 0  }
   0x3 LB: > { %s23_s20 = sadd.s32 1, %s1376_s18  ;;  %s1070_s21 = sadd.s32 4294967295, %s1380_s19   ;;  %s1380_s19 = sphi %s1415_s19, %s14_s19   ;;  %s1376_s18 = sphi %s1413_s18, %s1642_s18   ;;  %s1372_s17 = sphi %s1411_s17, %s1641_s17   ;;  %s1368_s16 = sphi %s1409_s16, %s1640_s16   ;;  %s1364_s15 = sphi %s1407_s15, %s1639_s15  }
   0x4   : > { %p24_p0 = scmp.ge.s32.totalorder %s23_s20, 2  ;;  %p66_p1 = scmp.ne.s32.totalorder %s1368_s16, %s1364_s15 }
   0x5   : > { %p67_p2 = scmp.eq.s32.totalorder %s1380_s19, 0  ;;  %p152_p4 = scmp.eq.s32.totalorder %s1070_s21, 1 }
   0x6   : > { %s1644_s20 = smov (%p24_p0, %s23_s20), 0  ;;  %s59_s24 = sadd.s32 1, %s1368_s16 }
   0x7   : > { %p1439_p3 = por %p67_p2, %p66_p1  ;;  %s56_s23 = ssub.s32 %s1376_s18, %s1644_s20 }
   0x8   : > { %p57_p5 = scmp.eq.s32.totalorder %s56_s23, 0  ;;  %p1446_p6 = por %p152_p4, %p66_p1 }
   0x9   : > { %p1074_p7 = scmp.ge.s32.totalorder %s1380_s19, 2 }
   0xa   : > { %s1451_s26 = scalar_select %p57_p5, %s1368_s16, %s59_s24  }
   0xb   : > { %183 = sbr.rel (%p1074_p7) target bundleno = 46 (0x2e), region = 20 }
  0x12   : > { %186 = sbr.rel (!%p1439_p3) target bundleno = 32 (0x20), region = 24  ;;  %s188_s27 = sand.u32 (%p1439_p3), 1, %s1368_s16  }
  0x13   : > { %s1076_s28 = sshll.u32 (%p1439_p3), %s1376_s18, 2  ;;  %s1075_s29 = sshll.u32 (%p1439_p3), %s188_s27, 6 }
  0x14   : > { %s1461_s6 = scalar_lea.vmem (%p1439_p3), %s1633_s1, %s1076_s28  ;;  %s190_s7 = scalar_lea.vmem (%p1439_p3), [#allocation2], %s1075_s29 }
  0x15   : > { %v208_v0 = vld [vmem:[%s1461_s6] sm:$0xf] (%p1439_p3)  ;;  %v210_v1 = vld [vmem:[%s1461_s6 + $0x8] sm:$0xf] (%p1439_p3)  ;;  %v212_v2 = vld [vmem:[%s1461_s6 + $0x10] sm:$0xf] (%p1439_p3) }
  0x16   : > { %209 = vst [vmem:[%s190_s7] sm:$0xf] (%p1439_p3), %v208_v0  ;;  %211 = vst [vmem:[%s190_s7 + $0x4] sm:$0xf] (%p1439_p3), %v210_v1  ;;  %v214_v3 = vld [vmem:[%s1461_s6 + $0x18] sm:$0xf] (%p1439_p3) }
  0x17   : > { %v216_v4 = vld [vmem:[%s1461_s6 + $0x20] sm:$0xf] (%p1439_p3)  ;;  %213 = vst [vmem:[%s190_s7 + $0x8] sm:$0xf] (%p1439_p3), %v212_v2  ;;  %215 = vst [vmem:[%s190_s7 + $0xc] sm:$0xf] (%p1439_p3), %v214_v3 }
  0x18   : > { %217 = vst [vmem:[%s190_s7 + $0x10] sm:$0xf] (%p1439_p3), %v216_v4  ;;  %v218_v5 = vld [vmem:[%s1461_s6 + $0x28] sm:$0xf] (%p1439_p3)  ;;  %v220_v6 = vld [vmem:[%s1461_s6 + $0x30] sm:$0xf] (%p1439_p3) }
  0x19   : > { %v222_v7 = vld [vmem:[%s1461_s6 + $0x38] sm:$0xf]  ;;  %219 = vst [vmem:[%s190_s7 + $0x14] sm:$0xf] %v218_v5  ;;  %221 = vst [vmem:[%s190_s7 + $0x18] sm:$0xf] %v220_v6 }
  0x1a   : > { %223 = vst [vmem:[%s190_s7 + $0x1c] sm:$0xf] %v222_v7  ;;  %v224_v8 = vld [vmem:[%s1461_s6 + $0x40] sm:$0xf]  ;;  %v226_v9 = vld [vmem:[%s1461_s6 + $0x48] sm:$0xf] }
  0x1b   : > { %v228_v10 = vld [vmem:[%s1461_s6 + $0x50] sm:$0xf]  ;;  %225 = vst [vmem:[%s190_s7 + $0x20] sm:$0xf] %v224_v8  ;;  %227 = vst [vmem:[%s190_s7 + $0x24] sm:$0xf] %v226_v9 }
  0x1c   : > { %229 = vst [vmem:[%s190_s7 + $0x28] sm:$0xf] %v228_v10  ;;  %v230_v11 = vld [vmem:[%s1461_s6 + $0x58] sm:$0xf]  ;;  %v232_v12 = vld [vmem:[%s1461_s6 + $0x60] sm:$0xf] }
  0x1d   : > { %v234_v13 = vld [vmem:[%s1461_s6 + $0x68] sm:$0xf]  ;;  %231 = vst [vmem:[%s190_s7 + $0x2c] sm:$0xf] %v230_v11  ;;  %233 = vst [vmem:[%s190_s7 + $0x30] sm:$0xf] %v232_v12 }
  0x1e   : > { %235 = vst [vmem:[%s190_s7 + $0x34] sm:$0xf] %v234_v13  ;;  %v236_v14 = vld [vmem:[%s1461_s6 + $0x70] sm:$0xf]  ;;  %v238_v15 = vld [vmem:[%s1461_s6 + $0x78] sm:$0xf] }
  0x1f   : > { %237 = vst [vmem:[%s190_s7 + $0x38] sm:$0xf] %v236_v14  ;;  %239 = vst [vmem:[%s190_s7 + $0x3c] sm:$0xf] %v238_v15 }
  0x20 PF: > { %300 = sbr.rel (!%p1439_p3) target bundleno = 46 (0x2e), region = 69  ;;  %s302_s8 = sand.u32 (%p1439_p3), 1, %s1368_s16  }
  0x21   : > { %s1078_s9 = sshll.u32 (%p1439_p3), %s1376_s18, 2  ;;  %s1077_s10 = sshll.u32 (%p1439_p3), %s302_s8, 6 }
  0x22   : > { %s1486_s13 = scalar_lea.vmem (%p1439_p3), %s1635_s3, %s1078_s9  ;;  %s304_s14 = scalar_lea.vmem (%p1439_p3), [#allocation3], %s1077_s10 }
  0x23   : > { %v325_v16 = vld [vmem:[%s1486_s13] sm:$0xf] (%p1439_p3)  ;;  %v327_v17 = vld [vmem:[%s1486_s13 + $0x8] sm:$0xf] (%p1439_p3)  ;;  %v329_v18 = vld [vmem:[%s1486_s13 + $0x10] sm:$0xf] (%p1439_p3) }
  0x24   : > { %326 = vst [vmem:[%s304_s14] sm:$0xf] (%p1439_p3), %v325_v16  ;;  %328 = vst [vmem:[%s304_s14 + $0x4] sm:$0xf] (%p1439_p3), %v327_v17  ;;  %v331_v19 = vld [vmem:[%s1486_s13 + $0x18] sm:$0xf] (%p1439_p3) }
  0x25   : > { %v333_v20 = vld [vmem:[%s1486_s13 + $0x20] sm:$0xf] (%p1439_p3)  ;;  %330 = vst [vmem:[%s304_s14 + $0x8] sm:$0xf] (%p1439_p3), %v329_v18  ;;  %332 = vst [vmem:[%s304_s14 + $0xc] sm:$0xf] (%p1439_p3), %v331_v19 }
  0x26   : > { %334 = vst [vmem:[%s304_s14 + $0x10] sm:$0xf] (%p1439_p3), %v333_v20  ;;  %v335_v21 = vld [vmem:[%s1486_s13 + $0x28] sm:$0xf] (%p1439_p3)  ;;  %v337_v22 = vld [vmem:[%s1486_s13 + $0x30] sm:$0xf] (%p1439_p3) }
  0x27   : > { %v339_v23 = vld [vmem:[%s1486_s13 + $0x38] sm:$0xf]  ;;  %336 = vst [vmem:[%s304_s14 + $0x14] sm:$0xf] %v335_v21  ;;  %338 = vst [vmem:[%s304_s14 + $0x18] sm:$0xf] %v337_v22 }
  0x28   : > { %340 = vst [vmem:[%s304_s14 + $0x1c] sm:$0xf] %v339_v23  ;;  %v341_v24 = vld [vmem:[%s1486_s13 + $0x40] sm:$0xf]  ;;  %v343_v25 = vld [vmem:[%s1486_s13 + $0x48] sm:$0xf] }
  0x29   : > { %v345_v26 = vld [vmem:[%s1486_s13 + $0x50] sm:$0xf]  ;;  %342 = vst [vmem:[%s304_s14 + $0x20] sm:$0xf] %v341_v24  ;;  %344 = vst [vmem:[%s304_s14 + $0x24] sm:$0xf] %v343_v25 }
  0x2a   : > { %346 = vst [vmem:[%s304_s14 + $0x28] sm:$0xf] %v345_v26  ;;  %v347_v27 = vld [vmem:[%s1486_s13 + $0x58] sm:$0xf]  ;;  %v349_v28 = vld [vmem:[%s1486_s13 + $0x60] sm:$0xf] }
  0x2b   : > { %v351_v29 = vld [vmem:[%s1486_s13 + $0x68] sm:$0xf]  ;;  %348 = vst [vmem:[%s304_s14 + $0x2c] sm:$0xf] %v347_v27  ;;  %350 = vst [vmem:[%s304_s14 + $0x30] sm:$0xf] %v349_v28 }
  0x2c   : > { %352 = vst [vmem:[%s304_s14 + $0x34] sm:$0xf] %v351_v29  ;;  %v353_v30 = vld [vmem:[%s1486_s13 + $0x70] sm:$0xf]  ;;  %v355_v31 = vld [vmem:[%s1486_s13 + $0x78] sm:$0xf] }
  0x2d   : > { %354 = vst [vmem:[%s304_s14 + $0x38] sm:$0xf] %v353_v30  ;;  %356 = vst [vmem:[%s304_s14 + $0x3c] sm:$0xf] %v355_v31 }
  0x2e PF: > { %p1079_p8 = scmp.ge.s32.totalorder %s1380_s19, 1  ;;  %p410_p9 = scmp.lt.s32.totalorder %s1380_s19, 3 }
  0x30   : > { %p411_p10 = pnand %p1079_p8, %p410_p9 }
  0x31   : > { %s417_s21 = sand.u32 (!%p411_p10), 1, %s1364_s15   ;;  %v1334_v32 = vld [vmem:[%s1632_s0] sm:$0xff] (!%p411_p10)   ;;  %v1336_v42 = vld [vmem:[%s1632_s0 + $0x8] sm:$0xff] (!%p411_p10)   ;;  %v1338_v44 = vld [vmem:[%s1632_s0 + $0x10] sm:$0xff] (!%p411_p10)   ;;  %p466_p11 = scmp.lt.s32.totalorder (!%p411_p10), %s1372_s17, 1 }
  0x32   : > { %414 = sbr.rel (%p411_p10) target bundleno = 328 (0x148), region = 110  ;;  %s1510_s24 = sshll.u32 (!%p411_p10), %s417_s21, 6  ;;  %v1335_v33 = vld [vmem:[%s1632_s0 + $0x20] sm:$0xff] (!%p411_p10)   ;;  %1254 = vmatprep.mubr.bf16.mxu0 (!%p411_p10), %v1334_v32  ;;  %v1337_v43 = vld [vmem:[%s1632_s0 + $0x28] sm:$0xff] (!%p411_p10)   ;;  %v1339_v45 = vld [vmem:[%s1632_s0 + $0x30] sm:$0xff] (!%p411_p10)  }
  0x33   : > { %s1516_s29 = scalar_lea.vmem (!%p411_p10), [#allocation2], %s1510_s24  ;;  %1262 = vmatprep.mubr.bf16.mxu1 (!%p411_p10), %v1335_v33  ;;  %v1340_v46 = vld [vmem:[%s1632_s0 + $0x18] sm:$0xff] (!%p411_p10)   ;;  %s426_s28 = scalar_lea.vmem (!%p411_p10), [#allocation3], %s1510_s24 }
  0x34   : > { %v1326_v34 = vld [vmem:[%s1516_s29] sm:$0xff] (!%p411_p10)   ;;  %v1327_v35 = vld [vmem:[%s1516_s29 + $0x8] sm:$0xff] (!%p411_p10)   ;;  %v1328_v36 = vld [vmem:[%s1516_s29 + $0x10] sm:$0xff] (!%p411_p10)  }
  0x35   : > { %1238 = vmatprep.subr.bf16.mxu0 (!%p411_p10), %v1326_v34  ;;  %1270 = vmatprep.subr.bf16.mxu1 (!%p411_p10), %v1326_v34  ;;  %v1329_v37 = vld [vmem:[%s1516_s29 + $0x18] sm:$0xff] (!%p411_p10)   ;;  %v1330_v38 = vld [vmem:[%s1516_s29 + $0x20] sm:$0xff] (!%p411_p10)   ;;  %v1331_v39 = vld [vmem:[%s1516_s29 + $0x28] sm:$0xff] (!%p411_p10)  }
  0x36   : > { %1239 = vmatpush3.bf16.msra.mxu0 (!%p411_p10), %v1326_v34  ;;  %1278 = vmatpush3.bf16.msra.mxu1 (!%p411_p10), %v1326_v34  ;;  %v1332_v40 = vld [vmem:[%s1516_s29 + $0x30] sm:$0xff] (!%p411_p10)   ;;  %v1333_v41 = vld [vmem:[%s1516_s29 + $0x38] sm:$0xff] (!%p411_p10)   ;;  %v1208_v48 = vld [vmem:[%s426_s28 + $0x8] sm:$0xff] (!%p411_p10)   ;;  %s1581_s29 = scalar_lea.vmem (!%p411_p10), [#allocation4], %s1510_s24 }
  0x37   : > { %1240 = vmatprep.subr.bf16.mxu0 (!%p411_p10), %v1327_v35  ;;  %1271 = vmatprep.subr.bf16.mxu1 (!%p411_p10), %v1327_v35  ;;  %v1341_v47 = vld [vmem:[%s1632_s0 + $0x38] sm:$0xff] (!%p411_p10)   ;;  %v1212_v49 = vld [vmem:[%s426_s28 + $0x28] sm:$0xff] (!%p411_p10)   ;;  %v1137_v50 = vld [vmem:[%s426_s28] sm:$0xff] (!%p411_p10)   ;;  %v1142_v55 = vunpack.c.l.bf16 (!%p411_p10), %v1208_v48  ;;  %v1143_v63 = vunpack.c.h.bf16 (!%p411_p10), %v1208_v48 }
  0x38   : > { %v1211_v51 = vld [vmem:[%s426_s28 + $0x20] sm:$0xff] (!%p411_p10)   ;;  %v1552_v53 = vld [vmem:[%s426_s28 + $0x18] sm:$0xff] (!%p411_p10)   ;;  %v1158_v56 = vunpack.c.l.bf16 (!%p411_p10), %v1212_v49  ;;  %v1138_v57 = vunpack.c.l.bf16 (!%p411_p10), %v1137_v50  ;;  %v1556_v59 = vld [vmem:[%s426_s28 + $0x10] sm:$0xff] (!%p411_p10)   ;;  %v1159_v0 = vunpack.c.h.bf16 (!%p411_p10), %v1212_v49  ;;  %v1139_v1 = vunpack.c.h.bf16 (!%p411_p10), %v1137_v50 }
  0x39   : > { %s467_s21 = scalar_select %p466_p11, %s1372_s17, 1  ;;  %v1554_v54 = vld [vmem:[%s426_s28 + $0x38] sm:$0xff]   ;;  %v1154_v58 = vunpack.c.l.bf16 %v1211_v51  ;;  %v1558_v60 = vld [vmem:[%s426_s28 + $0x30] sm:$0xff]   ;;  %v1155_v2 = vunpack.c.h.bf16 %v1211_v51  ;;  %v1150_v7 = vunpack.c.l.bf16 %v1552_v53  ;;  %v1146_v13 = vunpack.c.l.bf16 %v1556_v59 }
  0x3a   : > { %1241 = vmatpush3.bf16.msra.mxu0 %v1327_v35  ;;  %1279 = vmatpush3.bf16.msra.mxu1 %v1327_v35  ;;  %v1166_v8 = vunpack.c.l.bf16 %v1554_v54  ;;  %v1162_v14 = vunpack.c.l.bf16 %v1558_v60  ;;  %v1151_v27 = vunpack.c.h.bf16 %v1552_v53  ;;  %v1167_v28 = vunpack.c.h.bf16 %v1554_v54  ;;  %s1117_s24 = sshll.u32 (%p1446_p6), %s1372_s17, 2 }
  0x3b   : > { %1242 = vmatprep.subr.bf16.mxu0 %v1328_v36  ;;  %1272 = vmatprep.subr.bf16.mxu1 %v1328_v36  ;;  %s468_s27 = scalar_lea.vmem %s1634_s2, %s467_s21  ;;  %v1147_v31 = vunpack.c.h.bf16 %v1556_v59  ;;  %v1163_v32 = vunpack.c.h.bf16 %v1558_v60  ;;  %s859_s5 = scalar_lea.vmem (%p1446_p6), %s1636_s4, %s1117_s24 }
  0x3c   : > { %v1550_v52 = vld [vmem:[%s468_s27] ss:$0 sm:$0xff] }
  0x3e   : > { %1243 = vmatpush3.bf16.msra.mxu0 %v1328_v36  ;;  %1280 = vmatpush3.bf16.msra.mxu1 %v1328_v36 }
  0x3f   : > { %1244 = vmatprep.subr.bf16.mxu0 %v1329_v37  ;;  %1273 = vmatprep.subr.bf16.mxu1 %v1329_v37 }
  0x42   : > { %1245 = vmatpush3.bf16.msra.mxu0 %v1329_v37  ;;  %1281 = vmatpush3.bf16.msra.mxu1 %v1329_v37 }
  0x43   : > { %1246 = vmatprep.subr.bf16.mxu0 %v1330_v38  ;;  %1274 = vmatprep.subr.bf16.mxu1 %v1330_v38 }
  0x46   : > { %1247 = vmatpush3.bf16.msra.mxu0 %v1330_v38  ;;  %1282 = vmatpush3.bf16.msra.mxu1 %v1330_v38 }
  0x47   : > { %1248 = vmatprep.subr.bf16.mxu0 %v1331_v39  ;;  %1275 = vmatprep.subr.bf16.mxu1 %v1331_v39 }
  0x4a   : > { %1249 = vmatpush3.bf16.msra.mxu0 %v1331_v39  ;;  %1283 = vmatpush3.bf16.msra.mxu1 %v1331_v39 }
  0x4b   : > { %1250 = vmatprep.subr.bf16.mxu0 %v1332_v40  ;;  %1276 = vmatprep.subr.bf16.mxu1 %v1332_v40 }
  0x4e   : > { %1251 = vmatpush3.bf16.msra.mxu0 %v1332_v40  ;;  %1284 = vmatpush3.bf16.msra.mxu1 %v1332_v40 }
  0x4f   : > { %1252 = vmatprep.subr.bf16.mxu0 %v1333_v41  ;;  %1277 = vmatprep.subr.bf16.mxu1 %v1333_v41 }
  0x52   : > { %1253 = vmatpush3.bf16.msra.mxu0 %v1333_v41  ;;  %1285 = vmatpush3.bf16.msra.mxu1 %v1333_v41 }
  0x55   : > { %1255 = vmatmul.mubr.bf16.vlgmr.msra.gmra.mrb[0].mxu0 %v1336_v42  ;;  %1263 = vmatmul.mubr.bf16.vlgmr.msra.gmra.mrb[0].mxu1 %v1337_v43 }
  0x56   : > { %1258 = vmatprep.mubr.bf16.mxu0 %v1338_v44  ;;  %1266 = vmatprep.mubr.bf16.mxu1 %v1339_v45 }
  0x5d   : > { %1259 = vmatmul.mubr.bf16.gmra.mrb[4].mxu0 %v1340_v46  ;;  %1267 = vmatmul.mubr.bf16.gmra.mrb[4].mxu1 %v1341_v47 }
 0x128   : > { %v1256_v61 = vpop.f32.mrb[0].mxu0  ;;  %v1264_v62 = vpop.f32.mrb[0].mxu1 }
 0x129   : > { %v650_v3 = vadd.f32 %v1256_v61, %v1550_v52  ;;  %v682_v4 = vadd.f32 %v1264_v62, %v1550_v52  ;;  %v641_v5 = vpop.f32.mrb[1].mxu0  ;;  %v673_v6 = vpop.f32.mrb[1].mxu1 }
 0x12a   : > { %v642_v9 = vadd.f32 %v1550_v52, %v641_v5  ;;  %v674_v10 = vadd.f32 %v1550_v52, %v673_v6  ;;  %v1257_v11 = vpop.f32.mrb[2].mxu0  ;;  %v1265_v12 = vpop.f32.mrb[2].mxu1 }
 0x12b   : > { %v738_v15 = vadd.f32 %v1142_v55, %v650_v3  ;;  %v746_v16 = vadd.f32 %v1158_v56, %v682_v4  ;;  %v653_v17 = vadd.f32 %v1257_v11, %v1550_v52  ;;  %v685_v18 = vadd.f32 %v1265_v12, %v1550_v52  ;;  %v644_v19 = vpop.f32.mrb[3].mxu0  ;;  %v676_v20 = vpop.f32.mrb[3].mxu1 }
 0x12c   : > { %v736_v21 = vadd.f32 %v1138_v57, %v642_v9  ;;  %v744_v22 = vadd.f32 %v1154_v58, %v674_v10  ;;  %v645_v23 = vadd.f32 %v1550_v52, %v644_v19  ;;  %v677_v24 = vadd.f32 %v1550_v52, %v676_v20 }
 0x12d   : > { %v739_v25 = vadd.f32 %v1143_v63, %v653_v17  ;;  %v747_v26 = vadd.f32 %v1159_v0, %v685_v18  ;;  %v754_v33 = vmax.f32 %v738_v15, 0.0  ;;  %v762_v34 = vmax.f32 %v746_v16, 0.0 }
 0x12e   : > { %v737_v29 = vadd.f32 %v1139_v1, %v645_v23  ;;  %v745_v30 = vadd.f32 %v1155_v2, %v677_v24  ;;  %v752_v37 = vmax.f32 %v736_v21, 0.0  ;;  %v760_v38 = vmax.f32 %v744_v22, 0.0 }
 0x12f   : > { %v755_v35 = vmax.f32 %v739_v25, 0.0  ;;  %v763_v36 = vmax.f32 %v747_v26, 0.0 }
 0x130   : > { %v753_v39 = vmax.f32 %v737_v29, 0.0  ;;  %v761_v40 = vmax.f32 %v745_v30, 0.0  ;;  %v1260_v41 = vpop.f32.mrb[4].mxu0  ;;  %v1268_v42 = vpop.f32.mrb[4].mxu1 }
 0x131   : > { %v1176_v43 = vpack.c.bf16 %v755_v35, %v754_v33  ;;  %v1196_v44 = vpack.c.bf16 %v763_v36, %v762_v34  ;;  %v666_v45 = vadd.f32 %v1260_v41, %v1550_v52  ;;  %v698_v46 = vadd.f32 %v1268_v42, %v1550_v52  ;;  %v657_v47 = vpop.f32.mrb[5].mxu0  ;;  %v689_v48 = vpop.f32.mrb[5].mxu1 }
 0x132   : > { %v1171_v49 = vpack.c.bf16 %v753_v39, %v752_v37  ;;  %v1191_v50 = vpack.c.bf16 %v761_v40, %v760_v38  ;;  %v658_v51 = vadd.f32 %v1550_v52, %v657_v47  ;;  %v690_v53 = vadd.f32 %v1550_v52, %v689_v48  ;;  %v1261_v54 = vpop.f32.mrb[6].mxu0  ;;  %v1269_v55 = vpop.f32.mrb[6].mxu1 }
 0x133   : > { %1215 = vst [vmem:[%s1581_s29 + $0x8] sm:$0xff] %v1176_v43   ;;  %1219 = vst [vmem:[%s1581_s29 + $0x28] sm:$0xff] %v1196_v44   ;;  %v742_v56 = vadd.f32 %v1150_v7, %v666_v45  ;;  %v750_v57 = vadd.f32 %v1166_v8, %v698_v46  ;;  %v669_v58 = vadd.f32 %v1261_v54, %v1550_v52  ;;  %v660_v60 = vpop.f32.mrb[7].mxu0  ;;  %v692_v61 = vpop.f32.mrb[7].mxu1 }
 0x134   : > { %v701_v59 = vadd.f32 %v1269_v55, %v1550_v52  ;;  %1172 = vst [vmem:[%s1581_s29] sm:$0xff] %v1171_v49   ;;  %1218 = vst [vmem:[%s1581_s29 + $0x20] sm:$0xff] %v1191_v50   ;;  %v740_v62 = vadd.f32 %v1146_v13, %v658_v51  ;;  %v748_v63 = vadd.f32 %v1162_v14, %v690_v53 }
 0x135   : > { %v661_v0 = vadd.f32 %v1550_v52, %v660_v60  ;;  %v693_v1 = vadd.f32 %v1550_v52, %v692_v61  ;;  %v743_v2 = vadd.f32 %v1151_v27, %v669_v58  ;;  %v758_v6 = vmax.f32 %v742_v56, 0.0 }
 0x136   : > { %v751_v3 = vadd.f32 %v1167_v28, %v701_v59  ;;  %v766_v7 = vmax.f32 %v750_v57, 0.0  ;;  %v756_v10 = vmax.f32 %v740_v62, 0.0  ;;  %v764_v11 = vmax.f32 %v748_v63, 0.0 }
 0x137   : > { %v741_v4 = vadd.f32 %v1147_v31, %v661_v0  ;;  %v749_v5 = vadd.f32 %v1163_v32, %v693_v1  ;;  %v759_v8 = vmax.f32 %v743_v2, 0.0  ;;  %854 = sbr.rel (!%p1446_p6) target bundleno = 328 (0x148), region = 122 }
 0x138   : > { %v767_v9 = vmax.f32 %v751_v3, 0.0 }
 0x139   : > { %v757_v12 = vmax.f32 %v741_v4, 0.0  ;;  %v765_v13 = vmax.f32 %v749_v5, 0.0  ;;  %v1186_v14 = vpack.c.bf16 %v759_v8, %v758_v6 }
 0x13a   : > { %v1206_v15 = vpack.c.bf16 %v767_v9, %v766_v7  ;;  %v879_v19 = vld [vmem:[%s1581_s29 + $0x8] sm:$0xf] (%p1446_p6)  ;;  %v881_v20 = vld [vmem:[%s1581_s29 + $0xc] sm:$0xf] (%p1446_p6) }
 0x13b   : > { %v1181_v16 = vpack.c.bf16 %v757_v12, %v756_v10  ;;  %v1201_v52 = vpack.c.bf16 %v765_v13, %v764_v11  ;;  %1217 = vst [vmem:[%s1581_s29 + $0x18] sm:$0xff] %v1186_v14   ;;  %v875_v17 = vld [vmem:[%s1581_s29] sm:$0xf] (%p1446_p6)  ;;  %v877_v18 = vld [vmem:[%s1581_s29 + $0x4] sm:$0xf] (%p1446_p6) }
 0x13c   : > { %1221 = vst [vmem:[%s1581_s29 + $0x38] sm:$0xff] %v1206_v15   ;;  %876 = vst [vmem:[%s859_s5] sm:$0xf] (%p1446_p6), %v875_v17  ;;  %v891_v25 = vld [vmem:[%s1581_s29 + $0x20] sm:$0xf] (%p1446_p6)  ;;  %v893_v26 = vld [vmem:[%s1581_s29 + $0x24] sm:$0xf] (%p1446_p6) }
 0x13d   : > { %1216 = vst [vmem:[%s1581_s29 + $0x10] sm:$0xff] %v1181_v16   ;;  %1220 = vst [vmem:[%s1581_s29 + $0x30] sm:$0xff] %v1201_v52   ;;  %v895_v27 = vld [vmem:[%s1581_s29 + $0x28] sm:$0xf] (%p1446_p6)  ;;  %v897_v28 = vld [vmem:[%s1581_s29 + $0x2c] sm:$0xf] (%p1446_p6) }
 0x13e   : > { %878 = vst [vmem:[%s859_s5 + $0x8] sm:$0xf] %v877_v18  ;;  %880 = vst [vmem:[%s859_s5 + $0x10] sm:$0xf] %v879_v19 }
 0x13f   : > { %882 = vst [vmem:[%s859_s5 + $0x18] sm:$0xf] %v881_v20  ;;  %892 = vst [vmem:[%s859_s5 + $0x40] sm:$0xf] %v891_v25 }
 0x140   : > { %894 = vst [vmem:[%s859_s5 + $0x48] sm:$0xf] %v893_v26  ;;  %896 = vst [vmem:[%s859_s5 + $0x50] sm:$0xf] %v895_v27 }
 0x141   : > { %898 = vst [vmem:[%s859_s5 + $0x58] sm:$0xf] %v897_v28 }
 0x142   : > { %v887_v23 = vld [vmem:[%s1581_s29 + $0x18] sm:$0xf]  ;;  %v889_v24 = vld [vmem:[%s1581_s29 + $0x1c] sm:$0xf] }
 0x143   : > { %888 = vst [vmem:[%s859_s5 + $0x30] sm:$0xf] %v887_v23  ;;  %890 = vst [vmem:[%s859_s5 + $0x38] sm:$0xf] %v889_v24  ;;  %v903_v31 = vld [vmem:[%s1581_s29 + $0x38] sm:$0xf] }
 0x144   : > { %v883_v21 = vld [vmem:[%s1581_s29 + $0x10] sm:$0xf]  ;;  %v885_v22 = vld [vmem:[%s1581_s29 + $0x14] sm:$0xf]  ;;  %v905_v32 = vld [vmem:[%s1581_s29 + $0x3c] sm:$0xf] }
 0x145   : > { %884 = vst [vmem:[%s859_s5 + $0x20] sm:$0xf] %v883_v21  ;;  %886 = vst [vmem:[%s859_s5 + $0x28] sm:$0xf] %v885_v22  ;;  %v899_v29 = vld [vmem:[%s1581_s29 + $0x30] sm:$0xf] }
 0x146   : > { %v901_v30 = vld [vmem:[%s1581_s29 + $0x34] sm:$0xf]  ;;  %900 = vst [vmem:[%s859_s5 + $0x60] sm:$0xf] %v899_v29  ;;  %904 = vst [vmem:[%s859_s5 + $0x70] sm:$0xf] %v903_v31 }
 0x147   : > { %902 = vst [vmem:[%s859_s5 + $0x68] sm:$0xf] %v901_v30  ;;  %906 = vst [vmem:[%s859_s5 + $0x78] sm:$0xf] %v905_v32 }
 0x148 PF: > { %s14_s19 = sadd.s32 1, %s1380_s19   ;;  %s1639_s15 = smov %s1368_s16 }
 0x149   : > { %p11_p12 = scmp.ge.s32.totalorder %s14_s19, 4   ;;  %s1640_s16 = smov %s1451_s26 }
 0x14a   : > { %s1641_s17 = smov %s1376_s18  ;;  %s1642_s18 = smov %s1644_s20 }
 0x14b   :  { %13 = sbr.rel (!%p11_p12) target bundleno = 3 (0x3), region = 208 }

// kernel: forward_fn.30
= control target key start
LH: loop header
LB: loop body
LE: loop exit
PB: predicated region body
PF: predicated region fallthrough
CT: control target
= control target key end

     0   :  { %s2077_s12 = smov 0   ;;  %s2079_s13 = smov 0   ;;  %s2374_s0 = inlined_call_operand.vmem [shape: bf16[128,1152], index: 0, kind: input, shape index: {}]   ;;  %s2375_s1 = inlined_call_operand.vmem [shape: bf16[1152,128], index: 1, kind: input, shape index: {}]   ;;  %s2376_s2 = inlined_call_operand.vmem [shape: f32[1,128], index: 2, kind: input, shape index: {}]   ;;  %s2377_s3 = inlined_call_operand.vmem [shape: bf16[128,128], index: 3, kind: output, shape index: {}]  }
   0x1   :  { %s2081_s14 = smov 0  }
   0x2 LB: > { %s22_s15 = sadd.s32 1, %s2051_s13  ;;  %p1517_p0 = scmp.ge.s32.totalorder %s2055_s14, 1  ;;  %s2055_s14 = sphi %s2081_s14, %s13_s14   ;;  %s2051_s13 = sphi %s2079_s13, %s2379_s13   ;;  %s2047_s12 = sphi %s2077_s12, %s2378_s12  }
   0x3   : > { %p23_p1 = scmp.ge.s32.totalorder %s22_s15, 2  ;;  %p170_p2 = scmp.lt.s32.totalorder %s2055_s14, 3 }
   0x5   : > { %s2381_s15 = smov (%p23_p1, %s22_s15), 0  ;;  %p171_p3 = pnand %p1517_p0, %p170_p2 }
   0x6   : > { %v1909_v0 = vld [vmem:[%s2375_s1 + $0x40] sm:$0xff] (!%p171_p3)   ;;  %v1913_v4 = vld [vmem:[%s2375_s1 + $0x48] sm:$0xff] (!%p171_p3)   ;;  %v1917_v8 = vld [vmem:[%s2375_s1 + $0x50] sm:$0xff] (!%p171_p3)   ;;  %s1518_s23 = sshll.u32 (!%p171_p3), %s2047_s12, 3 }
   0x7   : > { %174 = sbr.rel (%p171_p3) target bundleno = 328 (0x148), region = 32  ;;  %v1910_v1 = vld [vmem:[%s2375_s1 + $0xc0] sm:$0xff] (!%p171_p3)   ;;  %1672 = vmatprep.subr.bf16.mxu0 (!%p171_p3), %v1909_v0  ;;  %v1914_v5 = vld [vmem:[%s2375_s1 + $0xc8] sm:$0xff] (!%p171_p3)   ;;  %v1918_v9 = vld [vmem:[%s2375_s1 + $0xd0] sm:$0xff] (!%p171_p3)   ;;  %p206_p4 = scmp.lt.s32.totalorder (!%p171_p3), %s1518_s23, 15 }
   0x8   : > { %v1911_v2 = vld [vmem:[%s2375_s1] sm:$0xff] (!%p171_p3)   ;;  %1712 = vmatprep.subr.bf16.mxu1 (!%p171_p3), %v1910_v1  ;;  %v1915_v6 = vld [vmem:[%s2375_s1 + $0x8] sm:$0xff] (!%p171_p3)   ;;  %v1919_v10 = vld [vmem:[%s2375_s1 + $0x10] sm:$0xff] (!%p171_p3)  }
   0x9   : > { %v1912_v3 = vld [vmem:[%s2375_s1 + $0x80] sm:$0xff] (!%p171_p3)   ;;  %1673 = vmatpush3.bf16.msra.mxu0 (!%p171_p3), %v1911_v2  ;;  %v1916_v7 = vld [vmem:[%s2375_s1 + $0x88] sm:$0xff] (!%p171_p3)   ;;  %v1920_v11 = vld [vmem:[%s2375_s1 + $0x90] sm:$0xff] (!%p171_p3)  }
   0xa   : > { %1713 = vmatpush3.bf16.msra.mxu1 (!%p171_p3), %v1912_v3  ;;  %1674 = vmatprep.subr.bf16.mxu0 (!%p171_p3), %v1913_v4  ;;  %v1921_v12 = vld [vmem:[%s2375_s1 + $0x58] sm:$0xff] (!%p171_p3)   ;;  %v1925_v16 = vld [vmem:[%s2375_s1 + $0x60] sm:$0xff] (!%p171_p3)   ;;  %v1929_v20 = vld [vmem:[%s2375_s1 + $0x68] sm:$0xff] (!%p171_p3)  }
   0xb   : > { %1714 = vmatprep.subr.bf16.mxu1 (!%p171_p3), %v1914_v5  ;;  %v1922_v13 = vld [vmem:[%s2375_s1 + $0xd8] sm:$0xff] (!%p171_p3)   ;;  %v1926_v17 = vld [vmem:[%s2375_s1 + $0xe0] sm:$0xff] (!%p171_p3)   ;;  %v1930_v21 = vld [vmem:[%s2375_s1 + $0xe8] sm:$0xff] (!%p171_p3)  }
   0xc   : > { %v1923_v14 = vld [vmem:[%s2375_s1 + $0x18] sm:$0xff] (!%p171_p3)   ;;  %v1927_v18 = vld [vmem:[%s2375_s1 + $0x20] sm:$0xff] (!%p171_p3)   ;;  %v1931_v22 = vld [vmem:[%s2375_s1 + $0x28] sm:$0xff] (!%p171_p3)  }
   0xd   : > { %1675 = vmatpush3.bf16.msra.mxu0 (!%p171_p3), %v1915_v6  ;;  %v1924_v15 = vld [vmem:[%s2375_s1 + $0x98] sm:$0xff] (!%p171_p3)   ;;  %v1928_v19 = vld [vmem:[%s2375_s1 + $0xa0] sm:$0xff] (!%p171_p3)   ;;  %v1932_v23 = vld [vmem:[%s2375_s1 + $0xa8] sm:$0xff] (!%p171_p3)  }
   0xe   : > { %1715 = vmatpush3.bf16.msra.mxu1 %v1916_v7  ;;  %1676 = vmatprep.subr.bf16.mxu0 %v1917_v8  ;;  %s2383_s23 = smov (!%p206_p4, %s1518_s23), 15  ;;  %v1933_v24 = vld [vmem:[%s2375_s1 + $0x70] sm:$0xff]   ;;  %v1937_v28 = vld [vmem:[%s2375_s1 + $0x78] sm:$0xff]   ;;  %v1947_v36 = vld [vmem:[%s2375_s1 + $0x140] sm:$0xff]  }
   0xf   : > { %1716 = vmatprep.subr.bf16.mxu1 %v1918_v9  ;;  %v1934_v25 = vld [vmem:[%s2375_s1 + $0xf0] sm:$0xff]   ;;  %s1884_s22 = smul.u32 36, %s2383_s23  ;;  %v1938_v29 = vld [vmem:[%s2375_s1 + $0xf8] sm:$0xff]   ;;  %v1948_v37 = vld [vmem:[%s2375_s1 + $0x1c0] sm:$0xff]  }
  0x10   : > { %v1935_v26 = vld [vmem:[%s2375_s1 + $0x30] sm:$0xff]   ;;  %v1939_v30 = vld [vmem:[%s2375_s1 + $0x38] sm:$0xff]   ;;  %v1949_v38 = vld [vmem:[%s2375_s1 + $0x100] sm:$0xff]  }
  0x11   : > { %1677 = vmatpush3.bf16.msra.mxu0 %v1919_v10  ;;  %v1936_v27 = vld [vmem:[%s2375_s1 + $0xb0] sm:$0xff]   ;;  %s2194_s6 = scalar_lea.vmem %s2374_s0, %s1884_s22  ;;  %v1940_v31 = vld [vmem:[%s2375_s1 + $0xb8] sm:$0xff]   ;;  %v1950_v39 = vld [vmem:[%s2375_s1 + $0x180] sm:$0xff]  }
  0x12   : > { %1717 = vmatpush3.bf16.msra.mxu1 %v1920_v11  ;;  %1678 = vmatprep.subr.bf16.mxu0 %v1921_v12  ;;  %v1941_v32 = vld [vmem:[%s2194_s6] ss:$36 sps:$4 sm:$0xff]   ;;  %v1944_v34 = vld [vmem:[%s2194_s6 + $0x8] ss:$36 sps:$4 sm:$0xff]   ;;  %v1957_v45 = vld [vmem:[%s2194_s6 + $0x54] ss:$36 sps:$4 sm:$0xff]  }
  0x13   : > { %1718 = vmatprep.subr.bf16.mxu1 %v1922_v13  ;;  %v1943_v33 = vld [vmem:[%s2194_s6 + $0x4] ss:$36 sps:$4 sm:$0xff]   ;;  %v1946_v35 = vld [vmem:[%s2194_s6 + $0xc] ss:$36 sps:$4 sm:$0xff]   ;;  %v1965_v52 = vld [vmem:[%s2375_s1 + $0x158] sm:$0xff]  }
  0x14   : > { %1068 = vmatprep.mubr.bf16.mxu0 %v1943_v33  ;;  %1133 = vmatprep.mubr.bf16.mxu1 %v1946_v35  ;;  %v1951_v40 = vld [vmem:[%s2375_s1 + $0x148] sm:$0xff]   ;;  %v1960_v47 = vld [vmem:[%s2194_s6 + $0x50] ss:$36 sps:$4 sm:$0xff]   ;;  %v1966_v53 = vld [vmem:[%s2375_s1 + $0x1d8] sm:$0xff]  }
  0x15   : > { %1679 = vmatpush3.bf16.msra.mxu0 %v1923_v14  ;;  %v1952_v41 = vld [vmem:[%s2375_s1 + $0x1c8] sm:$0xff]   ;;  %v1961_v48 = vld [vmem:[%s2375_s1 + $0x150] sm:$0xff]   ;;  %v1967_v54 = vld [vmem:[%s2375_s1 + $0x118] sm:$0xff]  }
  0x16   : > { %1719 = vmatpush3.bf16.msra.mxu1 %v1924_v15  ;;  %1680 = vmatprep.subr.bf16.mxu0 %v1925_v16  ;;  %v1953_v42 = vld [vmem:[%s2375_s1 + $0x108] sm:$0xff]   ;;  %v1962_v49 = vld [vmem:[%s2375_s1 + $0x1d0] sm:$0xff]   ;;  %v1968_v55 = vld [vmem:[%s2375_s1 + $0x198] sm:$0xff]  }
  0x17   : > { %1720 = vmatprep.subr.bf16.mxu1 %v1926_v17  ;;  %v1954_v43 = vld [vmem:[%s2375_s1 + $0x188] sm:$0xff]   ;;  %v1963_v50 = vld [vmem:[%s2375_s1 + $0x110] sm:$0xff]   ;;  %v1971_v57 = vld [vmem:[%s2194_s6 + $0x9c] ss:$36 sps:$4 sm:$0xff]  }
  0x18   : > { %v1955_v44 = vld [vmem:[%s2194_s6 + $0x4c] ss:$36 sps:$4 sm:$0xff]   ;;  %v1969_v56 = vld [vmem:[%s2194_s6 + $0x94] ss:$36 sps:$4 sm:$0xff]   ;;  %v1975_v60 = vld [vmem:[%s2375_s1 + $0x160] sm:$0xff]  }
  0x19   : > { %1681 = vmatpush3.bf16.msra.mxu0 %v1927_v18  ;;  %v1959_v46 = vld [vmem:[%s2194_s6 + $0x48] ss:$36 sps:$4 sm:$0xff]   ;;  %v1964_v51 = vld [vmem:[%s2375_s1 + $0x190] sm:$0xff]   ;;  %v1974_v59 = vld [vmem:[%s2194_s6 + $0x98] ss:$36 sps:$4 sm:$0xff]  }
  0x1a   : > { %1721 = vmatpush3.bf16.msra.mxu1 %v1928_v19  ;;  %1682 = vmatprep.subr.bf16.mxu0 %v1929_v20  ;;  %v1973_v58 = vld [vmem:[%s2194_s6 + $0x90] ss:$36 sps:$4 sm:$0xff]   ;;  %v1976_v61 = vld [vmem:[%s2375_s1 + $0x1e0] sm:$0xff]   ;;  %v1979_v0 = vld [vmem:[%s2375_s1 + $0x168] sm:$0xff]  }
  0x1b   : > { %1722 = vmatprep.subr.bf16.mxu1 %v1930_v21  ;;  %v1977_v62 = vld [vmem:[%s2375_s1 + $0x120] sm:$0xff]   ;;  %v1980_v1 = vld [vmem:[%s2375_s1 + $0x1e8] sm:$0xff]   ;;  %v1987_v6 = vld [vmem:[%s2194_s6 + $0xd8] ss:$36 sps:$4 sm:$0xff]  }
  0x1c   : > { %v1978_v63 = vld [vmem:[%s2375_s1 + $0x1a0] sm:$0xff]   ;;  %v1981_v2 = vld [vmem:[%s2375_s1 + $0x128] sm:$0xff]   ;;  %v1989_v8 = vld [vmem:[%s2375_s1 + $0x170] sm:$0xff]  }
  0x1d   : > { %1683 = vmatpush3.bf16.msra.mxu0 %v1931_v22  ;;  %v1982_v3 = vld [vmem:[%s2375_s1 + $0x1a8] sm:$0xff]   ;;  %v1983_v4 = vld [vmem:[%s2194_s6 + $0xdc] ss:$36 sps:$4 sm:$0xff]   ;;  %v1990_v9 = vld [vmem:[%s2375_s1 + $0x1f0] sm:$0xff]  }
  0x1e   : > { %1723 = vmatpush3.bf16.msra.mxu1 %v1932_v23  ;;  %1684 = vmatprep.subr.bf16.mxu0 %v1933_v24  ;;  %v1985_v5 = vld [vmem:[%s2194_s6 + $0xe4] ss:$36 sps:$4 sm:$0xff]   ;;  %v1991_v10 = vld [vmem:[%s2375_s1 + $0x130] sm:$0xff]   ;;  %v1993_v12 = vld [vmem:[%s2375_s1 + $0x178] sm:$0xff]  }
  0x1f   : > { %1724 = vmatprep.subr.bf16.mxu1 %v1934_v25  ;;  %v1988_v7 = vld [vmem:[%s2194_s6 + $0xe0] ss:$36 sps:$4 sm:$0xff]   ;;  %v1992_v11 = vld [vmem:[%s2375_s1 + $0x1b0] sm:$0xff]   ;;  %v1994_v13 = vld [vmem:[%s2375_s1 + $0x1f8] sm:$0xff]  }
  0x20   : > { %v1995_v14 = vld [vmem:[%s2375_s1 + $0x138] sm:$0xff]   ;;  %v1997_v16 = vld [vmem:[%s2194_s6 + $0x10] ss:$36 sps:$4 sm:$0xff]   ;;  %v2003_v20 = vld [vmem:[%s2375_s1 + $0x200] sm:$0xff]  }
  0x21   : > { %1685 = vmatpush3.bf16.msra.mxu0 %v1935_v26  ;;  %v1996_v15 = vld [vmem:[%s2375_s1 + $0x1b8] sm:$0xff]   ;;  %v2004_v21 = vld [vmem:[%s2375_s1 + $0x208] sm:$0xff]   ;;  %v2010_v25 = vld [vmem:[%s2194_s6 + $0x60] ss:$36 sps:$4 sm:$0xff]  }
  0x22   : > { %1725 = vmatpush3.bf16.msra.mxu1 %v1936_v27  ;;  %1686 = vmatprep.subr.bf16.mxu0 %v1937_v28  ;;  %v1999_v17 = vld [vmem:[%s2194_s6 + $0x14] ss:$36 sps:$4 sm:$0xff]   ;;  %v2002_v19 = vld [vmem:[%s2194_s6 + $0x1c] ss:$36 sps:$4 sm:$0xff]   ;;  %v2007_v23 = vld [vmem:[%s2194_s6 + $0x64] ss:$36 sps:$4 sm:$0xff]  }
  0x23   : > { %1726 = vmatprep.subr.bf16.mxu1 %v1938_v29  ;;  %v2000_v18 = vld [vmem:[%s2194_s6 + $0x18] ss:$36 sps:$4 sm:$0xff]   ;;  %v2011_v26 = vld [vmem:[%s2375_s1 + $0x210] sm:$0xff]   ;;  %v2013_v27 = vld [vmem:[%s2194_s6 + $0xa4] ss:$36 sps:$4 sm:$0xff]  }
  0x24   : > { %v2005_v22 = vld [vmem:[%s2194_s6 + $0x5c] ss:$36 sps:$4 sm:$0xff]   ;;  %v2015_v28 = vld [vmem:[%s2194_s6 + $0xac] ss:$36 sps:$4 sm:$0xff]  }
  0x25   : > { %1687 = vmatpush3.bf16.msra.mxu0 %v1939_v30  ;;  %v2009_v24 = vld [vmem:[%s2194_s6 + $0x58] ss:$36 sps:$4 sm:$0xff]   ;;  %v2017_v30 = vld [vmem:[%s2194_s6 + $0xa0] ss:$36 sps:$4 sm:$0xff]   ;;  %v2021_v33 = vld [vmem:[%s2194_s6 + $0xec] ss:$36 sps:$4 sm:$0xff]  }
  0x26   : > { %1727 = vmatpush3.bf16.msra.mxu1 %v1940_v31  ;;  %1752 = vmatprep.subr.bf16.mxu0 %v1947_v36  ;;  %v2012_v29 = vld [vmem:[%s2375_s1 + $0x218] sm:$0xff]   ;;  %v2018_v31 = vld [vmem:[%s2194_s6 + $0xa8] ss:$36 sps:$4 sm:$0xff]  }
  0x27   : > { %1792 = vmatprep.subr.bf16.mxu1 %v1948_v37  ;;  %v2020_v35 = vld [vmem:[%s2375_s1 + $0x228] sm:$0xff]   ;;  %v2027_v37 = vld [vmem:[%s2375_s1 + $0x230] sm:$0xff]  }
  0x28   : > { %1069 = vmatmul.mubr.bf16.vlgmr.msra.gmra.mrb[0].mxu0 %v1941_v32  ;;  %v2019_v32 = vld [vmem:[%s2375_s1 + $0x220] sm:$0xff]   ;;  %v2025_v36 = vld [vmem:[%s2194_s6 + $0xe8] ss:$36 sps:$4 sm:$0xff]  }
  0x29   : > { %1134 = vmatmul.mubr.bf16.vlgmr.msra.gmra.mrb[0].mxu1 %v1944_v34  ;;  %1753 = vmatpush3.bf16.msra.mxu0 %v1949_v38  ;;  %v2023_v34 = vld [vmem:[%s2194_s6 + $0xf4] ss:$36 sps:$4 sm:$0xff]  }
  0x2a   : > { %1793 = vmatpush3.bf16.msra.mxu1 %v1950_v39  ;;  %1754 = vmatprep.subr.bf16.mxu0 %v1951_v40  ;;  %v2026_v38 = vld [vmem:[%s2194_s6 + $0xf0] ss:$36 sps:$4 sm:$0xff]   ;;  %v2029_v39 = vld [vmem:[%s2194_s6 + $0x20] ss:$36 sps:$4 sm:$0xff]  }
  0x2b   : > { %1794 = vmatprep.subr.bf16.mxu1 %v1952_v41  ;;  %1076 = vmatprep.mubr.bf16.mxu0 %v1955_v44  ;;  %v2030_v40 = vld [vmem:[%s2194_s6 + $0xb0] ss:$36 sps:$4 sm:$0xff]   ;;  %v2028_v41 = vld [vmem:[%s2375_s1 + $0x238] sm:$0xff]  }
  0x2c   : > { %1141 = vmatprep.mubr.bf16.mxu1 %v1957_v45 }
  0x2d   : > { %1755 = vmatpush3.bf16.msra.mxu0 %v1953_v42  ;;  %v2031_v42 = vld [vmem:[%s2194_s6 + $0x68] ss:$36 sps:$4 sm:$0xff]  }
  0x2e   : > { %1795 = vmatpush3.bf16.msra.mxu1 %v1954_v43  ;;  %1756 = vmatprep.subr.bf16.mxu0 %v1961_v48  ;;  %v2032_v43 = vld [vmem:[%s2194_s6 + $0xf8] ss:$36 sps:$4 sm:$0xff]   ;;  %s1521_s6 = sshll.u32 %s2383_s23, 2 }
  0x2f   : > { %1796 = vmatprep.subr.bf16.mxu1 %v1962_v49  ;;  %s226_s7 = scalar_lea.vmem %s2377_s3, %s1521_s6 }
  0x30   : > { %1077 = vmatmul.mubr.bf16.gmra.mrb[4].mxu0 %v1959_v46  ;;  %v1522_v46 = vld [vmem:[%s2376_s2] ss:$0 sm:$0xff] }
  0x31   : > { %1142 = vmatmul.mubr.bf16.gmra.mrb[4].mxu1 %v1960_v47  ;;  %1757 = vmatpush3.bf16.msra.mxu0 %v1963_v50 }
  0x32   : > { %1797 = vmatpush3.bf16.msra.mxu1 %v1964_v51  ;;  %1758 = vmatprep.subr.bf16.mxu0 %v1965_v52 }
  0x33   : > { %1798 = vmatprep.subr.bf16.mxu1 %v1966_v53  ;;  %1084 = vmatprep.mubr.bf16.mxu0 %v1969_v56 }
  0x34   : > { %1149 = vmatprep.mubr.bf16.mxu1 %v1971_v57 }
  0x35   : > { %1759 = vmatpush3.bf16.msra.mxu0 %v1967_v54 }
  0x36   : > { %1799 = vmatpush3.bf16.msra.mxu1 %v1968_v55  ;;  %1760 = vmatprep.subr.bf16.mxu0 %v1975_v60 }
  0x37   : > { %1800 = vmatprep.subr.bf16.mxu1 %v1976_v61 }
  0x38   : > { %1085 = vmatmul.mubr.bf16.gmra.mrb[8].mxu0 %v1973_v58 }
  0x39   : > { %1150 = vmatmul.mubr.bf16.gmra.mrb[8].mxu1 %v1974_v59  ;;  %1761 = vmatpush3.bf16.msra.mxu0 %v1977_v62 }
  0x3a   : > { %1801 = vmatpush3.bf16.msra.mxu1 %v1978_v63  ;;  %1762 = vmatprep.subr.bf16.mxu0 %v1979_v0 }
  0x3b   : > { %1802 = vmatprep.subr.bf16.mxu1 %v1980_v1  ;;  %1092 = vmatprep.mubr.bf16.mxu0 %v1983_v4 }
  0x3c   : > { %1157 = vmatprep.mubr.bf16.mxu1 %v1985_v5 }
  0x3d   : > { %1763 = vmatpush3.bf16.msra.mxu0 %v1981_v2 }
  0x3e   : > { %1803 = vmatpush3.bf16.msra.mxu1 %v1982_v3  ;;  %1764 = vmatprep.subr.bf16.mxu0 %v1989_v8 }
  0x3f   : > { %1804 = vmatprep.subr.bf16.mxu1 %v1990_v9 }
  0x40   : > { %1093 = vmatmul.mubr.bf16.gmra.mrb[12].mxu0 %v1987_v6 }
  0x41   : > { %1158 = vmatmul.mubr.bf16.gmra.mrb[12].mxu1 %v1988_v7  ;;  %1765 = vmatpush3.bf16.msra.mxu0 %v1991_v10 }
  0x42   : > { %1805 = vmatpush3.bf16.msra.mxu1 %v1992_v11  ;;  %1766 = vmatprep.subr.bf16.mxu0 %v1993_v12 }
  0x43   : > { %1806 = vmatprep.subr.bf16.mxu1 %v1994_v13  ;;  %1198 = vmatprep.mubr.bf16.mxu0 %v1999_v17 }
  0x44   : > { %1263 = vmatprep.mubr.bf16.mxu1 %v2002_v19 }
  0x45   : > { %1767 = vmatpush3.bf16.msra.mxu0 %v1995_v14 }
  0x46   : > { %1807 = vmatpush3.bf16.msra.mxu1 %v1996_v15  ;;  %1844 = vmatprep.subr.bf16.mxu0 %v2003_v20 }
  0x47   : > { %1868 = vmatprep.subr.bf16.mxu1 %v2003_v20 }
  0x48   : > { %1199 = vmatmul.mubr.bf16.vlgmr.msra.gmra.mrb[16].mxu0 %v1997_v16 }
  0x49   : > { %1264 = vmatmul.mubr.bf16.vlgmr.msra.gmra.mrb[16].mxu1 %v2000_v18  ;;  %1845 = vmatpush3.bf16.msra.mxu0 %v2003_v20 }
  0x4a   : > { %1876 = vmatpush3.bf16.msra.mxu1 %v2003_v20  ;;  %1846 = vmatprep.subr.bf16.mxu0 %v2004_v21 }
  0x4b   : > { %1869 = vmatprep.subr.bf16.mxu1 %v2004_v21  ;;  %1206 = vmatprep.mubr.bf16.mxu0 %v2005_v22 }
  0x4c   : > { %1271 = vmatprep.mubr.bf16.mxu1 %v2007_v23 }
  0x4d   : > { %1847 = vmatpush3.bf16.msra.mxu0 %v2004_v21 }
  0x4e   : > { %1877 = vmatpush3.bf16.msra.mxu1 %v2004_v21  ;;  %1848 = vmatprep.subr.bf16.mxu0 %v2011_v26 }
  0x4f   : > { %1870 = vmatprep.subr.bf16.mxu1 %v2011_v26 }
  0x50   : > { %1207 = vmatmul.mubr.bf16.gmra.mrb[20].mxu0 %v2009_v24 }
  0x51   : > { %1272 = vmatmul.mubr.bf16.gmra.mrb[20].mxu1 %v2010_v25  ;;  %1214 = vmatprep.mubr.bf16.mxu0 %v2013_v27 }
  0x52   : > { %1849 = vmatpush3.bf16.msra.mxu0 %v2011_v26  ;;  %1279 = vmatprep.mubr.bf16.mxu1 %v2015_v28 }
  0x53   : > { %1878 = vmatpush3.bf16.msra.mxu1 %v2011_v26  ;;  %1850 = vmatprep.subr.bf16.mxu0 %v2012_v29 }
  0x54   : > { %1871 = vmatprep.subr.bf16.mxu1 %v2012_v29 }
  0x56   : > { %1851 = vmatpush3.bf16.msra.mxu0 %v2012_v29 }
  0x57   : > { %1879 = vmatpush3.bf16.msra.mxu1 %v2012_v29  ;;  %1852 = vmatprep.subr.bf16.mxu0 %v2019_v32 }
  0x58   : > { %1215 = vmatmul.mubr.bf16.gmra.mrb[24].mxu0 %v2017_v30  ;;  %1872 = vmatprep.subr.bf16.mxu1 %v2019_v32 }
  0x59   : > { %1280 = vmatmul.mubr.bf16.gmra.mrb[24].mxu1 %v2018_v31  ;;  %1222 = vmatprep.mubr.bf16.mxu0 %v2021_v33 }
  0x5a   : > { %1853 = vmatpush3.bf16.msra.mxu0 %v2019_v32  ;;  %1287 = vmatprep.mubr.bf16.mxu1 %v2023_v34 }
  0x5b   : > { %1880 = vmatpush3.bf16.msra.mxu1 %v2019_v32  ;;  %1854 = vmatprep.subr.bf16.mxu0 %v2020_v35 }
  0x5c   : > { %1873 = vmatprep.subr.bf16.mxu1 %v2020_v35 }
  0x5e   : > { %1855 = vmatpush3.bf16.msra.mxu0 %v2020_v35 }
  0x5f   : > { %1881 = vmatpush3.bf16.msra.mxu1 %v2020_v35  ;;  %1856 = vmatprep.subr.bf16.mxu0 %v2027_v37 }
  0x60   : > { %1223 = vmatmul.mubr.bf16.gmra.mrb[28].mxu0 %v2025_v36  ;;  %1874 = vmatprep.subr.bf16.mxu1 %v2027_v37 }
  0x61   : > { %1288 = vmatmul.mubr.bf16.gmra.mrb[28].mxu1 %v2026_v38  ;;  %1860 = vmatprep.mubr.bf16.mxu0 %v2029_v39 }
  0x62   : > { %1857 = vmatpush3.bf16.msra.mxu0 %v2027_v37  ;;  %1864 = vmatprep.mubr.bf16.mxu1 %v2030_v40 }
  0x63   : > { %1882 = vmatpush3.bf16.msra.mxu1 %v2027_v37  ;;  %1858 = vmatprep.subr.bf16.mxu0 %v2028_v41 }
  0x64   : > { %1875 = vmatprep.subr.bf16.mxu1 %v2028_v41 }
  0x66   : > { %1859 = vmatpush3.bf16.msra.mxu0 %v2028_v41 }
  0x67   : > { %1883 = vmatpush3.bf16.msra.mxu1 %v2028_v41 }
  0x69   : > { %1861 = vmatmul.mubr.bf16.vlgmr.msra.gmra.mrb[32].mxu0 %v2031_v42 }
  0x6a   : > { %1865 = vmatmul.mubr.bf16.vlgmr.msra.gmra.mrb[32].mxu1 %v2032_v43 }
  0xfb   : > { %v1688_v44 = vpop.f32.mrb[0].mxu0 }
  0xfc   : > { %v1728_v45 = vpop.f32.mrb[0].mxu1  ;;  %v1689_v47 = vpop.f32.mrb[1].mxu0 }
  0xfd   : > { %v1690_v48 = vadd.f32 %v1689_v47, %v1688_v44  ;;  %v1729_v49 = vpop.f32.mrb[1].mxu1  ;;  %v1691_v50 = vpop.f32.mrb[2].mxu0 }
  0xfe   : > { %v1730_v51 = vadd.f32 %v1729_v49, %v1728_v45  ;;  %v1731_v52 = vpop.f32.mrb[2].mxu1  ;;  %v1692_v53 = vpop.f32.mrb[3].mxu0 }
  0xff   : > { %v1071_v54 = vadd.f32 %v1690_v48, %v1522_v46  ;;  %v1693_v55 = vadd.f32 %v1692_v53, %v1691_v50  ;;  %v1732_v56 = vpop.f32.mrb[3].mxu1 }
 0x100   : > { %v1733_v57 = vadd.f32 %v1732_v56, %v1731_v52 }
 0x101   : > { %v1136_v58 = vadd.f32 %v1730_v51, %v1071_v54  ;;  %v1074_v59 = vadd.f32 %v1693_v55, %v1522_v46 }
 0x103   : > { %v1139_v60 = vadd.f32 %v1733_v57, %v1074_v59  ;;  %v1694_v61 = vpop.f32.mrb[4].mxu0 }
 0x104   : > { %v1734_v62 = vpop.f32.mrb[4].mxu1  ;;  %v1695_v63 = vpop.f32.mrb[5].mxu0 }
 0x105   : > { %v1696_v0 = vadd.f32 %v1695_v63, %v1694_v61  ;;  %v1735_v1 = vpop.f32.mrb[5].mxu1  ;;  %v1697_v2 = vpop.f32.mrb[6].mxu0 }
 0x106   : > { %v1736_v3 = vadd.f32 %v1735_v1, %v1734_v62  ;;  %v1737_v4 = vpop.f32.mrb[6].mxu1  ;;  %v1698_v5 = vpop.f32.mrb[7].mxu0 }
 0x107   : > { %v1079_v6 = vadd.f32 %v1696_v0, %v1522_v46  ;;  %v1699_v7 = vadd.f32 %v1698_v5, %v1697_v2  ;;  %v1738_v8 = vpop.f32.mrb[7].mxu1 }
 0x108   : > { %v1739_v9 = vadd.f32 %v1738_v8, %v1737_v4 }
 0x109   : > { %v1144_v10 = vadd.f32 %v1736_v3, %v1079_v6  ;;  %v1082_v11 = vadd.f32 %v1699_v7, %v1522_v46 }
 0x10b   : > { %v1147_v12 = vadd.f32 %v1739_v9, %v1082_v11  ;;  %v1700_v13 = vpop.f32.mrb[8].mxu0 }
 0x10c   : > { %v1740_v14 = vpop.f32.mrb[8].mxu1  ;;  %v1701_v15 = vpop.f32.mrb[9].mxu0 }
 0x10d   : > { %v1702_v16 = vadd.f32 %v1701_v15, %v1700_v13  ;;  %v1741_v17 = vpop.f32.mrb[9].mxu1  ;;  %v1703_v18 = vpop.f32.mrb[10].mxu0 }
 0x10e   : > { %v1742_v19 = vadd.f32 %v1741_v17, %v1740_v14  ;;  %v1743_v20 = vpop.f32.mrb[10].mxu1  ;;  %v1704_v21 = vpop.f32.mrb[11].mxu0 }
 0x10f   : > { %v1087_v22 = vadd.f32 %v1702_v16, %v1522_v46  ;;  %v1705_v23 = vadd.f32 %v1704_v21, %v1703_v18  ;;  %v1744_v24 = vpop.f32.mrb[11].mxu1 }
 0x110   : > { %v1745_v25 = vadd.f32 %v1744_v24, %v1743_v20 }
 0x111   : > { %v1152_v26 = vadd.f32 %v1742_v19, %v1087_v22  ;;  %v1090_v27 = vadd.f32 %v1705_v23, %v1522_v46 }
 0x113   : > { %v1155_v28 = vadd.f32 %v1745_v25, %v1090_v27  ;;  %v1706_v29 = vpop.f32.mrb[12].mxu0 }
 0x114   : > { %v1746_v30 = vpop.f32.mrb[12].mxu1  ;;  %v1707_v31 = vpop.f32.mrb[13].mxu0 }
 0x115   : > { %v1747_v32 = vpop.f32.mrb[13].mxu1  ;;  %v1708_v33 = vadd.f32 %v1707_v31, %v1706_v29  ;;  %v1709_v35 = vpop.f32.mrb[14].mxu0 }
 0x116   : > { %v1748_v34 = vadd.f32 %v1747_v32, %v1746_v30  ;;  %v1749_v36 = vpop.f32.mrb[14].mxu1  ;;  %v1710_v37 = vpop.f32.mrb[15].mxu0 }
 0x117   : > { %v1750_v38 = vpop.f32.mrb[15].mxu1  ;;  %v1095_v39 = vadd.f32 %v1708_v33, %v1522_v46  ;;  %v1711_v40 = vadd.f32 %v1710_v37, %v1709_v35 }
 0x118   : > { %v1751_v41 = vadd.f32 %v1750_v38, %v1749_v36 }
 0x119   : > { %v1160_v42 = vadd.f32 %v1748_v34, %v1095_v39  ;;  %v1098_v43 = vadd.f32 %v1711_v40, %v1522_v46 }
 0x11b   : > { %v1163_v44 = vadd.f32 %v1751_v41, %v1098_v43  ;;  %v1768_v45 = vpop.f32.mrb[16].mxu0 }
 0x11c   : > { %v1769_v47 = vpop.f32.mrb[17].mxu0  ;;  %v1808_v48 = vpop.f32.mrb[16].mxu1 }
 0x11d   : > { %v1770_v49 = vadd.f32 %v1769_v47, %v1768_v45  ;;  %v1771_v50 = vpop.f32.mrb[18].mxu0  ;;  %v1809_v51 = vpop.f32.mrb[17].mxu1 }
 0x11e   : > { %v1772_v52 = vpop.f32.mrb[19].mxu0  ;;  %v1810_v54 = vadd.f32 %v1809_v51, %v1808_v48  ;;  %v1811_v55 = vpop.f32.mrb[18].mxu1 }
 0x11f   : > { %v1201_v53 = vadd.f32 %v1770_v49, %v1136_v58  ;;  %v1773_v56 = vadd.f32 %v1772_v52, %v1771_v50  ;;  %v1812_v57 = vpop.f32.mrb[19].mxu1 }
 0x120   : > { %v1813_v61 = vadd.f32 %v1812_v57, %v1811_v55 }
 0x121   : > { %v1204_v59 = vadd.f32 %v1773_v56, %v1139_v60  ;;  %v1266_v62 = vadd.f32 %v1810_v54, %v1201_v53 }
 0x123   : > { %v1774_v63 = vpop.f32.mrb[20].mxu0  ;;  %v1269_v0 = vadd.f32 %v1813_v61, %v1204_v59 }
 0x124   : > { %v1775_v1 = vpop.f32.mrb[21].mxu0  ;;  %v1814_v46 = vpop.f32.mrb[20].mxu1 }
 0x125   : > { %v1776_v2 = vadd.f32 %v1775_v1, %v1774_v63  ;;  %v1777_v3 = vpop.f32.mrb[22].mxu0  ;;  %v1815_v4 = vpop.f32.mrb[21].mxu1 }
 0x126   : > { %v1778_v5 = vpop.f32.mrb[23].mxu0  ;;  %v1816_v7 = vadd.f32 %v1815_v4, %v1814_v46  ;;  %v1817_v8 = vpop.f32.mrb[22].mxu1 }
 0x127   : > { %v1209_v6 = vadd.f32 %v1776_v2, %v1144_v10  ;;  %v1779_v9 = vadd.f32 %v1778_v5, %v1777_v3  ;;  %v1818_v58 = vpop.f32.mrb[23].mxu1 }
 0x128   : > { %v1819_v13 = vadd.f32 %v1818_v58, %v1817_v8 }
 0x129   : > { %v1212_v11 = vadd.f32 %v1779_v9, %v1147_v12  ;;  %v1274_v14 = vadd.f32 %v1816_v7, %v1209_v6 }
 0x12b   : > { %v1780_v15 = vpop.f32.mrb[24].mxu0  ;;  %v1277_v60 = vadd.f32 %v1819_v13, %v1212_v11 }
 0x12c   : > { %v1781_v16 = vpop.f32.mrb[25].mxu0  ;;  %v1820_v17 = vpop.f32.mrb[24].mxu1 }
 0x12d   : > { %v1782_v18 = vadd.f32 %v1781_v16, %v1780_v15  ;;  %v1783_v19 = vpop.f32.mrb[26].mxu0  ;;  %v1821_v20 = vpop.f32.mrb[25].mxu1 }
 0x12e   : > { %v1784_v21 = vpop.f32.mrb[27].mxu0  ;;  %v1822_v23 = vadd.f32 %v1821_v20, %v1820_v17  ;;  %v1823_v24 = vpop.f32.mrb[26].mxu1 }
 0x12f   : > { %v1217_v22 = vadd.f32 %v1782_v18, %v1152_v26  ;;  %v1785_v25 = vadd.f32 %v1784_v21, %v1783_v19  ;;  %v1824_v10 = vpop.f32.mrb[27].mxu1 }
 0x130   : > { %v1825_v29 = vadd.f32 %v1824_v10, %v1823_v24 }
 0x131   : > { %v1220_v27 = vadd.f32 %v1785_v25, %v1155_v28  ;;  %v1282_v30 = vadd.f32 %v1822_v23, %v1217_v22 }
 0x133   : > { %v1786_v31 = vpop.f32.mrb[28].mxu0  ;;  %v1285_v12 = vadd.f32 %v1825_v29, %v1220_v27 }
 0x134   : > { %v1787_v32 = vpop.f32.mrb[29].mxu0  ;;  %v1826_v33 = vpop.f32.mrb[28].mxu1 }
 0x135   : > { %v1788_v34 = vadd.f32 %v1787_v32, %v1786_v31  ;;  %v1789_v35 = vpop.f32.mrb[30].mxu0  ;;  %v1827_v36 = vpop.f32.mrb[29].mxu1 }
 0x136   : > { %v1790_v37 = vpop.f32.mrb[31].mxu0  ;;  %v1828_v39 = vadd.f32 %v1827_v36, %v1826_v33  ;;  %v1829_v40 = vpop.f32.mrb[30].mxu1 }
 0x137   : > { %v1225_v38 = vadd.f32 %v1788_v34, %v1160_v42  ;;  %v1791_v26 = vadd.f32 %v1790_v37, %v1789_v35  ;;  %v1830_v41 = vpop.f32.mrb[31].mxu1 }
 0x138   : > { %v1831_v45 = vadd.f32 %v1830_v41, %v1829_v40 }
 0x139   : > { %v1228_v43 = vadd.f32 %v1791_v26, %v1163_v44  ;;  %v1290_v47 = vadd.f32 %v1828_v39, %v1225_v38 }
 0x13b   : > { %v1293_v28 = vadd.f32 %v1831_v45, %v1228_v43 }
 0x13c   : > { %v1862_v48 = vpop.f32.mrb[32].mxu0 }
 0x13d   : > { %v1339_v49 = vadd.f32 %v1862_v48, %v1274_v14  ;;  %v1866_v50 = vpop.f32.mrb[32].mxu1  ;;  %v1330_v51 = vpop.f32.mrb[33].mxu0 }
 0x13e   : > { %v1355_v52 = vadd.f32 %v1866_v50, %v1290_v47  ;;  %v1331_v53 = vadd.f32 %v1330_v51, %v1266_v62  ;;  %v1346_v54 = vpop.f32.mrb[33].mxu1  ;;  %v1863_v55 = vpop.f32.mrb[34].mxu0 }
 0x13f   : > { %v1347_v56 = vadd.f32 %v1346_v54, %v1282_v30  ;;  %v1342_v42 = vadd.f32 %v1863_v55, %v1277_v60  ;;  %v1867_v57 = vpop.f32.mrb[34].mxu1  ;;  %v1333_v59 = vpop.f32.mrb[35].mxu0  ;;  %v1363_v44 = vmax.f32 %v1339_v49, 0.0 }
 0x140   : > { %v1358_v61 = vadd.f32 %v1867_v57, %v1293_v28  ;;  %v1334_v63 = vadd.f32 %v1333_v59, %v1269_v0  ;;  %v1349_v1 = vpop.f32.mrb[35].mxu1  ;;  %v1367_v3 = vmax.f32 %v1355_v52, 0.0  ;;  %v1361_v4 = vmax.f32 %v1331_v53, 0.0 }
 0x141   : > { %v1364_v46 = vmax.f32 %v1342_v42, 0.0  ;;  %v1350_v2 = vadd.f32 %v1349_v1, %v1285_v12  ;;  %v1365_v6 = vmax.f32 %v1347_v56, 0.0 }
 0x142   : > { %v1368_v62 = vmax.f32 %v1358_v61, 0.0  ;;  %v1362_v5 = vmax.f32 %v1334_v63, 0.0 }
 0x143   : > { %v1657_v7 = vpack.c.bf16 %v1364_v46, %v1363_v44  ;;  %v1366_v8 = vmax.f32 %v1350_v2, 0.0 }
 0x144   : > { %v1667_v9 = vpack.c.bf16 %v1368_v62, %v1367_v3  ;;  %v1652_v58 = vpack.c.bf16 %v1362_v5, %v1361_v4 }
 0x145   : > { %1669 = vst [vmem:[%s226_s7 + $0x8] sm:$0xff] %v1657_v7   ;;  %v1662_v11 = vpack.c.bf16 %v1366_v8, %v1365_v6 }
 0x146   : > { %1671 = vst [vmem:[%s226_s7 + $0x18] sm:$0xff] %v1667_v9   ;;  %1653 = vst [vmem:[%s226_s7] sm:$0xff] %v1652_v58  }
 0x147   : > { %1670 = vst [vmem:[%s226_s7 + $0x10] sm:$0xff] %v1662_v11  }
 0x148 PF: > { %s13_s14 = sadd.s32 1, %s2055_s14   ;;  %s2378_s12 = smov %s2051_s13 }
 0x149   : > { %p10_p5 = scmp.ge.s32.totalorder %s13_s14, 4   ;;  %s2379_s13 = smov %s2381_s15 }
 0x14b   :  { %12 = sbr.rel (!%p10_p5) target bundleno = 2 (0x2), region = 68 }

// kernel: forward_fn.39
= control target key start
LH: loop header
LB: loop body
LE: loop exit
PB: predicated region body
PF: predicated region fallthrough
CT: control target
= control target key end

     0   :  { %s1357_s12 = smov 0   ;;  %s1359_s13 = smov 0   ;;  %s1616_s0 = inlined_call_operand.vmem [shape: bf16[128,256], index: 0, kind: input, shape index: {}]   ;;  %s1617_s1 = inlined_call_operand.vmem [shape: bf16[256,256], index: 1, kind: input, shape index: {}]   ;;  %s1618_s2 = inlined_call_operand.vmem [shape: f32[1,256], index: 2, kind: input, shape index: {}]   ;;  %s1619_s3 = inlined_call_operand.vmem [shape: bf16[128,256], index: 3, kind: output, shape index: {}]  }
   0x1   :  { %s1361_s14 = smov 0   ;;  %s1363_s15 = smov 0  }
   0x2   :  { %s1365_s16 = smov 0  }
   0x3 LB: > { %s22_s17 = sadd.s32 1, %s1331_s15  ;;  %s1011_s18 = sadd.s32 4294967295, %s1335_s16   ;;  %s1335_s16 = sphi %s1365_s16, %s13_s16   ;;  %s1331_s15 = sphi %s1363_s15, %s1624_s15   ;;  %s1327_s14 = sphi %s1361_s14, %s1623_s14   ;;  %s1323_s13 = sphi %s1359_s13, %s1622_s13   ;;  %s1319_s12 = sphi %s1357_s12, %s1621_s12  }
   0x4   : > { %p23_p0 = scmp.ge.s32.totalorder %s22_s17, 2  ;;  %p65_p1 = scmp.ne.s32.totalorder %s1323_s13, %s1319_s12 }
   0x5   : > { %p66_p2 = scmp.eq.s32.totalorder %s1335_s16, 0  ;;  %p123_p4 = scmp.eq.s32.totalorder %s1011_s18, 1 }
   0x6   : > { %s1626_s17 = smov (%p23_p0, %s22_s17), 0  ;;  %s58_s20 = sadd.s32 1, %s1323_s13 }
   0x7   : > { %p67_p3 = por %p66_p2, %p65_p1  ;;  %s55_s19 = ssub.s32 %s1331_s15, %s1626_s17 }
   0x8   : > { %p56_p5 = scmp.eq.s32.totalorder %s55_s19, 0  ;;  %p1392_p6 = por %p123_p4, %p65_p1 }
   0x9   : > { %p1015_p7 = scmp.ge.s32.totalorder %s1335_s16, 2 }
   0xa   : > { %s1397_s22 = scalar_select %p56_p5, %s1323_s13, %s58_s20  }
   0xb   : > { %155 = sbr.rel (%p1015_p7) target bundleno = 43 (0x2b), region = 20 }
  0x12   : > { %158 = sbr.rel (!%p67_p3) target bundleno = 43 (0x2b), region = 24  ;;  %s160_s23 = sand.u32 (%p67_p3), 1, %s1323_s13  }
  0x13   : > { %s1017_s24 = sshll.u32 (%p67_p3), %s1331_s15, 2  ;;  %s1016_s25 = sshll.u32 (%p67_p3), %s160_s23, 7 }
  0x14   : > { %s1405_s28 = scalar_lea.vmem (%p67_p3), %s1617_s1, %s1017_s24  ;;  %s1409_s29 = scalar_lea.vmem (%p67_p3), [#allocation2], %s1016_s25 }
  0x15   : > { %v180_v0 = vld [vmem:[%s1405_s28] sm:$0xf] (%p67_p3)  ;;  %v182_v1 = vld [vmem:[%s1405_s28 + $0x8] sm:$0xf] (%p67_p3)  ;;  %v184_v2 = vld [vmem:[%s1405_s28 + $0x10] sm:$0xf] (%p67_p3) }
  0x16   : > { %181 = vst [vmem:[%s1409_s29] sm:$0xf] (%p67_p3), %v180_v0  ;;  %183 = vst [vmem:[%s1409_s29 + $0x4] sm:$0xf] (%p67_p3), %v182_v1  ;;  %v186_v3 = vld [vmem:[%s1405_s28 + $0x18] sm:$0xf] (%p67_p3) }
  0x17   : > { %v188_v4 = vld [vmem:[%s1405_s28 + $0x20] sm:$0xf] (%p67_p3)  ;;  %185 = vst [vmem:[%s1409_s29 + $0x8] sm:$0xf] (%p67_p3), %v184_v2  ;;  %187 = vst [vmem:[%s1409_s29 + $0xc] sm:$0xf] (%p67_p3), %v186_v3 }
  0x18   : > { %189 = vst [vmem:[%s1409_s29 + $0x10] sm:$0xf] (%p67_p3), %v188_v4  ;;  %v190_v5 = vld [vmem:[%s1405_s28 + $0x28] sm:$0xf] (%p67_p3)  ;;  %v192_v6 = vld [vmem:[%s1405_s28 + $0x30] sm:$0xf] (%p67_p3) }
  0x19   : > { %v194_v7 = vld [vmem:[%s1405_s28 + $0x38] sm:$0xf]  ;;  %191 = vst [vmem:[%s1409_s29 + $0x14] sm:$0xf] %v190_v5  ;;  %193 = vst [vmem:[%s1409_s29 + $0x18] sm:$0xf] %v192_v6 }
  0x1a   : > { %195 = vst [vmem:[%s1409_s29 + $0x1c] sm:$0xf] %v194_v7  ;;  %v196_v8 = vld [vmem:[%s1405_s28 + $0x40] sm:$0xf]  ;;  %v198_v9 = vld [vmem:[%s1405_s28 + $0x48] sm:$0xf] }
  0x1b   : > { %v200_v10 = vld [vmem:[%s1405_s28 + $0x50] sm:$0xf]  ;;  %197 = vst [vmem:[%s1409_s29 + $0x20] sm:$0xf] %v196_v8  ;;  %199 = vst [vmem:[%s1409_s29 + $0x24] sm:$0xf] %v198_v9 }
  0x1c   : > { %201 = vst [vmem:[%s1409_s29 + $0x28] sm:$0xf] %v200_v10  ;;  %v202_v11 = vld [vmem:[%s1405_s28 + $0x58] sm:$0xf]  ;;  %v204_v12 = vld [vmem:[%s1405_s28 + $0x60] sm:$0xf] }
  0x1d   : > { %v206_v13 = vld [vmem:[%s1405_s28 + $0x68] sm:$0xf]  ;;  %203 = vst [vmem:[%s1409_s29 + $0x2c] sm:$0xf] %v202_v11  ;;  %205 = vst [vmem:[%s1409_s29 + $0x30] sm:$0xf] %v204_v12 }
  0x1e   : > { %207 = vst [vmem:[%s1409_s29 + $0x34] sm:$0xf] %v206_v13  ;;  %v208_v14 = vld [vmem:[%s1405_s28 + $0x70] sm:$0xf]  ;;  %v210_v15 = vld [vmem:[%s1405_s28 + $0x78] sm:$0xf] }
  0x1f   : > { %v212_v16 = vld [vmem:[%s1405_s28 + $0x80] sm:$0xf]  ;;  %209 = vst [vmem:[%s1409_s29 + $0x38] sm:$0xf] %v208_v14  ;;  %211 = vst [vmem:[%s1409_s29 + $0x3c] sm:$0xf] %v210_v15 }
  0x20   : > { %213 = vst [vmem:[%s1409_s29 + $0x40] sm:$0xf] %v212_v16  ;;  %v214_v17 = vld [vmem:[%s1405_s28 + $0x88] sm:$0xf]  ;;  %v216_v18 = vld [vmem:[%s1405_s28 + $0x90] sm:$0xf] }
  0x21   : > { %v218_v19 = vld [vmem:[%s1405_s28 + $0x98] sm:$0xf]  ;;  %215 = vst [vmem:[%s1409_s29 + $0x44] sm:$0xf] %v214_v17  ;;  %217 = vst [vmem:[%s1409_s29 + $0x48] sm:$0xf] %v216_v18 }
  0x22   : > { %219 = vst [vmem:[%s1409_s29 + $0x4c] sm:$0xf] %v218_v19  ;;  %v220_v20 = vld [vmem:[%s1405_s28 + $0xa0] sm:$0xf]  ;;  %v222_v21 = vld [vmem:[%s1405_s28 + $0xa8] sm:$0xf] }
  0x23   : > { %v224_v22 = vld [vmem:[%s1405_s28 + $0xb0] sm:$0xf]  ;;  %221 = vst [vmem:[%s1409_s29 + $0x50] sm:$0xf] %v220_v20  ;;  %223 = vst [vmem:[%s1409_s29 + $0x54] sm:$0xf] %v222_v21 }
  0x24   : > { %225 = vst [vmem:[%s1409_s29 + $0x58] sm:$0xf] %v224_v22  ;;  %v226_v23 = vld [vmem:[%s1405_s28 + $0xb8] sm:$0xf]  ;;  %v228_v24 = vld [vmem:[%s1405_s28 + $0xc0] sm:$0xf] }
  0x25   : > { %v230_v25 = vld [vmem:[%s1405_s28 + $0xc8] sm:$0xf]  ;;  %227 = vst [vmem:[%s1409_s29 + $0x5c] sm:$0xf] %v226_v23  ;;  %229 = vst [vmem:[%s1409_s29 + $0x60] sm:$0xf] %v228_v24 }
  0x26   : > { %231 = vst [vmem:[%s1409_s29 + $0x64] sm:$0xf] %v230_v25  ;;  %v232_v26 = vld [vmem:[%s1405_s28 + $0xd0] sm:$0xf]  ;;  %v234_v27 = vld [vmem:[%s1405_s28 + $0xd8] sm:$0xf] }
  0x27   : > { %v236_v28 = vld [vmem:[%s1405_s28 + $0xe0] sm:$0xf]  ;;  %233 = vst [vmem:[%s1409_s29 + $0x68] sm:$0xf] %v232_v26  ;;  %235 = vst [vmem:[%s1409_s29 + $0x6c] sm:$0xf] %v234_v27 }
  0x28   : > { %237 = vst [vmem:[%s1409_s29 + $0x70] sm:$0xf] %v236_v28  ;;  %v238_v29 = vld [vmem:[%s1405_s28 + $0xe8] sm:$0xf]  ;;  %v240_v30 = vld [vmem:[%s1405_s28 + $0xf0] sm:$0xf] }
  0x29   : > { %v242_v31 = vld [vmem:[%s1405_s28 + $0xf8] sm:$0xf]  ;;  %239 = vst [vmem:[%s1409_s29 + $0x74] sm:$0xf] %v238_v29  ;;  %241 = vst [vmem:[%s1409_s29 + $0x78] sm:$0xf] %v240_v30 }
  0x2a   : > { %243 = vst [vmem:[%s1409_s29 + $0x7c] sm:$0xf] %v242_v31 }
  0x2b PF: > { %p1018_p8 = scmp.ge.s32.totalorder %s1335_s16, 1  ;;  %p335_p9 = scmp.lt.s32.totalorder %s1335_s16, 3 }
  0x2d   : > { %p336_p10 = pnand %p1018_p8, %p335_p9 }
  0x2e   : > { %s342_s30 = sand.u32 (!%p336_p10), 1, %s1319_s12   ;;  %v1275_v32 = vld [vmem:[%s1616_s0 + $0x4] ss:$8 sps:$4 sm:$0xff] (!%p336_p10)   ;;  %v1273_v50 = vld [vmem:[%s1616_s0] ss:$8 sps:$4 sm:$0xff] (!%p336_p10)   ;;  %p380_p11 = scmp.lt.s32.totalorder (!%p336_p10), %s1327_s14, 1 }
  0x2f   : > { %339 = sbr.rel (%p336_p10) target bundleno = 340 (0x154), region = 69  ;;  %s1019_s4 = sshll.u32 (!%p336_p10), %s342_s30, 7  ;;  %v1278_v33 = vld [vmem:[%s1616_s0 + $0x44] ss:$8 sps:$4 sm:$0xff] (!%p336_p10)   ;;  %648 = vmatprep.mubr.bf16.mxu0 (!%p336_p10), %v1275_v32  ;;  %v1276_v51 = vld [vmem:[%s1616_s0 + $0x40] ss:$8 sps:$4 sm:$0xff] (!%p336_p10)  }
  0x30   : > { %s1484_s9 = scalar_lea.vmem (!%p336_p10), [#allocation2], %s1019_s4  ;;  %680 = vmatprep.mubr.bf16.mxu1 (!%p336_p10), %v1278_v33  ;;  %v1279_v52 = vld [vmem:[%s1616_s0 + $0x14] ss:$8 sps:$4 sm:$0xff] (!%p336_p10)   ;;  %v1283_v54 = vld [vmem:[%s1616_s0 + $0x10] ss:$8 sps:$4 sm:$0xff] (!%p336_p10)   ;;  %s1020_s6 = sshll.u32 (!%p336_p10), %s342_s30, 6 }
  0x31   : > { %v1257_v34 = vld [vmem:[%s1484_s9 + $0x40] sm:$0xff] (!%p336_p10)   ;;  %v1259_v36 = vld [vmem:[%s1484_s9 + $0x48] sm:$0xff] (!%p336_p10)   ;;  %v1261_v38 = vld [vmem:[%s1484_s9 + $0x50] sm:$0xff] (!%p336_p10)   ;;  %s1557_s12 = scalar_lea.vmem (!%p336_p10), [#allocation3], %s1020_s6 }
  0x32   : > { %v1258_v35 = vld [vmem:[%s1484_s9] sm:$0xff] (!%p336_p10)   ;;  %1137 = vmatprep.subr.bf16.mxu0 (!%p336_p10), %v1257_v34  ;;  %1201 = vmatprep.subr.bf16.mxu1 (!%p336_p10), %v1257_v34  ;;  %v1260_v37 = vld [vmem:[%s1484_s9 + $0x8] sm:$0xff] (!%p336_p10)   ;;  %v1262_v39 = vld [vmem:[%s1484_s9 + $0x10] sm:$0xff] (!%p336_p10)  }
  0x33   : > { %1138 = vmatpush3.bf16.msra.mxu0 (!%p336_p10), %v1258_v35  ;;  %1209 = vmatpush3.bf16.msra.mxu1 (!%p336_p10), %v1258_v35  ;;  %v1263_v40 = vld [vmem:[%s1484_s9 + $0x58] sm:$0xff] (!%p336_p10)   ;;  %v1265_v42 = vld [vmem:[%s1484_s9 + $0x60] sm:$0xff] (!%p336_p10)   ;;  %v1267_v44 = vld [vmem:[%s1484_s9 + $0x68] sm:$0xff] (!%p336_p10)  }
  0x34   : > { %1139 = vmatprep.subr.bf16.mxu0 (!%p336_p10), %v1259_v36  ;;  %1202 = vmatprep.subr.bf16.mxu1 (!%p336_p10), %v1259_v36  ;;  %v1264_v41 = vld [vmem:[%s1484_s9 + $0x18] sm:$0xff] (!%p336_p10)   ;;  %v1266_v43 = vld [vmem:[%s1484_s9 + $0x20] sm:$0xff] (!%p336_p10)   ;;  %v1268_v45 = vld [vmem:[%s1484_s9 + $0x28] sm:$0xff] (!%p336_p10)  }
  0x35   : > { %v1269_v46 = vld [vmem:[%s1484_s9 + $0x70] sm:$0xff] (!%p336_p10)   ;;  %v1271_v48 = vld [vmem:[%s1484_s9 + $0x78] sm:$0xff] (!%p336_p10)   ;;  %v1285_v56 = vld [vmem:[%s1616_s0 + $0x24] ss:$8 sps:$4 sm:$0xff] (!%p336_p10)  }
  0x36   : > { %v1270_v47 = vld [vmem:[%s1484_s9 + $0x30] sm:$0xff]   ;;  %v1272_v49 = vld [vmem:[%s1484_s9 + $0x38] sm:$0xff]   ;;  %v1287_v57 = vld [vmem:[%s1616_s0 + $0x64] ss:$8 sps:$4 sm:$0xff]   ;;  %s381_s28 = scalar_select %p380_p11, %s1327_s14, 1 }
  0x37   : > { %1140 = vmatpush3.bf16.msra.mxu0 %v1260_v37  ;;  %1210 = vmatpush3.bf16.msra.mxu1 %v1260_v37  ;;  %v1281_v53 = vld [vmem:[%s1616_s0 + $0x54] ss:$8 sps:$4 sm:$0xff]   ;;  %v1284_v55 = vld [vmem:[%s1616_s0 + $0x50] ss:$8 sps:$4 sm:$0xff]   ;;  %v1289_v58 = vld [vmem:[%s1616_s0 + $0x20] ss:$8 sps:$4 sm:$0xff]  }
  0x38   : > { %1141 = vmatprep.subr.bf16.mxu0 %v1261_v38  ;;  %1203 = vmatprep.subr.bf16.mxu1 %v1261_v38  ;;  %v1290_v59 = vld [vmem:[%s1616_s0 + $0x60] ss:$8 sps:$4 sm:$0xff]   ;;  %v1291_v60 = vld [vmem:[%s1616_s0 + $0x34] ss:$8 sps:$4 sm:$0xff]   ;;  %v1295_v62 = vld [vmem:[%s1616_s0 + $0x30] ss:$8 sps:$4 sm:$0xff]   ;;  %s382_s5 = scalar_lea.vmem %s1618_s2, %s381_s28 }
  0x39   : > { %v1293_v61 = vld [vmem:[%s1616_s0 + $0x74] ss:$8 sps:$4 sm:$0xff]   ;;  %v1296_v63 = vld [vmem:[%s1616_s0 + $0x70] ss:$8 sps:$4 sm:$0xff]   ;;  %v1549_v2 = vld [vmem:[%s382_s5] ss:$0 sm:$0xff] }
  0x3a   : > { %s1071_s30 = sshll.u32 (%p1392_p6), %s1327_s14, 2 }
  0x3b   : > { %1142 = vmatpush3.bf16.msra.mxu0 %v1262_v39  ;;  %1211 = vmatpush3.bf16.msra.mxu1 %v1262_v39  ;;  %s820_s9 = scalar_lea.vmem (%p1392_p6), %s1619_s3, %s1071_s30 }
  0x3c   : > { %1143 = vmatprep.subr.bf16.mxu0 %v1263_v40  ;;  %1204 = vmatprep.subr.bf16.mxu1 %v1263_v40 }
  0x3f   : > { %1144 = vmatpush3.bf16.msra.mxu0 %v1264_v41  ;;  %1212 = vmatpush3.bf16.msra.mxu1 %v1264_v41 }
  0x40   : > { %1145 = vmatprep.subr.bf16.mxu0 %v1265_v42  ;;  %1205 = vmatprep.subr.bf16.mxu1 %v1265_v42 }
  0x43   : > { %1146 = vmatpush3.bf16.msra.mxu0 %v1266_v43  ;;  %1213 = vmatpush3.bf16.msra.mxu1 %v1266_v43 }
  0x44   : > { %1147 = vmatprep.subr.bf16.mxu0 %v1267_v44  ;;  %1206 = vmatprep.subr.bf16.mxu1 %v1267_v44 }
  0x47   : > { %1148 = vmatpush3.bf16.msra.mxu0 %v1268_v45  ;;  %1214 = vmatpush3.bf16.msra.mxu1 %v1268_v45 }
  0x48   : > { %1149 = vmatprep.subr.bf16.mxu0 %v1269_v46  ;;  %1207 = vmatprep.subr.bf16.mxu1 %v1269_v46 }
  0x4b   : > { %1150 = vmatpush3.bf16.msra.mxu0 %v1270_v47  ;;  %1215 = vmatpush3.bf16.msra.mxu1 %v1270_v47 }
  0x4c   : > { %1151 = vmatprep.subr.bf16.mxu0 %v1271_v48  ;;  %1208 = vmatprep.subr.bf16.mxu1 %v1271_v48 }
  0x4f   : > { %1152 = vmatpush3.bf16.msra.mxu0 %v1272_v49  ;;  %1216 = vmatpush3.bf16.msra.mxu1 %v1272_v49 }
  0x52   : > { %649 = vmatmul.mubr.bf16.vlgmr.msra.gmra.mrb[0].mxu0 %v1273_v50  ;;  %681 = vmatmul.mubr.bf16.vlgmr.msra.gmra.mrb[0].mxu1 %v1276_v51 }
  0x53   : > { %656 = vmatprep.mubr.bf16.mxu0 %v1279_v52  ;;  %688 = vmatprep.mubr.bf16.mxu1 %v1281_v53 }
  0x5a   : > { %657 = vmatmul.mubr.bf16.gmra.mrb[4].mxu0 %v1283_v54  ;;  %689 = vmatmul.mubr.bf16.gmra.mrb[4].mxu1 %v1284_v55 }
  0x5b   : > { %664 = vmatprep.mubr.bf16.mxu0 %v1285_v56  ;;  %696 = vmatprep.mubr.bf16.mxu1 %v1287_v57 }
  0x62   : > { %665 = vmatmul.mubr.bf16.gmra.mrb[8].mxu0 %v1289_v58  ;;  %697 = vmatmul.mubr.bf16.gmra.mrb[8].mxu1 %v1290_v59 }
  0x63   : > { %672 = vmatprep.mubr.bf16.mxu0 %v1291_v60  ;;  %704 = vmatprep.mubr.bf16.mxu1 %v1293_v61 }
  0x6a   : > { %673 = vmatmul.mubr.bf16.gmra.mrb[12].mxu0 %v1295_v62  ;;  %705 = vmatmul.mubr.bf16.gmra.mrb[12].mxu1 %v1296_v63 }
 0x125   : > { %v1153_v0 = vpop.f32.mrb[0].mxu0  ;;  %v1177_v1 = vpop.f32.mrb[0].mxu1 }
 0x126   : > { %v1154_v3 = vpop.f32.mrb[1].mxu0  ;;  %v1178_v4 = vpop.f32.mrb[1].mxu1 }
 0x127   : > { %v1155_v5 = vadd.f32 %v1154_v3, %v1153_v0  ;;  %v1179_v6 = vadd.f32 %v1178_v4, %v1177_v1  ;;  %v1156_v7 = vpop.f32.mrb[2].mxu0  ;;  %v1180_v8 = vpop.f32.mrb[2].mxu1 }
 0x128   : > { %v1157_v9 = vpop.f32.mrb[3].mxu0  ;;  %v1181_v10 = vpop.f32.mrb[3].mxu1 }
 0x129   : > { %v651_v11 = vadd.f32 %v1155_v5, %v1549_v2  ;;  %v683_v12 = vadd.f32 %v1179_v6, %v1549_v2  ;;  %v1158_v13 = vadd.f32 %v1157_v9, %v1156_v7  ;;  %v1182_v14 = vadd.f32 %v1181_v10, %v1180_v8 }
 0x12b   : > { %v654_v15 = vadd.f32 %v1158_v13, %v1549_v2  ;;  %v686_v16 = vadd.f32 %v1182_v14, %v1549_v2  ;;  %v713_v17 = vmax.f32 %v651_v11, 0.0  ;;  %v721_v18 = vmax.f32 %v683_v12, 0.0 }
 0x12d   : > { %v714_v19 = vmax.f32 %v654_v15, 0.0  ;;  %v722_v20 = vmax.f32 %v686_v16, 0.0  ;;  %v1159_v21 = vpop.f32.mrb[4].mxu0  ;;  %v1183_v22 = vpop.f32.mrb[4].mxu1 }
 0x12e   : > { %v1160_v23 = vpop.f32.mrb[5].mxu0  ;;  %v1184_v24 = vpop.f32.mrb[5].mxu1 }
 0x12f   : > { %v1093_v25 = vpack.c.bf16 %v714_v19, %v713_v17  ;;  %v1113_v26 = vpack.c.bf16 %v722_v20, %v721_v18  ;;  %v1161_v27 = vadd.f32 %v1160_v23, %v1159_v21  ;;  %v1185_v28 = vadd.f32 %v1184_v24, %v1183_v22  ;;  %v1162_v29 = vpop.f32.mrb[6].mxu0  ;;  %v1186_v30 = vpop.f32.mrb[6].mxu1 }
 0x130   : > { %v1163_v31 = vpop.f32.mrb[7].mxu0  ;;  %v1187_v32 = vpop.f32.mrb[7].mxu1 }
 0x131   : > { %1094 = vst [vmem:[%s1557_s12] sm:$0xff] %v1093_v25   ;;  %1133 = vst [vmem:[%s1557_s12 + $0x20] sm:$0xff] %v1113_v26   ;;  %v659_v33 = vadd.f32 %v1161_v27, %v1549_v2  ;;  %v691_v34 = vadd.f32 %v1185_v28, %v1549_v2  ;;  %v1164_v35 = vadd.f32 %v1163_v31, %v1162_v29 }
 0x132   : > { %v1188_v36 = vadd.f32 %v1187_v32, %v1186_v30 }
 0x133   : > { %v662_v37 = vadd.f32 %v1164_v35, %v1549_v2  ;;  %v715_v39 = vmax.f32 %v659_v33, 0.0  ;;  %v723_v40 = vmax.f32 %v691_v34, 0.0 }
 0x134   : > { %v694_v38 = vadd.f32 %v1188_v36, %v1549_v2 }
 0x135   : > { %v716_v41 = vmax.f32 %v662_v37, 0.0  ;;  %v1165_v43 = vpop.f32.mrb[8].mxu0  ;;  %v1189_v44 = vpop.f32.mrb[8].mxu1 }
 0x136   : > { %v724_v42 = vmax.f32 %v694_v38, 0.0  ;;  %v1166_v45 = vpop.f32.mrb[9].mxu0  ;;  %v1190_v46 = vpop.f32.mrb[9].mxu1 }
 0x137   : > { %v1098_v47 = vpack.c.bf16 %v716_v41, %v715_v39  ;;  %v1167_v49 = vadd.f32 %v1166_v45, %v1165_v43  ;;  %v1191_v50 = vadd.f32 %v1190_v46, %v1189_v44  ;;  %v1168_v51 = vpop.f32.mrb[10].mxu0  ;;  %v1192_v52 = vpop.f32.mrb[10].mxu1 }
 0x138   : > { %v1118_v48 = vpack.c.bf16 %v724_v42, %v723_v40  ;;  %v1169_v53 = vpop.f32.mrb[11].mxu0  ;;  %v1193_v54 = vpop.f32.mrb[11].mxu1  ;;  %v838_v26 = vld [vmem:[%s1557_s12 + $0x4] sm:$0xf] (%p1392_p6)  ;;  %v852_v33 = vld [vmem:[%s1557_s12 + $0x20] sm:$0xf] (%p1392_p6) }
 0x139   : > { %1130 = vst [vmem:[%s1557_s12 + $0x8] sm:$0xff] %v1098_v47   ;;  %v667_v55 = vadd.f32 %v1167_v49, %v1549_v2  ;;  %v699_v56 = vadd.f32 %v1191_v50, %v1549_v2  ;;  %v1170_v57 = vadd.f32 %v1169_v53, %v1168_v51  ;;  %v1194_v58 = vadd.f32 %v1193_v54, %v1192_v52  ;;  %v854_v34 = vld [vmem:[%s1557_s12 + $0x24] sm:$0xf] (%p1392_p6) }
 0x13a   : > { %1134 = vst [vmem:[%s1557_s12 + $0x28] sm:$0xff] %v1118_v48   ;;  %839 = vst [vmem:[%s820_s9 + $0x8] sm:$0xf] (%p1392_p6), %v838_v26 }
 0x13b   : > { %v670_v59 = vadd.f32 %v1170_v57, %v1549_v2  ;;  %v702_v60 = vadd.f32 %v1194_v58, %v1549_v2  ;;  %v717_v61 = vmax.f32 %v667_v55, 0.0  ;;  %v725_v62 = vmax.f32 %v699_v56, 0.0  ;;  %853 = vst [vmem:[%s820_s9 + $0x40] sm:$0xf] (%p1392_p6), %v852_v33  ;;  %855 = vst [vmem:[%s820_s9 + $0x48] sm:$0xf] (%p1392_p6), %v854_v34 }
 0x13d   : > { %v718_v63 = vmax.f32 %v670_v59, 0.0  ;;  %v726_v0 = vmax.f32 %v702_v60, 0.0  ;;  %v1171_v1 = vpop.f32.mrb[12].mxu0  ;;  %v1195_v3 = vpop.f32.mrb[12].mxu1 }
 0x13e   : > { %v1172_v4 = vpop.f32.mrb[13].mxu0  ;;  %v1196_v5 = vpop.f32.mrb[13].mxu1 }
 0x13f   : > { %v1103_v6 = vpack.c.bf16 %v718_v63, %v717_v61  ;;  %v1123_v7 = vpack.c.bf16 %v726_v0, %v725_v62  ;;  %v1173_v8 = vadd.f32 %v1172_v4, %v1171_v1  ;;  %v1197_v9 = vadd.f32 %v1196_v5, %v1195_v3  ;;  %v1174_v10 = vpop.f32.mrb[14].mxu0  ;;  %v1198_v11 = vpop.f32.mrb[14].mxu1 }
 0x140   : > { %v1175_v12 = vpop.f32.mrb[15].mxu0  ;;  %v1199_v13 = vpop.f32.mrb[15].mxu1  ;;  %v840_v27 = vld [vmem:[%s1557_s12 + $0x8] sm:$0xf] (%p1392_p6)  ;;  %v842_v28 = vld [vmem:[%s1557_s12 + $0xc] sm:$0xf] (%p1392_p6) }
 0x141   : > { %1131 = vst [vmem:[%s1557_s12 + $0x10] sm:$0xff] %v1103_v6   ;;  %1135 = vst [vmem:[%s1557_s12 + $0x30] sm:$0xff] %v1123_v7   ;;  %v675_v14 = vadd.f32 %v1173_v8, %v1549_v2  ;;  %v707_v15 = vadd.f32 %v1197_v9, %v1549_v2  ;;  %v1176_v16 = vadd.f32 %v1175_v12, %v1174_v10  ;;  %v856_v35 = vld [vmem:[%s1557_s12 + $0x28] sm:$0xf] (%p1392_p6)  ;;  %v858_v36 = vld [vmem:[%s1557_s12 + $0x2c] sm:$0xf] (%p1392_p6) }
 0x142   : > { %v1200_v17 = vadd.f32 %v1199_v13, %v1198_v11  ;;  %841 = vst [vmem:[%s820_s9 + $0x10] sm:$0xf] (%p1392_p6), %v840_v27  ;;  %843 = vst [vmem:[%s820_s9 + $0x18] sm:$0xf] (%p1392_p6), %v842_v28 }
 0x143   : > { %v678_v18 = vadd.f32 %v1176_v16, %v1549_v2  ;;  %v719_v20 = vmax.f32 %v675_v14, 0.0  ;;  %v727_v21 = vmax.f32 %v707_v15, 0.0  ;;  %857 = vst [vmem:[%s820_s9 + $0x50] sm:$0xf] (%p1392_p6), %v856_v35  ;;  %859 = vst [vmem:[%s820_s9 + $0x58] sm:$0xf] (%p1392_p6), %v858_v36 }
 0x144   : > { %v710_v19 = vadd.f32 %v1200_v17, %v1549_v2  ;;  %815 = sbr.rel (!%p1392_p6) target bundleno = 340 (0x154), region = 77  ;;  %v836_v2 = vld [vmem:[%s1557_s12] sm:$0xf] (%p1392_p6) }
 0x145   : > { %v720_v22 = vmax.f32 %v678_v18, 0.0  ;;  %837 = vst [vmem:[%s820_s9] sm:$0xf] (%p1392_p6), %v836_v2 }
 0x146   : > { %v728_v23 = vmax.f32 %v710_v19, 0.0 }
 0x147   : > { %v1108_v24 = vpack.c.bf16 %v720_v22, %v719_v20 }
 0x148   : > { %v1128_v25 = vpack.c.bf16 %v728_v23, %v727_v21  ;;  %v844_v29 = vld [vmem:[%s1557_s12 + $0x10] sm:$0xf] (%p1392_p6)  ;;  %v846_v30 = vld [vmem:[%s1557_s12 + $0x14] sm:$0xf] (%p1392_p6) }
 0x149   : > { %1132 = vst [vmem:[%s1557_s12 + $0x18] sm:$0xff] %v1108_v24   ;;  %845 = vst [vmem:[%s820_s9 + $0x20] sm:$0xf] (%p1392_p6), %v844_v29  ;;  %v860_v37 = vld [vmem:[%s1557_s12 + $0x30] sm:$0xf] (%p1392_p6) }
 0x14a   : > { %1136 = vst [vmem:[%s1557_s12 + $0x38] sm:$0xff] %v1128_v25   ;;  %847 = vst [vmem:[%s820_s9 + $0x28] sm:$0xf] (%p1392_p6), %v846_v30  ;;  %v862_v38 = vld [vmem:[%s1557_s12 + $0x34] sm:$0xf] (%p1392_p6) }
 0x14b   : > { %861 = vst [vmem:[%s820_s9 + $0x60] sm:$0xf] %v860_v37  ;;  %863 = vst [vmem:[%s820_s9 + $0x68] sm:$0xf] %v862_v38 }
 0x150   : > { %v848_v31 = vld [vmem:[%s1557_s12 + $0x18] sm:$0xf]  ;;  %v850_v32 = vld [vmem:[%s1557_s12 + $0x1c] sm:$0xf] }
 0x151   : > { %849 = vst [vmem:[%s820_s9 + $0x30] sm:$0xf] %v848_v31  ;;  %851 = vst [vmem:[%s820_s9 + $0x38] sm:$0xf] %v850_v32  ;;  %v864_v39 = vld [vmem:[%s1557_s12 + $0x38] sm:$0xf] }
 0x152   : > { %v866_v40 = vld [vmem:[%s1557_s12 + $0x3c] sm:$0xf]  ;;  %865 = vst [vmem:[%s820_s9 + $0x70] sm:$0xf] %v864_v39 }
 0x153   : > { %867 = vst [vmem:[%s820_s9 + $0x78] sm:$0xf] %v866_v40 }
 0x154 PF: > { %s13_s16 = sadd.s32 1, %s1335_s16   ;;  %s1621_s12 = smov %s1323_s13 }
 0x155   : > { %p10_p12 = scmp.ge.s32.totalorder %s13_s16, 4   ;;  %s1622_s13 = smov %s1397_s22 }
 0x156   : > { %s1623_s14 = smov %s1331_s15  ;;  %s1624_s15 = smov %s1626_s17 }
 0x157   :  { %12 = sbr.rel (!%p10_p12) target bundleno = 3 (0x3), region = 155 }

// kernel: forward_fn.41
= control target key start
LH: loop header
LB: loop body
LE: loop exit
PB: predicated region body
PF: predicated region fallthrough
CT: control target
= control target key end

     0   :  { %s1092_s12 = smov 0   ;;  %s1094_s13 = smov 0   ;;  %s1286_s0 = inlined_call_operand.vmem [shape: bf16[32,256], index: 0, kind: input, shape index: {}]   ;;  %s1287_s1 = inlined_call_operand.vmem [shape: bf16[256,512], index: 1, kind: input, shape index: {}]   ;;  %s1288_s2 = inlined_call_operand.vmem [shape: f32[1,512], index: 2, kind: input, shape index: {}]   ;;  %s1289_s3 = inlined_call_operand.vmem [shape: bf16[32,512], index: 3, kind: output, shape index: {}]  }
   0x1   :  { %s1096_s14 = smov 0   ;;  %s1098_s15 = smov 0  }
   0x2   :  { %s1100_s16 = smov 0  }
   0x3 LB: > { %s22_s17 = sadd.s32 1, %s1066_s15  ;;  %s843_s18 = sadd.s32 4294967295, %s1070_s16   ;;  %s1070_s16 = sphi %s1100_s16, %s13_s16   ;;  %s1066_s15 = sphi %s1098_s15, %s1294_s15   ;;  %s1062_s14 = sphi %s1096_s14, %s1293_s14   ;;  %s1058_s13 = sphi %s1094_s13, %s1292_s13   ;;  %s1054_s12 = sphi %s1092_s12, %s1291_s12  }
   0x4   : > { %p23_p0 = scmp.ge.s32.totalorder %s22_s17, 2  ;;  %p65_p1 = scmp.ne.s32.totalorder %s1058_s13, %s1054_s12 }
   0x5   : > { %p66_p2 = scmp.eq.s32.totalorder %s1070_s16, 0  ;;  %p123_p4 = scmp.eq.s32.totalorder %s843_s18, 1 }
   0x6   : > { %s1296_s17 = smov (%p23_p0, %s22_s17), 0  ;;  %s58_s20 = sadd.s32 1, %s1058_s13 }
   0x7   : > { %p67_p3 = por %p66_p2, %p65_p1  ;;  %s55_s19 = ssub.s32 %s1066_s15, %s1296_s17 }
   0x8   : > { %p56_p5 = scmp.eq.s32.totalorder %s55_s19, 0  ;;  %p1127_p6 = por %p123_p4, %p65_p1 }
   0x9   : > { %p847_p7 = scmp.ge.s32.totalorder %s1070_s16, 2 }
   0xa   : > { %s1132_s22 = scalar_select %p56_p5, %s1058_s13, %s58_s20  }
   0xb   : > { %155 = sbr.rel (%p847_p7) target bundleno = 38 (0x26), region = 20 }
  0x12   : > { %158 = sbr.rel (!%p67_p3) target bundleno = 38 (0x26), region = 24  ;;  %s160_s23 = sand.u32 (%p67_p3), 1, %s1058_s13  }
  0x13   : > { %s900_s24 = sshll.u32 (%p67_p3), %s1066_s15, 3  ;;  %s848_s25 = sshll.u32 (%p67_p3), %s160_s23, 8 }
  0x14   : > { %s1140_s28 = scalar_lea.vmem (%p67_p3), %s1287_s1, %s900_s24  ;;  %s1145_s29 = scalar_lea.vmem (%p67_p3), [#allocation2], %s848_s25 }
  0x15   : > { %v255_v0 = vld [vmem:[%s1140_s28] sm:$0xff] (%p67_p3)  ;;  %v257_v1 = vld [vmem:[%s1140_s28 + $0x10] sm:$0xff] (%p67_p3) }
  0x16   : > { %v259_v2 = vld [vmem:[%s1140_s28 + $0x20] sm:$0xff] (%p67_p3)  ;;  %256 = vst [vmem:[%s1145_s29] sm:$0xff] (%p67_p3), %v255_v0  ;;  %258 = vst [vmem:[%s1145_s29 + $0x8] sm:$0xff] (%p67_p3), %v257_v1  ;;  %v261_v3 = vld [vmem:[%s1140_s28 + $0x30] sm:$0xff] (%p67_p3) }
  0x17   : > { %260 = vst [vmem:[%s1145_s29 + $0x10] sm:$0xff] (%p67_p3), %v259_v2  ;;  %v263_v4 = vld [vmem:[%s1140_s28 + $0x40] sm:$0xff] (%p67_p3)  ;;  %v265_v5 = vld [vmem:[%s1140_s28 + $0x50] sm:$0xff] (%p67_p3)  ;;  %262 = vst [vmem:[%s1145_s29 + $0x18] sm:$0xff] (%p67_p3), %v261_v3 }
  0x18   : > { %264 = vst [vmem:[%s1145_s29 + $0x20] sm:$0xff] (%p67_p3), %v263_v4  ;;  %266 = vst [vmem:[%s1145_s29 + $0x28] sm:$0xff] (%p67_p3), %v265_v5  ;;  %v267_v6 = vld [vmem:[%s1140_s28 + $0x60] sm:$0xff] (%p67_p3)  ;;  %v269_v7 = vld [vmem:[%s1140_s28 + $0x70] sm:$0xff] (%p67_p3) }
  0x19   : > { %v271_v8 = vld [vmem:[%s1140_s28 + $0x80] sm:$0xff]  ;;  %268 = vst [vmem:[%s1145_s29 + $0x30] sm:$0xff] %v267_v6  ;;  %270 = vst [vmem:[%s1145_s29 + $0x38] sm:$0xff] %v269_v7  ;;  %v273_v9 = vld [vmem:[%s1140_s28 + $0x90] sm:$0xff] }
  0x1a   : > { %272 = vst [vmem:[%s1145_s29 + $0x40] sm:$0xff] %v271_v8  ;;  %v275_v10 = vld [vmem:[%s1140_s28 + $0xa0] sm:$0xff]  ;;  %v277_v11 = vld [vmem:[%s1140_s28 + $0xb0] sm:$0xff]  ;;  %274 = vst [vmem:[%s1145_s29 + $0x48] sm:$0xff] %v273_v9 }
  0x1b   : > { %276 = vst [vmem:[%s1145_s29 + $0x50] sm:$0xff] %v275_v10  ;;  %278 = vst [vmem:[%s1145_s29 + $0x58] sm:$0xff] %v277_v11  ;;  %v279_v12 = vld [vmem:[%s1140_s28 + $0xc0] sm:$0xff]  ;;  %v281_v13 = vld [vmem:[%s1140_s28 + $0xd0] sm:$0xff] }
  0x1c   : > { %v283_v14 = vld [vmem:[%s1140_s28 + $0xe0] sm:$0xff]  ;;  %280 = vst [vmem:[%s1145_s29 + $0x60] sm:$0xff] %v279_v12  ;;  %282 = vst [vmem:[%s1145_s29 + $0x68] sm:$0xff] %v281_v13  ;;  %v285_v15 = vld [vmem:[%s1140_s28 + $0xf0] sm:$0xff] }
  0x1d   : > { %284 = vst [vmem:[%s1145_s29 + $0x70] sm:$0xff] %v283_v14  ;;  %v287_v16 = vld [vmem:[%s1140_s28 + $0x100] sm:$0xff]  ;;  %v289_v17 = vld [vmem:[%s1140_s28 + $0x110] sm:$0xff]  ;;  %286 = vst [vmem:[%s1145_s29 + $0x78] sm:$0xff] %v285_v15 }
  0x1e   : > { %288 = vst [vmem:[%s1145_s29 + $0x80] sm:$0xff] %v287_v16  ;;  %290 = vst [vmem:[%s1145_s29 + $0x88] sm:$0xff] %v289_v17  ;;  %v291_v18 = vld [vmem:[%s1140_s28 + $0x120] sm:$0xff]  ;;  %v293_v19 = vld [vmem:[%s1140_s28 + $0x130] sm:$0xff] }
  0x1f   : > { %v295_v20 = vld [vmem:[%s1140_s28 + $0x140] sm:$0xff]  ;;  %292 = vst [vmem:[%s1145_s29 + $0x90] sm:$0xff] %v291_v18  ;;  %294 = vst [vmem:[%s1145_s29 + $0x98] sm:$0xff] %v293_v19  ;;  %v297_v21 = vld [vmem:[%s1140_s28 + $0x150] sm:$0xff] }
  0x20   : > { %296 = vst [vmem:[%s1145_s29 + $0xa0] sm:$0xff] %v295_v20  ;;  %v299_v22 = vld [vmem:[%s1140_s28 + $0x160] sm:$0xff]  ;;  %v301_v23 = vld [vmem:[%s1140_s28 + $0x170] sm:$0xff]  ;;  %298 = vst [vmem:[%s1145_s29 + $0xa8] sm:$0xff] %v297_v21 }
  0x21   : > { %300 = vst [vmem:[%s1145_s29 + $0xb0] sm:$0xff] %v299_v22  ;;  %302 = vst [vmem:[%s1145_s29 + $0xb8] sm:$0xff] %v301_v23  ;;  %v303_v24 = vld [vmem:[%s1140_s28 + $0x180] sm:$0xff]  ;;  %v305_v25 = vld [vmem:[%s1140_s28 + $0x190] sm:$0xff] }
  0x22   : > { %v307_v26 = vld [vmem:[%s1140_s28 + $0x1a0] sm:$0xff]  ;;  %304 = vst [vmem:[%s1145_s29 + $0xc0] sm:$0xff] %v303_v24  ;;  %306 = vst [vmem:[%s1145_s29 + $0xc8] sm:$0xff] %v305_v25  ;;  %v309_v27 = vld [vmem:[%s1140_s28 + $0x1b0] sm:$0xff] }
  0x23   : > { %308 = vst [vmem:[%s1145_s29 + $0xd0] sm:$0xff] %v307_v26  ;;  %v311_v28 = vld [vmem:[%s1140_s28 + $0x1c0] sm:$0xff]  ;;  %v313_v29 = vld [vmem:[%s1140_s28 + $0x1d0] sm:$0xff]  ;;  %310 = vst [vmem:[%s1145_s29 + $0xd8] sm:$0xff] %v309_v27 }
  0x24   : > { %312 = vst [vmem:[%s1145_s29 + $0xe0] sm:$0xff] %v311_v28  ;;  %314 = vst [vmem:[%s1145_s29 + $0xe8] sm:$0xff] %v313_v29  ;;  %v315_v30 = vld [vmem:[%s1140_s28 + $0x1e0] sm:$0xff]  ;;  %v317_v31 = vld [vmem:[%s1140_s28 + $0x1f0] sm:$0xff] }
  0x25   : > { %316 = vst [vmem:[%s1145_s29 + $0xf0] sm:$0xff] %v315_v30  ;;  %318 = vst [vmem:[%s1145_s29 + $0xf8] sm:$0xff] %v317_v31 }
  0x26 PF: > { %p851_p8 = scmp.ge.s32.totalorder %s1070_s16, 1  ;;  %p331_p9 = scmp.lt.s32.totalorder %s1070_s16, 3 }
  0x28   : > { %p332_p10 = pnand %p851_p8, %p331_p9 }
  0x29   : > { %s338_s30 = sand.u32 (!%p332_p10), 1, %s1054_s12   ;;  %v1028_v32 = vld [vmem:[%s1286_s0 + $0x4] ss:$8 sps:$4 sm:$0xff] (!%p332_p10)   ;;  %v1031_v33 = vld [vmem:[%s1286_s0 + $0x14] ss:$8 sps:$4 sm:$0xff] (!%p332_p10)   ;;  %s854_s20 = sshll.u32 (!%p332_p10), %s1062_s14, 1  ;;  %v423_v4 = vlaneseq (!%p332_p10) }
  0x2a   : > { %335 = sbr.rel (%p332_p10) target bundleno = 337 (0x151), region = 66  ;;  %s852_s4 = sshll.u32 (!%p332_p10), %s338_s30, 8  ;;  %645 = vmatprep.mubr.bf16.mxu0 (!%p332_p10), %v1028_v32  ;;  %655 = vmatprep.mubr.bf16.mxu1 (!%p332_p10), %v1031_v33  ;;  %v1026_v2 = vld [vmem:[%s1286_s0] ss:$8 sps:$4 sm:$0xff] (!%p332_p10)   ;;  %v1029_v3 = vld [vmem:[%s1286_s0 + $0x10] ss:$8 sps:$4 sm:$0xff] (!%p332_p10)  }
  0x2b   : > { %s1219_s9 = scalar_lea.vmem (!%p332_p10), [#allocation2], %s852_s4  ;;  %p379_p11 = scmp.lt.s32.totalorder (!%p332_p10), %s854_s20, 3  ;;  %v424_v5 = vshrl.u32 (!%p332_p10), %v423_v4, 7 }
  0x2c   : > { %v978_v34 = vld [vmem:[%s1219_s9 + $0x4] ss:$8 sps:$4 sm:$0xff] (!%p332_p10)   ;;  %v980_v35 = vld [vmem:[%s1219_s9] ss:$8 sps:$4 sm:$0xff] (!%p332_p10)   ;;  %v981_v36 = vld [vmem:[%s1219_s9 + $0x14] ss:$8 sps:$4 sm:$0xff] (!%p332_p10)  }
  0x2d   : > { %613 = vmatprep.subr.bf16.mxu0 (!%p332_p10), %v978_v34  ;;  %906 = vmatprep.subr.bf16.mxu1 (!%p332_p10), %v978_v34  ;;  %v983_v37 = vld [vmem:[%s1219_s9 + $0x10] ss:$8 sps:$4 sm:$0xff] (!%p332_p10)   ;;  %v984_v38 = vld [vmem:[%s1219_s9 + $0x24] ss:$8 sps:$4 sm:$0xff] (!%p332_p10)   ;;  %v986_v39 = vld [vmem:[%s1219_s9 + $0x20] ss:$8 sps:$4 sm:$0xff] (!%p332_p10)  }
  0x2e   : > { %614 = vmatpush1.bf16.msra.mxu0 (!%p332_p10), %v980_v35  ;;  %922 = vmatpush1.bf16.msra.mxu1 (!%p332_p10), %v980_v35  ;;  %v987_v40 = vld [vmem:[%s1219_s9 + $0x34] ss:$8 sps:$4 sm:$0xff] (!%p332_p10)   ;;  %v989_v41 = vld [vmem:[%s1219_s9 + $0x30] ss:$8 sps:$4 sm:$0xff] (!%p332_p10)   ;;  %v990_v42 = vld [vmem:[%s1219_s9 + $0x44] ss:$8 sps:$4 sm:$0xff] (!%p332_p10)  }
  0x2f   : > { %615 = vmatprep.subr.bf16.mxu0 (!%p332_p10), %v981_v36  ;;  %907 = vmatprep.subr.bf16.mxu1 (!%p332_p10), %v981_v36  ;;  %v992_v43 = vld [vmem:[%s1219_s9 + $0x40] ss:$8 sps:$4 sm:$0xff] (!%p332_p10)   ;;  %v993_v44 = vld [vmem:[%s1219_s9 + $0x54] ss:$8 sps:$4 sm:$0xff] (!%p332_p10)   ;;  %v995_v45 = vld [vmem:[%s1219_s9 + $0x50] ss:$8 sps:$4 sm:$0xff] (!%p332_p10)  }
  0x30   : > { %v996_v46 = vld [vmem:[%s1219_s9 + $0x64] ss:$8 sps:$4 sm:$0xff] (!%p332_p10)   ;;  %v998_v47 = vld [vmem:[%s1219_s9 + $0x60] ss:$8 sps:$4 sm:$0xff] (!%p332_p10)   ;;  %v999_v48 = vld [vmem:[%s1219_s9 + $0x74] ss:$8 sps:$4 sm:$0xff] (!%p332_p10)  }
  0x31   : > { %v1001_v49 = vld [vmem:[%s1219_s9 + $0x70] ss:$8 sps:$4 sm:$0xff]   ;;  %v1002_v50 = vld [vmem:[%s1219_s9 + $0x84] ss:$8 sps:$4 sm:$0xff]   ;;  %v1004_v51 = vld [vmem:[%s1219_s9 + $0x80] ss:$8 sps:$4 sm:$0xff]  }
  0x32   : > { %616 = vmatpush1.bf16.msra.mxu0 %v983_v37  ;;  %923 = vmatpush1.bf16.msra.mxu1 %v983_v37  ;;  %v1005_v52 = vld [vmem:[%s1219_s9 + $0x94] ss:$8 sps:$4 sm:$0xff]   ;;  %v1007_v53 = vld [vmem:[%s1219_s9 + $0x90] ss:$8 sps:$4 sm:$0xff]   ;;  %v1008_v54 = vld [vmem:[%s1219_s9 + $0xa4] ss:$8 sps:$4 sm:$0xff]  }
  0x33   : > { %617 = vmatprep.subr.bf16.mxu0 %v984_v38  ;;  %908 = vmatprep.subr.bf16.mxu1 %v984_v38  ;;  %v1010_v55 = vld [vmem:[%s1219_s9 + $0xa0] ss:$8 sps:$4 sm:$0xff]   ;;  %v1011_v56 = vld [vmem:[%s1219_s9 + $0xb4] ss:$8 sps:$4 sm:$0xff]   ;;  %v1013_v57 = vld [vmem:[%s1219_s9 + $0xb0] ss:$8 sps:$4 sm:$0xff]  }
  0x34   : > { %v1014_v58 = vld [vmem:[%s1219_s9 + $0xc4] ss:$8 sps:$4 sm:$0xff]   ;;  %v1016_v59 = vld [vmem:[%s1219_s9 + $0xc0] ss:$8 sps:$4 sm:$0xff]   ;;  %v1017_v60 = vld [vmem:[%s1219_s9 + $0xd4] ss:$8 sps:$4 sm:$0xff]  }
  0x35   : > { %v1019_v61 = vld [vmem:[%s1219_s9 + $0xd0] ss:$8 sps:$4 sm:$0xff]   ;;  %v1020_v62 = vld [vmem:[%s1219_s9 + $0xe4] ss:$8 sps:$4 sm:$0xff]   ;;  %v1022_v63 = vld [vmem:[%s1219_s9 + $0xe0] ss:$8 sps:$4 sm:$0xff]  }
  0x36   : > { %618 = vmatpush1.bf16.msra.mxu0 %v986_v39  ;;  %924 = vmatpush1.bf16.msra.mxu1 %v986_v39  ;;  %v1023_v0 = vld [vmem:[%s1219_s9 + $0xf4] ss:$8 sps:$4 sm:$0xff]   ;;  %v1025_v1 = vld [vmem:[%s1219_s9 + $0xf0] ss:$8 sps:$4 sm:$0xff]   ;;  %s1298_s20 = smov (!%p379_p11, %s854_s20), 3  ;;  %v425_v6 = vsub.s32 0, %v424_v5 }
  0x37   : > { %619 = vmatprep.subr.bf16.mxu0 %v987_v40  ;;  %909 = vmatprep.subr.bf16.mxu1 %v987_v40  ;;  %s381_s25 = scalar_lea.vmem %s1288_s2, %s1298_s20  ;;  %v429_v8 = vsub.s32 1, %v424_v5  ;;  %s853_s26 = sshll.u32 %s338_s30, 5 }
  0x38   : > { %v421_v7 = vld [vmem:[%s381_s25] sm:$0x3]  ;;  %s369_s27 = scalar_lea.vmem [#allocation3], %s853_s26  ;;  %s905_s12 = sshll.u32 (%p1127_p6), %s1062_s14, 3 }
  0x39   : > { %v426_v9 = vrot.slane %v421_v7, %v425_v6  ;;  %v430_v10 = vrot.slane %v421_v7, %v429_v8  ;;  %s706_s30 = scalar_lea.vmem (%p1127_p6), %s1289_s3, %s905_s12 }
  0x3a   : > { %620 = vmatpush1.bf16.msra.mxu0 %v989_v41  ;;  %925 = vmatpush1.bf16.msra.mxu1 %v989_v41 }
  0x3b   : > { %621 = vmatprep.subr.bf16.mxu0 %v990_v42  ;;  %910 = vmatprep.subr.bf16.mxu1 %v990_v42 }
  0x3e   : > { %622 = vmatpush1.bf16.msra.mxu0 %v992_v43  ;;  %926 = vmatpush1.bf16.msra.mxu1 %v992_v43 }
  0x3f   : > { %623 = vmatprep.subr.bf16.mxu0 %v993_v44  ;;  %911 = vmatprep.subr.bf16.mxu1 %v993_v44 }
  0x42   : > { %624 = vmatpush1.bf16.msra.mxu0 %v995_v45  ;;  %927 = vmatpush1.bf16.msra.mxu1 %v995_v45 }
  0x43   : > { %625 = vmatprep.subr.bf16.mxu0 %v996_v46  ;;  %912 = vmatprep.subr.bf16.mxu1 %v996_v46 }
  0x46   : > { %626 = vmatpush1.bf16.msra.mxu0 %v998_v47  ;;  %928 = vmatpush1.bf16.msra.mxu1 %v998_v47 }
  0x47   : > { %627 = vmatprep.subr.bf16.mxu0 %v999_v48  ;;  %913 = vmatprep.subr.bf16.mxu1 %v999_v48 }
  0x4a   : > { %628 = vmatpush1.bf16.msra.mxu0 %v1001_v49  ;;  %929 = vmatpush1.bf16.msra.mxu1 %v1001_v49 }
  0x4b   : > { %629 = vmatprep.subr.bf16.mxu0 %v1002_v50  ;;  %914 = vmatprep.subr.bf16.mxu1 %v1002_v50 }
  0x4e   : > { %630 = vmatpush1.bf16.msra.mxu0 %v1004_v51  ;;  %930 = vmatpush1.bf16.msra.mxu1 %v1004_v51 }
  0x4f   : > { %631 = vmatprep.subr.bf16.mxu0 %v1005_v52  ;;  %915 = vmatprep.subr.bf16.mxu1 %v1005_v52 }
  0x52   : > { %632 = vmatpush1.bf16.msra.mxu0 %v1007_v53  ;;  %931 = vmatpush1.bf16.msra.mxu1 %v1007_v53 }
  0x53   : > { %633 = vmatprep.subr.bf16.mxu0 %v1008_v54  ;;  %916 = vmatprep.subr.bf16.mxu1 %v1008_v54 }
  0x56   : > { %634 = vmatpush1.bf16.msra.mxu0 %v1010_v55  ;;  %932 = vmatpush1.bf16.msra.mxu1 %v1010_v55 }
  0x57   : > { %635 = vmatprep.subr.bf16.mxu0 %v1011_v56  ;;  %917 = vmatprep.subr.bf16.mxu1 %v1011_v56 }
  0x5a   : > { %636 = vmatpush1.bf16.msra.mxu0 %v1013_v57  ;;  %933 = vmatpush1.bf16.msra.mxu1 %v1013_v57 }
  0x5b   : > { %637 = vmatprep.subr.bf16.mxu0 %v1014_v58  ;;  %918 = vmatprep.subr.bf16.mxu1 %v1014_v58 }
  0x5e   : > { %638 = vmatpush1.bf16.msra.mxu0 %v1016_v59  ;;  %934 = vmatpush1.bf16.msra.mxu1 %v1016_v59 }
  0x5f   : > { %639 = vmatprep.subr.bf16.mxu0 %v1017_v60  ;;  %919 = vmatprep.subr.bf16.mxu1 %v1017_v60 }
  0x62   : > { %640 = vmatpush1.bf16.msra.mxu0 %v1019_v61  ;;  %935 = vmatpush1.bf16.msra.mxu1 %v1019_v61 }
  0x63   : > { %641 = vmatprep.subr.bf16.mxu0 %v1020_v62  ;;  %920 = vmatprep.subr.bf16.mxu1 %v1020_v62 }
  0x66   : > { %642 = vmatpush1.bf16.msra.mxu0 %v1022_v63  ;;  %936 = vmatpush1.bf16.msra.mxu1 %v1022_v63 }
  0x67   : > { %643 = vmatprep.subr.bf16.mxu0 %v1023_v0  ;;  %921 = vmatprep.subr.bf16.mxu1 %v1023_v0 }
  0x6a   : > { %644 = vmatpush1.bf16.msra.mxu0 %v1025_v1  ;;  %937 = vmatpush1.bf16.msra.mxu1 %v1025_v1 }
  0x6d   : > { %646 = vmatmul.mubr.bf16.vlgmr.msra.gmra.mrb[0].mxu0 %v1026_v2  ;;  %656 = vmatmul.mubr.bf16.vlgmr.msra.gmra.mrb[0].mxu1 %v1029_v3 }
 0x140   : > { %v647_v11 = vpop.f32.mrb[0].mxu0  ;;  %v657_v12 = vpop.f32.mrb[0].mxu1 }
 0x141   : > { %v648_v13 = vadd.f32 %v647_v11, %v426_v9  ;;  %v658_v14 = vadd.f32 %v657_v12, %v426_v9  ;;  %v649_v15 = vpop.f32.mrb[1].mxu0  ;;  %v659_v16 = vpop.f32.mrb[1].mxu1 }
 0x142   : > { %v650_v17 = vadd.f32 %v649_v15, %v430_v10  ;;  %v660_v18 = vadd.f32 %v659_v16, %v430_v10  ;;  %v651_v19 = vpop.f32.mrb[2].mxu0  ;;  %v661_v20 = vpop.f32.mrb[2].mxu1  ;;  %700 = sbr.rel (!%p1127_p6) target bundleno = 337 (0x151), region = 74 }
 0x143   : > { %v652_v21 = vadd.f32 %v651_v19, %v426_v9  ;;  %v662_v22 = vadd.f32 %v661_v20, %v426_v9  ;;  %v653_v23 = vpop.f32.mrb[3].mxu0  ;;  %v663_v24 = vpop.f32.mrb[3].mxu1 }
 0x144   : > { %v901_v25 = vpack.c.bf16 %v650_v17, %v648_v13  ;;  %v903_v26 = vpack.c.bf16 %v660_v18, %v658_v14  ;;  %v654_v27 = vadd.f32 %v653_v23, %v430_v10  ;;  %v664_v28 = vadd.f32 %v663_v24, %v430_v10 }
 0x146   : > { %690 = vst [vmem:[%s369_s27] sm:$0xff] %v901_v25  ;;  %692 = vst [vmem:[%s369_s27 + $0x10] sm:$0xff] %v903_v26  ;;  %v902_v29 = vpack.c.bf16 %v654_v27, %v652_v21  ;;  %v904_v30 = vpack.c.bf16 %v664_v28, %v662_v22 }
 0x148   : > { %691 = vst [vmem:[%s369_s27 + $0x8] sm:$0xff] %v902_v29  ;;  %693 = vst [vmem:[%s369_s27 + $0x18] sm:$0xff] %v904_v30 }
 0x14d   : > { %v740_v31 = vld [vmem:[%s369_s27] sm:$0xff]  ;;  %v744_v33 = vld [vmem:[%s369_s27 + $0x10] sm:$0xff] }
 0x14e   : > { %741 = vst [vmem:[%s706_s30] sm:$0xff] %v740_v31  ;;  %745 = vst [vmem:[%s706_s30 + $0x20] sm:$0xff] %v744_v33 }
 0x14f   : > { %v742_v32 = vld [vmem:[%s369_s27 + $0x8] sm:$0xff]  ;;  %v746_v34 = vld [vmem:[%s369_s27 + $0x18] sm:$0xff] }
 0x150   : > { %743 = vst [vmem:[%s706_s30 + $0x10] sm:$0xff] %v742_v32  ;;  %747 = vst [vmem:[%s706_s30 + $0x30] sm:$0xff] %v746_v34 }
 0x151 PF: > { %s13_s16 = sadd.s32 1, %s1070_s16   ;;  %s1291_s12 = smov %s1058_s13 }
 0x152   : > { %p10_p12 = scmp.ge.s32.totalorder %s13_s16, 4   ;;  %s1292_s13 = smov %s1132_s22 }
 0x153   : > { %s1293_s14 = smov %s1066_s15  ;;  %s1294_s15 = smov %s1296_s17 }
 0x154   :  { %12 = sbr.rel (!%p10_p12) target bundleno = 3 (0x3), region = 149 }

// kernel: forward_fn.42
= control target key start
LH: loop header
LB: loop body
LE: loop exit
PB: predicated region body
PF: predicated region fallthrough
CT: control target
= control target key end

     0   :  { %s1252_s15 = smov 0   ;;  %s1254_s16 = smov 0   ;;  %s1463_s0 = inlined_call_operand.vmem [shape: bf16[32,256], index: 0, kind: input, shape index: {}]   ;;  %s1464_s1 = inlined_call_operand.vmem [shape: bf16[256,512], index: 1, kind: input, shape index: {}]   ;;  %s1465_s2 = inlined_call_operand.vmem [shape: f32[1,512], index: 2, kind: input, shape index: {}]   ;;  %s1466_s3 = inlined_call_operand.vmem [shape: bf16[32,512], index: 3, kind: input, shape index: {}]   ;;  %s1467_s4 = inlined_call_operand.vmem [shape: bf16[32,512], index: 4, kind: output, shape index: {}]  }
   0x1   :  { %s1256_s17 = smov 0   ;;  %s1258_s18 = smov 0  }
   0x2   :  { %s1260_s19 = smov 0  }
   0x3 LB: > { %s23_s20 = sadd.s32 1, %s1221_s18  ;;  %s993_s21 = sadd.s32 4294967295, %s1225_s19   ;;  %s1225_s19 = sphi %s1260_s19, %s14_s19   ;;  %s1221_s18 = sphi %s1258_s18, %s1473_s18   ;;  %s1217_s17 = sphi %s1256_s17, %s1472_s17   ;;  %s1213_s16 = sphi %s1254_s16, %s1471_s16   ;;  %s1209_s15 = sphi %s1252_s15, %s1470_s15  }
   0x4   : > { %p24_p0 = scmp.ge.s32.totalorder %s23_s20, 2  ;;  %p66_p1 = scmp.ne.s32.totalorder %s1213_s16, %s1209_s15 }
   0x5   : > { %p67_p2 = scmp.eq.s32.totalorder %s1225_s19, 0  ;;  %p152_p4 = scmp.eq.s32.totalorder %s993_s21, 1 }
   0x6   : > { %s1475_s20 = smov (%p24_p0, %s23_s20), 0  ;;  %s59_s24 = sadd.s32 1, %s1213_s16 }
   0x7   : > { %p1284_p3 = por %p67_p2, %p66_p1  ;;  %s56_s23 = ssub.s32 %s1221_s18, %s1475_s20 }
   0x8   : > { %p57_p5 = scmp.eq.s32.totalorder %s56_s23, 0  ;;  %p1291_p6 = por %p152_p4, %p66_p1 }
   0x9   : > { %p997_p7 = scmp.ge.s32.totalorder %s1225_s19, 2 }
   0xa   : > { %s1296_s26 = scalar_select %p57_p5, %s1213_s16, %s59_s24  }
   0xb   : > { %184 = sbr.rel (%p997_p7) target bundleno = 45 (0x2d), region = 20 }
  0x12   : > { %187 = sbr.rel (!%p1284_p3) target bundleno = 38 (0x26), region = 24  ;;  %s189_s27 = sand.u32 (%p1284_p3), 1, %s1213_s16  }
  0x13   : > { %s1054_s28 = sshll.u32 (%p1284_p3), %s1221_s18, 3  ;;  %s998_s29 = sshll.u32 (%p1284_p3), %s189_s27, 8 }
  0x14   : > { %s1306_s6 = scalar_lea.vmem (%p1284_p3), %s1464_s1, %s1054_s28  ;;  %s1311_s7 = scalar_lea.vmem (%p1284_p3), [#allocation2], %s998_s29 }
  0x15   : > { %v284_v0 = vld [vmem:[%s1306_s6] sm:$0xff] (%p1284_p3)  ;;  %v286_v1 = vld [vmem:[%s1306_s6 + $0x10] sm:$0xff] (%p1284_p3) }
  0x16   : > { %v288_v2 = vld [vmem:[%s1306_s6 + $0x20] sm:$0xff] (%p1284_p3)  ;;  %285 = vst [vmem:[%s1311_s7] sm:$0xff] (%p1284_p3), %v284_v0  ;;  %287 = vst [vmem:[%s1311_s7 + $0x8] sm:$0xff] (%p1284_p3), %v286_v1  ;;  %v290_v3 = vld [vmem:[%s1306_s6 + $0x30] sm:$0xff] (%p1284_p3) }
  0x17   : > { %289 = vst [vmem:[%s1311_s7 + $0x10] sm:$0xff] (%p1284_p3), %v288_v2  ;;  %v292_v4 = vld [vmem:[%s1306_s6 + $0x40] sm:$0xff] (%p1284_p3)  ;;  %v294_v5 = vld [vmem:[%s1306_s6 + $0x50] sm:$0xff] (%p1284_p3)  ;;  %291 = vst [vmem:[%s1311_s7 + $0x18] sm:$0xff] (%p1284_p3), %v290_v3 }
  0x18   : > { %293 = vst [vmem:[%s1311_s7 + $0x20] sm:$0xff] (%p1284_p3), %v292_v4  ;;  %295 = vst [vmem:[%s1311_s7 + $0x28] sm:$0xff] (%p1284_p3), %v294_v5  ;;  %v296_v6 = vld [vmem:[%s1306_s6 + $0x60] sm:$0xff] (%p1284_p3)  ;;  %v298_v7 = vld [vmem:[%s1306_s6 + $0x70] sm:$0xff] (%p1284_p3) }
  0x19   : > { %v300_v8 = vld [vmem:[%s1306_s6 + $0x80] sm:$0xff]  ;;  %297 = vst [vmem:[%s1311_s7 + $0x30] sm:$0xff] %v296_v6  ;;  %299 = vst [vmem:[%s1311_s7 + $0x38] sm:$0xff] %v298_v7  ;;  %v302_v9 = vld [vmem:[%s1306_s6 + $0x90] sm:$0xff] }
  0x1a   : > { %301 = vst [vmem:[%s1311_s7 + $0x40] sm:$0xff] %v300_v8  ;;  %v304_v10 = vld [vmem:[%s1306_s6 + $0xa0] sm:$0xff]  ;;  %v306_v11 = vld [vmem:[%s1306_s6 + $0xb0] sm:$0xff]  ;;  %303 = vst [vmem:[%s1311_s7 + $0x48] sm:$0xff] %v302_v9 }
  0x1b   : > { %305 = vst [vmem:[%s1311_s7 + $0x50] sm:$0xff] %v304_v10  ;;  %307 = vst [vmem:[%s1311_s7 + $0x58] sm:$0xff] %v306_v11  ;;  %v308_v12 = vld [vmem:[%s1306_s6 + $0xc0] sm:$0xff]  ;;  %v310_v13 = vld [vmem:[%s1306_s6 + $0xd0] sm:$0xff] }
  0x1c   : > { %v312_v14 = vld [vmem:[%s1306_s6 + $0xe0] sm:$0xff]  ;;  %309 = vst [vmem:[%s1311_s7 + $0x60] sm:$0xff] %v308_v12  ;;  %311 = vst [vmem:[%s1311_s7 + $0x68] sm:$0xff] %v310_v13  ;;  %v314_v15 = vld [vmem:[%s1306_s6 + $0xf0] sm:$0xff] }
  0x1d   : > { %313 = vst [vmem:[%s1311_s7 + $0x70] sm:$0xff] %v312_v14  ;;  %v316_v16 = vld [vmem:[%s1306_s6 + $0x100] sm:$0xff]  ;;  %v318_v17 = vld [vmem:[%s1306_s6 + $0x110] sm:$0xff]  ;;  %315 = vst [vmem:[%s1311_s7 + $0x78] sm:$0xff] %v314_v15 }
  0x1e   : > { %317 = vst [vmem:[%s1311_s7 + $0x80] sm:$0xff] %v316_v16  ;;  %319 = vst [vmem:[%s1311_s7 + $0x88] sm:$0xff] %v318_v17  ;;  %v320_v18 = vld [vmem:[%s1306_s6 + $0x120] sm:$0xff]  ;;  %v322_v19 = vld [vmem:[%s1306_s6 + $0x130] sm:$0xff] }
  0x1f   : > { %v324_v20 = vld [vmem:[%s1306_s6 + $0x140] sm:$0xff]  ;;  %321 = vst [vmem:[%s1311_s7 + $0x90] sm:$0xff] %v320_v18  ;;  %323 = vst [vmem:[%s1311_s7 + $0x98] sm:$0xff] %v322_v19  ;;  %v326_v21 = vld [vmem:[%s1306_s6 + $0x150] sm:$0xff] }
  0x20   : > { %325 = vst [vmem:[%s1311_s7 + $0xa0] sm:$0xff] %v324_v20  ;;  %v328_v22 = vld [vmem:[%s1306_s6 + $0x160] sm:$0xff]  ;;  %v330_v23 = vld [vmem:[%s1306_s6 + $0x170] sm:$0xff]  ;;  %327 = vst [vmem:[%s1311_s7 + $0xa8] sm:$0xff] %v326_v21 }
  0x21   : > { %329 = vst [vmem:[%s1311_s7 + $0xb0] sm:$0xff] %v328_v22  ;;  %331 = vst [vmem:[%s1311_s7 + $0xb8] sm:$0xff] %v330_v23  ;;  %v332_v24 = vld [vmem:[%s1306_s6 + $0x180] sm:$0xff]  ;;  %v334_v25 = vld [vmem:[%s1306_s6 + $0x190] sm:$0xff] }
  0x22   : > { %v336_v26 = vld [vmem:[%s1306_s6 + $0x1a0] sm:$0xff]  ;;  %333 = vst [vmem:[%s1311_s7 + $0xc0] sm:$0xff] %v332_v24  ;;  %335 = vst [vmem:[%s1311_s7 + $0xc8] sm:$0xff] %v334_v25  ;;  %v338_v27 = vld [vmem:[%s1306_s6 + $0x1b0] sm:$0xff] }
  0x23   : > { %337 = vst [vmem:[%s1311_s7 + $0xd0] sm:$0xff] %v336_v26  ;;  %v340_v28 = vld [vmem:[%s1306_s6 + $0x1c0] sm:$0xff]  ;;  %v342_v29 = vld [vmem:[%s1306_s6 + $0x1d0] sm:$0xff]  ;;  %339 = vst [vmem:[%s1311_s7 + $0xd8] sm:$0xff] %v338_v27 }
  0x24   : > { %341 = vst [vmem:[%s1311_s7 + $0xe0] sm:$0xff] %v340_v28  ;;  %343 = vst [vmem:[%s1311_s7 + $0xe8] sm:$0xff] %v342_v29  ;;  %v344_v30 = vld [vmem:[%s1306_s6 + $0x1e0] sm:$0xff]  ;;  %v346_v31 = vld [vmem:[%s1306_s6 + $0x1f0] sm:$0xff] }
  0x25   : > { %345 = vst [vmem:[%s1311_s7 + $0xf0] sm:$0xff] %v344_v30  ;;  %347 = vst [vmem:[%s1311_s7 + $0xf8] sm:$0xff] %v346_v31 }
  0x26 PF: > { %361 = sbr.rel (!%p1284_p3) target bundleno = 45 (0x2d), region = 66  ;;  %s363_s8 = sand.u32 (%p1284_p3), 1, %s1213_s16  }
  0x27   : > { %s1055_s9 = sshll.u32 (%p1284_p3), %s1221_s18, 3  ;;  %s1001_s10 = sshll.u32 (%p1284_p3), %s363_s8, 5 }
  0x28   : > { %s371_s13 = scalar_lea.vmem (%p1284_p3), %s1466_s3, %s1055_s9  ;;  %s365_s14 = scalar_lea.vmem (%p1284_p3), [#allocation3], %s1001_s10 }
  0x29   : > { %v405_v32 = vld [vmem:[%s371_s13] sm:$0xff] (%p1284_p3)  ;;  %v407_v33 = vld [vmem:[%s371_s13 + $0x10] sm:$0xff] (%p1284_p3) }
  0x2a   : > { %v409_v34 = vld [vmem:[%s371_s13 + $0x20] sm:$0xff] (%p1284_p3)  ;;  %406 = vst [vmem:[%s365_s14] sm:$0xff] (%p1284_p3), %v405_v32  ;;  %408 = vst [vmem:[%s365_s14 + $0x8] sm:$0xff] (%p1284_p3), %v407_v33  ;;  %v411_v35 = vld [vmem:[%s371_s13 + $0x30] sm:$0xff] (%p1284_p3) }
  0x2b   : > { %410 = vst [vmem:[%s365_s14 + $0x10] sm:$0xff] (%p1284_p3), %v409_v34  ;;  %412 = vst [vmem:[%s365_s14 + $0x18] sm:$0xff] (%p1284_p3), %v411_v35 }
  0x2d PF: > { %p1004_p8 = scmp.ge.s32.totalorder %s1225_s19, 1  ;;  %p417_p9 = scmp.lt.s32.totalorder %s1225_s19, 3 }
  0x2f   : > { %p418_p10 = pnand %p1004_p8, %p417_p9 }
  0x30   : > { %s424_s21 = sand.u32 (!%p418_p10), 1, %s1209_s15   ;;  %v1183_v36 = vld [vmem:[%s1463_s0 + $0x4] ss:$8 sps:$4 sm:$0xff] (!%p418_p10)   ;;  %v1186_v37 = vld [vmem:[%s1463_s0 + $0x14] ss:$8 sps:$4 sm:$0xff] (!%p418_p10)   ;;  %s1008_s8 = sshll.u32 (!%p418_p10), %s1217_s17, 1  ;;  %v524_v8 = vlaneseq (!%p418_p10) }
  0x31   : > { %421 = sbr.rel (%p418_p10) target bundleno = 348 (0x15c), region = 104  ;;  %s1005_s22 = sshll.u32 (!%p418_p10), %s424_s21, 8  ;;  %746 = vmatprep.mubr.bf16.mxu0 (!%p418_p10), %v1183_v36  ;;  %756 = vmatprep.mubr.bf16.mxu1 (!%p418_p10), %v1186_v37  ;;  %v1181_v6 = vld [vmem:[%s1463_s0] ss:$8 sps:$4 sm:$0xff] (!%p418_p10)   ;;  %v1184_v7 = vld [vmem:[%s1463_s0 + $0x10] ss:$8 sps:$4 sm:$0xff] (!%p418_p10)  }
  0x32   : > { %s1392_s29 = scalar_lea.vmem (!%p418_p10), [#allocation2], %s1005_s22  ;;  %p478_p11 = scmp.lt.s32.totalorder (!%p418_p10), %s1008_s8, 3  ;;  %v525_v9 = vshrl.u32 (!%p418_p10), %v524_v8, 7 }
  0x33   : > { %v1133_v38 = vld [vmem:[%s1392_s29 + $0x4] ss:$8 sps:$4 sm:$0xff] (!%p418_p10)   ;;  %v1135_v39 = vld [vmem:[%s1392_s29] ss:$8 sps:$4 sm:$0xff] (!%p418_p10)   ;;  %v1136_v40 = vld [vmem:[%s1392_s29 + $0x14] ss:$8 sps:$4 sm:$0xff] (!%p418_p10)  }
  0x34   : > { %714 = vmatprep.subr.bf16.mxu0 (!%p418_p10), %v1133_v38  ;;  %1061 = vmatprep.subr.bf16.mxu1 (!%p418_p10), %v1133_v38  ;;  %v1138_v41 = vld [vmem:[%s1392_s29 + $0x10] ss:$8 sps:$4 sm:$0xff] (!%p418_p10)   ;;  %v1139_v42 = vld [vmem:[%s1392_s29 + $0x24] ss:$8 sps:$4 sm:$0xff] (!%p418_p10)   ;;  %v1141_v43 = vld [vmem:[%s1392_s29 + $0x20] ss:$8 sps:$4 sm:$0xff] (!%p418_p10)  }
  0x35   : > { %715 = vmatpush1.bf16.msra.mxu0 (!%p418_p10), %v1135_v39  ;;  %1077 = vmatpush1.bf16.msra.mxu1 (!%p418_p10), %v1135_v39  ;;  %v1142_v44 = vld [vmem:[%s1392_s29 + $0x34] ss:$8 sps:$4 sm:$0xff] (!%p418_p10)   ;;  %v1144_v45 = vld [vmem:[%s1392_s29 + $0x30] ss:$8 sps:$4 sm:$0xff] (!%p418_p10)   ;;  %v1145_v46 = vld [vmem:[%s1392_s29 + $0x44] ss:$8 sps:$4 sm:$0xff] (!%p418_p10)  }
  0x36   : > { %716 = vmatprep.subr.bf16.mxu0 (!%p418_p10), %v1136_v40  ;;  %1062 = vmatprep.subr.bf16.mxu1 (!%p418_p10), %v1136_v40  ;;  %v1147_v47 = vld [vmem:[%s1392_s29 + $0x40] ss:$8 sps:$4 sm:$0xff] (!%p418_p10)   ;;  %v1148_v48 = vld [vmem:[%s1392_s29 + $0x54] ss:$8 sps:$4 sm:$0xff] (!%p418_p10)   ;;  %v1150_v49 = vld [vmem:[%s1392_s29 + $0x50] ss:$8 sps:$4 sm:$0xff] (!%p418_p10)  }
  0x37   : > { %v1151_v50 = vld [vmem:[%s1392_s29 + $0x64] ss:$8 sps:$4 sm:$0xff] (!%p418_p10)   ;;  %v1153_v51 = vld [vmem:[%s1392_s29 + $0x60] ss:$8 sps:$4 sm:$0xff] (!%p418_p10)   ;;  %v1154_v52 = vld [vmem:[%s1392_s29 + $0x74] ss:$8 sps:$4 sm:$0xff] (!%p418_p10)  }
  0x38   : > { %v1156_v53 = vld [vmem:[%s1392_s29 + $0x70] ss:$8 sps:$4 sm:$0xff]   ;;  %v1157_v54 = vld [vmem:[%s1392_s29 + $0x84] ss:$8 sps:$4 sm:$0xff]   ;;  %v1159_v55 = vld [vmem:[%s1392_s29 + $0x80] ss:$8 sps:$4 sm:$0xff]  }
  0x39   : > { %717 = vmatpush1.bf16.msra.mxu0 %v1138_v41  ;;  %1078 = vmatpush1.bf16.msra.mxu1 %v1138_v41  ;;  %v1160_v56 = vld [vmem:[%s1392_s29 + $0x94] ss:$8 sps:$4 sm:$0xff]   ;;  %v1162_v57 = vld [vmem:[%s1392_s29 + $0x90] ss:$8 sps:$4 sm:$0xff]   ;;  %v1163_v58 = vld [vmem:[%s1392_s29 + $0xa4] ss:$8 sps:$4 sm:$0xff]  }
  0x3a   : > { %718 = vmatprep.subr.bf16.mxu0 %v1139_v42  ;;  %1063 = vmatprep.subr.bf16.mxu1 %v1139_v42  ;;  %v1165_v59 = vld [vmem:[%s1392_s29 + $0xa0] ss:$8 sps:$4 sm:$0xff]   ;;  %v1166_v60 = vld [vmem:[%s1392_s29 + $0xb4] ss:$8 sps:$4 sm:$0xff]   ;;  %v1168_v61 = vld [vmem:[%s1392_s29 + $0xb0] ss:$8 sps:$4 sm:$0xff]  }
  0x3b   : > { %v1169_v62 = vld [vmem:[%s1392_s29 + $0xc4] ss:$8 sps:$4 sm:$0xff]   ;;  %v1171_v63 = vld [vmem:[%s1392_s29 + $0xc0] ss:$8 sps:$4 sm:$0xff]   ;;  %v1172_v0 = vld [vmem:[%s1392_s29 + $0xd4] ss:$8 sps:$4 sm:$0xff]  }
  0x3c   : > { %v1174_v1 = vld [vmem:[%s1392_s29 + $0xd0] ss:$8 sps:$4 sm:$0xff]   ;;  %v1175_v2 = vld [vmem:[%s1392_s29 + $0xe4] ss:$8 sps:$4 sm:$0xff]   ;;  %v1177_v3 = vld [vmem:[%s1392_s29 + $0xe0] ss:$8 sps:$4 sm:$0xff]  }
  0x3d   : > { %719 = vmatpush1.bf16.msra.mxu0 %v1141_v43  ;;  %1079 = vmatpush1.bf16.msra.mxu1 %v1141_v43  ;;  %v1178_v4 = vld [vmem:[%s1392_s29 + $0xf4] ss:$8 sps:$4 sm:$0xff]   ;;  %v1180_v5 = vld [vmem:[%s1392_s29 + $0xf0] ss:$8 sps:$4 sm:$0xff]   ;;  %s1477_s8 = smov (!%p478_p11, %s1008_s8), 3  ;;  %s1435_s9 = sshll.u32 %s424_s21, 5 }
  0x3e   : > { %720 = vmatprep.subr.bf16.mxu0 %v1142_v44  ;;  %1064 = vmatprep.subr.bf16.mxu1 %v1142_v44  ;;  %s480_s12 = scalar_lea.vmem %s1465_s2, %s1477_s8  ;;  %v526_v10 = vsub.s32 0, %v525_v9  ;;  %v530_v12 = vsub.s32 1, %v525_v9  ;;  %s433_s13 = scalar_lea.vmem [#allocation3], %s1435_s9 }
  0x3f   : > { %v522_v11 = vld [vmem:[%s480_s12] sm:$0x3]  ;;  %v769_v14 = vld [vmem:[%s433_s13 + $0x10] sm:$0xff]  ;;  %v768_v17 = vld [vmem:[%s433_s13 + $0x8] sm:$0xff]  ;;  %s468_s15 = scalar_lea.vmem [#allocation4], %s1435_s9  ;;  %s1060_s14 = sshll.u32 (%p1291_p6), %s1217_s17, 3 }
  0x40   : > { %v767_v13 = vld [vmem:[%s433_s13] sm:$0xff]  ;;  %v527_v15 = vrot.slane %v522_v11, %v526_v10  ;;  %v531_v16 = vrot.slane %v522_v11, %v530_v12  ;;  %v770_v18 = vld [vmem:[%s433_s13 + $0x18] sm:$0xff]  ;;  %v775_v20 = vunpack.c.l.bf16 %v769_v14  ;;  %v776_v24 = vunpack.c.h.bf16 %v769_v14  ;;  %s835_s23 = scalar_lea.vmem (%p1291_p6), %s1467_s4, %s1060_s14 }
  0x41   : > { %721 = vmatpush1.bf16.msra.mxu0 %v1144_v45  ;;  %1080 = vmatpush1.bf16.msra.mxu1 %v1144_v45  ;;  %v771_v19 = vunpack.c.l.bf16 %v767_v13  ;;  %v772_v23 = vunpack.c.h.bf16 %v767_v13  ;;  %v773_v29 = vunpack.c.l.bf16 %v768_v17  ;;  %v777_v30 = vunpack.c.l.bf16 %v770_v18 }
  0x42   : > { %722 = vmatprep.subr.bf16.mxu0 %v1145_v46  ;;  %1065 = vmatprep.subr.bf16.mxu1 %v1145_v46  ;;  %v774_v35 = vunpack.c.h.bf16 %v768_v17  ;;  %v778_v36 = vunpack.c.h.bf16 %v770_v18 }
  0x45   : > { %723 = vmatpush1.bf16.msra.mxu0 %v1147_v47  ;;  %1081 = vmatpush1.bf16.msra.mxu1 %v1147_v47 }
  0x46   : > { %724 = vmatprep.subr.bf16.mxu0 %v1148_v48  ;;  %1066 = vmatprep.subr.bf16.mxu1 %v1148_v48 }
  0x49   : > { %725 = vmatpush1.bf16.msra.mxu0 %v1150_v49  ;;  %1082 = vmatpush1.bf16.msra.mxu1 %v1150_v49 }
  0x4a   : > { %726 = vmatprep.subr.bf16.mxu0 %v1151_v50  ;;  %1067 = vmatprep.subr.bf16.mxu1 %v1151_v50 }
  0x4d   : > { %727 = vmatpush1.bf16.msra.mxu0 %v1153_v51  ;;  %1083 = vmatpush1.bf16.msra.mxu1 %v1153_v51 }
  0x4e   : > { %728 = vmatprep.subr.bf16.mxu0 %v1154_v52  ;;  %1068 = vmatprep.subr.bf16.mxu1 %v1154_v52 }
  0x51   : > { %729 = vmatpush1.bf16.msra.mxu0 %v1156_v53  ;;  %1084 = vmatpush1.bf16.msra.mxu1 %v1156_v53 }
  0x52   : > { %730 = vmatprep.subr.bf16.mxu0 %v1157_v54  ;;  %1069 = vmatprep.subr.bf16.mxu1 %v1157_v54 }
  0x55   : > { %731 = vmatpush1.bf16.msra.mxu0 %v1159_v55  ;;  %1085 = vmatpush1.bf16.msra.mxu1 %v1159_v55 }
  0x56   : > { %732 = vmatprep.subr.bf16.mxu0 %v1160_v56  ;;  %1070 = vmatprep.subr.bf16.mxu1 %v1160_v56 }
  0x59   : > { %733 = vmatpush1.bf16.msra.mxu0 %v1162_v57  ;;  %1086 = vmatpush1.bf16.msra.mxu1 %v1162_v57 }
  0x5a   : > { %734 = vmatprep.subr.bf16.mxu0 %v1163_v58  ;;  %1071 = vmatprep.subr.bf16.mxu1 %v1163_v58 }
  0x5d   : > { %735 = vmatpush1.bf16.msra.mxu0 %v1165_v59  ;;  %1087 = vmatpush1.bf16.msra.mxu1 %v1165_v59 }
  0x5e   : > { %736 = vmatprep.subr.bf16.mxu0 %v1166_v60  ;;  %1072 = vmatprep.subr.bf16.mxu1 %v1166_v60 }
  0x61   : > { %737 = vmatpush1.bf16.msra.mxu0 %v1168_v61  ;;  %1088 = vmatpush1.bf16.msra.mxu1 %v1168_v61 }
  0x62   : > { %738 = vmatprep.subr.bf16.mxu0 %v1169_v62  ;;  %1073 = vmatprep.subr.bf16.mxu1 %v1169_v62 }
  0x65   : > { %739 = vmatpush1.bf16.msra.mxu0 %v1171_v63  ;;  %1089 = vmatpush1.bf16.msra.mxu1 %v1171_v63 }
  0x66   : > { %740 = vmatprep.subr.bf16.mxu0 %v1172_v0  ;;  %1074 = vmatprep.subr.bf16.mxu1 %v1172_v0 }
  0x69   : > { %741 = vmatpush1.bf16.msra.mxu0 %v1174_v1  ;;  %1090 = vmatpush1.bf16.msra.mxu1 %v1174_v1 }
  0x6a   : > { %742 = vmatprep.subr.bf16.mxu0 %v1175_v2  ;;  %1075 = vmatprep.subr.bf16.mxu1 %v1175_v2 }
  0x6d   : > { %743 = vmatpush1.bf16.msra.mxu0 %v1177_v3  ;;  %1091 = vmatpush1.bf16.msra.mxu1 %v1177_v3 }
  0x6e   : > { %744 = vmatprep.subr.bf16.mxu0 %v1178_v4  ;;  %1076 = vmatprep.subr.bf16.mxu1 %v1178_v4 }
  0x71   : > { %745 = vmatpush1.bf16.msra.mxu0 %v1180_v5  ;;  %1092 = vmatpush1.bf16.msra.mxu1 %v1180_v5 }
  0x74   : > { %747 = vmatmul.mubr.bf16.vlgmr.msra.gmra.mrb[0].mxu0 %v1181_v6  ;;  %757 = vmatmul.mubr.bf16.vlgmr.msra.gmra.mrb[0].mxu1 %v1184_v7 }
 0x147   : > { %v748_v21 = vpop.f32.mrb[0].mxu0  ;;  %v758_v22 = vpop.f32.mrb[0].mxu1 }
 0x148   : > { %v749_v25 = vadd.f32 %v748_v21, %v527_v15  ;;  %v759_v26 = vadd.f32 %v758_v22, %v527_v15  ;;  %v750_v27 = vpop.f32.mrb[1].mxu0  ;;  %v760_v28 = vpop.f32.mrb[1].mxu1 }
 0x149   : > { %v751_v31 = vadd.f32 %v750_v27, %v531_v16  ;;  %v761_v32 = vadd.f32 %v760_v28, %v531_v16  ;;  %v752_v33 = vpop.f32.mrb[2].mxu0  ;;  %v762_v34 = vpop.f32.mrb[2].mxu1 }
 0x14a   : > { %v779_v37 = vadd.f32 %v771_v19, %v749_v25  ;;  %v783_v38 = vadd.f32 %v775_v20, %v759_v26  ;;  %v753_v39 = vadd.f32 %v752_v33, %v527_v15  ;;  %v763_v40 = vadd.f32 %v762_v34, %v527_v15  ;;  %v754_v41 = vpop.f32.mrb[3].mxu0  ;;  %v764_v42 = vpop.f32.mrb[3].mxu1 }
 0x14b   : > { %v780_v43 = vadd.f32 %v772_v23, %v751_v31  ;;  %v784_v44 = vadd.f32 %v776_v24, %v761_v32  ;;  %v755_v45 = vadd.f32 %v754_v41, %v531_v16  ;;  %v765_v46 = vadd.f32 %v764_v42, %v531_v16 }
 0x14c   : > { %v787_v47 = vmax.f32 %v779_v37, 0.0  ;;  %v791_v48 = vmax.f32 %v783_v38, 0.0  ;;  %v781_v49 = vadd.f32 %v773_v29, %v753_v39  ;;  %v785_v50 = vadd.f32 %v777_v30, %v763_v40 }
 0x14d   : > { %v788_v51 = vmax.f32 %v780_v43, 0.0  ;;  %v792_v52 = vmax.f32 %v784_v44, 0.0  ;;  %v782_v53 = vadd.f32 %v774_v35, %v755_v45  ;;  %v786_v54 = vadd.f32 %v778_v36, %v765_v46  ;;  %829 = sbr.rel (!%p1291_p6) target bundleno = 348 (0x15c), region = 116 }
 0x14e   : > { %v789_v55 = vmax.f32 %v781_v49, 0.0  ;;  %v793_v56 = vmax.f32 %v785_v50, 0.0 }
 0x14f   : > { %v1056_v57 = vpack.c.bf16 %v788_v51, %v787_v47  ;;  %v1058_v58 = vpack.c.bf16 %v792_v52, %v791_v48  ;;  %v790_v59 = vmax.f32 %v782_v53, 0.0  ;;  %v794_v60 = vmax.f32 %v786_v54, 0.0 }
 0x151   : > { %819 = vst [vmem:[%s468_s15] sm:$0xff] %v1056_v57  ;;  %821 = vst [vmem:[%s468_s15 + $0x10] sm:$0xff] %v1058_v58  ;;  %v1057_v61 = vpack.c.bf16 %v790_v59, %v789_v55  ;;  %v1059_v62 = vpack.c.bf16 %v794_v60, %v793_v56 }
 0x153   : > { %820 = vst [vmem:[%s468_s15 + $0x8] sm:$0xff] %v1057_v61  ;;  %822 = vst [vmem:[%s468_s15 + $0x18] sm:$0xff] %v1059_v62 }
 0x158   : > { %v869_v63 = vld [vmem:[%s468_s15] sm:$0xff]  ;;  %v873_v1 = vld [vmem:[%s468_s15 + $0x10] sm:$0xff] }
 0x159   : > { %870 = vst [vmem:[%s835_s23] sm:$0xff] %v869_v63  ;;  %874 = vst [vmem:[%s835_s23 + $0x20] sm:$0xff] %v873_v1 }
 0x15a   : > { %v871_v0 = vld [vmem:[%s468_s15 + $0x8] sm:$0xff]  ;;  %v875_v2 = vld [vmem:[%s468_s15 + $0x18] sm:$0xff] }
 0x15b   : > { %872 = vst [vmem:[%s835_s23 + $0x10] sm:$0xff] %v871_v0  ;;  %876 = vst [vmem:[%s835_s23 + $0x30] sm:$0xff] %v875_v2 }
 0x15c PF: > { %s14_s19 = sadd.s32 1, %s1225_s19   ;;  %s1470_s15 = smov %s1213_s16 }
 0x15d   : > { %p11_p12 = scmp.ge.s32.totalorder %s14_s19, 4   ;;  %s1471_s16 = smov %s1296_s26 }
 0x15e   : > { %s1472_s17 = smov %s1221_s18  ;;  %s1473_s18 = smov %s1475_s20 }
 0x15f   :  { %13 = sbr.rel (!%p11_p12) target bundleno = 3 (0x3), region = 199 }

// kernel: forward_fn.43
= control target key start
LH: loop header
LB: loop body
LE: loop exit
PB: predicated region body
PF: predicated region fallthrough
CT: control target
= control target key end

     0   :  { %s1374_s12 = smov 0   ;;  %s1376_s13 = smov 0   ;;  %s1645_s0 = inlined_call_operand.vmem [shape: bf16[32,512], index: 0, kind: input, shape index: {}]   ;;  %s1646_s1 = inlined_call_operand.vmem [shape: bf16[512,256], index: 1, kind: input, shape index: {}]   ;;  %s1647_s2 = inlined_call_operand.vmem [shape: f32[1,256], index: 2, kind: input, shape index: {}]   ;;  %s1648_s3 = inlined_call_operand.vmem [shape: bf16[32,256], index: 3, kind: output, shape index: {}]  }
   0x1   :  { %s1378_s14 = smov 0   ;;  %s1380_s15 = smov 0  }
   0x2   :  { %s1382_s16 = smov 0  }
   0x3 LB: > { %s22_s17 = sadd.s32 1, %s1348_s15  ;;  %s1100_s18 = sadd.s32 4294967295, %s1352_s16   ;;  %s1352_s16 = sphi %s1382_s16, %s13_s16   ;;  %s1348_s15 = sphi %s1380_s15, %s1653_s15   ;;  %s1344_s14 = sphi %s1378_s14, %s1652_s14   ;;  %s1340_s13 = sphi %s1376_s13, %s1651_s13   ;;  %s1336_s12 = sphi %s1374_s12, %s1650_s12  }
   0x4   : > { %p23_p0 = scmp.ge.s32.totalorder %s22_s17, 2  ;;  %p65_p1 = scmp.ne.s32.totalorder %s1340_s13, %s1336_s12 }
   0x5   : > { %p66_p2 = scmp.eq.s32.totalorder %s1352_s16, 0  ;;  %p123_p4 = scmp.eq.s32.totalorder %s1100_s18, 1 }
   0x6   : > { %s1655_s17 = smov (%p23_p0, %s22_s17), 0  ;;  %s58_s20 = sadd.s32 1, %s1340_s13 }
   0x7   : > { %p67_p3 = por %p66_p2, %p65_p1  ;;  %s55_s19 = ssub.s32 %s1348_s15, %s1655_s17 }
   0x8   : > { %p56_p5 = scmp.eq.s32.totalorder %s55_s19, 0  ;;  %p1409_p6 = por %p123_p4, %p65_p1 }
   0x9   : > { %p1104_p7 = scmp.ge.s32.totalorder %s1352_s16, 2 }
   0xa   : > { %s1414_s22 = scalar_select %p56_p5, %s1340_s13, %s58_s20  }
   0xb   : > { %155 = sbr.rel (%p1104_p7) target bundleno = 64 (0x40), region = 20 }
  0x12   : > { %158 = sbr.rel (!%p67_p3) target bundleno = 64 (0x40), region = 24  ;;  %s160_s23 = sand.u32 (%p67_p3), 1, %s1340_s13  }
  0x13   : > { %s1106_s24 = sshll.u32 (%p67_p3), %s1348_s15, 2  ;;  %s1105_s25 = sshll.u32 (%p67_p3), %s160_s23, 8 }
  0x14   : > { %s1422_s28 = scalar_lea.vmem (%p67_p3), %s1646_s1, %s1106_s24  ;;  %s1426_s29 = scalar_lea.vmem (%p67_p3), [#allocation2], %s1105_s25 }
  0x15   : > { %v180_v0 = vld [vmem:[%s1422_s28] sm:$0xf] (%p67_p3)  ;;  %v182_v1 = vld [vmem:[%s1422_s28 + $0x8] sm:$0xf] (%p67_p3)  ;;  %v184_v2 = vld [vmem:[%s1422_s28 + $0x10] sm:$0xf] (%p67_p3) }
  0x16   : > { %181 = vst [vmem:[%s1426_s29] sm:$0xf] (%p67_p3), %v180_v0  ;;  %183 = vst [vmem:[%s1426_s29 + $0x4] sm:$0xf] (%p67_p3), %v182_v1  ;;  %v186_v3 = vld [vmem:[%s1422_s28 + $0x18] sm:$0xf] (%p67_p3) }
  0x17   : > { %v188_v4 = vld [vmem:[%s1422_s28 + $0x20] sm:$0xf] (%p67_p3)  ;;  %185 = vst [vmem:[%s1426_s29 + $0x8] sm:$0xf] (%p67_p3), %v184_v2  ;;  %187 = vst [vmem:[%s1426_s29 + $0xc] sm:$0xf] (%p67_p3), %v186_v3 }
  0x18   : > { %189 = vst [vmem:[%s1426_s29 + $0x10] sm:$0xf] (%p67_p3), %v188_v4  ;;  %v190_v5 = vld [vmem:[%s1422_s28 + $0x28] sm:$0xf] (%p67_p3)  ;;  %v192_v6 = vld [vmem:[%s1422_s28 + $0x30] sm:$0xf] (%p67_p3) }
  0x19   : > { %v194_v7 = vld [vmem:[%s1422_s28 + $0x38] sm:$0xf]  ;;  %191 = vst [vmem:[%s1426_s29 + $0x14] sm:$0xf] %v190_v5  ;;  %193 = vst [vmem:[%s1426_s29 + $0x18] sm:$0xf] %v192_v6 }
  0x1a   : > { %195 = vst [vmem:[%s1426_s29 + $0x1c] sm:$0xf] %v194_v7  ;;  %v196_v8 = vld [vmem:[%s1422_s28 + $0x40] sm:$0xf]  ;;  %v198_v9 = vld [vmem:[%s1422_s28 + $0x48] sm:$0xf] }
  0x1b   : > { %v200_v10 = vld [vmem:[%s1422_s28 + $0x50] sm:$0xf]  ;;  %197 = vst [vmem:[%s1426_s29 + $0x20] sm:$0xf] %v196_v8  ;;  %199 = vst [vmem:[%s1426_s29 + $0x24] sm:$0xf] %v198_v9 }
  0x1c   : > { %201 = vst [vmem:[%s1426_s29 + $0x28] sm:$0xf] %v200_v10  ;;  %v202_v11 = vld [vmem:[%s1422_s28 + $0x58] sm:$0xf]  ;;  %v204_v12 = vld [vmem:[%s1422_s28 + $0x60] sm:$0xf] }
  0x1d   : > { %v206_v13 = vld [vmem:[%s1422_s28 + $0x68] sm:$0xf]  ;;  %203 = vst [vmem:[%s1426_s29 + $0x2c] sm:$0xf] %v202_v11  ;;  %205 = vst [vmem:[%s1426_s29 + $0x30] sm:$0xf] %v204_v12 }
  0x1e   : > { %207 = vst [vmem:[%s1426_s29 + $0x34] sm:$0xf] %v206_v13  ;;  %v208_v14 = vld [vmem:[%s1422_s28 + $0x70] sm:$0xf]  ;;  %v210_v15 = vld [vmem:[%s1422_s28 + $0x78] sm:$0xf] }
  0x1f   : > { %v212_v16 = vld [vmem:[%s1422_s28 + $0x80] sm:$0xf]  ;;  %209 = vst [vmem:[%s1426_s29 + $0x38] sm:$0xf] %v208_v14  ;;  %211 = vst [vmem:[%s1426_s29 + $0x3c] sm:$0xf] %v210_v15 }
  0x20   : > { %213 = vst [vmem:[%s1426_s29 + $0x40] sm:$0xf] %v212_v16  ;;  %v214_v17 = vld [vmem:[%s1422_s28 + $0x88] sm:$0xf]  ;;  %v216_v18 = vld [vmem:[%s1422_s28 + $0x90] sm:$0xf] }
  0x21   : > { %v218_v19 = vld [vmem:[%s1422_s28 + $0x98] sm:$0xf]  ;;  %215 = vst [vmem:[%s1426_s29 + $0x44] sm:$0xf] %v214_v17  ;;  %217 = vst [vmem:[%s1426_s29 + $0x48] sm:$0xf] %v216_v18 }
  0x22   : > { %219 = vst [vmem:[%s1426_s29 + $0x4c] sm:$0xf] %v218_v19  ;;  %v220_v20 = vld [vmem:[%s1422_s28 + $0xa0] sm:$0xf]  ;;  %v222_v21 = vld [vmem:[%s1422_s28 + $0xa8] sm:$0xf] }
  0x23   : > { %v224_v22 = vld [vmem:[%s1422_s28 + $0xb0] sm:$0xf]  ;;  %221 = vst [vmem:[%s1426_s29 + $0x50] sm:$0xf] %v220_v20  ;;  %223 = vst [vmem:[%s1426_s29 + $0x54] sm:$0xf] %v222_v21 }
  0x24   : > { %225 = vst [vmem:[%s1426_s29 + $0x58] sm:$0xf] %v224_v22  ;;  %v226_v23 = vld [vmem:[%s1422_s28 + $0xb8] sm:$0xf]  ;;  %v228_v24 = vld [vmem:[%s1422_s28 + $0xc0] sm:$0xf] }
  0x25   : > { %v230_v25 = vld [vmem:[%s1422_s28 + $0xc8] sm:$0xf]  ;;  %227 = vst [vmem:[%s1426_s29 + $0x5c] sm:$0xf] %v226_v23  ;;  %229 = vst [vmem:[%s1426_s29 + $0x60] sm:$0xf] %v228_v24 }
  0x26   : > { %231 = vst [vmem:[%s1426_s29 + $0x64] sm:$0xf] %v230_v25  ;;  %v232_v26 = vld [vmem:[%s1422_s28 + $0xd0] sm:$0xf]  ;;  %v234_v27 = vld [vmem:[%s1422_s28 + $0xd8] sm:$0xf] }
  0x27   : > { %v236_v28 = vld [vmem:[%s1422_s28 + $0xe0] sm:$0xf]  ;;  %233 = vst [vmem:[%s1426_s29 + $0x68] sm:$0xf] %v232_v26  ;;  %235 = vst [vmem:[%s1426_s29 + $0x6c] sm:$0xf] %v234_v27 }
  0x28   : > { %237 = vst [vmem:[%s1426_s29 + $0x70] sm:$0xf] %v236_v28  ;;  %v238_v29 = vld [vmem:[%s1422_s28 + $0xe8] sm:$0xf]  ;;  %v240_v30 = vld [vmem:[%s1422_s28 + $0xf0] sm:$0xf] }
  0x29   : > { %v242_v31 = vld [vmem:[%s1422_s28 + $0xf8] sm:$0xf]  ;;  %239 = vst [vmem:[%s1426_s29 + $0x74] sm:$0xf] %v238_v29  ;;  %241 = vst [vmem:[%s1426_s29 + $0x78] sm:$0xf] %v240_v30 }
  0x2a   : > { %243 = vst [vmem:[%s1426_s29 + $0x7c] sm:$0xf] %v242_v31  ;;  %v244_v32 = vld [vmem:[%s1422_s28 + $0x100] sm:$0xf]  ;;  %v246_v33 = vld [vmem:[%s1422_s28 + $0x108] sm:$0xf] }
  0x2b   : > { %v248_v34 = vld [vmem:[%s1422_s28 + $0x110] sm:$0xf]  ;;  %245 = vst [vmem:[%s1426_s29 + $0x80] sm:$0xf] %v244_v32  ;;  %247 = vst [vmem:[%s1426_s29 + $0x84] sm:$0xf] %v246_v33 }
  0x2c   : > { %249 = vst [vmem:[%s1426_s29 + $0x88] sm:$0xf] %v248_v34  ;;  %v250_v35 = vld [vmem:[%s1422_s28 + $0x118] sm:$0xf]  ;;  %v252_v36 = vld [vmem:[%s1422_s28 + $0x120] sm:$0xf] }
  0x2d   : > { %v254_v37 = vld [vmem:[%s1422_s28 + $0x128] sm:$0xf]  ;;  %251 = vst [vmem:[%s1426_s29 + $0x8c] sm:$0xf] %v250_v35  ;;  %253 = vst [vmem:[%s1426_s29 + $0x90] sm:$0xf] %v252_v36 }
  0x2e   : > { %255 = vst [vmem:[%s1426_s29 + $0x94] sm:$0xf] %v254_v37  ;;  %v256_v38 = vld [vmem:[%s1422_s28 + $0x130] sm:$0xf]  ;;  %v258_v39 = vld [vmem:[%s1422_s28 + $0x138] sm:$0xf] }
  0x2f   : > { %v260_v40 = vld [vmem:[%s1422_s28 + $0x140] sm:$0xf]  ;;  %257 = vst [vmem:[%s1426_s29 + $0x98] sm:$0xf] %v256_v38  ;;  %259 = vst [vmem:[%s1426_s29 + $0x9c] sm:$0xf] %v258_v39 }
  0x30   : > { %261 = vst [vmem:[%s1426_s29 + $0xa0] sm:$0xf] %v260_v40  ;;  %v262_v41 = vld [vmem:[%s1422_s28 + $0x148] sm:$0xf]  ;;  %v264_v42 = vld [vmem:[%s1422_s28 + $0x150] sm:$0xf] }
  0x31   : > { %v266_v43 = vld [vmem:[%s1422_s28 + $0x158] sm:$0xf]  ;;  %263 = vst [vmem:[%s1426_s29 + $0xa4] sm:$0xf] %v262_v41  ;;  %265 = vst [vmem:[%s1426_s29 + $0xa8] sm:$0xf] %v264_v42 }
  0x32   : > { %267 = vst [vmem:[%s1426_s29 + $0xac] sm:$0xf] %v266_v43  ;;  %v268_v44 = vld [vmem:[%s1422_s28 + $0x160] sm:$0xf]  ;;  %v270_v45 = vld [vmem:[%s1422_s28 + $0x168] sm:$0xf] }
  0x33   : > { %v272_v46 = vld [vmem:[%s1422_s28 + $0x170] sm:$0xf]  ;;  %269 = vst [vmem:[%s1426_s29 + $0xb0] sm:$0xf] %v268_v44  ;;  %271 = vst [vmem:[%s1426_s29 + $0xb4] sm:$0xf] %v270_v45 }
  0x34   : > { %273 = vst [vmem:[%s1426_s29 + $0xb8] sm:$0xf] %v272_v46  ;;  %v274_v47 = vld [vmem:[%s1422_s28 + $0x178] sm:$0xf]  ;;  %v276_v48 = vld [vmem:[%s1422_s28 + $0x180] sm:$0xf] }
  0x35   : > { %v278_v49 = vld [vmem:[%s1422_s28 + $0x188] sm:$0xf]  ;;  %275 = vst [vmem:[%s1426_s29 + $0xbc] sm:$0xf] %v274_v47  ;;  %277 = vst [vmem:[%s1426_s29 + $0xc0] sm:$0xf] %v276_v48 }
  0x36   : > { %279 = vst [vmem:[%s1426_s29 + $0xc4] sm:$0xf] %v278_v49  ;;  %v280_v50 = vld [vmem:[%s1422_s28 + $0x190] sm:$0xf]  ;;  %v282_v51 = vld [vmem:[%s1422_s28 + $0x198] sm:$0xf] }
  0x37   : > { %v284_v52 = vld [vmem:[%s1422_s28 + $0x1a0] sm:$0xf]  ;;  %281 = vst [vmem:[%s1426_s29 + $0xc8] sm:$0xf] %v280_v50  ;;  %283 = vst [vmem:[%s1426_s29 + $0xcc] sm:$0xf] %v282_v51 }
  0x38   : > { %285 = vst [vmem:[%s1426_s29 + $0xd0] sm:$0xf] %v284_v52  ;;  %v286_v53 = vld [vmem:[%s1422_s28 + $0x1a8] sm:$0xf]  ;;  %v288_v54 = vld [vmem:[%s1422_s28 + $0x1b0] sm:$0xf] }
  0x39   : > { %v290_v55 = vld [vmem:[%s1422_s28 + $0x1b8] sm:$0xf]  ;;  %287 = vst [vmem:[%s1426_s29 + $0xd4] sm:$0xf] %v286_v53  ;;  %289 = vst [vmem:[%s1426_s29 + $0xd8] sm:$0xf] %v288_v54 }
  0x3a   : > { %291 = vst [vmem:[%s1426_s29 + $0xdc] sm:$0xf] %v290_v55  ;;  %v292_v56 = vld [vmem:[%s1422_s28 + $0x1c0] sm:$0xf]  ;;  %v294_v57 = vld [vmem:[%s1422_s28 + $0x1c8] sm:$0xf] }
  0x3b   : > { %v296_v58 = vld [vmem:[%s1422_s28 + $0x1d0] sm:$0xf]  ;;  %293 = vst [vmem:[%s1426_s29 + $0xe0] sm:$0xf] %v292_v56  ;;  %295 = vst [vmem:[%s1426_s29 + $0xe4] sm:$0xf] %v294_v57 }
  0x3c   : > { %297 = vst [vmem:[%s1426_s29 + $0xe8] sm:$0xf] %v296_v58  ;;  %v298_v59 = vld [vmem:[%s1422_s28 + $0x1d8] sm:$0xf]  ;;  %v300_v60 = vld [vmem:[%s1422_s28 + $0x1e0] sm:$0xf] }
  0x3d   : > { %v302_v61 = vld [vmem:[%s1422_s28 + $0x1e8] sm:$0xf]  ;;  %299 = vst [vmem:[%s1426_s29 + $0xec] sm:$0xf] %v298_v59  ;;  %301 = vst [vmem:[%s1426_s29 + $0xf0] sm:$0xf] %v300_v60 }
  0x3e   : > { %303 = vst [vmem:[%s1426_s29 + $0xf4] sm:$0xf] %v302_v61  ;;  %v304_v62 = vld [vmem:[%s1422_s28 + $0x1f0] sm:$0xf]  ;;  %v306_v63 = vld [vmem:[%s1422_s28 + $0x1f8] sm:$0xf] }
  0x3f   : > { %305 = vst [vmem:[%s1426_s29 + $0xf8] sm:$0xf] %v304_v62  ;;  %307 = vst [vmem:[%s1426_s29 + $0xfc] sm:$0xf] %v306_v63 }
  0x40 PF: > { %p1107_p8 = scmp.ge.s32.totalorder %s1352_s16, 1  ;;  %p463_p9 = scmp.lt.s32.totalorder %s1352_s16, 3 }
  0x42   : > { %p464_p10 = pnand %p1107_p8, %p463_p9 }
  0x43   : > { %s470_s30 = sand.u32 (!%p464_p10), 1, %s1336_s12   ;;  %v1304_v0 = vld [vmem:[%s1645_s0 + $0x4] ss:$16 sps:$4 sm:$0xff] (!%p464_p10)   ;;  %v1307_v1 = vld [vmem:[%s1645_s0 + $0xc] ss:$16 sps:$4 sm:$0xff] (!%p464_p10)   ;;  %p508_p11 = scmp.lt.s32.totalorder (!%p464_p10), %s1344_s14, 1 }
  0x44   : > { %467 = sbr.rel (%p464_p10) target bundleno = 346 (0x15a), region = 69  ;;  %s1108_s4 = sshll.u32 (!%p464_p10), %s470_s30, 8  ;;  %856 = vmatprep.mubr.bf16.mxu0 (!%p464_p10), %v1304_v0  ;;  %905 = vmatprep.mubr.bf16.mxu1 (!%p464_p10), %v1307_v1  ;;  %v1302_v32 = vld [vmem:[%s1645_s0] ss:$16 sps:$4 sm:$0xff] (!%p464_p10)   ;;  %v1305_v34 = vld [vmem:[%s1645_s0 + $0x8] ss:$16 sps:$4 sm:$0xff] (!%p464_p10)  }
  0x45   : > { %s1565_s9 = scalar_lea.vmem (!%p464_p10), [#allocation2], %s1108_s4  ;;  %v1308_v36 = vld [vmem:[%s1645_s0 + $0x24] ss:$16 sps:$4 sm:$0xff] (!%p464_p10)   ;;  %v1310_v37 = vld [vmem:[%s1645_s0 + $0x2c] ss:$16 sps:$4 sm:$0xff] (!%p464_p10)   ;;  %s1109_s8 = sshll.u32 (!%p464_p10), %s470_s30, 4 }
  0x46   : > { %v1270_v2 = vld [vmem:[%s1565_s9 + $0x40] sm:$0xff] (!%p464_p10)   ;;  %v1274_v6 = vld [vmem:[%s1565_s9 + $0x48] sm:$0xff] (!%p464_p10)   ;;  %v1278_v10 = vld [vmem:[%s1565_s9 + $0x50] sm:$0xff] (!%p464_p10)  }
  0x47   : > { %v1271_v3 = vld [vmem:[%s1565_s9 + $0xc0] sm:$0xff] (!%p464_p10)   ;;  %1174 = vmatprep.subr.bf16.mxu0 (!%p464_p10), %v1270_v2  ;;  %v1275_v7 = vld [vmem:[%s1565_s9 + $0xc8] sm:$0xff] (!%p464_p10)   ;;  %v1279_v11 = vld [vmem:[%s1565_s9 + $0xd0] sm:$0xff] (!%p464_p10)  }
  0x48   : > { %v1272_v4 = vld [vmem:[%s1565_s9] sm:$0xff] (!%p464_p10)   ;;  %1202 = vmatprep.subr.bf16.mxu1 (!%p464_p10), %v1271_v3  ;;  %v1276_v8 = vld [vmem:[%s1565_s9 + $0x8] sm:$0xff] (!%p464_p10)   ;;  %v1280_v12 = vld [vmem:[%s1565_s9 + $0x10] sm:$0xff] (!%p464_p10)  }
  0x49   : > { %v1273_v5 = vld [vmem:[%s1565_s9 + $0x80] sm:$0xff] (!%p464_p10)   ;;  %1175 = vmatpush3.bf16.msra.mxu0 (!%p464_p10), %v1272_v4  ;;  %v1277_v9 = vld [vmem:[%s1565_s9 + $0x88] sm:$0xff] (!%p464_p10)   ;;  %v1281_v13 = vld [vmem:[%s1565_s9 + $0x90] sm:$0xff] (!%p464_p10)  }
  0x4a   : > { %1203 = vmatpush3.bf16.msra.mxu1 (!%p464_p10), %v1273_v5  ;;  %1176 = vmatprep.subr.bf16.mxu0 (!%p464_p10), %v1274_v6  ;;  %v1282_v14 = vld [vmem:[%s1565_s9 + $0x58] sm:$0xff] (!%p464_p10)   ;;  %v1286_v18 = vld [vmem:[%s1565_s9 + $0x60] sm:$0xff] (!%p464_p10)   ;;  %v1290_v22 = vld [vmem:[%s1565_s9 + $0x68] sm:$0xff] (!%p464_p10)  }
  0x4b   : > { %1204 = vmatprep.subr.bf16.mxu1 %v1275_v7  ;;  %v1283_v15 = vld [vmem:[%s1565_s9 + $0xd8] sm:$0xff]   ;;  %v1287_v19 = vld [vmem:[%s1565_s9 + $0xe0] sm:$0xff]   ;;  %v1291_v23 = vld [vmem:[%s1565_s9 + $0xe8] sm:$0xff]   ;;  %s509_s4 = scalar_select %p508_p11, %s1344_s14, 1 }
  0x4c   : > { %v1284_v16 = vld [vmem:[%s1565_s9 + $0x18] sm:$0xff]   ;;  %v1288_v20 = vld [vmem:[%s1565_s9 + $0x20] sm:$0xff]   ;;  %v1292_v24 = vld [vmem:[%s1565_s9 + $0x28] sm:$0xff]   ;;  %s1156_s12 = sshll.u32 (%p1409_p6), %s1344_s14, 2 }
  0x4d   : > { %1177 = vmatpush3.bf16.msra.mxu0 %v1276_v8  ;;  %v1285_v17 = vld [vmem:[%s1565_s9 + $0x98] sm:$0xff]   ;;  %v1289_v21 = vld [vmem:[%s1565_s9 + $0xa0] sm:$0xff]   ;;  %v1293_v25 = vld [vmem:[%s1565_s9 + $0xa8] sm:$0xff]   ;;  %s510_s7 = scalar_lea.vmem %s1647_s2, %s509_s4  ;;  %s957_s11 = scalar_lea.vmem (%p1409_p6), %s1648_s3, %s1156_s12 }
  0x4e   : > { %1205 = vmatpush3.bf16.msra.mxu1 %v1277_v9  ;;  %1178 = vmatprep.subr.bf16.mxu0 %v1278_v10  ;;  %v1294_v26 = vld [vmem:[%s1565_s9 + $0x70] sm:$0xff]   ;;  %v1298_v30 = vld [vmem:[%s1565_s9 + $0x78] sm:$0xff]   ;;  %v1110_v42 = vld [vmem:[%s510_s7] ss:$0 sm:$0xff] }
  0x4f   : > { %1206 = vmatprep.subr.bf16.mxu1 %v1279_v11  ;;  %v1295_v27 = vld [vmem:[%s1565_s9 + $0xf0] sm:$0xff]   ;;  %v1299_v31 = vld [vmem:[%s1565_s9 + $0xf8] sm:$0xff]  }
  0x50   : > { %v1296_v28 = vld [vmem:[%s1565_s9 + $0x30] sm:$0xff]   ;;  %v1300_v33 = vld [vmem:[%s1565_s9 + $0x38] sm:$0xff]  }
  0x51   : > { %1179 = vmatpush3.bf16.msra.mxu0 %v1280_v12  ;;  %v1297_v29 = vld [vmem:[%s1565_s9 + $0xb0] sm:$0xff]   ;;  %v1301_v35 = vld [vmem:[%s1565_s9 + $0xb8] sm:$0xff]   ;;  %s500_s9 = scalar_lea.vmem [#allocation3], %s1109_s8 }
  0x52   : > { %1207 = vmatpush3.bf16.msra.mxu1 %v1281_v13  ;;  %1180 = vmatprep.subr.bf16.mxu0 %v1282_v14  ;;  %v1312_v38 = vld [vmem:[%s1645_s0 + $0x20] ss:$16 sps:$4 sm:$0xff]   ;;  %v1313_v39 = vld [vmem:[%s1645_s0 + $0x28] ss:$16 sps:$4 sm:$0xff]  }
  0x53   : > { %1208 = vmatprep.subr.bf16.mxu1 %v1283_v15 }
  0x55   : > { %1181 = vmatpush3.bf16.msra.mxu0 %v1284_v16 }
  0x56   : > { %1209 = vmatpush3.bf16.msra.mxu1 %v1285_v17  ;;  %1182 = vmatprep.subr.bf16.mxu0 %v1286_v18 }
  0x57   : > { %1210 = vmatprep.subr.bf16.mxu1 %v1287_v19 }
  0x59   : > { %1183 = vmatpush3.bf16.msra.mxu0 %v1288_v20 }
  0x5a   : > { %1211 = vmatpush3.bf16.msra.mxu1 %v1289_v21  ;;  %1184 = vmatprep.subr.bf16.mxu0 %v1290_v22 }
  0x5b   : > { %1212 = vmatprep.subr.bf16.mxu1 %v1291_v23 }
  0x5d   : > { %1185 = vmatpush3.bf16.msra.mxu0 %v1292_v24 }
  0x5e   : > { %1213 = vmatpush3.bf16.msra.mxu1 %v1293_v25  ;;  %1186 = vmatprep.subr.bf16.mxu0 %v1294_v26 }
  0x5f   : > { %1214 = vmatprep.subr.bf16.mxu1 %v1295_v27 }
  0x61   : > { %1187 = vmatpush3.bf16.msra.mxu0 %v1296_v28 }
  0x62   : > { %1215 = vmatpush3.bf16.msra.mxu1 %v1297_v29  ;;  %1188 = vmatprep.subr.bf16.mxu0 %v1298_v30 }
  0x63   : > { %1216 = vmatprep.subr.bf16.mxu1 %v1299_v31 }
  0x65   : > { %1189 = vmatpush3.bf16.msra.mxu0 %v1300_v33 }
  0x66   : > { %1217 = vmatpush3.bf16.msra.mxu1 %v1301_v35 }
  0x68   : > { %857 = vmatmul.mubr.bf16.vlgmr.msra.gmra.mrb[0].mxu0 %v1302_v32 }
  0x69   : > { %906 = vmatmul.mubr.bf16.vlgmr.msra.gmra.mrb[0].mxu1 %v1305_v34  ;;  %864 = vmatprep.mubr.bf16.mxu0 %v1308_v36 }
  0x6a   : > { %913 = vmatprep.mubr.bf16.mxu1 %v1310_v37 }
  0x70   : > { %865 = vmatmul.mubr.bf16.gmra.mrb[4].mxu0 %v1312_v38 }
  0x71   : > { %914 = vmatmul.mubr.bf16.gmra.mrb[4].mxu1 %v1313_v39 }
 0x13b   : > { %v1190_v40 = vpop.f32.mrb[0].mxu0 }
 0x13c   : > { %v1218_v41 = vpop.f32.mrb[0].mxu1  ;;  %v1191_v43 = vpop.f32.mrb[1].mxu0 }
 0x13d   : > { %v1192_v44 = vadd.f32 %v1191_v43, %v1190_v40  ;;  %v1219_v45 = vpop.f32.mrb[1].mxu1  ;;  %v1193_v46 = vpop.f32.mrb[2].mxu0 }
 0x13e   : > { %v1220_v47 = vadd.f32 %v1219_v45, %v1218_v41  ;;  %v1221_v48 = vpop.f32.mrb[2].mxu1  ;;  %v1194_v49 = vpop.f32.mrb[3].mxu0 }
 0x13f   : > { %v859_v50 = vadd.f32 %v1192_v44, %v1110_v42  ;;  %v1195_v51 = vadd.f32 %v1194_v49, %v1193_v46  ;;  %v1222_v52 = vpop.f32.mrb[3].mxu1 }
 0x140   : > { %v1223_v53 = vadd.f32 %v1222_v52, %v1221_v48 }
 0x141   : > { %v908_v54 = vadd.f32 %v1220_v47, %v859_v50  ;;  %v862_v55 = vadd.f32 %v1195_v51, %v1110_v42 }
 0x143   : > { %v911_v56 = vadd.f32 %v1223_v53, %v862_v55  ;;  %v1196_v57 = vpop.f32.mrb[4].mxu0  ;;  %v922_v60 = vmax.f32 %v908_v54, 0.0 }
 0x144   : > { %v1224_v58 = vpop.f32.mrb[4].mxu1  ;;  %v1197_v59 = vpop.f32.mrb[5].mxu0 }
 0x145   : > { %v923_v61 = vmax.f32 %v911_v56, 0.0  ;;  %v1198_v62 = vadd.f32 %v1197_v59, %v1196_v57  ;;  %v1225_v63 = vpop.f32.mrb[5].mxu1  ;;  %v1199_v0 = vpop.f32.mrb[6].mxu0 }
 0x146   : > { %v1226_v1 = vadd.f32 %v1225_v63, %v1224_v58  ;;  %v1227_v2 = vpop.f32.mrb[6].mxu1  ;;  %v1200_v3 = vpop.f32.mrb[7].mxu0 }
 0x147   : > { %v1166_v4 = vpack.c.bf16 %v923_v61, %v922_v60  ;;  %v867_v5 = vadd.f32 %v1198_v62, %v1110_v42  ;;  %v1201_v6 = vadd.f32 %v1200_v3, %v1199_v0  ;;  %v1228_v7 = vpop.f32.mrb[7].mxu1 }
 0x148   : > { %v1229_v8 = vadd.f32 %v1228_v7, %v1227_v2 }
 0x149   : > { %1167 = vst [vmem:[%s500_s9] sm:$0xff] %v1166_v4   ;;  %v916_v9 = vadd.f32 %v1226_v1, %v867_v5  ;;  %v870_v10 = vadd.f32 %v1201_v6, %v1110_v42 }
 0x14b   : > { %v919_v11 = vadd.f32 %v1229_v8, %v870_v10  ;;  %v924_v12 = vmax.f32 %v916_v9, 0.0  ;;  %952 = sbr.rel (!%p1409_p6) target bundleno = 346 (0x15a), region = 77 }
 0x14d   : > { %v925_v13 = vmax.f32 %v919_v11, 0.0 }
 0x14f   : > { %v1171_v14 = vpack.c.bf16 %v925_v13, %v924_v12 }
 0x150   : > { %v973_v15 = vld [vmem:[%s500_s9] sm:$0xf] (%p1409_p6)  ;;  %v975_v16 = vld [vmem:[%s500_s9 + $0x4] sm:$0xf] (%p1409_p6) }
 0x151   : > { %1173 = vst [vmem:[%s500_s9 + $0x8] sm:$0xff] %v1171_v14   ;;  %974 = vst [vmem:[%s957_s11] sm:$0xf] (%p1409_p6), %v973_v15 }
 0x152   : > { %976 = vst [vmem:[%s957_s11 + $0x8] sm:$0xf] %v975_v16 }
 0x158   : > { %v977_v17 = vld [vmem:[%s500_s9 + $0x8] sm:$0xf]  ;;  %v979_v18 = vld [vmem:[%s500_s9 + $0xc] sm:$0xf] }
 0x159   : > { %978 = vst [vmem:[%s957_s11 + $0x10] sm:$0xf] %v977_v17  ;;  %980 = vst [vmem:[%s957_s11 + $0x18] sm:$0xf] %v979_v18 }
 0x15a PF: > { %s13_s16 = sadd.s32 1, %s1352_s16   ;;  %s1650_s12 = smov %s1340_s13 }
 0x15b   : > { %p10_p12 = scmp.ge.s32.totalorder %s13_s16, 4   ;;  %s1651_s13 = smov %s1414_s22 }
 0x15c   : > { %s1652_s14 = smov %s1348_s15  ;;  %s1653_s15 = smov %s1655_s17 }
 0x15d   :  { %12 = sbr.rel (!%p10_p12) target bundleno = 3 (0x3), region = 155 }

// kernel: forward_fn.40
= control target key start
LH: loop header
LB: loop body
LE: loop exit
PB: predicated region body
PF: predicated region fallthrough
CT: control target
= control target key end

     0   :  { %s4183_s12 = smov 0   ;;  %s4185_s13 = smov 0   ;;  %s5098_s0 = inlined_call_operand.vmem [shape: bf16[32,2304], index: 0, kind: input, shape index: {}]   ;;  %s5099_s1 = inlined_call_operand.vmem [shape: bf16[2304,256], index: 1, kind: input, shape index: {}]   ;;  %s5100_s2 = inlined_call_operand.vmem [shape: f32[1,256], index: 2, kind: input, shape index: {}]   ;;  %s5101_s3 = inlined_call_operand.vmem [shape: bf16[32,256], index: 3, kind: output, shape index: {}]  }
   0x1   :  { %s4187_s14 = smov 0   ;;  %s4189_s15 = smov 0  }
   0x2   :  { %s4191_s16 = smov 0  }
   0x3 LB: > { %s22_s17 = sadd.s32 1, %s4157_s15  ;;  %s3403_s18 = sadd.s32 4294967295, %s4161_s16   ;;  %s4161_s16 = sphi %s4191_s16, %s13_s16   ;;  %s4157_s15 = sphi %s4189_s15, %s5106_s15   ;;  %s4153_s14 = sphi %s4187_s14, %s5105_s14   ;;  %s4149_s13 = sphi %s4185_s13, %s5104_s13   ;;  %s4145_s12 = sphi %s4183_s12, %s5103_s12  }
   0x4   : > { %p23_p0 = scmp.ge.s32.totalorder %s22_s17, 2  ;;  %p65_p1 = scmp.ne.s32.totalorder %s4149_s13, %s4145_s12 }
   0x5   : > { %p66_p2 = scmp.eq.s32.totalorder %s4161_s16, 0  ;;  %p123_p4 = scmp.eq.s32.totalorder %s3403_s18, 1 }
   0x6   : > { %s5108_s17 = smov (%p23_p0, %s22_s17), 0  ;;  %s58_s20 = sadd.s32 1, %s4149_s13 }
   0x7   : > { %p67_p3 = por %p66_p2, %p65_p1  ;;  %s55_s19 = ssub.s32 %s4157_s15, %s5108_s17 }
   0x8   : > { %p56_p5 = scmp.eq.s32.totalorder %s55_s19, 0  ;;  %p4218_p6 = por %p123_p4, %p65_p1 }
   0x9   : > { %p3407_p7 = scmp.ge.s32.totalorder %s4161_s16, 2 }
   0xa   : > { %s4223_s22 = scalar_select %p56_p5, %s4149_s13, %s58_s20  }
   0xb   : > { %155 = sbr.rel (%p3407_p7) target bundleno = 214 (0xd6), region = 20 }
  0x12   : > { %158 = sbr.rel (!%p67_p3) target bundleno = 214 (0xd6), region = 24  ;;  %s160_s23 = sand.u32 (%p67_p3), 1, %s4149_s13  }
  0x13   : > { %s3408_s24 = sshll.u32 (%p67_p3), %s4157_s15, 2  ;;  %s3883_s25 = smul.u32 (%p67_p3), 1152, %s160_s23 }
  0x14   : > { %s4231_s28 = scalar_lea.vmem (%p67_p3), %s5099_s1, %s3408_s24 }
  0x15   : > { %v180_v0 = vld [vmem:[%s4231_s28] sm:$0xf] (%p67_p3)  ;;  %v182_v1 = vld [vmem:[%s4231_s28 + $0x8] sm:$0xf] (%p67_p3)  ;;  %v184_v2 = vld [vmem:[%s4231_s28 + $0x10] sm:$0xf] (%p67_p3) }
  0x16   : > { %v186_v3 = vld [vmem:[%s4231_s28 + $0x18] sm:$0xf] (%p67_p3)  ;;  %v188_v4 = vld [vmem:[%s4231_s28 + $0x20] sm:$0xf] (%p67_p3)  ;;  %s4238_s29 = scalar_lea.vmem (%p67_p3), [#allocation2], %s3883_s25 }
  0x17   : > { %181 = vst [vmem:[%s4238_s29] sm:$0xf] (%p67_p3), %v180_v0  ;;  %183 = vst [vmem:[%s4238_s29 + $0x4] sm:$0xf] (%p67_p3), %v182_v1  ;;  %v190_v5 = vld [vmem:[%s4231_s28 + $0x28] sm:$0xf] (%p67_p3) }
  0x18   : > { %185 = vst [vmem:[%s4238_s29 + $0x8] sm:$0xf] (%p67_p3), %v184_v2  ;;  %187 = vst [vmem:[%s4238_s29 + $0xc] sm:$0xf] (%p67_p3), %v186_v3  ;;  %v192_v6 = vld [vmem:[%s4231_s28 + $0x30] sm:$0xf] (%p67_p3) }
  0x19   : > { %189 = vst [vmem:[%s4238_s29 + $0x10] sm:$0xf] %v188_v4  ;;  %v194_v7 = vld [vmem:[%s4231_s28 + $0x38] sm:$0xf]  ;;  %191 = vst [vmem:[%s4238_s29 + $0x14] sm:$0xf] %v190_v5 }
  0x1a   : > { %193 = vst [vmem:[%s4238_s29 + $0x18] sm:$0xf] %v192_v6  ;;  %195 = vst [vmem:[%s4238_s29 + $0x1c] sm:$0xf] %v194_v7  ;;  %v196_v8 = vld [vmem:[%s4231_s28 + $0x40] sm:$0xf] }
  0x1b   : > { %v198_v9 = vld [vmem:[%s4231_s28 + $0x48] sm:$0xf]  ;;  %v200_v10 = vld [vmem:[%s4231_s28 + $0x50] sm:$0xf]  ;;  %197 = vst [vmem:[%s4238_s29 + $0x20] sm:$0xf] %v196_v8 }
  0x1c   : > { %199 = vst [vmem:[%s4238_s29 + $0x24] sm:$0xf] %v198_v9  ;;  %201 = vst [vmem:[%s4238_s29 + $0x28] sm:$0xf] %v200_v10  ;;  %v202_v11 = vld [vmem:[%s4231_s28 + $0x58] sm:$0xf] }
  0x1d   : > { %v204_v12 = vld [vmem:[%s4231_s28 + $0x60] sm:$0xf]  ;;  %v206_v13 = vld [vmem:[%s4231_s28 + $0x68] sm:$0xf]  ;;  %203 = vst [vmem:[%s4238_s29 + $0x2c] sm:$0xf] %v202_v11 }
  0x1e   : > { %205 = vst [vmem:[%s4238_s29 + $0x30] sm:$0xf] %v204_v12  ;;  %207 = vst [vmem:[%s4238_s29 + $0x34] sm:$0xf] %v206_v13  ;;  %v208_v14 = vld [vmem:[%s4231_s28 + $0x70] sm:$0xf] }
  0x1f   : > { %v210_v15 = vld [vmem:[%s4231_s28 + $0x78] sm:$0xf]  ;;  %v212_v16 = vld [vmem:[%s4231_s28 + $0x80] sm:$0xf]  ;;  %209 = vst [vmem:[%s4238_s29 + $0x38] sm:$0xf] %v208_v14 }
  0x20   : > { %211 = vst [vmem:[%s4238_s29 + $0x3c] sm:$0xf] %v210_v15  ;;  %213 = vst [vmem:[%s4238_s29 + $0x40] sm:$0xf] %v212_v16  ;;  %v214_v17 = vld [vmem:[%s4231_s28 + $0x88] sm:$0xf] }
  0x21   : > { %v216_v18 = vld [vmem:[%s4231_s28 + $0x90] sm:$0xf]  ;;  %v218_v19 = vld [vmem:[%s4231_s28 + $0x98] sm:$0xf]  ;;  %215 = vst [vmem:[%s4238_s29 + $0x44] sm:$0xf] %v214_v17 }
  0x22   : > { %217 = vst [vmem:[%s4238_s29 + $0x48] sm:$0xf] %v216_v18  ;;  %219 = vst [vmem:[%s4238_s29 + $0x4c] sm:$0xf] %v218_v19  ;;  %v220_v20 = vld [vmem:[%s4231_s28 + $0xa0] sm:$0xf] }
  0x23   : > { %v222_v21 = vld [vmem:[%s4231_s28 + $0xa8] sm:$0xf]  ;;  %v224_v22 = vld [vmem:[%s4231_s28 + $0xb0] sm:$0xf]  ;;  %221 = vst [vmem:[%s4238_s29 + $0x50] sm:$0xf] %v220_v20 }
  0x24   : > { %223 = vst [vmem:[%s4238_s29 + $0x54] sm:$0xf] %v222_v21  ;;  %225 = vst [vmem:[%s4238_s29 + $0x58] sm:$0xf] %v224_v22  ;;  %v226_v23 = vld [vmem:[%s4231_s28 + $0xb8] sm:$0xf] }
  0x25   : > { %v228_v24 = vld [vmem:[%s4231_s28 + $0xc0] sm:$0xf]  ;;  %v230_v25 = vld [vmem:[%s4231_s28 + $0xc8] sm:$0xf]  ;;  %227 = vst [vmem:[%s4238_s29 + $0x5c] sm:$0xf] %v226_v23 }
  0x26   : > { %229 = vst [vmem:[%s4238_s29 + $0x60] sm:$0xf] %v228_v24  ;;  %231 = vst [vmem:[%s4238_s29 + $0x64] sm:$0xf] %v230_v25  ;;  %v232_v26 = vld [vmem:[%s4231_s28 + $0xd0] sm:$0xf] }
  0x27   : > { %v234_v27 = vld [vmem:[%s4231_s28 + $0xd8] sm:$0xf]  ;;  %v236_v28 = vld [vmem:[%s4231_s28 + $0xe0] sm:$0xf]  ;;  %233 = vst [vmem:[%s4238_s29 + $0x68] sm:$0xf] %v232_v26 }
  0x28   : > { %235 = vst [vmem:[%s4238_s29 + $0x6c] sm:$0xf] %v234_v27  ;;  %237 = vst [vmem:[%s4238_s29 + $0x70] sm:$0xf] %v236_v28  ;;  %v238_v29 = vld [vmem:[%s4231_s28 + $0xe8] sm:$0xf] }
  0x29   : > { %v240_v30 = vld [vmem:[%s4231_s28 + $0xf0] sm:$0xf]  ;;  %v242_v31 = vld [vmem:[%s4231_s28 + $0xf8] sm:$0xf]  ;;  %239 = vst [vmem:[%s4238_s29 + $0x74] sm:$0xf] %v238_v29 }
  0x2a   : > { %241 = vst [vmem:[%s4238_s29 + $0x78] sm:$0xf] %v240_v30  ;;  %243 = vst [vmem:[%s4238_s29 + $0x7c] sm:$0xf] %v242_v31  ;;  %v244_v32 = vld [vmem:[%s4231_s28 + $0x100] sm:$0xf] }
  0x2b   : > { %v246_v33 = vld [vmem:[%s4231_s28 + $0x108] sm:$0xf]  ;;  %v248_v34 = vld [vmem:[%s4231_s28 + $0x110] sm:$0xf]  ;;  %245 = vst [vmem:[%s4238_s29 + $0x80] sm:$0xf] %v244_v32 }
  0x2c   : > { %247 = vst [vmem:[%s4238_s29 + $0x84] sm:$0xf] %v246_v33  ;;  %249 = vst [vmem:[%s4238_s29 + $0x88] sm:$0xf] %v248_v34  ;;  %v250_v35 = vld [vmem:[%s4231_s28 + $0x118] sm:$0xf] }
  0x2d   : > { %v252_v36 = vld [vmem:[%s4231_s28 + $0x120] sm:$0xf]  ;;  %v254_v37 = vld [vmem:[%s4231_s28 + $0x128] sm:$0xf]  ;;  %251 = vst [vmem:[%s4238_s29 + $0x8c] sm:$0xf] %v250_v35 }
  0x2e   : > { %253 = vst [vmem:[%s4238_s29 + $0x90] sm:$0xf] %v252_v36  ;;  %255 = vst [vmem:[%s4238_s29 + $0x94] sm:$0xf] %v254_v37  ;;  %v256_v38 = vld [vmem:[%s4231_s28 + $0x130] sm:$0xf] }
  0x2f   : > { %v258_v39 = vld [vmem:[%s4231_s28 + $0x138] sm:$0xf]  ;;  %v260_v40 = vld [vmem:[%s4231_s28 + $0x140] sm:$0xf]  ;;  %257 = vst [vmem:[%s4238_s29 + $0x98] sm:$0xf] %v256_v38 }
  0x30   : > { %259 = vst [vmem:[%s4238_s29 + $0x9c] sm:$0xf] %v258_v39  ;;  %261 = vst [vmem:[%s4238_s29 + $0xa0] sm:$0xf] %v260_v40  ;;  %v262_v41 = vld [vmem:[%s4231_s28 + $0x148] sm:$0xf] }
  0x31   : > { %v264_v42 = vld [vmem:[%s4231_s28 + $0x150] sm:$0xf]  ;;  %v266_v43 = vld [vmem:[%s4231_s28 + $0x158] sm:$0xf]  ;;  %263 = vst [vmem:[%s4238_s29 + $0xa4] sm:$0xf] %v262_v41 }
  0x32   : > { %265 = vst [vmem:[%s4238_s29 + $0xa8] sm:$0xf] %v264_v42  ;;  %267 = vst [vmem:[%s4238_s29 + $0xac] sm:$0xf] %v266_v43  ;;  %v268_v44 = vld [vmem:[%s4231_s28 + $0x160] sm:$0xf] }
  0x33   : > { %v270_v45 = vld [vmem:[%s4231_s28 + $0x168] sm:$0xf]  ;;  %v272_v46 = vld [vmem:[%s4231_s28 + $0x170] sm:$0xf]  ;;  %269 = vst [vmem:[%s4238_s29 + $0xb0] sm:$0xf] %v268_v44 }
  0x34   : > { %271 = vst [vmem:[%s4238_s29 + $0xb4] sm:$0xf] %v270_v45  ;;  %273 = vst [vmem:[%s4238_s29 + $0xb8] sm:$0xf] %v272_v46  ;;  %v274_v47 = vld [vmem:[%s4231_s28 + $0x178] sm:$0xf] }
  0x35   : > { %v276_v48 = vld [vmem:[%s4231_s28 + $0x180] sm:$0xf]  ;;  %v278_v49 = vld [vmem:[%s4231_s28 + $0x188] sm:$0xf]  ;;  %275 = vst [vmem:[%s4238_s29 + $0xbc] sm:$0xf] %v274_v47 }
  0x36   : > { %277 = vst [vmem:[%s4238_s29 + $0xc0] sm:$0xf] %v276_v48  ;;  %279 = vst [vmem:[%s4238_s29 + $0xc4] sm:$0xf] %v278_v49  ;;  %v280_v50 = vld [vmem:[%s4231_s28 + $0x190] sm:$0xf] }
  0x37   : > { %v282_v51 = vld [vmem:[%s4231_s28 + $0x198] sm:$0xf]  ;;  %v284_v52 = vld [vmem:[%s4231_s28 + $0x1a0] sm:$0xf]  ;;  %281 = vst [vmem:[%s4238_s29 + $0xc8] sm:$0xf] %v280_v50 }
  0x38   : > { %283 = vst [vmem:[%s4238_s29 + $0xcc] sm:$0xf] %v282_v51  ;;  %285 = vst [vmem:[%s4238_s29 + $0xd0] sm:$0xf] %v284_v52  ;;  %v286_v53 = vld [vmem:[%s4231_s28 + $0x1a8] sm:$0xf] }
  0x39   : > { %v288_v54 = vld [vmem:[%s4231_s28 + $0x1b0] sm:$0xf]  ;;  %v290_v55 = vld [vmem:[%s4231_s28 + $0x1b8] sm:$0xf]  ;;  %287 = vst [vmem:[%s4238_s29 + $0xd4] sm:$0xf] %v286_v53 }
  0x3a   : > { %289 = vst [vmem:[%s4238_s29 + $0xd8] sm:$0xf] %v288_v54  ;;  %291 = vst [vmem:[%s4238_s29 + $0xdc] sm:$0xf] %v290_v55  ;;  %v292_v56 = vld [vmem:[%s4231_s28 + $0x1c0] sm:$0xf] }
  0x3b   : > { %v294_v57 = vld [vmem:[%s4231_s28 + $0x1c8] sm:$0xf]  ;;  %v296_v58 = vld [vmem:[%s4231_s28 + $0x1d0] sm:$0xf]  ;;  %293 = vst [vmem:[%s4238_s29 + $0xe0] sm:$0xf] %v292_v56 }
  0x3c   : > { %295 = vst [vmem:[%s4238_s29 + $0xe4] sm:$0xf] %v294_v57  ;;  %297 = vst [vmem:[%s4238_s29 + $0xe8] sm:$0xf] %v296_v58  ;;  %v298_v59 = vld [vmem:[%s4231_s28 + $0x1d8] sm:$0xf] }
  0x3d   : > { %v300_v60 = vld [vmem:[%s4231_s28 + $0x1e0] sm:$0xf]  ;;  %v302_v61 = vld [vmem:[%s4231_s28 + $0x1e8] sm:$0xf]  ;;  %299 = vst [vmem:[%s4238_s29 + $0xec] sm:$0xf] %v298_v59 }
  0x3e   : > { %301 = vst [vmem:[%s4238_s29 + $0xf0] sm:$0xf] %v300_v60  ;;  %303 = vst [vmem:[%s4238_s29 + $0xf4] sm:$0xf] %v302_v61  ;;  %v304_v62 = vld [vmem:[%s4231_s28 + $0x1f0] sm:$0xf] }
  0x3f   : > { %v306_v63 = vld [vmem:[%s4231_s28 + $0x1f8] sm:$0xf]  ;;  %v308_v0 = vld [vmem:[%s4231_s28 + $0x200] sm:$0xf]  ;;  %305 = vst [vmem:[%s4238_s29 + $0xf8] sm:$0xf] %v304_v62 }
  0x40   : > { %307 = vst [vmem:[%s4238_s29 + $0xfc] sm:$0xf] %v306_v63  ;;  %309 = vst [vmem:[%s4238_s29 + $0x100] sm:$0xf] %v308_v0  ;;  %v310_v1 = vld [vmem:[%s4231_s28 + $0x208] sm:$0xf] }
  0x41   : > { %v312_v2 = vld [vmem:[%s4231_s28 + $0x210] sm:$0xf]  ;;  %v314_v3 = vld [vmem:[%s4231_s28 + $0x218] sm:$0xf]  ;;  %311 = vst [vmem:[%s4238_s29 + $0x104] sm:$0xf] %v310_v1 }
  0x42   : > { %313 = vst [vmem:[%s4238_s29 + $0x108] sm:$0xf] %v312_v2  ;;  %315 = vst [vmem:[%s4238_s29 + $0x10c] sm:$0xf] %v314_v3  ;;  %v316_v4 = vld [vmem:[%s4231_s28 + $0x220] sm:$0xf] }
  0x43   : > { %v318_v5 = vld [vmem:[%s4231_s28 + $0x228] sm:$0xf]  ;;  %v320_v6 = vld [vmem:[%s4231_s28 + $0x230] sm:$0xf]  ;;  %317 = vst [vmem:[%s4238_s29 + $0x110] sm:$0xf] %v316_v4 }
  0x44   : > { %319 = vst [vmem:[%s4238_s29 + $0x114] sm:$0xf] %v318_v5  ;;  %321 = vst [vmem:[%s4238_s29 + $0x118] sm:$0xf] %v320_v6  ;;  %v322_v7 = vld [vmem:[%s4231_s28 + $0x238] sm:$0xf] }
  0x45   : > { %v324_v8 = vld [vmem:[%s4231_s28 + $0x240] sm:$0xf]  ;;  %v326_v9 = vld [vmem:[%s4231_s28 + $0x248] sm:$0xf]  ;;  %323 = vst [vmem:[%s4238_s29 + $0x11c] sm:$0xf] %v322_v7 }
  0x46   : > { %325 = vst [vmem:[%s4238_s29 + $0x120] sm:$0xf] %v324_v8  ;;  %327 = vst [vmem:[%s4238_s29 + $0x124] sm:$0xf] %v326_v9  ;;  %v328_v10 = vld [vmem:[%s4231_s28 + $0x250] sm:$0xf] }
  0x47   : > { %v330_v11 = vld [vmem:[%s4231_s28 + $0x258] sm:$0xf]  ;;  %v332_v12 = vld [vmem:[%s4231_s28 + $0x260] sm:$0xf]  ;;  %329 = vst [vmem:[%s4238_s29 + $0x128] sm:$0xf] %v328_v10 }
  0x48   : > { %331 = vst [vmem:[%s4238_s29 + $0x12c] sm:$0xf] %v330_v11  ;;  %333 = vst [vmem:[%s4238_s29 + $0x130] sm:$0xf] %v332_v12  ;;  %v334_v13 = vld [vmem:[%s4231_s28 + $0x268] sm:$0xf] }
  0x49   : > { %v336_v14 = vld [vmem:[%s4231_s28 + $0x270] sm:$0xf]  ;;  %v338_v15 = vld [vmem:[%s4231_s28 + $0x278] sm:$0xf]  ;;  %335 = vst [vmem:[%s4238_s29 + $0x134] sm:$0xf] %v334_v13 }
  0x4a   : > { %337 = vst [vmem:[%s4238_s29 + $0x138] sm:$0xf] %v336_v14  ;;  %339 = vst [vmem:[%s4238_s29 + $0x13c] sm:$0xf] %v338_v15  ;;  %v340_v16 = vld [vmem:[%s4231_s28 + $0x280] sm:$0xf] }
  0x4b   : > { %v342_v17 = vld [vmem:[%s4231_s28 + $0x288] sm:$0xf]  ;;  %v344_v18 = vld [vmem:[%s4231_s28 + $0x290] sm:$0xf]  ;;  %341 = vst [vmem:[%s4238_s29 + $0x140] sm:$0xf] %v340_v16 }
  0x4c   : > { %343 = vst [vmem:[%s4238_s29 + $0x144] sm:$0xf] %v342_v17  ;;  %345 = vst [vmem:[%s4238_s29 + $0x148] sm:$0xf] %v344_v18  ;;  %v346_v19 = vld [vmem:[%s4231_s28 + $0x298] sm:$0xf] }
  0x4d   : > { %v348_v20 = vld [vmem:[%s4231_s28 + $0x2a0] sm:$0xf]  ;;  %v350_v21 = vld [vmem:[%s4231_s28 + $0x2a8] sm:$0xf]  ;;  %347 = vst [vmem:[%s4238_s29 + $0x14c] sm:$0xf] %v346_v19 }
  0x4e   : > { %349 = vst [vmem:[%s4238_s29 + $0x150] sm:$0xf] %v348_v20  ;;  %351 = vst [vmem:[%s4238_s29 + $0x154] sm:$0xf] %v350_v21  ;;  %v352_v22 = vld [vmem:[%s4231_s28 + $0x2b0] sm:$0xf] }
  0x4f   : > { %v354_v23 = vld [vmem:[%s4231_s28 + $0x2b8] sm:$0xf]  ;;  %v356_v24 = vld [vmem:[%s4231_s28 + $0x2c0] sm:$0xf]  ;;  %353 = vst [vmem:[%s4238_s29 + $0x158] sm:$0xf] %v352_v22 }
  0x50   : > { %355 = vst [vmem:[%s4238_s29 + $0x15c] sm:$0xf] %v354_v23  ;;  %357 = vst [vmem:[%s4238_s29 + $0x160] sm:$0xf] %v356_v24  ;;  %v358_v25 = vld [vmem:[%s4231_s28 + $0x2c8] sm:$0xf] }
  0x51   : > { %v360_v26 = vld [vmem:[%s4231_s28 + $0x2d0] sm:$0xf]  ;;  %v362_v27 = vld [vmem:[%s4231_s28 + $0x2d8] sm:$0xf]  ;;  %359 = vst [vmem:[%s4238_s29 + $0x164] sm:$0xf] %v358_v25 }
  0x52   : > { %361 = vst [vmem:[%s4238_s29 + $0x168] sm:$0xf] %v360_v26  ;;  %363 = vst [vmem:[%s4238_s29 + $0x16c] sm:$0xf] %v362_v27  ;;  %v364_v28 = vld [vmem:[%s4231_s28 + $0x2e0] sm:$0xf] }
  0x53   : > { %v366_v29 = vld [vmem:[%s4231_s28 + $0x2e8] sm:$0xf]  ;;  %v368_v30 = vld [vmem:[%s4231_s28 + $0x2f0] sm:$0xf]  ;;  %365 = vst [vmem:[%s4238_s29 + $0x170] sm:$0xf] %v364_v28 }
  0x54   : > { %367 = vst [vmem:[%s4238_s29 + $0x174] sm:$0xf] %v366_v29  ;;  %369 = vst [vmem:[%s4238_s29 + $0x178] sm:$0xf] %v368_v30  ;;  %v370_v31 = vld [vmem:[%s4231_s28 + $0x2f8] sm:$0xf] }
  0x55   : > { %v372_v32 = vld [vmem:[%s4231_s28 + $0x300] sm:$0xf]  ;;  %v374_v33 = vld [vmem:[%s4231_s28 + $0x308] sm:$0xf]  ;;  %371 = vst [vmem:[%s4238_s29 + $0x17c] sm:$0xf] %v370_v31 }
  0x56   : > { %373 = vst [vmem:[%s4238_s29 + $0x180] sm:$0xf] %v372_v32  ;;  %375 = vst [vmem:[%s4238_s29 + $0x184] sm:$0xf] %v374_v33  ;;  %v376_v34 = vld [vmem:[%s4231_s28 + $0x310] sm:$0xf] }
  0x57   : > { %v378_v35 = vld [vmem:[%s4231_s28 + $0x318] sm:$0xf]  ;;  %v380_v36 = vld [vmem:[%s4231_s28 + $0x320] sm:$0xf]  ;;  %377 = vst [vmem:[%s4238_s29 + $0x188] sm:$0xf] %v376_v34 }
  0x58   : > { %379 = vst [vmem:[%s4238_s29 + $0x18c] sm:$0xf] %v378_v35  ;;  %381 = vst [vmem:[%s4238_s29 + $0x190] sm:$0xf] %v380_v36  ;;  %v382_v37 = vld [vmem:[%s4231_s28 + $0x328] sm:$0xf] }
  0x59   : > { %v384_v38 = vld [vmem:[%s4231_s28 + $0x330] sm:$0xf]  ;;  %v386_v39 = vld [vmem:[%s4231_s28 + $0x338] sm:$0xf]  ;;  %383 = vst [vmem:[%s4238_s29 + $0x194] sm:$0xf] %v382_v37 }
  0x5a   : > { %385 = vst [vmem:[%s4238_s29 + $0x198] sm:$0xf] %v384_v38  ;;  %387 = vst [vmem:[%s4238_s29 + $0x19c] sm:$0xf] %v386_v39  ;;  %v388_v40 = vld [vmem:[%s4231_s28 + $0x340] sm:$0xf] }
  0x5b   : > { %v390_v41 = vld [vmem:[%s4231_s28 + $0x348] sm:$0xf]  ;;  %v392_v42 = vld [vmem:[%s4231_s28 + $0x350] sm:$0xf]  ;;  %389 = vst [vmem:[%s4238_s29 + $0x1a0] sm:$0xf] %v388_v40 }
  0x5c   : > { %391 = vst [vmem:[%s4238_s29 + $0x1a4] sm:$0xf] %v390_v41  ;;  %393 = vst [vmem:[%s4238_s29 + $0x1a8] sm:$0xf] %v392_v42  ;;  %v394_v43 = vld [vmem:[%s4231_s28 + $0x358] sm:$0xf] }
  0x5d   : > { %v396_v44 = vld [vmem:[%s4231_s28 + $0x360] sm:$0xf]  ;;  %v398_v45 = vld [vmem:[%s4231_s28 + $0x368] sm:$0xf]  ;;  %395 = vst [vmem:[%s4238_s29 + $0x1ac] sm:$0xf] %v394_v43 }
  0x5e   : > { %397 = vst [vmem:[%s4238_s29 + $0x1b0] sm:$0xf] %v396_v44  ;;  %399 = vst [vmem:[%s4238_s29 + $0x1b4] sm:$0xf] %v398_v45  ;;  %v400_v46 = vld [vmem:[%s4231_s28 + $0x370] sm:$0xf] }
  0x5f   : > { %v402_v47 = vld [vmem:[%s4231_s28 + $0x378] sm:$0xf]  ;;  %v404_v48 = vld [vmem:[%s4231_s28 + $0x380] sm:$0xf]  ;;  %401 = vst [vmem:[%s4238_s29 + $0x1b8] sm:$0xf] %v400_v46 }
  0x60   : > { %403 = vst [vmem:[%s4238_s29 + $0x1bc] sm:$0xf] %v402_v47  ;;  %405 = vst [vmem:[%s4238_s29 + $0x1c0] sm:$0xf] %v404_v48  ;;  %v406_v49 = vld [vmem:[%s4231_s28 + $0x388] sm:$0xf] }
  0x61   : > { %v408_v50 = vld [vmem:[%s4231_s28 + $0x390] sm:$0xf]  ;;  %v410_v51 = vld [vmem:[%s4231_s28 + $0x398] sm:$0xf]  ;;  %407 = vst [vmem:[%s4238_s29 + $0x1c4] sm:$0xf] %v406_v49 }
  0x62   : > { %409 = vst [vmem:[%s4238_s29 + $0x1c8] sm:$0xf] %v408_v50  ;;  %411 = vst [vmem:[%s4238_s29 + $0x1cc] sm:$0xf] %v410_v51  ;;  %v412_v52 = vld [vmem:[%s4231_s28 + $0x3a0] sm:$0xf] }
  0x63   : > { %v414_v53 = vld [vmem:[%s4231_s28 + $0x3a8] sm:$0xf]  ;;  %v416_v54 = vld [vmem:[%s4231_s28 + $0x3b0] sm:$0xf]  ;;  %413 = vst [vmem:[%s4238_s29 + $0x1d0] sm:$0xf] %v412_v52 }
  0x64   : > { %415 = vst [vmem:[%s4238_s29 + $0x1d4] sm:$0xf] %v414_v53  ;;  %417 = vst [vmem:[%s4238_s29 + $0x1d8] sm:$0xf] %v416_v54  ;;  %v418_v55 = vld [vmem:[%s4231_s28 + $0x3b8] sm:$0xf] }
  0x65   : > { %v420_v56 = vld [vmem:[%s4231_s28 + $0x3c0] sm:$0xf]  ;;  %v422_v57 = vld [vmem:[%s4231_s28 + $0x3c8] sm:$0xf]  ;;  %419 = vst [vmem:[%s4238_s29 + $0x1dc] sm:$0xf] %v418_v55 }
  0x66   : > { %421 = vst [vmem:[%s4238_s29 + $0x1e0] sm:$0xf] %v420_v56  ;;  %423 = vst [vmem:[%s4238_s29 + $0x1e4] sm:$0xf] %v422_v57  ;;  %v424_v58 = vld [vmem:[%s4231_s28 + $0x3d0] sm:$0xf] }
  0x67   : > { %v426_v59 = vld [vmem:[%s4231_s28 + $0x3d8] sm:$0xf]  ;;  %v428_v60 = vld [vmem:[%s4231_s28 + $0x3e0] sm:$0xf]  ;;  %425 = vst [vmem:[%s4238_s29 + $0x1e8] sm:$0xf] %v424_v58 }
  0x68   : > { %427 = vst [vmem:[%s4238_s29 + $0x1ec] sm:$0xf] %v426_v59  ;;  %429 = vst [vmem:[%s4238_s29 + $0x1f0] sm:$0xf] %v428_v60  ;;  %v430_v61 = vld [vmem:[%s4231_s28 + $0x3e8] sm:$0xf] }
  0x69   : > { %v432_v62 = vld [vmem:[%s4231_s28 + $0x3f0] sm:$0xf]  ;;  %v434_v63 = vld [vmem:[%s4231_s28 + $0x3f8] sm:$0xf]  ;;  %431 = vst [vmem:[%s4238_s29 + $0x1f4] sm:$0xf] %v430_v61 }
  0x6a   : > { %433 = vst [vmem:[%s4238_s29 + $0x1f8] sm:$0xf] %v432_v62  ;;  %435 = vst [vmem:[%s4238_s29 + $0x1fc] sm:$0xf] %v434_v63  ;;  %v436_v0 = vld [vmem:[%s4231_s28 + $0x400] sm:$0xf] }
  0x6b   : > { %v438_v1 = vld [vmem:[%s4231_s28 + $0x408] sm:$0xf]  ;;  %v440_v2 = vld [vmem:[%s4231_s28 + $0x410] sm:$0xf]  ;;  %437 = vst [vmem:[%s4238_s29 + $0x200] sm:$0xf] %v436_v0 }
  0x6c   : > { %439 = vst [vmem:[%s4238_s29 + $0x204] sm:$0xf] %v438_v1  ;;  %441 = vst [vmem:[%s4238_s29 + $0x208] sm:$0xf] %v440_v2  ;;  %v442_v3 = vld [vmem:[%s4231_s28 + $0x418] sm:$0xf] }
  0x6d   : > { %v444_v4 = vld [vmem:[%s4231_s28 + $0x420] sm:$0xf]  ;;  %v446_v5 = vld [vmem:[%s4231_s28 + $0x428] sm:$0xf]  ;;  %443 = vst [vmem:[%s4238_s29 + $0x20c] sm:$0xf] %v442_v3 }
  0x6e   : > { %445 = vst [vmem:[%s4238_s29 + $0x210] sm:$0xf] %v444_v4  ;;  %447 = vst [vmem:[%s4238_s29 + $0x214] sm:$0xf] %v446_v5  ;;  %v448_v6 = vld [vmem:[%s4231_s28 + $0x430] sm:$0xf] }
  0x6f   : > { %v450_v7 = vld [vmem:[%s4231_s28 + $0x438] sm:$0xf]  ;;  %v452_v8 = vld [vmem:[%s4231_s28 + $0x440] sm:$0xf]  ;;  %449 = vst [vmem:[%s4238_s29 + $0x218] sm:$0xf] %v448_v6 }
  0x70   : > { %451 = vst [vmem:[%s4238_s29 + $0x21c] sm:$0xf] %v450_v7  ;;  %453 = vst [vmem:[%s4238_s29 + $0x220] sm:$0xf] %v452_v8  ;;  %v454_v9 = vld [vmem:[%s4231_s28 + $0x448] sm:$0xf] }
  0x71   : > { %v456_v10 = vld [vmem:[%s4231_s28 + $0x450] sm:$0xf]  ;;  %v458_v11 = vld [vmem:[%s4231_s28 + $0x458] sm:$0xf]  ;;  %455 = vst [vmem:[%s4238_s29 + $0x224] sm:$0xf] %v454_v9 }
  0x72   : > { %457 = vst [vmem:[%s4238_s29 + $0x228] sm:$0xf] %v456_v10  ;;  %459 = vst [vmem:[%s4238_s29 + $0x22c] sm:$0xf] %v458_v11  ;;  %v460_v12 = vld [vmem:[%s4231_s28 + $0x460] sm:$0xf] }
  0x73   : > { %v462_v13 = vld [vmem:[%s4231_s28 + $0x468] sm:$0xf]  ;;  %v464_v14 = vld [vmem:[%s4231_s28 + $0x470] sm:$0xf]  ;;  %461 = vst [vmem:[%s4238_s29 + $0x230] sm:$0xf] %v460_v12 }
  0x74   : > { %463 = vst [vmem:[%s4238_s29 + $0x234] sm:$0xf] %v462_v13  ;;  %465 = vst [vmem:[%s4238_s29 + $0x238] sm:$0xf] %v464_v14  ;;  %v466_v15 = vld [vmem:[%s4231_s28 + $0x478] sm:$0xf] }
  0x75   : > { %v468_v16 = vld [vmem:[%s4231_s28 + $0x480] sm:$0xf]  ;;  %v470_v17 = vld [vmem:[%s4231_s28 + $0x488] sm:$0xf]  ;;  %467 = vst [vmem:[%s4238_s29 + $0x23c] sm:$0xf] %v466_v15 }
  0x76   : > { %469 = vst [vmem:[%s4238_s29 + $0x240] sm:$0xf] %v468_v16  ;;  %471 = vst [vmem:[%s4238_s29 + $0x244] sm:$0xf] %v470_v17  ;;  %v472_v18 = vld [vmem:[%s4231_s28 + $0x490] sm:$0xf] }
  0x77   : > { %v474_v19 = vld [vmem:[%s4231_s28 + $0x498] sm:$0xf]  ;;  %v476_v20 = vld [vmem:[%s4231_s28 + $0x4a0] sm:$0xf]  ;;  %473 = vst [vmem:[%s4238_s29 + $0x248] sm:$0xf] %v472_v18 }
  0x78   : > { %475 = vst [vmem:[%s4238_s29 + $0x24c] sm:$0xf] %v474_v19  ;;  %477 = vst [vmem:[%s4238_s29 + $0x250] sm:$0xf] %v476_v20  ;;  %v478_v21 = vld [vmem:[%s4231_s28 + $0x4a8] sm:$0xf] }
  0x79   : > { %v480_v22 = vld [vmem:[%s4231_s28 + $0x4b0] sm:$0xf]  ;;  %v482_v23 = vld [vmem:[%s4231_s28 + $0x4b8] sm:$0xf]  ;;  %479 = vst [vmem:[%s4238_s29 + $0x254] sm:$0xf] %v478_v21 }
  0x7a   : > { %481 = vst [vmem:[%s4238_s29 + $0x258] sm:$0xf] %v480_v22  ;;  %483 = vst [vmem:[%s4238_s29 + $0x25c] sm:$0xf] %v482_v23  ;;  %v484_v24 = vld [vmem:[%s4231_s28 + $0x4c0] sm:$0xf] }
  0x7b   : > { %v486_v25 = vld [vmem:[%s4231_s28 + $0x4c8] sm:$0xf]  ;;  %v488_v26 = vld [vmem:[%s4231_s28 + $0x4d0] sm:$0xf]  ;;  %485 = vst [vmem:[%s4238_s29 + $0x260] sm:$0xf] %v484_v24 }
  0x7c   : > { %487 = vst [vmem:[%s4238_s29 + $0x264] sm:$0xf] %v486_v25  ;;  %489 = vst [vmem:[%s4238_s29 + $0x268] sm:$0xf] %v488_v26  ;;  %v490_v27 = vld [vmem:[%s4231_s28 + $0x4d8] sm:$0xf] }
  0x7d   : > { %v492_v28 = vld [vmem:[%s4231_s28 + $0x4e0] sm:$0xf]  ;;  %v494_v29 = vld [vmem:[%s4231_s28 + $0x4e8] sm:$0xf]  ;;  %491 = vst [vmem:[%s4238_s29 + $0x26c] sm:$0xf] %v490_v27 }
  0x7e   : > { %493 = vst [vmem:[%s4238_s29 + $0x270] sm:$0xf] %v492_v28  ;;  %495 = vst [vmem:[%s4238_s29 + $0x274] sm:$0xf] %v494_v29  ;;  %v496_v30 = vld [vmem:[%s4231_s28 + $0x4f0] sm:$0xf] }
  0x7f   : > { %v498_v31 = vld [vmem:[%s4231_s28 + $0x4f8] sm:$0xf]  ;;  %v500_v32 = vld [vmem:[%s4231_s28 + $0x500] sm:$0xf]  ;;  %497 = vst [vmem:[%s4238_s29 + $0x278] sm:$0xf] %v496_v30 }
  0x80   : > { %499 = vst [vmem:[%s4238_s29 + $0x27c] sm:$0xf] %v498_v31  ;;  %501 = vst [vmem:[%s4238_s29 + $0x280] sm:$0xf] %v500_v32  ;;  %v502_v33 = vld [vmem:[%s4231_s28 + $0x508] sm:$0xf] }
  0x81   : > { %v504_v34 = vld [vmem:[%s4231_s28 + $0x510] sm:$0xf]  ;;  %v506_v35 = vld [vmem:[%s4231_s28 + $0x518] sm:$0xf]  ;;  %503 = vst [vmem:[%s4238_s29 + $0x284] sm:$0xf] %v502_v33 }
  0x82   : > { %505 = vst [vmem:[%s4238_s29 + $0x288] sm:$0xf] %v504_v34  ;;  %507 = vst [vmem:[%s4238_s29 + $0x28c] sm:$0xf] %v506_v35  ;;  %v508_v36 = vld [vmem:[%s4231_s28 + $0x520] sm:$0xf] }
  0x83   : > { %v510_v37 = vld [vmem:[%s4231_s28 + $0x528] sm:$0xf]  ;;  %v512_v38 = vld [vmem:[%s4231_s28 + $0x530] sm:$0xf]  ;;  %509 = vst [vmem:[%s4238_s29 + $0x290] sm:$0xf] %v508_v36 }
  0x84   : > { %511 = vst [vmem:[%s4238_s29 + $0x294] sm:$0xf] %v510_v37  ;;  %513 = vst [vmem:[%s4238_s29 + $0x298] sm:$0xf] %v512_v38  ;;  %v514_v39 = vld [vmem:[%s4231_s28 + $0x538] sm:$0xf] }
  0x85   : > { %v516_v40 = vld [vmem:[%s4231_s28 + $0x540] sm:$0xf]  ;;  %v518_v41 = vld [vmem:[%s4231_s28 + $0x548] sm:$0xf]  ;;  %515 = vst [vmem:[%s4238_s29 + $0x29c] sm:$0xf] %v514_v39 }
  0x86   : > { %517 = vst [vmem:[%s4238_s29 + $0x2a0] sm:$0xf] %v516_v40  ;;  %519 = vst [vmem:[%s4238_s29 + $0x2a4] sm:$0xf] %v518_v41  ;;  %v520_v42 = vld [vmem:[%s4231_s28 + $0x550] sm:$0xf] }
  0x87   : > { %v522_v43 = vld [vmem:[%s4231_s28 + $0x558] sm:$0xf]  ;;  %v524_v44 = vld [vmem:[%s4231_s28 + $0x560] sm:$0xf]  ;;  %521 = vst [vmem:[%s4238_s29 + $0x2a8] sm:$0xf] %v520_v42 }
  0x88   : > { %523 = vst [vmem:[%s4238_s29 + $0x2ac] sm:$0xf] %v522_v43  ;;  %525 = vst [vmem:[%s4238_s29 + $0x2b0] sm:$0xf] %v524_v44  ;;  %v526_v45 = vld [vmem:[%s4231_s28 + $0x568] sm:$0xf] }
  0x89   : > { %v528_v46 = vld [vmem:[%s4231_s28 + $0x570] sm:$0xf]  ;;  %v530_v47 = vld [vmem:[%s4231_s28 + $0x578] sm:$0xf]  ;;  %527 = vst [vmem:[%s4238_s29 + $0x2b4] sm:$0xf] %v526_v45 }
  0x8a   : > { %529 = vst [vmem:[%s4238_s29 + $0x2b8] sm:$0xf] %v528_v46  ;;  %531 = vst [vmem:[%s4238_s29 + $0x2bc] sm:$0xf] %v530_v47  ;;  %v532_v48 = vld [vmem:[%s4231_s28 + $0x580] sm:$0xf] }
  0x8b   : > { %v534_v49 = vld [vmem:[%s4231_s28 + $0x588] sm:$0xf]  ;;  %v536_v50 = vld [vmem:[%s4231_s28 + $0x590] sm:$0xf]  ;;  %533 = vst [vmem:[%s4238_s29 + $0x2c0] sm:$0xf] %v532_v48 }
  0x8c   : > { %535 = vst [vmem:[%s4238_s29 + $0x2c4] sm:$0xf] %v534_v49  ;;  %537 = vst [vmem:[%s4238_s29 + $0x2c8] sm:$0xf] %v536_v50  ;;  %v538_v51 = vld [vmem:[%s4231_s28 + $0x598] sm:$0xf] }
  0x8d   : > { %v540_v52 = vld [vmem:[%s4231_s28 + $0x5a0] sm:$0xf]  ;;  %v542_v53 = vld [vmem:[%s4231_s28 + $0x5a8] sm:$0xf]  ;;  %539 = vst [vmem:[%s4238_s29 + $0x2cc] sm:$0xf] %v538_v51 }
  0x8e   : > { %541 = vst [vmem:[%s4238_s29 + $0x2d0] sm:$0xf] %v540_v52  ;;  %543 = vst [vmem:[%s4238_s29 + $0x2d4] sm:$0xf] %v542_v53  ;;  %v544_v54 = vld [vmem:[%s4231_s28 + $0x5b0] sm:$0xf] }
  0x8f   : > { %v546_v55 = vld [vmem:[%s4231_s28 + $0x5b8] sm:$0xf]  ;;  %v548_v56 = vld [vmem:[%s4231_s28 + $0x5c0] sm:$0xf]  ;;  %545 = vst [vmem:[%s4238_s29 + $0x2d8] sm:$0xf] %v544_v54 }
  0x90   : > { %547 = vst [vmem:[%s4238_s29 + $0x2dc] sm:$0xf] %v546_v55  ;;  %549 = vst [vmem:[%s4238_s29 + $0x2e0] sm:$0xf] %v548_v56  ;;  %v550_v57 = vld [vmem:[%s4231_s28 + $0x5c8] sm:$0xf] }
  0x91   : > { %v552_v58 = vld [vmem:[%s4231_s28 + $0x5d0] sm:$0xf]  ;;  %v554_v59 = vld [vmem:[%s4231_s28 + $0x5d8] sm:$0xf]  ;;  %551 = vst [vmem:[%s4238_s29 + $0x2e4] sm:$0xf] %v550_v57 }
  0x92   : > { %553 = vst [vmem:[%s4238_s29 + $0x2e8] sm:$0xf] %v552_v58  ;;  %555 = vst [vmem:[%s4238_s29 + $0x2ec] sm:$0xf] %v554_v59  ;;  %v556_v60 = vld [vmem:[%s4231_s28 + $0x5e0] sm:$0xf] }
  0x93   : > { %v558_v61 = vld [vmem:[%s4231_s28 + $0x5e8] sm:$0xf]  ;;  %v560_v62 = vld [vmem:[%s4231_s28 + $0x5f0] sm:$0xf]  ;;  %557 = vst [vmem:[%s4238_s29 + $0x2f0] sm:$0xf] %v556_v60 }
  0x94   : > { %559 = vst [vmem:[%s4238_s29 + $0x2f4] sm:$0xf] %v558_v61  ;;  %561 = vst [vmem:[%s4238_s29 + $0x2f8] sm:$0xf] %v560_v62  ;;  %v562_v63 = vld [vmem:[%s4231_s28 + $0x5f8] sm:$0xf] }
  0x95   : > { %v564_v0 = vld [vmem:[%s4231_s28 + $0x600] sm:$0xf]  ;;  %v566_v1 = vld [vmem:[%s4231_s28 + $0x608] sm:$0xf]  ;;  %563 = vst [vmem:[%s4238_s29 + $0x2fc] sm:$0xf] %v562_v63 }
  0x96   : > { %565 = vst [vmem:[%s4238_s29 + $0x300] sm:$0xf] %v564_v0  ;;  %567 = vst [vmem:[%s4238_s29 + $0x304] sm:$0xf] %v566_v1  ;;  %v568_v2 = vld [vmem:[%s4231_s28 + $0x610] sm:$0xf] }
  0x97   : > { %v570_v3 = vld [vmem:[%s4231_s28 + $0x618] sm:$0xf]  ;;  %v572_v4 = vld [vmem:[%s4231_s28 + $0x620] sm:$0xf]  ;;  %569 = vst [vmem:[%s4238_s29 + $0x308] sm:$0xf] %v568_v2 }
  0x98   : > { %571 = vst [vmem:[%s4238_s29 + $0x30c] sm:$0xf] %v570_v3  ;;  %573 = vst [vmem:[%s4238_s29 + $0x310] sm:$0xf] %v572_v4  ;;  %v574_v5 = vld [vmem:[%s4231_s28 + $0x628] sm:$0xf] }
  0x99   : > { %v576_v6 = vld [vmem:[%s4231_s28 + $0x630] sm:$0xf]  ;;  %v578_v7 = vld [vmem:[%s4231_s28 + $0x638] sm:$0xf]  ;;  %575 = vst [vmem:[%s4238_s29 + $0x314] sm:$0xf] %v574_v5 }
  0x9a   : > { %577 = vst [vmem:[%s4238_s29 + $0x318] sm:$0xf] %v576_v6  ;;  %579 = vst [vmem:[%s4238_s29 + $0x31c] sm:$0xf] %v578_v7  ;;  %v580_v8 = vld [vmem:[%s4231_s28 + $0x640] sm:$0xf] }
  0x9b   : > { %v582_v9 = vld [vmem:[%s4231_s28 + $0x648] sm:$0xf]  ;;  %v584_v10 = vld [vmem:[%s4231_s28 + $0x650] sm:$0xf]  ;;  %581 = vst [vmem:[%s4238_s29 + $0x320] sm:$0xf] %v580_v8 }
  0x9c   : > { %583 = vst [vmem:[%s4238_s29 + $0x324] sm:$0xf] %v582_v9  ;;  %585 = vst [vmem:[%s4238_s29 + $0x328] sm:$0xf] %v584_v10  ;;  %v586_v11 = vld [vmem:[%s4231_s28 + $0x658] sm:$0xf] }
  0x9d   : > { %v588_v12 = vld [vmem:[%s4231_s28 + $0x660] sm:$0xf]  ;;  %v590_v13 = vld [vmem:[%s4231_s28 + $0x668] sm:$0xf]  ;;  %587 = vst [vmem:[%s4238_s29 + $0x32c] sm:$0xf] %v586_v11 }
  0x9e   : > { %589 = vst [vmem:[%s4238_s29 + $0x330] sm:$0xf] %v588_v12  ;;  %591 = vst [vmem:[%s4238_s29 + $0x334] sm:$0xf] %v590_v13  ;;  %v592_v14 = vld [vmem:[%s4231_s28 + $0x670] sm:$0xf] }
  0x9f   : > { %v594_v15 = vld [vmem:[%s4231_s28 + $0x678] sm:$0xf]  ;;  %v596_v16 = vld [vmem:[%s4231_s28 + $0x680] sm:$0xf]  ;;  %593 = vst [vmem:[%s4238_s29 + $0x338] sm:$0xf] %v592_v14 }
  0xa0   : > { %595 = vst [vmem:[%s4238_s29 + $0x33c] sm:$0xf] %v594_v15  ;;  %597 = vst [vmem:[%s4238_s29 + $0x340] sm:$0xf] %v596_v16  ;;  %v598_v17 = vld [vmem:[%s4231_s28 + $0x688] sm:$0xf] }
  0xa1   : > { %v600_v18 = vld [vmem:[%s4231_s28 + $0x690] sm:$0xf]  ;;  %v602_v19 = vld [vmem:[%s4231_s28 + $0x698] sm:$0xf]  ;;  %599 = vst [vmem:[%s4238_s29 + $0x344] sm:$0xf] %v598_v17 }
  0xa2   : > { %601 = vst [vmem:[%s4238_s29 + $0x348] sm:$0xf] %v600_v18  ;;  %603 = vst [vmem:[%s4238_s29 + $0x34c] sm:$0xf] %v602_v19  ;;  %v604_v20 = vld [vmem:[%s4231_s28 + $0x6a0] sm:$0xf] }
  0xa3   : > { %v606_v21 = vld [vmem:[%s4231_s28 + $0x6a8] sm:$0xf]  ;;  %v608_v22 = vld [vmem:[%s4231_s28 + $0x6b0] sm:$0xf]  ;;  %605 = vst [vmem:[%s4238_s29 + $0x350] sm:$0xf] %v604_v20 }
  0xa4   : > { %607 = vst [vmem:[%s4238_s29 + $0x354] sm:$0xf] %v606_v21  ;;  %609 = vst [vmem:[%s4238_s29 + $0x358] sm:$0xf] %v608_v22  ;;  %v610_v23 = vld [vmem:[%s4231_s28 + $0x6b8] sm:$0xf] }
  0xa5   : > { %v612_v24 = vld [vmem:[%s4231_s28 + $0x6c0] sm:$0xf]  ;;  %v614_v25 = vld [vmem:[%s4231_s28 + $0x6c8] sm:$0xf]  ;;  %611 = vst [vmem:[%s4238_s29 + $0x35c] sm:$0xf] %v610_v23 }
  0xa6   : > { %613 = vst [vmem:[%s4238_s29 + $0x360] sm:$0xf] %v612_v24  ;;  %615 = vst [vmem:[%s4238_s29 + $0x364] sm:$0xf] %v614_v25  ;;  %v616_v26 = vld [vmem:[%s4231_s28 + $0x6d0] sm:$0xf] }
  0xa7   : > { %v618_v27 = vld [vmem:[%s4231_s28 + $0x6d8] sm:$0xf]  ;;  %v620_v28 = vld [vmem:[%s4231_s28 + $0x6e0] sm:$0xf]  ;;  %617 = vst [vmem:[%s4238_s29 + $0x368] sm:$0xf] %v616_v26 }
  0xa8   : > { %619 = vst [vmem:[%s4238_s29 + $0x36c] sm:$0xf] %v618_v27  ;;  %621 = vst [vmem:[%s4238_s29 + $0x370] sm:$0xf] %v620_v28  ;;  %v622_v29 = vld [vmem:[%s4231_s28 + $0x6e8] sm:$0xf] }
  0xa9   : > { %v624_v30 = vld [vmem:[%s4231_s28 + $0x6f0] sm:$0xf]  ;;  %v626_v31 = vld [vmem:[%s4231_s28 + $0x6f8] sm:$0xf]  ;;  %623 = vst [vmem:[%s4238_s29 + $0x374] sm:$0xf] %v622_v29 }
  0xaa   : > { %625 = vst [vmem:[%s4238_s29 + $0x378] sm:$0xf] %v624_v30  ;;  %627 = vst [vmem:[%s4238_s29 + $0x37c] sm:$0xf] %v626_v31  ;;  %v628_v32 = vld [vmem:[%s4231_s28 + $0x700] sm:$0xf] }
  0xab   : > { %v630_v33 = vld [vmem:[%s4231_s28 + $0x708] sm:$0xf]  ;;  %v632_v34 = vld [vmem:[%s4231_s28 + $0x710] sm:$0xf]  ;;  %629 = vst [vmem:[%s4238_s29 + $0x380] sm:$0xf] %v628_v32 }
  0xac   : > { %631 = vst [vmem:[%s4238_s29 + $0x384] sm:$0xf] %v630_v33  ;;  %633 = vst [vmem:[%s4238_s29 + $0x388] sm:$0xf] %v632_v34  ;;  %v634_v35 = vld [vmem:[%s4231_s28 + $0x718] sm:$0xf] }
  0xad   : > { %v636_v36 = vld [vmem:[%s4231_s28 + $0x720] sm:$0xf]  ;;  %v638_v37 = vld [vmem:[%s4231_s28 + $0x728] sm:$0xf]  ;;  %635 = vst [vmem:[%s4238_s29 + $0x38c] sm:$0xf] %v634_v35 }
  0xae   : > { %637 = vst [vmem:[%s4238_s29 + $0x390] sm:$0xf] %v636_v36  ;;  %639 = vst [vmem:[%s4238_s29 + $0x394] sm:$0xf] %v638_v37  ;;  %v640_v38 = vld [vmem:[%s4231_s28 + $0x730] sm:$0xf] }
  0xaf   : > { %v642_v39 = vld [vmem:[%s4231_s28 + $0x738] sm:$0xf]  ;;  %v644_v40 = vld [vmem:[%s4231_s28 + $0x740] sm:$0xf]  ;;  %641 = vst [vmem:[%s4238_s29 + $0x398] sm:$0xf] %v640_v38 }
  0xb0   : > { %643 = vst [vmem:[%s4238_s29 + $0x39c] sm:$0xf] %v642_v39  ;;  %645 = vst [vmem:[%s4238_s29 + $0x3a0] sm:$0xf] %v644_v40  ;;  %v646_v41 = vld [vmem:[%s4231_s28 + $0x748] sm:$0xf] }
  0xb1   : > { %v648_v42 = vld [vmem:[%s4231_s28 + $0x750] sm:$0xf]  ;;  %v650_v43 = vld [vmem:[%s4231_s28 + $0x758] sm:$0xf]  ;;  %647 = vst [vmem:[%s4238_s29 + $0x3a4] sm:$0xf] %v646_v41 }
  0xb2   : > { %649 = vst [vmem:[%s4238_s29 + $0x3a8] sm:$0xf] %v648_v42  ;;  %651 = vst [vmem:[%s4238_s29 + $0x3ac] sm:$0xf] %v650_v43  ;;  %v652_v44 = vld [vmem:[%s4231_s28 + $0x760] sm:$0xf] }
  0xb3   : > { %v654_v45 = vld [vmem:[%s4231_s28 + $0x768] sm:$0xf]  ;;  %v656_v46 = vld [vmem:[%s4231_s28 + $0x770] sm:$0xf]  ;;  %653 = vst [vmem:[%s4238_s29 + $0x3b0] sm:$0xf] %v652_v44 }
  0xb4   : > { %655 = vst [vmem:[%s4238_s29 + $0x3b4] sm:$0xf] %v654_v45  ;;  %657 = vst [vmem:[%s4238_s29 + $0x3b8] sm:$0xf] %v656_v46  ;;  %v658_v47 = vld [vmem:[%s4231_s28 + $0x778] sm:$0xf] }
  0xb5   : > { %v660_v48 = vld [vmem:[%s4231_s28 + $0x780] sm:$0xf]  ;;  %v662_v49 = vld [vmem:[%s4231_s28 + $0x788] sm:$0xf]  ;;  %659 = vst [vmem:[%s4238_s29 + $0x3bc] sm:$0xf] %v658_v47 }
  0xb6   : > { %661 = vst [vmem:[%s4238_s29 + $0x3c0] sm:$0xf] %v660_v48  ;;  %663 = vst [vmem:[%s4238_s29 + $0x3c4] sm:$0xf] %v662_v49  ;;  %v664_v50 = vld [vmem:[%s4231_s28 + $0x790] sm:$0xf] }
  0xb7   : > { %v666_v51 = vld [vmem:[%s4231_s28 + $0x798] sm:$0xf]  ;;  %v668_v52 = vld [vmem:[%s4231_s28 + $0x7a0] sm:$0xf]  ;;  %665 = vst [vmem:[%s4238_s29 + $0x3c8] sm:$0xf] %v664_v50 }
  0xb8   : > { %667 = vst [vmem:[%s4238_s29 + $0x3cc] sm:$0xf] %v666_v51  ;;  %669 = vst [vmem:[%s4238_s29 + $0x3d0] sm:$0xf] %v668_v52  ;;  %v670_v53 = vld [vmem:[%s4231_s28 + $0x7a8] sm:$0xf] }
  0xb9   : > { %v672_v54 = vld [vmem:[%s4231_s28 + $0x7b0] sm:$0xf]  ;;  %v674_v55 = vld [vmem:[%s4231_s28 + $0x7b8] sm:$0xf]  ;;  %671 = vst [vmem:[%s4238_s29 + $0x3d4] sm:$0xf] %v670_v53 }
  0xba   : > { %673 = vst [vmem:[%s4238_s29 + $0x3d8] sm:$0xf] %v672_v54  ;;  %675 = vst [vmem:[%s4238_s29 + $0x3dc] sm:$0xf] %v674_v55  ;;  %v676_v56 = vld [vmem:[%s4231_s28 + $0x7c0] sm:$0xf] }
  0xbb   : > { %v678_v57 = vld [vmem:[%s4231_s28 + $0x7c8] sm:$0xf]  ;;  %v680_v58 = vld [vmem:[%s4231_s28 + $0x7d0] sm:$0xf]  ;;  %677 = vst [vmem:[%s4238_s29 + $0x3e0] sm:$0xf] %v676_v56 }
  0xbc   : > { %679 = vst [vmem:[%s4238_s29 + $0x3e4] sm:$0xf] %v678_v57  ;;  %681 = vst [vmem:[%s4238_s29 + $0x3e8] sm:$0xf] %v680_v58  ;;  %v682_v59 = vld [vmem:[%s4231_s28 + $0x7d8] sm:$0xf] }
  0xbd   : > { %v684_v60 = vld [vmem:[%s4231_s28 + $0x7e0] sm:$0xf]  ;;  %v686_v61 = vld [vmem:[%s4231_s28 + $0x7e8] sm:$0xf]  ;;  %683 = vst [vmem:[%s4238_s29 + $0x3ec] sm:$0xf] %v682_v59 }
  0xbe   : > { %685 = vst [vmem:[%s4238_s29 + $0x3f0] sm:$0xf] %v684_v60  ;;  %687 = vst [vmem:[%s4238_s29 + $0x3f4] sm:$0xf] %v686_v61  ;;  %v688_v62 = vld [vmem:[%s4231_s28 + $0x7f0] sm:$0xf] }
  0xbf   : > { %v690_v63 = vld [vmem:[%s4231_s28 + $0x7f8] sm:$0xf]  ;;  %v692_v0 = vld [vmem:[%s4231_s28 + $0x800] sm:$0xf]  ;;  %689 = vst [vmem:[%s4238_s29 + $0x3f8] sm:$0xf] %v688_v62 }
  0xc0   : > { %691 = vst [vmem:[%s4238_s29 + $0x3fc] sm:$0xf] %v690_v63  ;;  %693 = vst [vmem:[%s4238_s29 + $0x400] sm:$0xf] %v692_v0  ;;  %v694_v1 = vld [vmem:[%s4231_s28 + $0x808] sm:$0xf] }
  0xc1   : > { %v696_v2 = vld [vmem:[%s4231_s28 + $0x810] sm:$0xf]  ;;  %v698_v3 = vld [vmem:[%s4231_s28 + $0x818] sm:$0xf]  ;;  %695 = vst [vmem:[%s4238_s29 + $0x404] sm:$0xf] %v694_v1 }
  0xc2   : > { %697 = vst [vmem:[%s4238_s29 + $0x408] sm:$0xf] %v696_v2  ;;  %699 = vst [vmem:[%s4238_s29 + $0x40c] sm:$0xf] %v698_v3  ;;  %v700_v4 = vld [vmem:[%s4231_s28 + $0x820] sm:$0xf] }
  0xc3   : > { %v702_v5 = vld [vmem:[%s4231_s28 + $0x828] sm:$0xf]  ;;  %v704_v6 = vld [vmem:[%s4231_s28 + $0x830] sm:$0xf]  ;;  %701 = vst [vmem:[%s4238_s29 + $0x410] sm:$0xf] %v700_v4 }
  0xc4   : > { %703 = vst [vmem:[%s4238_s29 + $0x414] sm:$0xf] %v702_v5  ;;  %705 = vst [vmem:[%s4238_s29 + $0x418] sm:$0xf] %v704_v6  ;;  %v706_v7 = vld [vmem:[%s4231_s28 + $0x838] sm:$0xf] }
  0xc5   : > { %v708_v8 = vld [vmem:[%s4231_s28 + $0x840] sm:$0xf]  ;;  %v710_v9 = vld [vmem:[%s4231_s28 + $0x848] sm:$0xf]  ;;  %707 = vst [vmem:[%s4238_s29 + $0x41c] sm:$0xf] %v706_v7 }
  0xc6   : > { %709 = vst [vmem:[%s4238_s29 + $0x420] sm:$0xf] %v708_v8  ;;  %711 = vst [vmem:[%s4238_s29 + $0x424] sm:$0xf] %v710_v9  ;;  %v712_v10 = vld [vmem:[%s4231_s28 + $0x850] sm:$0xf] }
  0xc7   : > { %v714_v11 = vld [vmem:[%s4231_s28 + $0x858] sm:$0xf]  ;;  %v716_v12 = vld [vmem:[%s4231_s28 + $0x860] sm:$0xf]  ;;  %713 = vst [vmem:[%s4238_s29 + $0x428] sm:$0xf] %v712_v10 }
  0xc8   : > { %715 = vst [vmem:[%s4238_s29 + $0x42c] sm:$0xf] %v714_v11  ;;  %717 = vst [vmem:[%s4238_s29 + $0x430] sm:$0xf] %v716_v12  ;;  %v718_v13 = vld [vmem:[%s4231_s28 + $0x868] sm:$0xf] }
  0xc9   : > { %v720_v14 = vld [vmem:[%s4231_s28 + $0x870] sm:$0xf]  ;;  %v722_v15 = vld [vmem:[%s4231_s28 + $0x878] sm:$0xf]  ;;  %719 = vst [vmem:[%s4238_s29 + $0x434] sm:$0xf] %v718_v13 }
  0xca   : > { %721 = vst [vmem:[%s4238_s29 + $0x438] sm:$0xf] %v720_v14  ;;  %723 = vst [vmem:[%s4238_s29 + $0x43c] sm:$0xf] %v722_v15  ;;  %v724_v16 = vld [vmem:[%s4231_s28 + $0x880] sm:$0xf] }
  0xcb   : > { %v726_v17 = vld [vmem:[%s4231_s28 + $0x888] sm:$0xf]  ;;  %v728_v18 = vld [vmem:[%s4231_s28 + $0x890] sm:$0xf]  ;;  %725 = vst [vmem:[%s4238_s29 + $0x440] sm:$0xf] %v724_v16 }
  0xcc   : > { %727 = vst [vmem:[%s4238_s29 + $0x444] sm:$0xf] %v726_v17  ;;  %729 = vst [vmem:[%s4238_s29 + $0x448] sm:$0xf] %v728_v18  ;;  %v730_v19 = vld [vmem:[%s4231_s28 + $0x898] sm:$0xf] }
  0xcd   : > { %v732_v20 = vld [vmem:[%s4231_s28 + $0x8a0] sm:$0xf]  ;;  %v734_v21 = vld [vmem:[%s4231_s28 + $0x8a8] sm:$0xf]  ;;  %731 = vst [vmem:[%s4238_s29 + $0x44c] sm:$0xf] %v730_v19 }
  0xce   : > { %733 = vst [vmem:[%s4238_s29 + $0x450] sm:$0xf] %v732_v20  ;;  %735 = vst [vmem:[%s4238_s29 + $0x454] sm:$0xf] %v734_v21  ;;  %v736_v22 = vld [vmem:[%s4231_s28 + $0x8b0] sm:$0xf] }
  0xcf   : > { %v738_v23 = vld [vmem:[%s4231_s28 + $0x8b8] sm:$0xf]  ;;  %v740_v24 = vld [vmem:[%s4231_s28 + $0x8c0] sm:$0xf]  ;;  %737 = vst [vmem:[%s4238_s29 + $0x458] sm:$0xf] %v736_v22 }
  0xd0   : > { %739 = vst [vmem:[%s4238_s29 + $0x45c] sm:$0xf] %v738_v23  ;;  %741 = vst [vmem:[%s4238_s29 + $0x460] sm:$0xf] %v740_v24  ;;  %v742_v25 = vld [vmem:[%s4231_s28 + $0x8c8] sm:$0xf] }
  0xd1   : > { %v744_v26 = vld [vmem:[%s4231_s28 + $0x8d0] sm:$0xf]  ;;  %v746_v27 = vld [vmem:[%s4231_s28 + $0x8d8] sm:$0xf]  ;;  %743 = vst [vmem:[%s4238_s29 + $0x464] sm:$0xf] %v742_v25 }
  0xd2   : > { %745 = vst [vmem:[%s4238_s29 + $0x468] sm:$0xf] %v744_v26  ;;  %747 = vst [vmem:[%s4238_s29 + $0x46c] sm:$0xf] %v746_v27  ;;  %v748_v28 = vld [vmem:[%s4231_s28 + $0x8e0] sm:$0xf] }
  0xd3   : > { %v750_v29 = vld [vmem:[%s4231_s28 + $0x8e8] sm:$0xf]  ;;  %v752_v30 = vld [vmem:[%s4231_s28 + $0x8f0] sm:$0xf]  ;;  %749 = vst [vmem:[%s4238_s29 + $0x470] sm:$0xf] %v748_v28 }
  0xd4   : > { %751 = vst [vmem:[%s4238_s29 + $0x474] sm:$0xf] %v750_v29  ;;  %753 = vst [vmem:[%s4238_s29 + $0x478] sm:$0xf] %v752_v30  ;;  %v754_v31 = vld [vmem:[%s4231_s28 + $0x8f8] sm:$0xf] }
  0xd5   : > { %755 = vst [vmem:[%s4238_s29 + $0x47c] sm:$0xf] %v754_v31 }
  0xd6 PF: > { %p3409_p8 = scmp.ge.s32.totalorder %s4161_s16, 1  ;;  %p1359_p9 = scmp.lt.s32.totalorder %s4161_s16, 3 }
  0xd8   : > { %p1360_p10 = pnand %p3409_p8, %p1359_p9 }
  0xd9   : > { %s1366_s30 = sand.u32 (!%p1360_p10), 1, %s4145_s12   ;;  %v3959_v32 = vld [vmem:[%s5098_s0 + $0x4] ss:$72 sps:$4 sm:$0xff] (!%p1360_p10)   ;;  %v3957_v0 = vld [vmem:[%s5098_s0] ss:$72 sps:$4 sm:$0xff] (!%p1360_p10)   ;;  %p1404_p11 = scmp.lt.s32.totalorder (!%p1360_p10), %s4153_s14, 1 }
  0xda   : > { %1363 = sbr.rel (%p1360_p10) target bundleno = 618 (0x26a), region = 69  ;;  %v3962_v33 = vld [vmem:[%s5098_s0 + $0xc] ss:$72 sps:$4 sm:$0xff] (!%p1360_p10)   ;;  %2816 = vmatprep.mubr.bf16.mxu0 (!%p1360_p10), %v3959_v32  ;;  %v3960_v2 = vld [vmem:[%s5098_s0 + $0x8] ss:$72 sps:$4 sm:$0xff] (!%p1360_p10)   ;;  %s3410_s19 = sshll.u32 (!%p1360_p10), %s1366_s30, 4 }
  0xdb   : > { %s3884_s4 = smul.u32 (!%p1360_p10), 1152, %s1366_s30  ;;  %2865 = vmatprep.mubr.bf16.mxu1 (!%p1360_p10), %v3962_v33  ;;  %v3983_v4 = vld [vmem:[%s5098_s0 + $0x94] ss:$72 sps:$4 sm:$0xff] (!%p1360_p10)   ;;  %v3985_v11 = vld [vmem:[%s5098_s0 + $0x90] ss:$72 sps:$4 sm:$0xff] (!%p1360_p10)   ;;  %s1396_s20 = scalar_lea.vmem (!%p1360_p10), [#allocation3], %s3410_s19 }
  0xdc   : > { %v3988_v28 = vld [vmem:[%s5098_s0 + $0x9c] ss:$72 sps:$4 sm:$0xff] (!%p1360_p10)   ;;  %v3992_v31 = vld [vmem:[%s5098_s0 + $0x98] ss:$72 sps:$4 sm:$0xff] (!%p1360_p10)  }
  0xdd   : > { %s4822_s9 = scalar_lea.vmem (!%p1360_p10), [#allocation2], %s3884_s4 }
  0xde   : > { %v3925_v34 = vld [vmem:[%s4822_s9 + $0x40] sm:$0xff] (!%p1360_p10)   ;;  %v3929_v38 = vld [vmem:[%s4822_s9 + $0x48] sm:$0xff] (!%p1360_p10)   ;;  %v3933_v42 = vld [vmem:[%s4822_s9 + $0x50] sm:$0xff] (!%p1360_p10)  }
  0xdf   : > { %v3926_v35 = vld [vmem:[%s4822_s9 + $0xc0] sm:$0xff] (!%p1360_p10)   ;;  %3615 = vmatprep.subr.bf16.mxu0 (!%p1360_p10), %v3925_v34  ;;  %v3930_v39 = vld [vmem:[%s4822_s9 + $0xc8] sm:$0xff] (!%p1360_p10)   ;;  %v3934_v43 = vld [vmem:[%s4822_s9 + $0xd0] sm:$0xff] (!%p1360_p10)  }
  0xe0   : > { %v3927_v36 = vld [vmem:[%s4822_s9] sm:$0xff] (!%p1360_p10)   ;;  %3643 = vmatprep.subr.bf16.mxu1 (!%p1360_p10), %v3926_v35  ;;  %v3931_v40 = vld [vmem:[%s4822_s9 + $0x8] sm:$0xff] (!%p1360_p10)   ;;  %v3935_v44 = vld [vmem:[%s4822_s9 + $0x10] sm:$0xff] (!%p1360_p10)  }
  0xe1   : > { %v3928_v37 = vld [vmem:[%s4822_s9 + $0x80] sm:$0xff]   ;;  %3616 = vmatpush3.bf16.msra.mxu0 %v3927_v36  ;;  %v3932_v41 = vld [vmem:[%s4822_s9 + $0x88] sm:$0xff]   ;;  %v3936_v45 = vld [vmem:[%s4822_s9 + $0x90] sm:$0xff]   ;;  %s1405_s10 = scalar_select %p1404_p11, %s4153_s14, 1 }
  0xe2   : > { %3644 = vmatpush3.bf16.msra.mxu1 %v3928_v37  ;;  %3617 = vmatprep.subr.bf16.mxu0 %v3929_v38  ;;  %v3937_v46 = vld [vmem:[%s4822_s9 + $0x58] sm:$0xff]   ;;  %v3941_v50 = vld [vmem:[%s4822_s9 + $0x60] sm:$0xff]   ;;  %v3945_v54 = vld [vmem:[%s4822_s9 + $0x68] sm:$0xff]   ;;  %s3597_s23 = sshll.u32 (%p4218_p6), %s4153_s14, 2 }
  0xe3   : > { %3645 = vmatprep.subr.bf16.mxu1 %v3930_v39  ;;  %v3938_v47 = vld [vmem:[%s4822_s9 + $0xd8] sm:$0xff]   ;;  %v3942_v51 = vld [vmem:[%s4822_s9 + $0xe0] sm:$0xff]   ;;  %v3946_v55 = vld [vmem:[%s4822_s9 + $0xe8] sm:$0xff]   ;;  %s3260_s24 = scalar_lea.vmem (%p4218_p6), %s5101_s3, %s3597_s23 }
  0xe4   : > { %v3939_v48 = vld [vmem:[%s4822_s9 + $0x18] sm:$0xff]   ;;  %v3943_v52 = vld [vmem:[%s4822_s9 + $0x20] sm:$0xff]   ;;  %v3947_v56 = vld [vmem:[%s4822_s9 + $0x28] sm:$0xff]  }
  0xe5   : > { %3618 = vmatpush3.bf16.msra.mxu0 %v3931_v40  ;;  %v3940_v49 = vld [vmem:[%s4822_s9 + $0x98] sm:$0xff]   ;;  %v3944_v53 = vld [vmem:[%s4822_s9 + $0xa0] sm:$0xff]   ;;  %v3948_v57 = vld [vmem:[%s4822_s9 + $0xa8] sm:$0xff]  }
  0xe6   : > { %3646 = vmatpush3.bf16.msra.mxu1 %v3932_v41  ;;  %3619 = vmatprep.subr.bf16.mxu0 %v3933_v42  ;;  %v3949_v58 = vld [vmem:[%s4822_s9 + $0x70] sm:$0xff]   ;;  %v3953_v62 = vld [vmem:[%s4822_s9 + $0x78] sm:$0xff]   ;;  %v3963_v5 = vld [vmem:[%s4822_s9 + $0x140] sm:$0xff]  }
  0xe7   : > { %3647 = vmatprep.subr.bf16.mxu1 %v3934_v43  ;;  %v3950_v59 = vld [vmem:[%s4822_s9 + $0xf0] sm:$0xff]   ;;  %v3954_v63 = vld [vmem:[%s4822_s9 + $0xf8] sm:$0xff]   ;;  %v3964_v6 = vld [vmem:[%s4822_s9 + $0x1c0] sm:$0xff]  }
  0xe8   : > { %v3951_v60 = vld [vmem:[%s4822_s9 + $0x30] sm:$0xff]   ;;  %v3955_v1 = vld [vmem:[%s4822_s9 + $0x38] sm:$0xff]   ;;  %v3965_v7 = vld [vmem:[%s4822_s9 + $0x100] sm:$0xff]  }
  0xe9   : > { %3620 = vmatpush3.bf16.msra.mxu0 %v3935_v44  ;;  %v3952_v61 = vld [vmem:[%s4822_s9 + $0xb0] sm:$0xff]   ;;  %v3956_v3 = vld [vmem:[%s4822_s9 + $0xb8] sm:$0xff]   ;;  %v3966_v8 = vld [vmem:[%s4822_s9 + $0x180] sm:$0xff]  }
  0xea   : > { %3648 = vmatpush3.bf16.msra.mxu1 %v3936_v45  ;;  %3621 = vmatprep.subr.bf16.mxu0 %v3937_v46  ;;  %v3967_v9 = vld [vmem:[%s4822_s9 + $0x148] sm:$0xff]   ;;  %v3971_v14 = vld [vmem:[%s4822_s9 + $0x150] sm:$0xff]   ;;  %v3975_v18 = vld [vmem:[%s4822_s9 + $0x158] sm:$0xff]  }
  0xeb   : > { %3649 = vmatprep.subr.bf16.mxu1 %v3938_v47  ;;  %v3968_v10 = vld [vmem:[%s4822_s9 + $0x1c8] sm:$0xff]   ;;  %v3972_v15 = vld [vmem:[%s4822_s9 + $0x1d0] sm:$0xff]   ;;  %v3976_v19 = vld [vmem:[%s4822_s9 + $0x1d8] sm:$0xff]  }
  0xec   : > { %v3969_v12 = vld [vmem:[%s4822_s9 + $0x108] sm:$0xff]   ;;  %v3973_v16 = vld [vmem:[%s4822_s9 + $0x110] sm:$0xff]   ;;  %v3977_v20 = vld [vmem:[%s4822_s9 + $0x118] sm:$0xff]  }
  0xed   : > { %3622 = vmatpush3.bf16.msra.mxu0 %v3939_v48  ;;  %v3970_v13 = vld [vmem:[%s4822_s9 + $0x188] sm:$0xff]   ;;  %v3974_v17 = vld [vmem:[%s4822_s9 + $0x190] sm:$0xff]   ;;  %v3978_v21 = vld [vmem:[%s4822_s9 + $0x198] sm:$0xff]  }
  0xee   : > { %3650 = vmatpush3.bf16.msra.mxu1 %v3940_v49  ;;  %3623 = vmatprep.subr.bf16.mxu0 %v3941_v50  ;;  %v3979_v22 = vld [vmem:[%s4822_s9 + $0x160] sm:$0xff]   ;;  %v3986_v26 = vld [vmem:[%s4822_s9 + $0x168] sm:$0xff]   ;;  %v3993_v32 = vld [vmem:[%s4822_s9 + $0x170] sm:$0xff]  }
  0xef   : > { %3651 = vmatprep.subr.bf16.mxu1 %v3942_v51  ;;  %v3980_v23 = vld [vmem:[%s4822_s9 + $0x1e0] sm:$0xff]   ;;  %v3987_v27 = vld [vmem:[%s4822_s9 + $0x1e8] sm:$0xff]   ;;  %v3994_v33 = vld [vmem:[%s4822_s9 + $0x1f0] sm:$0xff]  }
  0xf0   : > { %v3981_v24 = vld [vmem:[%s4822_s9 + $0x120] sm:$0xff]   ;;  %v3990_v29 = vld [vmem:[%s4822_s9 + $0x128] sm:$0xff]   ;;  %v3995_v34 = vld [vmem:[%s4822_s9 + $0x130] sm:$0xff]  }
  0xf1   : > { %3624 = vmatpush3.bf16.msra.mxu0 %v3943_v52  ;;  %v3982_v25 = vld [vmem:[%s4822_s9 + $0x1a0] sm:$0xff]   ;;  %v3991_v30 = vld [vmem:[%s4822_s9 + $0x1a8] sm:$0xff]   ;;  %v3996_v35 = vld [vmem:[%s4822_s9 + $0x1b0] sm:$0xff]  }
  0xf2   : > { %3652 = vmatpush3.bf16.msra.mxu1 %v3944_v53  ;;  %3625 = vmatprep.subr.bf16.mxu0 %v3945_v54  ;;  %v3997_v36 = vld [vmem:[%s4822_s9 + $0x178] sm:$0xff]   ;;  %v4007_v44 = vld [vmem:[%s4822_s9 + $0x240] sm:$0xff]   ;;  %v4011_v48 = vld [vmem:[%s4822_s9 + $0x248] sm:$0xff]  }
  0xf3   : > { %3653 = vmatprep.subr.bf16.mxu1 %v3946_v55  ;;  %v3998_v37 = vld [vmem:[%s4822_s9 + $0x1f8] sm:$0xff]   ;;  %v4008_v45 = vld [vmem:[%s4822_s9 + $0x2c0] sm:$0xff]   ;;  %v4012_v49 = vld [vmem:[%s4822_s9 + $0x2c8] sm:$0xff]  }
  0xf4   : > { %v3999_v38 = vld [vmem:[%s4822_s9 + $0x138] sm:$0xff]   ;;  %v4009_v46 = vld [vmem:[%s4822_s9 + $0x200] sm:$0xff]   ;;  %v4013_v50 = vld [vmem:[%s4822_s9 + $0x208] sm:$0xff]  }
  0xf5   : > { %3626 = vmatpush3.bf16.msra.mxu0 %v3947_v56  ;;  %v4000_v39 = vld [vmem:[%s4822_s9 + $0x1b8] sm:$0xff]   ;;  %v4010_v47 = vld [vmem:[%s4822_s9 + $0x280] sm:$0xff]   ;;  %v4014_v51 = vld [vmem:[%s4822_s9 + $0x288] sm:$0xff]  }
  0xf6   : > { %3654 = vmatpush3.bf16.msra.mxu1 %v3948_v57  ;;  %3627 = vmatprep.subr.bf16.mxu0 %v3949_v58  ;;  %v4001_v40 = vld [vmem:[%s5098_s0 + $0x10] ss:$72 sps:$4 sm:$0xff]   ;;  %v4003_v41 = vld [vmem:[%s5098_s0 + $0x14] ss:$72 sps:$4 sm:$0xff]   ;;  %v4015_v52 = vld [vmem:[%s5098_s0 + $0xa4] ss:$72 sps:$4 sm:$0xff]  }
  0xf7   : > { %3655 = vmatprep.subr.bf16.mxu1 %v3950_v59  ;;  %v4004_v42 = vld [vmem:[%s5098_s0 + $0x18] ss:$72 sps:$4 sm:$0xff]   ;;  %v4006_v43 = vld [vmem:[%s5098_s0 + $0x1c] ss:$72 sps:$4 sm:$0xff]   ;;  %v4018_v54 = vld [vmem:[%s4822_s9 + $0x250] sm:$0xff]  }
  0xf8   : > { %v4017_v53 = vld [vmem:[%s5098_s0 + $0xa0] ss:$72 sps:$4 sm:$0xff]   ;;  %v4019_v55 = vld [vmem:[%s4822_s9 + $0x2d0] sm:$0xff]  }
  0xf9   : > { %3628 = vmatpush3.bf16.msra.mxu0 %v3951_v60  ;;  %v4020_v56 = vld [vmem:[%s5098_s0 + $0xac] ss:$72 sps:$4 sm:$0xff]   ;;  %v4024_v59 = vld [vmem:[%s5098_s0 + $0xa8] ss:$72 sps:$4 sm:$0xff]   ;;  %v4025_v60 = vld [vmem:[%s4822_s9 + $0x258] sm:$0xff]  }
  0xfa   : > { %3656 = vmatpush3.bf16.msra.mxu1 %v3952_v61  ;;  %3629 = vmatprep.subr.bf16.mxu0 %v3953_v62  ;;  %v4022_v57 = vld [vmem:[%s4822_s9 + $0x210] sm:$0xff]   ;;  %v4026_v61 = vld [vmem:[%s4822_s9 + $0x2d8] sm:$0xff]  }
  0xfb   : > { %3657 = vmatprep.subr.bf16.mxu1 %v3954_v63  ;;  %v4023_v58 = vld [vmem:[%s4822_s9 + $0x290] sm:$0xff]   ;;  %v4027_v62 = vld [vmem:[%s4822_s9 + $0x218] sm:$0xff]  }
  0xfc   : > { %v4028_v63 = vld [vmem:[%s4822_s9 + $0x298] sm:$0xff]  }
  0xfd   : > { %3630 = vmatpush3.bf16.msra.mxu0 %v3955_v1  ;;  %v4030_v1 = vld [vmem:[%s4822_s9 + $0x2e0] sm:$0xff]  }
  0xfe   : > { %3658 = vmatpush3.bf16.msra.mxu1 %v3956_v3  ;;  %3671 = vmatprep.subr.bf16.mxu0 %v3963_v5  ;;  %v4032_v3 = vld [vmem:[%s4822_s9 + $0x2a0] sm:$0xff]   ;;  %v4034_v5 = vld [vmem:[%s4822_s9 + $0x2e8] sm:$0xff]  }
  0xff   : > { %3699 = vmatprep.subr.bf16.mxu1 %v3964_v6  ;;  %v4035_v6 = vld [vmem:[%s4822_s9 + $0x228] sm:$0xff]  }
 0x100   : > { %2817 = vmatmul.mubr.bf16.vlgmr.msra.gmra.mrb[0].mxu0 %v3957_v0  ;;  %v4029_v0 = vld [vmem:[%s4822_s9 + $0x260] sm:$0xff]  }
 0x101   : > { %2866 = vmatmul.mubr.bf16.vlgmr.msra.gmra.mrb[0].mxu1 %v3960_v2  ;;  %3672 = vmatpush3.bf16.msra.mxu0 %v3965_v7  ;;  %v4031_v2 = vld [vmem:[%s4822_s9 + $0x220] sm:$0xff]   ;;  %v4036_v7 = vld [vmem:[%s4822_s9 + $0x2a8] sm:$0xff]  }
 0x102   : > { %3700 = vmatpush3.bf16.msra.mxu1 %v3966_v8  ;;  %2824 = vmatprep.mubr.bf16.mxu0 %v3983_v4  ;;  %v4033_v4 = vld [vmem:[%s4822_s9 + $0x268] sm:$0xff]   ;;  %v4037_v8 = vld [vmem:[%s4822_s9 + $0x270] sm:$0xff]  }
 0x103   : > { %3673 = vmatprep.subr.bf16.mxu0 %v3967_v9  ;;  %3701 = vmatprep.subr.bf16.mxu1 %v3968_v10  ;;  %v4038_v9 = vld [vmem:[%s4822_s9 + $0x2f0] sm:$0xff]  }
 0x104   : > { %2873 = vmatprep.mubr.bf16.mxu1 %v3988_v28  ;;  %v4039_v10 = vld [vmem:[%s4822_s9 + $0x230] sm:$0xff]  }
 0x105   : > { %3674 = vmatpush3.bf16.msra.mxu0 %v3969_v12  ;;  %v4041_v12 = vld [vmem:[%s4822_s9 + $0x278] sm:$0xff]  }
 0x106   : > { %3702 = vmatpush3.bf16.msra.mxu1 %v3970_v13  ;;  %3675 = vmatprep.subr.bf16.mxu0 %v3971_v14  ;;  %v4042_v13 = vld [vmem:[%s4822_s9 + $0x2f8] sm:$0xff]  }
 0x107   : > { %3703 = vmatprep.subr.bf16.mxu1 %v3972_v15  ;;  %v4043_v14 = vld [vmem:[%s4822_s9 + $0x238] sm:$0xff]  }
 0x108   : > { %2825 = vmatmul.mubr.bf16.gmra.mrb[4].mxu0 %v3985_v11  ;;  %v4040_v11 = vld [vmem:[%s4822_s9 + $0x2b0] sm:$0xff]   ;;  %v4044_v15 = vld [vmem:[%s4822_s9 + $0x2b8] sm:$0xff]  }
 0x109   : > { %3676 = vmatpush3.bf16.msra.mxu0 %v3973_v16  ;;  %2874 = vmatmul.mubr.bf16.gmra.mrb[4].mxu1 %v3992_v31  ;;  %v4045_v16 = vld [vmem:[%s5098_s0 + $0x20] ss:$72 sps:$4 sm:$0xff]   ;;  %v4059_v28 = vld [vmem:[%s5098_s0 + $0xb4] ss:$72 sps:$4 sm:$0xff]  }
 0x10a   : > { %3704 = vmatpush3.bf16.msra.mxu1 %v3974_v17  ;;  %3677 = vmatprep.subr.bf16.mxu0 %v3975_v18  ;;  %v4047_v17 = vld [vmem:[%s5098_s0 + $0x24] ss:$72 sps:$4 sm:$0xff]   ;;  %v4048_v18 = vld [vmem:[%s5098_s0 + $0x28] ss:$72 sps:$4 sm:$0xff]  }
 0x10b   : > { %3705 = vmatprep.subr.bf16.mxu1 %v3976_v19  ;;  %2914 = vmatprep.mubr.bf16.mxu0 %v4003_v41  ;;  %v4050_v19 = vld [vmem:[%s5098_s0 + $0x2c] ss:$72 sps:$4 sm:$0xff]   ;;  %v4074_v41 = vld [vmem:[%s4822_s9 + $0x3e0] sm:$0xff]  }
 0x10c   : > { %2963 = vmatprep.mubr.bf16.mxu1 %v4006_v43  ;;  %v4063_v31 = vld [vmem:[%s4822_s9 + $0x3d0] sm:$0xff]   ;;  %v4076_v43 = vld [vmem:[%s4822_s9 + $0x3a0] sm:$0xff]  }
 0x10d   : > { %3678 = vmatpush3.bf16.msra.mxu0 %v3977_v20  ;;  %v4051_v20 = vld [vmem:[%s4822_s9 + $0x340] sm:$0xff]  }
 0x10e   : > { %3706 = vmatpush3.bf16.msra.mxu1 %v3978_v21  ;;  %3679 = vmatprep.subr.bf16.mxu0 %v3979_v22  ;;  %v4052_v21 = vld [vmem:[%s4822_s9 + $0x3c0] sm:$0xff]  }
 0x10f   : > { %3707 = vmatprep.subr.bf16.mxu1 %v3980_v23  ;;  %v4053_v22 = vld [vmem:[%s4822_s9 + $0x300] sm:$0xff]  }
 0x110   : > { %v4054_v23 = vld [vmem:[%s4822_s9 + $0x380] sm:$0xff]  }
 0x111   : > { %3680 = vmatpush3.bf16.msra.mxu0 %v3981_v24  ;;  %v4055_v24 = vld [vmem:[%s4822_s9 + $0x348] sm:$0xff]  }
 0x112   : > { %3708 = vmatpush3.bf16.msra.mxu1 %v3982_v25  ;;  %3681 = vmatprep.subr.bf16.mxu0 %v3986_v26  ;;  %v4056_v25 = vld [vmem:[%s4822_s9 + $0x3c8] sm:$0xff]  }
 0x113   : > { %3709 = vmatprep.subr.bf16.mxu1 %v3987_v27  ;;  %v4057_v26 = vld [vmem:[%s4822_s9 + $0x308] sm:$0xff]  }
 0x114   : > { %v4058_v27 = vld [vmem:[%s4822_s9 + $0x388] sm:$0xff]  }
 0x115   : > { %3682 = vmatpush3.bf16.msra.mxu0 %v3990_v29  ;;  %v4061_v29 = vld [vmem:[%s5098_s0 + $0xb0] ss:$72 sps:$4 sm:$0xff]  }
 0x116   : > { %3710 = vmatpush3.bf16.msra.mxu1 %v3991_v30  ;;  %3683 = vmatprep.subr.bf16.mxu0 %v3993_v32  ;;  %v4062_v30 = vld [vmem:[%s4822_s9 + $0x350] sm:$0xff]   ;;  %v4064_v32 = vld [vmem:[%s5098_s0 + $0xbc] ss:$72 sps:$4 sm:$0xff]  }
 0x117   : > { %3711 = vmatprep.subr.bf16.mxu1 %v3994_v33  ;;  %v4066_v33 = vld [vmem:[%s4822_s9 + $0x310] sm:$0xff]  }
 0x119   : > { %3684 = vmatpush3.bf16.msra.mxu0 %v3995_v34  ;;  %v4067_v34 = vld [vmem:[%s4822_s9 + $0x390] sm:$0xff]  }
 0x11a   : > { %3712 = vmatpush3.bf16.msra.mxu1 %v3996_v35  ;;  %3685 = vmatprep.subr.bf16.mxu0 %v3997_v36  ;;  %v4068_v35 = vld [vmem:[%s5098_s0 + $0xb8] ss:$72 sps:$4 sm:$0xff]  }
 0x11b   : > { %3713 = vmatprep.subr.bf16.mxu1 %v3998_v37  ;;  %v4069_v36 = vld [vmem:[%s4822_s9 + $0x358] sm:$0xff]  }
 0x11c   : > { %v4070_v37 = vld [vmem:[%s4822_s9 + $0x3d8] sm:$0xff]  }
 0x11d   : > { %3686 = vmatpush3.bf16.msra.mxu0 %v3999_v38  ;;  %v4071_v38 = vld [vmem:[%s4822_s9 + $0x318] sm:$0xff]  }
 0x11e   : > { %3714 = vmatpush3.bf16.msra.mxu1 %v4000_v39  ;;  %3727 = vmatprep.subr.bf16.mxu0 %v4007_v44  ;;  %v4072_v39 = vld [vmem:[%s4822_s9 + $0x398] sm:$0xff]   ;;  %v4077_v44 = vld [vmem:[%s4822_s9 + $0x368] sm:$0xff]  }
 0x11f   : > { %3755 = vmatprep.subr.bf16.mxu1 %v4008_v45  ;;  %v4078_v45 = vld [vmem:[%s4822_s9 + $0x3e8] sm:$0xff]  }
 0x120   : > { %2915 = vmatmul.mubr.bf16.vlgmr.msra.gmra.mrb[8].mxu0 %v4001_v40  ;;  %v4073_v40 = vld [vmem:[%s4822_s9 + $0x360] sm:$0xff]  }
 0x121   : > { %2964 = vmatmul.mubr.bf16.vlgmr.msra.gmra.mrb[8].mxu1 %v4004_v42  ;;  %3728 = vmatpush3.bf16.msra.mxu0 %v4009_v46  ;;  %v4075_v42 = vld [vmem:[%s4822_s9 + $0x320] sm:$0xff]   ;;  %v4079_v46 = vld [vmem:[%s4822_s9 + $0x328] sm:$0xff]  }
 0x122   : > { %3756 = vmatpush3.bf16.msra.mxu1 %v4010_v47  ;;  %3729 = vmatprep.subr.bf16.mxu0 %v4011_v48  ;;  %v4080_v47 = vld [vmem:[%s4822_s9 + $0x3a8] sm:$0xff]   ;;  %v4081_v48 = vld [vmem:[%s4822_s9 + $0x370] sm:$0xff]  }
 0x123   : > { %3757 = vmatprep.subr.bf16.mxu1 %v4012_v49  ;;  %2922 = vmatprep.mubr.bf16.mxu0 %v4015_v52  ;;  %v4082_v49 = vld [vmem:[%s4822_s9 + $0x3f0] sm:$0xff]   ;;  %v4085_v52 = vld [vmem:[%s4822_s9 + $0x378] sm:$0xff]  }
 0x124   : > { %2971 = vmatprep.mubr.bf16.mxu1 %v4020_v56  ;;  %v4089_v56 = vld [vmem:[%s5098_s0 + $0x30] ss:$72 sps:$4 sm:$0xff]  }
 0x125   : > { %3730 = vmatpush3.bf16.msra.mxu0 %v4013_v50  ;;  %v4083_v50 = vld [vmem:[%s4822_s9 + $0x330] sm:$0xff]  }
 0x126   : > { %3758 = vmatpush3.bf16.msra.mxu1 %v4014_v51  ;;  %3731 = vmatprep.subr.bf16.mxu0 %v4018_v54  ;;  %v4084_v51 = vld [vmem:[%s4822_s9 + $0x3b0] sm:$0xff]   ;;  %v4087_v54 = vld [vmem:[%s4822_s9 + $0x338] sm:$0xff]  }
 0x127   : > { %3759 = vmatprep.subr.bf16.mxu1 %v4019_v55  ;;  %v4088_v55 = vld [vmem:[%s4822_s9 + $0x3b8] sm:$0xff]  }
 0x128   : > { %2923 = vmatmul.mubr.bf16.gmra.mrb[12].mxu0 %v4017_v53  ;;  %v4086_v53 = vld [vmem:[%s4822_s9 + $0x3f8] sm:$0xff]  }
 0x129   : > { %3732 = vmatpush3.bf16.msra.mxu0 %v4022_v57  ;;  %2972 = vmatmul.mubr.bf16.gmra.mrb[12].mxu1 %v4024_v59  ;;  %v4091_v57 = vld [vmem:[%s5098_s0 + $0x34] ss:$72 sps:$4 sm:$0xff]  }
 0x12a   : > { %3760 = vmatpush3.bf16.msra.mxu1 %v4023_v58  ;;  %3733 = vmatprep.subr.bf16.mxu0 %v4025_v60  ;;  %v4092_v58 = vld [vmem:[%s5098_s0 + $0x38] ss:$72 sps:$4 sm:$0xff]   ;;  %v4094_v59 = vld [vmem:[%s5098_s0 + $0x3c] ss:$72 sps:$4 sm:$0xff]  }
 0x12b   : > { %3761 = vmatprep.subr.bf16.mxu1 %v4026_v61  ;;  %3012 = vmatprep.mubr.bf16.mxu0 %v4047_v17  ;;  %v4095_v60 = vld [vmem:[%s4822_s9 + $0x440] sm:$0xff]   ;;  %v4116_v17 = vld [vmem:[%s4822_s9 + $0x438] sm:$0xff]  }
 0x12c   : > { %3061 = vmatprep.mubr.bf16.mxu1 %v4050_v19  ;;  %v4096_v61 = vld [vmem:[%s4822_s9 + $0x400] sm:$0xff]   ;;  %v4120_v19 = vld [vmem:[%s5098_s0 + $0xd0] ss:$72 sps:$4 sm:$0xff]  }
 0x12d   : > { %3734 = vmatpush3.bf16.msra.mxu0 %v4027_v62  ;;  %v4097_v62 = vld [vmem:[%s4822_s9 + $0x448] sm:$0xff]  }
 0x12e   : > { %3762 = vmatpush3.bf16.msra.mxu1 %v4028_v63  ;;  %3735 = vmatprep.subr.bf16.mxu0 %v4029_v0  ;;  %v4098_v63 = vld [vmem:[%s4822_s9 + $0x408] sm:$0xff]  }
 0x12f   : > { %3763 = vmatprep.subr.bf16.mxu1 %v4030_v1  ;;  %v4099_v0 = vld [vmem:[%s5098_s0 + $0xc4] ss:$72 sps:$4 sm:$0xff]   ;;  %v4101_v1 = vld [vmem:[%s5098_s0 + $0xc0] ss:$72 sps:$4 sm:$0xff]  }
 0x131   : > { %3736 = vmatpush3.bf16.msra.mxu0 %v4031_v2  ;;  %v4102_v2 = vld [vmem:[%s4822_s9 + $0x450] sm:$0xff]  }
 0x132   : > { %3764 = vmatpush3.bf16.msra.mxu1 %v4032_v3  ;;  %3737 = vmatprep.subr.bf16.mxu0 %v4033_v4  ;;  %v4103_v3 = vld [vmem:[%s5098_s0 + $0xcc] ss:$72 sps:$4 sm:$0xff]  }
 0x133   : > { %3765 = vmatprep.subr.bf16.mxu1 %v4034_v5  ;;  %v4105_v4 = vld [vmem:[%s4822_s9 + $0x410] sm:$0xff]  }
 0x134   : > { %v4106_v5 = vld [vmem:[%s5098_s0 + $0xc8] ss:$72 sps:$4 sm:$0xff]  }
 0x135   : > { %3738 = vmatpush3.bf16.msra.mxu0 %v4035_v6  ;;  %v4107_v6 = vld [vmem:[%s4822_s9 + $0x458] sm:$0xff]  }
 0x136   : > { %3766 = vmatpush3.bf16.msra.mxu1 %v4036_v7  ;;  %3739 = vmatprep.subr.bf16.mxu0 %v4037_v8  ;;  %v4108_v7 = vld [vmem:[%s4822_s9 + $0x418] sm:$0xff]   ;;  %v4109_v8 = vld [vmem:[%s4822_s9 + $0x460] sm:$0xff]  }
 0x137   : > { %3767 = vmatprep.subr.bf16.mxu1 %v4038_v9  ;;  %v4110_v9 = vld [vmem:[%s4822_s9 + $0x420] sm:$0xff]  }
 0x139   : > { %3740 = vmatpush3.bf16.msra.mxu0 %v4039_v10  ;;  %v4111_v10 = vld [vmem:[%s4822_s9 + $0x468] sm:$0xff]  }
 0x13a   : > { %3768 = vmatpush3.bf16.msra.mxu1 %v4040_v11  ;;  %3741 = vmatprep.subr.bf16.mxu0 %v4041_v12  ;;  %v4112_v11 = vld [vmem:[%s4822_s9 + $0x428] sm:$0xff]  }
 0x13b   : > { %3769 = vmatprep.subr.bf16.mxu1 %v4042_v13  ;;  %v4119_v12 = vld [vmem:[%s5098_s0 + $0x44] ss:$72 sps:$4 sm:$0xff]   ;;  %v4113_v13 = vld [vmem:[%s4822_s9 + $0x470] sm:$0xff]  }
 0x13d   : > { %3742 = vmatpush3.bf16.msra.mxu0 %v4043_v14  ;;  %v4122_v14 = vld [vmem:[%s5098_s0 + $0xd4] ss:$72 sps:$4 sm:$0xff]  }
 0x13e   : > { %3770 = vmatpush3.bf16.msra.mxu1 %v4044_v15  ;;  %3783 = vmatprep.subr.bf16.mxu0 %v4051_v20  ;;  %v4114_v15 = vld [vmem:[%s4822_s9 + $0x430] sm:$0xff]  }
 0x13f   : > { %3811 = vmatprep.subr.bf16.mxu1 %v4052_v21 }
 0x140   : > { %3013 = vmatmul.mubr.bf16.vlgmr.msra.gmra.mrb[16].mxu0 %v4045_v16  ;;  %v4115_v16 = vld [vmem:[%s4822_s9 + $0x478] sm:$0xff]   ;;  %s1406_s9 = scalar_lea.vmem %s5100_s2, %s1405_s10 }
 0x141   : > { %3062 = vmatmul.mubr.bf16.vlgmr.msra.gmra.mrb[16].mxu1 %v4048_v18  ;;  %3784 = vmatpush3.bf16.msra.mxu0 %v4053_v22  ;;  %v4117_v18 = vld [vmem:[%s5098_s0 + $0x40] ss:$72 sps:$4 sm:$0xff]  }
 0x142   : > { %3812 = vmatpush3.bf16.msra.mxu1 %v4054_v23  ;;  %3785 = vmatprep.subr.bf16.mxu0 %v4055_v24  ;;  %v3411_v22 = vld [vmem:[%s1406_s9] ss:$0 sm:$0xff] }
 0x143   : > { %3813 = vmatprep.subr.bf16.mxu1 %v4056_v25  ;;  %3020 = vmatprep.mubr.bf16.mxu0 %v4059_v28 }
 0x144   : > { %3069 = vmatprep.mubr.bf16.mxu1 %v4064_v32 }
 0x145   : > { %3786 = vmatpush3.bf16.msra.mxu0 %v4057_v26 }
 0x146   : > { %3814 = vmatpush3.bf16.msra.mxu1 %v4058_v27  ;;  %3787 = vmatprep.subr.bf16.mxu0 %v4062_v30 }
 0x147   : > { %3815 = vmatprep.subr.bf16.mxu1 %v4063_v31 }
 0x148   : > { %3021 = vmatmul.mubr.bf16.gmra.mrb[20].mxu0 %v4061_v29 }
 0x149   : > { %3788 = vmatpush3.bf16.msra.mxu0 %v4066_v33  ;;  %3070 = vmatmul.mubr.bf16.gmra.mrb[20].mxu1 %v4068_v35 }
 0x14a   : > { %3816 = vmatpush3.bf16.msra.mxu1 %v4067_v34  ;;  %3789 = vmatprep.subr.bf16.mxu0 %v4069_v36 }
 0x14b   : > { %3817 = vmatprep.subr.bf16.mxu1 %v4070_v37  ;;  %3110 = vmatprep.mubr.bf16.mxu0 %v4091_v57 }
 0x14c   : > { %3159 = vmatprep.mubr.bf16.mxu1 %v4094_v59 }
 0x14d   : > { %3790 = vmatpush3.bf16.msra.mxu0 %v4071_v38 }
 0x14e   : > { %3818 = vmatpush3.bf16.msra.mxu1 %v4072_v39  ;;  %3791 = vmatprep.subr.bf16.mxu0 %v4073_v40 }
 0x14f   : > { %3819 = vmatprep.subr.bf16.mxu1 %v4074_v41 }
 0x151   : > { %3792 = vmatpush3.bf16.msra.mxu0 %v4075_v42 }
 0x152   : > { %3820 = vmatpush3.bf16.msra.mxu1 %v4076_v43  ;;  %3793 = vmatprep.subr.bf16.mxu0 %v4077_v44 }
 0x153   : > { %3821 = vmatprep.subr.bf16.mxu1 %v4078_v45 }
 0x155   : > { %3794 = vmatpush3.bf16.msra.mxu0 %v4079_v46 }
 0x156   : > { %3822 = vmatpush3.bf16.msra.mxu1 %v4080_v47  ;;  %3795 = vmatprep.subr.bf16.mxu0 %v4081_v48 }
 0x157   : > { %3823 = vmatprep.subr.bf16.mxu1 %v4082_v49 }
 0x159   : > { %3796 = vmatpush3.bf16.msra.mxu0 %v4083_v50 }
 0x15a   : > { %3824 = vmatpush3.bf16.msra.mxu1 %v4084_v51  ;;  %3797 = vmatprep.subr.bf16.mxu0 %v4085_v52 }
 0x15b   : > { %3825 = vmatprep.subr.bf16.mxu1 %v4086_v53 }
 0x15d   : > { %3798 = vmatpush3.bf16.msra.mxu0 %v4087_v54 }
 0x15e   : > { %3826 = vmatpush3.bf16.msra.mxu1 %v4088_v55  ;;  %3839 = vmatprep.subr.bf16.mxu0 %v4095_v60 }
 0x15f   : > { %3867 = vmatprep.subr.bf16.mxu1 %v4095_v60 }
 0x160   : > { %3111 = vmatmul.mubr.bf16.vlgmr.msra.gmra.mrb[24].mxu0 %v4089_v56 }
 0x161   : > { %3160 = vmatmul.mubr.bf16.vlgmr.msra.gmra.mrb[24].mxu1 %v4092_v58  ;;  %3840 = vmatpush3.bf16.msra.mxu0 %v4096_v61 }
 0x162   : > { %3875 = vmatpush3.bf16.msra.mxu1 %v4096_v61  ;;  %3841 = vmatprep.subr.bf16.mxu0 %v4097_v62 }
 0x163   : > { %3868 = vmatprep.subr.bf16.mxu1 %v4097_v62  ;;  %3118 = vmatprep.mubr.bf16.mxu0 %v4099_v0 }
 0x164   : > { %3167 = vmatprep.mubr.bf16.mxu1 %v4103_v3 }
 0x165   : > { %3842 = vmatpush3.bf16.msra.mxu0 %v4098_v63 }
 0x166   : > { %3876 = vmatpush3.bf16.msra.mxu1 %v4098_v63  ;;  %3843 = vmatprep.subr.bf16.mxu0 %v4102_v2 }
 0x167   : > { %3869 = vmatprep.subr.bf16.mxu1 %v4102_v2 }
 0x168   : > { %3119 = vmatmul.mubr.bf16.gmra.mrb[28].mxu0 %v4101_v1 }
 0x169   : > { %3844 = vmatpush3.bf16.msra.mxu0 %v4105_v4  ;;  %3168 = vmatmul.mubr.bf16.gmra.mrb[28].mxu1 %v4106_v5 }
 0x16a   : > { %3877 = vmatpush3.bf16.msra.mxu1 %v4105_v4  ;;  %3845 = vmatprep.subr.bf16.mxu0 %v4107_v6 }
 0x16b   : > { %3870 = vmatprep.subr.bf16.mxu1 %v4107_v6  ;;  %3208 = vmatprep.mubr.bf16.mxu0 %v4119_v12 }
 0x16c   : > { %3216 = vmatprep.mubr.bf16.mxu1 %v4122_v14 }
 0x16d   : > { %3846 = vmatpush3.bf16.msra.mxu0 %v4108_v7 }
 0x16e   : > { %3878 = vmatpush3.bf16.msra.mxu1 %v4108_v7  ;;  %3847 = vmatprep.subr.bf16.mxu0 %v4109_v8 }
 0x16f   : > { %3871 = vmatprep.subr.bf16.mxu1 %v4109_v8 }
 0x171   : > { %3848 = vmatpush3.bf16.msra.mxu0 %v4110_v9 }
 0x172   : > { %3879 = vmatpush3.bf16.msra.mxu1 %v4110_v9  ;;  %3849 = vmatprep.subr.bf16.mxu0 %v4111_v10 }
 0x173   : > { %3872 = vmatprep.subr.bf16.mxu1 %v4111_v10 }
 0x175   : > { %3850 = vmatpush3.bf16.msra.mxu0 %v4112_v11 }
 0x176   : > { %3880 = vmatpush3.bf16.msra.mxu1 %v4112_v11  ;;  %3851 = vmatprep.subr.bf16.mxu0 %v4113_v13 }
 0x177   : > { %3873 = vmatprep.subr.bf16.mxu1 %v4113_v13 }
 0x179   : > { %3852 = vmatpush3.bf16.msra.mxu0 %v4114_v15 }
 0x17a   : > { %3881 = vmatpush3.bf16.msra.mxu1 %v4114_v15  ;;  %3853 = vmatprep.subr.bf16.mxu0 %v4115_v16 }
 0x17b   : > { %3874 = vmatprep.subr.bf16.mxu1 %v4115_v16 }
 0x17d   : > { %3854 = vmatpush3.bf16.msra.mxu0 %v4116_v17 }
 0x17e   : > { %3882 = vmatpush3.bf16.msra.mxu1 %v4116_v17 }
 0x180   : > { %3209 = vmatmul.mubr.bf16.vlgmr.msra.gmra.mrb[32].mxu0 %v4117_v18 }
 0x181   : > { %3217 = vmatmul.mubr.bf16.vlgmr.msra.gmra.mrb[32].mxu1 %v4120_v19 }
 0x1d3   : > { %v3631_v20 = vpop.f32.mrb[0].mxu0 }
 0x1d4   : > { %v3659_v21 = vpop.f32.mrb[0].mxu1  ;;  %v3632_v23 = vpop.f32.mrb[1].mxu0 }
 0x1d5   : > { %v3633_v24 = vadd.f32 %v3632_v23, %v3631_v20  ;;  %v3660_v25 = vpop.f32.mrb[1].mxu1  ;;  %v3634_v26 = vpop.f32.mrb[2].mxu0 }
 0x1d6   : > { %v3661_v27 = vadd.f32 %v3660_v25, %v3659_v21  ;;  %v3662_v28 = vpop.f32.mrb[2].mxu1  ;;  %v3635_v29 = vpop.f32.mrb[3].mxu0 }
 0x1d7   : > { %v2819_v30 = vadd.f32 %v3633_v24, %v3411_v22  ;;  %v3636_v31 = vadd.f32 %v3635_v29, %v3634_v26  ;;  %v3663_v32 = vpop.f32.mrb[3].mxu1 }
 0x1d8   : > { %v3664_v33 = vadd.f32 %v3663_v32, %v3662_v28 }
 0x1d9   : > { %v2868_v34 = vadd.f32 %v3661_v27, %v2819_v30  ;;  %v2822_v35 = vadd.f32 %v3636_v31, %v3411_v22 }
 0x1db   : > { %v2871_v36 = vadd.f32 %v3664_v33, %v2822_v35  ;;  %v3637_v37 = vpop.f32.mrb[4].mxu0 }
 0x1dc   : > { %v3638_v38 = vpop.f32.mrb[5].mxu0  ;;  %v3665_v44 = vpop.f32.mrb[4].mxu1 }
 0x1dd   : > { %v3639_v39 = vadd.f32 %v3638_v38, %v3637_v37  ;;  %v3640_v40 = vpop.f32.mrb[6].mxu0  ;;  %v3666_v45 = vpop.f32.mrb[5].mxu1 }
 0x1de   : > { %v3641_v41 = vpop.f32.mrb[7].mxu0  ;;  %v3667_v47 = vadd.f32 %v3666_v45, %v3665_v44  ;;  %v3668_v48 = vpop.f32.mrb[6].mxu1 }
 0x1df   : > { %v3642_v42 = vadd.f32 %v3641_v41, %v3640_v40  ;;  %v2827_v43 = vadd.f32 %v3639_v39, %v3411_v22  ;;  %v3669_v49 = vpop.f32.mrb[7].mxu1 }
 0x1e0   : > { %v3670_v51 = vadd.f32 %v3669_v49, %v3668_v48 }
 0x1e1   : > { %v2830_v46 = vadd.f32 %v3642_v42, %v3411_v22  ;;  %v2876_v50 = vadd.f32 %v3667_v47, %v2827_v43 }
 0x1e3   : > { %v2879_v52 = vadd.f32 %v3670_v51, %v2830_v46 }
 0x1f3   : > { %v3687_v53 = vpop.f32.mrb[8].mxu0 }
 0x1f4   : > { %v3715_v54 = vpop.f32.mrb[8].mxu1  ;;  %v3688_v55 = vpop.f32.mrb[9].mxu0 }
 0x1f5   : > { %v3689_v56 = vadd.f32 %v3688_v55, %v3687_v53  ;;  %v3716_v57 = vpop.f32.mrb[9].mxu1  ;;  %v3690_v58 = vpop.f32.mrb[10].mxu0 }
 0x1f6   : > { %v3717_v59 = vadd.f32 %v3716_v57, %v3715_v54  ;;  %v3718_v60 = vpop.f32.mrb[10].mxu1  ;;  %v3691_v61 = vpop.f32.mrb[11].mxu0 }
 0x1f7   : > { %v2917_v62 = vadd.f32 %v3689_v56, %v2868_v34  ;;  %v3692_v63 = vadd.f32 %v3691_v61, %v3690_v58  ;;  %v3719_v0 = vpop.f32.mrb[11].mxu1 }
 0x1f8   : > { %v3720_v1 = vadd.f32 %v3719_v0, %v3718_v60 }
 0x1f9   : > { %v2966_v2 = vadd.f32 %v3717_v59, %v2917_v62  ;;  %v2920_v3 = vadd.f32 %v3692_v63, %v2871_v36 }
 0x1fb   : > { %v2969_v4 = vadd.f32 %v3720_v1, %v2920_v3  ;;  %v3693_v5 = vpop.f32.mrb[12].mxu0 }
 0x1fc   : > { %v3694_v6 = vpop.f32.mrb[13].mxu0  ;;  %v3721_v12 = vpop.f32.mrb[12].mxu1 }
 0x1fd   : > { %v3695_v7 = vadd.f32 %v3694_v6, %v3693_v5  ;;  %v3696_v8 = vpop.f32.mrb[14].mxu0  ;;  %v3722_v14 = vpop.f32.mrb[13].mxu1 }
 0x1fe   : > { %v3697_v9 = vpop.f32.mrb[15].mxu0  ;;  %v3723_v15 = vadd.f32 %v3722_v14, %v3721_v12  ;;  %v3724_v16 = vpop.f32.mrb[14].mxu1 }
 0x1ff   : > { %v2925_v10 = vadd.f32 %v3695_v7, %v2876_v50  ;;  %v3698_v11 = vadd.f32 %v3697_v9, %v3696_v8  ;;  %v3725_v17 = vpop.f32.mrb[15].mxu1 }
 0x200   : > { %v3726_v19 = vadd.f32 %v3725_v17, %v3724_v16 }
 0x201   : > { %v2928_v13 = vadd.f32 %v3698_v11, %v2879_v52  ;;  %v2974_v18 = vadd.f32 %v3723_v15, %v2925_v10 }
 0x203   : > { %v2977_v20 = vadd.f32 %v3726_v19, %v2928_v13 }
 0x213   : > { %v3743_v21 = vpop.f32.mrb[16].mxu0 }
 0x214   : > { %v3744_v22 = vpop.f32.mrb[17].mxu0  ;;  %v3771_v23 = vpop.f32.mrb[16].mxu1 }
 0x215   : > { %v3745_v24 = vadd.f32 %v3744_v22, %v3743_v21  ;;  %v3746_v25 = vpop.f32.mrb[18].mxu0  ;;  %v3772_v26 = vpop.f32.mrb[17].mxu1 }
 0x216   : > { %v3747_v27 = vpop.f32.mrb[19].mxu0  ;;  %v3773_v29 = vadd.f32 %v3772_v26, %v3771_v23  ;;  %v3774_v30 = vpop.f32.mrb[18].mxu1 }
 0x217   : > { %v3015_v28 = vadd.f32 %v3745_v24, %v2966_v2  ;;  %v3748_v31 = vadd.f32 %v3747_v27, %v3746_v25  ;;  %v3775_v32 = vpop.f32.mrb[19].mxu1 }
 0x218   : > { %v3776_v35 = vadd.f32 %v3775_v32, %v3774_v30 }
 0x219   : > { %v3064_v33 = vadd.f32 %v3773_v29, %v3015_v28  ;;  %v3018_v34 = vadd.f32 %v3748_v31, %v2969_v4 }
 0x21b   : > { %v3067_v36 = vadd.f32 %v3776_v35, %v3018_v34  ;;  %v3749_v37 = vpop.f32.mrb[20].mxu0 }
 0x21c   : > { %v3750_v38 = vpop.f32.mrb[21].mxu0  ;;  %v3777_v44 = vpop.f32.mrb[20].mxu1 }
 0x21d   : > { %v3751_v39 = vadd.f32 %v3750_v38, %v3749_v37  ;;  %v3752_v40 = vpop.f32.mrb[22].mxu0  ;;  %v3778_v46 = vpop.f32.mrb[21].mxu1 }
 0x21e   : > { %v3753_v41 = vpop.f32.mrb[23].mxu0  ;;  %v3779_v47 = vadd.f32 %v3778_v46, %v3777_v44  ;;  %v3780_v48 = vpop.f32.mrb[22].mxu1 }
 0x21f   : > { %v3023_v42 = vadd.f32 %v3751_v39, %v2974_v18  ;;  %v3754_v43 = vadd.f32 %v3753_v41, %v3752_v40  ;;  %v3781_v49 = vpop.f32.mrb[23].mxu1 }
 0x220   : > { %v3782_v51 = vadd.f32 %v3781_v49, %v3780_v48 }
 0x221   : > { %v3026_v45 = vadd.f32 %v3754_v43, %v2977_v20  ;;  %v3072_v50 = vadd.f32 %v3779_v47, %v3023_v42 }
 0x223   : > { %v3075_v52 = vadd.f32 %v3782_v51, %v3026_v45 }
 0x233   : > { %v3799_v53 = vpop.f32.mrb[24].mxu0 }
 0x234   : > { %v3827_v54 = vpop.f32.mrb[24].mxu1  ;;  %v3800_v55 = vpop.f32.mrb[25].mxu0 }
 0x235   : > { %v3801_v56 = vadd.f32 %v3800_v55, %v3799_v53  ;;  %v3828_v57 = vpop.f32.mrb[25].mxu1  ;;  %v3802_v58 = vpop.f32.mrb[26].mxu0 }
 0x236   : > { %v3829_v59 = vadd.f32 %v3828_v57, %v3827_v54  ;;  %v3830_v60 = vpop.f32.mrb[26].mxu1  ;;  %v3803_v61 = vpop.f32.mrb[27].mxu0 }
 0x237   : > { %v3113_v62 = vadd.f32 %v3801_v56, %v3064_v33  ;;  %v3804_v63 = vadd.f32 %v3803_v61, %v3802_v58  ;;  %v3831_v0 = vpop.f32.mrb[27].mxu1 }
 0x238   : > { %v3832_v1 = vadd.f32 %v3831_v0, %v3830_v60 }
 0x239   : > { %v3162_v2 = vadd.f32 %v3829_v59, %v3113_v62  ;;  %v3116_v3 = vadd.f32 %v3804_v63, %v3067_v36 }
 0x23b   : > { %v3165_v4 = vadd.f32 %v3832_v1, %v3116_v3  ;;  %v3805_v5 = vpop.f32.mrb[28].mxu0 }
 0x23c   : > { %v3806_v6 = vpop.f32.mrb[29].mxu0  ;;  %v3833_v9 = vpop.f32.mrb[28].mxu1 }
 0x23d   : > { %v3807_v7 = vadd.f32 %v3806_v6, %v3805_v5  ;;  %v3808_v8 = vpop.f32.mrb[30].mxu0  ;;  %v3834_v11 = vpop.f32.mrb[29].mxu1 }
 0x23e   : > { %v3809_v10 = vpop.f32.mrb[31].mxu0  ;;  %v3835_v14 = vadd.f32 %v3834_v11, %v3833_v9  ;;  %v3836_v15 = vpop.f32.mrb[30].mxu1 }
 0x23f   : > { %v3121_v12 = vadd.f32 %v3807_v7, %v3072_v50  ;;  %v3810_v13 = vadd.f32 %v3809_v10, %v3808_v8  ;;  %v3837_v16 = vpop.f32.mrb[31].mxu1 }
 0x240   : > { %v3838_v19 = vadd.f32 %v3837_v16, %v3836_v15 }
 0x241   : > { %v3124_v17 = vadd.f32 %v3810_v13, %v3075_v52  ;;  %v3170_v18 = vadd.f32 %v3835_v14, %v3121_v12 }
 0x243   : > { %v3173_v20 = vadd.f32 %v3838_v19, %v3124_v17 }
 0x253   : > { %v3855_v21 = vpop.f32.mrb[32].mxu0 }
 0x254   : > { %v3861_v22 = vpop.f32.mrb[32].mxu1  ;;  %v3856_v23 = vpop.f32.mrb[33].mxu0 }
 0x255   : > { %v3857_v24 = vadd.f32 %v3856_v23, %v3855_v21  ;;  %v3862_v25 = vpop.f32.mrb[33].mxu1  ;;  %v3858_v26 = vpop.f32.mrb[34].mxu0 }
 0x256   : > { %v3863_v27 = vadd.f32 %v3862_v25, %v3861_v22  ;;  %v3864_v28 = vpop.f32.mrb[34].mxu1  ;;  %v3859_v29 = vpop.f32.mrb[35].mxu0 }
 0x257   : > { %v3211_v30 = vadd.f32 %v3857_v24, %v3162_v2  ;;  %v3860_v31 = vadd.f32 %v3859_v29, %v3858_v26  ;;  %v3865_v32 = vpop.f32.mrb[35].mxu1 }
 0x258   : > { %v3219_v33 = vadd.f32 %v3863_v27, %v3170_v18  ;;  %v3866_v34 = vadd.f32 %v3865_v32, %v3864_v28 }
 0x259   : > { %v3214_v35 = vadd.f32 %v3860_v31, %v3165_v4  ;;  %v3225_v37 = vmax.f32 %v3211_v30, 0.0 }
 0x25a   : > { %v3222_v36 = vadd.f32 %v3866_v34, %v3173_v20  ;;  %v3227_v39 = vmax.f32 %v3219_v33, 0.0  ;;  %3255 = sbr.rel (!%p4218_p6) target bundleno = 618 (0x26a), region = 77 }
 0x25b   : > { %v3226_v38 = vmax.f32 %v3214_v35, 0.0 }
 0x25c   : > { %v3228_v40 = vmax.f32 %v3222_v36, 0.0 }
 0x25d   : > { %v3607_v41 = vpack.c.bf16 %v3226_v38, %v3225_v37 }
 0x25e   : > { %v3612_v42 = vpack.c.bf16 %v3228_v40, %v3227_v39 }
 0x25f   : > { %3608 = vst [vmem:[%s1396_s20] sm:$0xff] %v3607_v41  }
 0x260   : > { %3614 = vst [vmem:[%s1396_s20 + $0x8] sm:$0xff] %v3612_v42  }
 0x266   : > { %v3276_v43 = vld [vmem:[%s1396_s20] sm:$0xf]  ;;  %v3278_v44 = vld [vmem:[%s1396_s20 + $0x4] sm:$0xf] }
 0x267   : > { %v3280_v45 = vld [vmem:[%s1396_s20 + $0x8] sm:$0xf]  ;;  %v3282_v46 = vld [vmem:[%s1396_s20 + $0xc] sm:$0xf]  ;;  %3277 = vst [vmem:[%s3260_s24] sm:$0xf] %v3276_v43 }
 0x268   : > { %3279 = vst [vmem:[%s3260_s24 + $0x8] sm:$0xf] %v3278_v44  ;;  %3281 = vst [vmem:[%s3260_s24 + $0x10] sm:$0xf] %v3280_v45 }
 0x269   : > { %3283 = vst [vmem:[%s3260_s24 + $0x18] sm:$0xf] %v3282_v46 }
 0x26a PF: > { %s13_s16 = sadd.s32 1, %s4161_s16   ;;  %s5103_s12 = smov %s4149_s13 }
 0x26b   : > { %p10_p12 = scmp.ge.s32.totalorder %s13_s16, 4   ;;  %s5104_s13 = smov %s4223_s22 }
 0x26c   : > { %s5105_s14 = smov %s4157_s15  ;;  %s5106_s15 = smov %s5108_s17 }
 0x26d   :  { %12 = sbr.rel (!%p10_p12) target bundleno = 3 (0x3), region = 155 }

// kernel: forward_fn.52
= control target key start
LH: loop header
LB: loop body
LE: loop exit
PB: predicated region body
PF: predicated region fallthrough
CT: control target
= control target key end

     0   :  { %s1571_s12 = smov 0   ;;  %s1573_s13 = smov 0   ;;  %s1883_s0 = inlined_call_operand.vmem [shape: bf16[32,512], index: 0, kind: input, shape index: {}]   ;;  %s1884_s1 = inlined_call_operand.vmem [shape: bf16[512,1024], index: 1, kind: input, shape index: {}]   ;;  %s1885_s2 = inlined_call_operand.vmem [shape: f32[1,1024], index: 2, kind: input, shape index: {}]   ;;  %s1886_s3 = inlined_call_operand.vmem [shape: bf16[32,1024], index: 3, kind: output, shape index: {}]  }
   0x1   :  { %s1575_s14 = smov 0   ;;  %s1577_s15 = smov 0  }
   0x2   :  { %s1579_s16 = smov 0  }
   0x3 LB: > { %s22_s17 = sadd.s32 1, %s1545_s15  ;;  %s1248_s18 = sadd.s32 4294967295, %s1549_s16   ;;  %s1549_s16 = sphi %s1579_s16, %s13_s16   ;;  %s1545_s15 = sphi %s1577_s15, %s1891_s15   ;;  %s1541_s14 = sphi %s1575_s14, %s1890_s14   ;;  %s1537_s13 = sphi %s1573_s13, %s1889_s13   ;;  %s1533_s12 = sphi %s1571_s12, %s1888_s12  }
   0x4   : > { %p23_p0 = scmp.ge.s32.totalorder %s22_s17, 4  ;;  %p65_p1 = scmp.ne.s32.totalorder %s1537_s13, %s1533_s12 }
   0x5   : > { %p66_p2 = scmp.eq.s32.totalorder %s1549_s16, 0  ;;  %p123_p4 = scmp.eq.s32.totalorder %s1248_s18, 3 }
   0x6   : > { %s1893_s17 = smov (%p23_p0, %s22_s17), 0  ;;  %s58_s20 = sadd.s32 1, %s1537_s13 }
   0x7   : > { %p67_p3 = por %p66_p2, %p65_p1  ;;  %s55_s19 = ssub.s32 %s1545_s15, %s1893_s17 }
   0x8   : > { %p56_p5 = scmp.eq.s32.totalorder %s55_s19, 0  ;;  %p1606_p6 = por %p123_p4, %p65_p1 }
   0x9   : > { %p1252_p7 = scmp.ge.s32.totalorder %s1549_s16, 4 }
   0xa   : > { %s1611_s22 = scalar_select %p56_p5, %s1537_s13, %s58_s20  }
   0xb   : > { %155 = sbr.rel (%p1252_p7) target bundleno = 86 (0x56), region = 20 }
  0x12   : > { %158 = sbr.rel (!%p67_p3) target bundleno = 86 (0x56), region = 24  ;;  %s160_s23 = sand.u32 (%p67_p3), 1, %s1537_s13  }
  0x13   : > { %s1341_s24 = sshll.u32 (%p67_p3), %s1545_s15, 3  ;;  %s1253_s25 = sshll.u32 (%p67_p3), %s160_s23, 9 }
  0x14   : > { %s1619_s28 = scalar_lea.vmem (%p67_p3), %s1884_s1, %s1341_s24  ;;  %s1624_s29 = scalar_lea.vmem (%p67_p3), [#allocation2], %s1253_s25 }
  0x15   : > { %v319_v0 = vld [vmem:[%s1619_s28] sm:$0xff] (%p67_p3) }
  0x16   : > { %v321_v1 = vld [vmem:[%s1619_s28 + $0x20] sm:$0xff] (%p67_p3)  ;;  %320 = vst [vmem:[%s1624_s29] sm:$0xff] (%p67_p3), %v319_v0 }
  0x17   : > { %v323_v2 = vld [vmem:[%s1619_s28 + $0x40] sm:$0xff] (%p67_p3)  ;;  %322 = vst [vmem:[%s1624_s29 + $0x8] sm:$0xff] (%p67_p3), %v321_v1 }
  0x18   : > { %324 = vst [vmem:[%s1624_s29 + $0x10] sm:$0xff] (%p67_p3), %v323_v2  ;;  %v325_v3 = vld [vmem:[%s1619_s28 + $0x60] sm:$0xff] (%p67_p3) }
  0x19   : > { %v327_v4 = vld [vmem:[%s1619_s28 + $0x80] sm:$0xff]  ;;  %326 = vst [vmem:[%s1624_s29 + $0x18] sm:$0xff] %v325_v3 }
  0x1a   : > { %v329_v5 = vld [vmem:[%s1619_s28 + $0xa0] sm:$0xff]  ;;  %328 = vst [vmem:[%s1624_s29 + $0x20] sm:$0xff] %v327_v4 }
  0x1b   : > { %330 = vst [vmem:[%s1624_s29 + $0x28] sm:$0xff] %v329_v5  ;;  %v331_v6 = vld [vmem:[%s1619_s28 + $0xc0] sm:$0xff] }
  0x1c   : > { %v333_v7 = vld [vmem:[%s1619_s28 + $0xe0] sm:$0xff]  ;;  %332 = vst [vmem:[%s1624_s29 + $0x30] sm:$0xff] %v331_v6 }
  0x1d   : > { %v335_v8 = vld [vmem:[%s1619_s28 + $0x100] sm:$0xff]  ;;  %334 = vst [vmem:[%s1624_s29 + $0x38] sm:$0xff] %v333_v7 }
  0x1e   : > { %336 = vst [vmem:[%s1624_s29 + $0x40] sm:$0xff] %v335_v8  ;;  %v337_v9 = vld [vmem:[%s1619_s28 + $0x120] sm:$0xff] }
  0x1f   : > { %v339_v10 = vld [vmem:[%s1619_s28 + $0x140] sm:$0xff]  ;;  %338 = vst [vmem:[%s1624_s29 + $0x48] sm:$0xff] %v337_v9 }
  0x20   : > { %v341_v11 = vld [vmem:[%s1619_s28 + $0x160] sm:$0xff]  ;;  %340 = vst [vmem:[%s1624_s29 + $0x50] sm:$0xff] %v339_v10 }
  0x21   : > { %342 = vst [vmem:[%s1624_s29 + $0x58] sm:$0xff] %v341_v11  ;;  %v343_v12 = vld [vmem:[%s1619_s28 + $0x180] sm:$0xff] }
  0x22   : > { %v345_v13 = vld [vmem:[%s1619_s28 + $0x1a0] sm:$0xff]  ;;  %344 = vst [vmem:[%s1624_s29 + $0x60] sm:$0xff] %v343_v12 }
  0x23   : > { %v347_v14 = vld [vmem:[%s1619_s28 + $0x1c0] sm:$0xff]  ;;  %346 = vst [vmem:[%s1624_s29 + $0x68] sm:$0xff] %v345_v13 }
  0x24   : > { %348 = vst [vmem:[%s1624_s29 + $0x70] sm:$0xff] %v347_v14  ;;  %v349_v15 = vld [vmem:[%s1619_s28 + $0x1e0] sm:$0xff] }
  0x25   : > { %v351_v16 = vld [vmem:[%s1619_s28 + $0x200] sm:$0xff]  ;;  %350 = vst [vmem:[%s1624_s29 + $0x78] sm:$0xff] %v349_v15 }
  0x26   : > { %v353_v17 = vld [vmem:[%s1619_s28 + $0x220] sm:$0xff]  ;;  %352 = vst [vmem:[%s1624_s29 + $0x80] sm:$0xff] %v351_v16 }
  0x27   : > { %354 = vst [vmem:[%s1624_s29 + $0x88] sm:$0xff] %v353_v17  ;;  %v355_v18 = vld [vmem:[%s1619_s28 + $0x240] sm:$0xff] }
  0x28   : > { %v357_v19 = vld [vmem:[%s1619_s28 + $0x260] sm:$0xff]  ;;  %356 = vst [vmem:[%s1624_s29 + $0x90] sm:$0xff] %v355_v18 }
  0x29   : > { %v359_v20 = vld [vmem:[%s1619_s28 + $0x280] sm:$0xff]  ;;  %358 = vst [vmem:[%s1624_s29 + $0x98] sm:$0xff] %v357_v19 }
  0x2a   : > { %360 = vst [vmem:[%s1624_s29 + $0xa0] sm:$0xff] %v359_v20  ;;  %v361_v21 = vld [vmem:[%s1619_s28 + $0x2a0] sm:$0xff] }
  0x2b   : > { %v363_v22 = vld [vmem:[%s1619_s28 + $0x2c0] sm:$0xff]  ;;  %362 = vst [vmem:[%s1624_s29 + $0xa8] sm:$0xff] %v361_v21 }
  0x2c   : > { %v365_v23 = vld [vmem:[%s1619_s28 + $0x2e0] sm:$0xff]  ;;  %364 = vst [vmem:[%s1624_s29 + $0xb0] sm:$0xff] %v363_v22 }
  0x2d   : > { %366 = vst [vmem:[%s1624_s29 + $0xb8] sm:$0xff] %v365_v23  ;;  %v367_v24 = vld [vmem:[%s1619_s28 + $0x300] sm:$0xff] }
  0x2e   : > { %v369_v25 = vld [vmem:[%s1619_s28 + $0x320] sm:$0xff]  ;;  %368 = vst [vmem:[%s1624_s29 + $0xc0] sm:$0xff] %v367_v24 }
  0x2f   : > { %v371_v26 = vld [vmem:[%s1619_s28 + $0x340] sm:$0xff]  ;;  %370 = vst [vmem:[%s1624_s29 + $0xc8] sm:$0xff] %v369_v25 }
  0x30   : > { %372 = vst [vmem:[%s1624_s29 + $0xd0] sm:$0xff] %v371_v26  ;;  %v373_v27 = vld [vmem:[%s1619_s28 + $0x360] sm:$0xff] }
  0x31   : > { %v375_v28 = vld [vmem:[%s1619_s28 + $0x380] sm:$0xff]  ;;  %374 = vst [vmem:[%s1624_s29 + $0xd8] sm:$0xff] %v373_v27 }
  0x32   : > { %v377_v29 = vld [vmem:[%s1619_s28 + $0x3a0] sm:$0xff]  ;;  %376 = vst [vmem:[%s1624_s29 + $0xe0] sm:$0xff] %v375_v28 }
  0x33   : > { %378 = vst [vmem:[%s1624_s29 + $0xe8] sm:$0xff] %v377_v29  ;;  %v379_v30 = vld [vmem:[%s1619_s28 + $0x3c0] sm:$0xff] }
  0x34   : > { %v381_v31 = vld [vmem:[%s1619_s28 + $0x3e0] sm:$0xff]  ;;  %380 = vst [vmem:[%s1624_s29 + $0xf0] sm:$0xff] %v379_v30 }
  0x35   : > { %v383_v32 = vld [vmem:[%s1619_s28 + $0x400] sm:$0xff]  ;;  %382 = vst [vmem:[%s1624_s29 + $0xf8] sm:$0xff] %v381_v31 }
  0x36   : > { %384 = vst [vmem:[%s1624_s29 + $0x100] sm:$0xff] %v383_v32  ;;  %v385_v33 = vld [vmem:[%s1619_s28 + $0x420] sm:$0xff] }
  0x37   : > { %v387_v34 = vld [vmem:[%s1619_s28 + $0x440] sm:$0xff]  ;;  %386 = vst [vmem:[%s1624_s29 + $0x108] sm:$0xff] %v385_v33 }
  0x38   : > { %v389_v35 = vld [vmem:[%s1619_s28 + $0x460] sm:$0xff]  ;;  %388 = vst [vmem:[%s1624_s29 + $0x110] sm:$0xff] %v387_v34 }
  0x39   : > { %390 = vst [vmem:[%s1624_s29 + $0x118] sm:$0xff] %v389_v35  ;;  %v391_v36 = vld [vmem:[%s1619_s28 + $0x480] sm:$0xff] }
  0x3a   : > { %v393_v37 = vld [vmem:[%s1619_s28 + $0x4a0] sm:$0xff]  ;;  %392 = vst [vmem:[%s1624_s29 + $0x120] sm:$0xff] %v391_v36 }
  0x3b   : > { %v395_v38 = vld [vmem:[%s1619_s28 + $0x4c0] sm:$0xff]  ;;  %394 = vst [vmem:[%s1624_s29 + $0x128] sm:$0xff] %v393_v37 }
  0x3c   : > { %396 = vst [vmem:[%s1624_s29 + $0x130] sm:$0xff] %v395_v38  ;;  %v397_v39 = vld [vmem:[%s1619_s28 + $0x4e0] sm:$0xff] }
  0x3d   : > { %v399_v40 = vld [vmem:[%s1619_s28 + $0x500] sm:$0xff]  ;;  %398 = vst [vmem:[%s1624_s29 + $0x138] sm:$0xff] %v397_v39 }
  0x3e   : > { %v401_v41 = vld [vmem:[%s1619_s28 + $0x520] sm:$0xff]  ;;  %400 = vst [vmem:[%s1624_s29 + $0x140] sm:$0xff] %v399_v40 }
  0x3f   : > { %402 = vst [vmem:[%s1624_s29 + $0x148] sm:$0xff] %v401_v41  ;;  %v403_v42 = vld [vmem:[%s1619_s28 + $0x540] sm:$0xff] }
  0x40   : > { %v405_v43 = vld [vmem:[%s1619_s28 + $0x560] sm:$0xff]  ;;  %404 = vst [vmem:[%s1624_s29 + $0x150] sm:$0xff] %v403_v42 }
  0x41   : > { %v407_v44 = vld [vmem:[%s1619_s28 + $0x580] sm:$0xff]  ;;  %406 = vst [vmem:[%s1624_s29 + $0x158] sm:$0xff] %v405_v43 }
  0x42   : > { %408 = vst [vmem:[%s1624_s29 + $0x160] sm:$0xff] %v407_v44  ;;  %v409_v45 = vld [vmem:[%s1619_s28 + $0x5a0] sm:$0xff] }
  0x43   : > { %v411_v46 = vld [vmem:[%s1619_s28 + $0x5c0] sm:$0xff]  ;;  %410 = vst [vmem:[%s1624_s29 + $0x168] sm:$0xff] %v409_v45 }
  0x44   : > { %v413_v47 = vld [vmem:[%s1619_s28 + $0x5e0] sm:$0xff]  ;;  %412 = vst [vmem:[%s1624_s29 + $0x170] sm:$0xff] %v411_v46 }
  0x45   : > { %414 = vst [vmem:[%s1624_s29 + $0x178] sm:$0xff] %v413_v47  ;;  %v415_v48 = vld [vmem:[%s1619_s28 + $0x600] sm:$0xff] }
  0x46   : > { %v417_v49 = vld [vmem:[%s1619_s28 + $0x620] sm:$0xff]  ;;  %416 = vst [vmem:[%s1624_s29 + $0x180] sm:$0xff] %v415_v48 }
  0x47   : > { %v419_v50 = vld [vmem:[%s1619_s28 + $0x640] sm:$0xff]  ;;  %418 = vst [vmem:[%s1624_s29 + $0x188] sm:$0xff] %v417_v49 }
  0x48   : > { %420 = vst [vmem:[%s1624_s29 + $0x190] sm:$0xff] %v419_v50  ;;  %v421_v51 = vld [vmem:[%s1619_s28 + $0x660] sm:$0xff] }
  0x49   : > { %v423_v52 = vld [vmem:[%s1619_s28 + $0x680] sm:$0xff]  ;;  %422 = vst [vmem:[%s1624_s29 + $0x198] sm:$0xff] %v421_v51 }
  0x4a   : > { %v425_v53 = vld [vmem:[%s1619_s28 + $0x6a0] sm:$0xff]  ;;  %424 = vst [vmem:[%s1624_s29 + $0x1a0] sm:$0xff] %v423_v52 }
  0x4b   : > { %426 = vst [vmem:[%s1624_s29 + $0x1a8] sm:$0xff] %v425_v53  ;;  %v427_v54 = vld [vmem:[%s1619_s28 + $0x6c0] sm:$0xff] }
  0x4c   : > { %v429_v55 = vld [vmem:[%s1619_s28 + $0x6e0] sm:$0xff]  ;;  %428 = vst [vmem:[%s1624_s29 + $0x1b0] sm:$0xff] %v427_v54 }
  0x4d   : > { %v431_v56 = vld [vmem:[%s1619_s28 + $0x700] sm:$0xff]  ;;  %430 = vst [vmem:[%s1624_s29 + $0x1b8] sm:$0xff] %v429_v55 }
  0x4e   : > { %432 = vst [vmem:[%s1624_s29 + $0x1c0] sm:$0xff] %v431_v56  ;;  %v433_v57 = vld [vmem:[%s1619_s28 + $0x720] sm:$0xff] }
  0x4f   : > { %v435_v58 = vld [vmem:[%s1619_s28 + $0x740] sm:$0xff]  ;;  %434 = vst [vmem:[%s1624_s29 + $0x1c8] sm:$0xff] %v433_v57 }
  0x50   : > { %v437_v59 = vld [vmem:[%s1619_s28 + $0x760] sm:$0xff]  ;;  %436 = vst [vmem:[%s1624_s29 + $0x1d0] sm:$0xff] %v435_v58 }
  0x51   : > { %438 = vst [vmem:[%s1624_s29 + $0x1d8] sm:$0xff] %v437_v59  ;;  %v439_v60 = vld [vmem:[%s1619_s28 + $0x780] sm:$0xff] }
  0x52   : > { %v441_v61 = vld [vmem:[%s1619_s28 + $0x7a0] sm:$0xff]  ;;  %440 = vst [vmem:[%s1624_s29 + $0x1e0] sm:$0xff] %v439_v60 }
  0x53   : > { %v443_v62 = vld [vmem:[%s1619_s28 + $0x7c0] sm:$0xff]  ;;  %442 = vst [vmem:[%s1624_s29 + $0x1e8] sm:$0xff] %v441_v61 }
  0x54   : > { %444 = vst [vmem:[%s1624_s29 + $0x1f0] sm:$0xff] %v443_v62  ;;  %v445_v63 = vld [vmem:[%s1619_s28 + $0x7e0] sm:$0xff] }
  0x55   : > { %446 = vst [vmem:[%s1624_s29 + $0x1f8] sm:$0xff] %v445_v63 }
  0x56 PF: > { %p1256_p8 = scmp.ge.s32.totalorder %s1549_s16, 1  ;;  %p459_p9 = scmp.lt.s32.totalorder %s1549_s16, 5 }
  0x58   : > { %p460_p10 = pnand %p1256_p8, %p459_p9 }
  0x59   : > { %s466_s30 = sand.u32 (!%p460_p10), 1, %s1533_s12   ;;  %v1501_v0 = vld [vmem:[%s1883_s0 + $0x4] ss:$16 sps:$4 sm:$0xff] (!%p460_p10)   ;;  %v1504_v1 = vld [vmem:[%s1883_s0 + $0xc] ss:$16 sps:$4 sm:$0xff] (!%p460_p10)  }
  0x5a   : > { %463 = sbr.rel (%p460_p10) target bundleno = 397 (0x18d), region = 66  ;;  %s1257_s4 = sshll.u32 (!%p460_p10), %s466_s30, 9  ;;  %989 = vmatprep.mubr.bf16.mxu1 (!%p460_p10), %v1501_v0  ;;  %1042 = vmatprep.mubr.bf16.mxu0 (!%p460_p10), %v1504_v1 }
  0x5b   : > { %s1762_s9 = scalar_lea.vmem (!%p460_p10), [#allocation2], %s1257_s4  ;;  %s1259_s4 = sshll.u32 (!%p460_p10), %s1541_s14, 1 }
  0x5c   : > { %v1403_v2 = vld [vmem:[%s1762_s9 + $0x4] ss:$8 sps:$4 sm:$0xff] (!%p460_p10)   ;;  %v1407_v4 = vld [vmem:[%s1762_s9] ss:$8 sps:$4 sm:$0xff] (!%p460_p10)   ;;  %v1409_v6 = vld [vmem:[%s1762_s9 + $0x14] ss:$8 sps:$4 sm:$0xff] (!%p460_p10)  }
  0x5d   : > { %v1405_v3 = vld [vmem:[%s1762_s9 + $0x104] ss:$8 sps:$4 sm:$0xff] (!%p460_p10)   ;;  %957 = vmatprep.subr.bf16.mxu1 (!%p460_p10), %v1403_v2  ;;  %v1408_v5 = vld [vmem:[%s1762_s9 + $0x100] ss:$8 sps:$4 sm:$0xff] (!%p460_p10)   ;;  %v1411_v7 = vld [vmem:[%s1762_s9 + $0x114] ss:$8 sps:$4 sm:$0xff] (!%p460_p10)  }
  0x5e   : > { %1010 = vmatprep.subr.bf16.mxu0 (!%p460_p10), %v1405_v3  ;;  %958 = vmatpush1.bf16.msra.mxu1 (!%p460_p10), %v1407_v4  ;;  %v1413_v8 = vld [vmem:[%s1762_s9 + $0x10] ss:$8 sps:$4 sm:$0xff] (!%p460_p10)   ;;  %v1415_v10 = vld [vmem:[%s1762_s9 + $0x24] ss:$8 sps:$4 sm:$0xff] (!%p460_p10)   ;;  %v1419_v12 = vld [vmem:[%s1762_s9 + $0x20] ss:$8 sps:$4 sm:$0xff] (!%p460_p10)  }
  0x5f   : > { %1011 = vmatpush1.bf16.msra.mxu0 (!%p460_p10), %v1408_v5  ;;  %959 = vmatprep.subr.bf16.mxu1 (!%p460_p10), %v1409_v6  ;;  %v1414_v9 = vld [vmem:[%s1762_s9 + $0x110] ss:$8 sps:$4 sm:$0xff] (!%p460_p10)   ;;  %v1417_v11 = vld [vmem:[%s1762_s9 + $0x124] ss:$8 sps:$4 sm:$0xff] (!%p460_p10)   ;;  %v1420_v13 = vld [vmem:[%s1762_s9 + $0x120] ss:$8 sps:$4 sm:$0xff] (!%p460_p10)  }
  0x60   : > { %1012 = vmatprep.subr.bf16.mxu0 (!%p460_p10), %v1411_v7  ;;  %v1421_v14 = vld [vmem:[%s1762_s9 + $0x34] ss:$8 sps:$4 sm:$0xff] (!%p460_p10)   ;;  %v1425_v16 = vld [vmem:[%s1762_s9 + $0x30] ss:$8 sps:$4 sm:$0xff] (!%p460_p10)   ;;  %v1427_v18 = vld [vmem:[%s1762_s9 + $0x44] ss:$8 sps:$4 sm:$0xff] (!%p460_p10)  }
  0x61   : > { %v1423_v15 = vld [vmem:[%s1762_s9 + $0x134] ss:$8 sps:$4 sm:$0xff]   ;;  %v1426_v17 = vld [vmem:[%s1762_s9 + $0x130] ss:$8 sps:$4 sm:$0xff]   ;;  %v1429_v19 = vld [vmem:[%s1762_s9 + $0x144] ss:$8 sps:$4 sm:$0xff]  }
  0x62   : > { %960 = vmatpush1.bf16.msra.mxu1 %v1413_v8  ;;  %v1431_v20 = vld [vmem:[%s1762_s9 + $0x40] ss:$8 sps:$4 sm:$0xff]   ;;  %v1433_v22 = vld [vmem:[%s1762_s9 + $0x54] ss:$8 sps:$4 sm:$0xff]   ;;  %v1437_v24 = vld [vmem:[%s1762_s9 + $0x50] ss:$8 sps:$4 sm:$0xff]   ;;  %v587_v8 = vlaneseq }
  0x63   : > { %1013 = vmatpush1.bf16.msra.mxu0 %v1414_v9  ;;  %961 = vmatprep.subr.bf16.mxu1 %v1415_v10  ;;  %v1432_v21 = vld [vmem:[%s1762_s9 + $0x140] ss:$8 sps:$4 sm:$0xff]   ;;  %v1435_v23 = vld [vmem:[%s1762_s9 + $0x154] ss:$8 sps:$4 sm:$0xff]   ;;  %v1438_v25 = vld [vmem:[%s1762_s9 + $0x150] ss:$8 sps:$4 sm:$0xff]  }
  0x64   : > { %1014 = vmatprep.subr.bf16.mxu0 %v1417_v11  ;;  %v1439_v26 = vld [vmem:[%s1762_s9 + $0x64] ss:$8 sps:$4 sm:$0xff]   ;;  %v1443_v28 = vld [vmem:[%s1762_s9 + $0x60] ss:$8 sps:$4 sm:$0xff]   ;;  %v1445_v30 = vld [vmem:[%s1762_s9 + $0x74] ss:$8 sps:$4 sm:$0xff]  }
  0x65   : > { %v1441_v27 = vld [vmem:[%s1762_s9 + $0x164] ss:$8 sps:$4 sm:$0xff]   ;;  %v1444_v29 = vld [vmem:[%s1762_s9 + $0x160] ss:$8 sps:$4 sm:$0xff]   ;;  %v1447_v31 = vld [vmem:[%s1762_s9 + $0x174] ss:$8 sps:$4 sm:$0xff]  }
  0x66   : > { %962 = vmatpush1.bf16.msra.mxu1 %v1419_v12  ;;  %v1449_v32 = vld [vmem:[%s1762_s9 + $0x70] ss:$8 sps:$4 sm:$0xff]   ;;  %v1451_v34 = vld [vmem:[%s1762_s9 + $0x84] ss:$8 sps:$4 sm:$0xff]   ;;  %v1455_v36 = vld [vmem:[%s1762_s9 + $0x80] ss:$8 sps:$4 sm:$0xff]  }
  0x67   : > { %1015 = vmatpush1.bf16.msra.mxu0 %v1420_v13  ;;  %963 = vmatprep.subr.bf16.mxu1 %v1421_v14  ;;  %v1450_v33 = vld [vmem:[%s1762_s9 + $0x170] ss:$8 sps:$4 sm:$0xff]   ;;  %v1453_v35 = vld [vmem:[%s1762_s9 + $0x184] ss:$8 sps:$4 sm:$0xff]   ;;  %v1456_v37 = vld [vmem:[%s1762_s9 + $0x180] ss:$8 sps:$4 sm:$0xff]  }
  0x68   : > { %1016 = vmatprep.subr.bf16.mxu0 %v1423_v15  ;;  %v1457_v38 = vld [vmem:[%s1762_s9 + $0x94] ss:$8 sps:$4 sm:$0xff]   ;;  %v1461_v40 = vld [vmem:[%s1762_s9 + $0x90] ss:$8 sps:$4 sm:$0xff]   ;;  %v1463_v42 = vld [vmem:[%s1762_s9 + $0xa4] ss:$8 sps:$4 sm:$0xff]  }
  0x69   : > { %v1459_v39 = vld [vmem:[%s1762_s9 + $0x194] ss:$8 sps:$4 sm:$0xff]   ;;  %v1462_v41 = vld [vmem:[%s1762_s9 + $0x190] ss:$8 sps:$4 sm:$0xff]   ;;  %v1465_v43 = vld [vmem:[%s1762_s9 + $0x1a4] ss:$8 sps:$4 sm:$0xff]  }
  0x6a   : > { %964 = vmatpush1.bf16.msra.mxu1 %v1425_v16  ;;  %v1467_v44 = vld [vmem:[%s1762_s9 + $0xa0] ss:$8 sps:$4 sm:$0xff]   ;;  %v1469_v46 = vld [vmem:[%s1762_s9 + $0xb4] ss:$8 sps:$4 sm:$0xff]   ;;  %v1473_v48 = vld [vmem:[%s1762_s9 + $0xb0] ss:$8 sps:$4 sm:$0xff]  }
  0x6b   : > { %1017 = vmatpush1.bf16.msra.mxu0 %v1426_v17  ;;  %965 = vmatprep.subr.bf16.mxu1 %v1427_v18  ;;  %v1468_v45 = vld [vmem:[%s1762_s9 + $0x1a0] ss:$8 sps:$4 sm:$0xff]   ;;  %v1471_v47 = vld [vmem:[%s1762_s9 + $0x1b4] ss:$8 sps:$4 sm:$0xff]   ;;  %v1474_v49 = vld [vmem:[%s1762_s9 + $0x1b0] ss:$8 sps:$4 sm:$0xff]  }
  0x6c   : > { %1018 = vmatprep.subr.bf16.mxu0 %v1429_v19  ;;  %v1475_v50 = vld [vmem:[%s1762_s9 + $0xc4] ss:$8 sps:$4 sm:$0xff]   ;;  %v1479_v52 = vld [vmem:[%s1762_s9 + $0xc0] ss:$8 sps:$4 sm:$0xff]   ;;  %v1481_v54 = vld [vmem:[%s1762_s9 + $0xd4] ss:$8 sps:$4 sm:$0xff]  }
  0x6d   : > { %v1477_v51 = vld [vmem:[%s1762_s9 + $0x1c4] ss:$8 sps:$4 sm:$0xff]   ;;  %v1480_v53 = vld [vmem:[%s1762_s9 + $0x1c0] ss:$8 sps:$4 sm:$0xff]   ;;  %v1483_v55 = vld [vmem:[%s1762_s9 + $0x1d4] ss:$8 sps:$4 sm:$0xff]  }
  0x6e   : > { %966 = vmatpush1.bf16.msra.mxu1 %v1431_v20  ;;  %v1485_v56 = vld [vmem:[%s1762_s9 + $0xd0] ss:$8 sps:$4 sm:$0xff]   ;;  %v1487_v58 = vld [vmem:[%s1762_s9 + $0xe4] ss:$8 sps:$4 sm:$0xff]   ;;  %v1491_v60 = vld [vmem:[%s1762_s9 + $0xe0] ss:$8 sps:$4 sm:$0xff]  }
  0x6f   : > { %1019 = vmatpush1.bf16.msra.mxu0 %v1432_v21  ;;  %967 = vmatprep.subr.bf16.mxu1 %v1433_v22  ;;  %v1486_v57 = vld [vmem:[%s1762_s9 + $0x1d0] ss:$8 sps:$4 sm:$0xff]   ;;  %v1489_v59 = vld [vmem:[%s1762_s9 + $0x1e4] ss:$8 sps:$4 sm:$0xff]   ;;  %v1492_v61 = vld [vmem:[%s1762_s9 + $0x1e0] ss:$8 sps:$4 sm:$0xff]  }
  0x70   : > { %1020 = vmatprep.subr.bf16.mxu0 %v1435_v23  ;;  %v1493_v62 = vld [vmem:[%s1762_s9 + $0xf4] ss:$8 sps:$4 sm:$0xff]   ;;  %v1497_v0 = vld [vmem:[%s1762_s9 + $0xf0] ss:$8 sps:$4 sm:$0xff]   ;;  %p507_p11 = scmp.lt.s32.totalorder %s1259_s4, 7  ;;  %v588_v9 = vshrl.u32 %v587_v8, 7 }
  0x71   : > { %v1495_v63 = vld [vmem:[%s1762_s9 + $0x1f4] ss:$8 sps:$4 sm:$0xff]   ;;  %v1498_v1 = vld [vmem:[%s1762_s9 + $0x1f0] ss:$8 sps:$4 sm:$0xff]   ;;  %s1258_s8 = sshll.u32 %s466_s30, 5  ;;  %s1346_s12 = sshll.u32 (%p1606_p6), %s1541_s14, 3 }
  0x72   : > { %968 = vmatpush1.bf16.msra.mxu1 %v1437_v24  ;;  %v1499_v2 = vld [vmem:[%s1883_s0] ss:$16 sps:$4 sm:$0xff]   ;;  %v1502_v3 = vld [vmem:[%s1883_s0 + $0x8] ss:$16 sps:$4 sm:$0xff]   ;;  %v1505_v4 = vld [vmem:[%s1883_s0 + $0x24] ss:$16 sps:$4 sm:$0xff]   ;;  %s1111_s11 = scalar_lea.vmem (%p1606_p6), %s1886_s3, %s1346_s12 }
  0x73   : > { %1021 = vmatpush1.bf16.msra.mxu0 %v1438_v25  ;;  %969 = vmatprep.subr.bf16.mxu1 %v1439_v26  ;;  %v1507_v5 = vld [vmem:[%s1883_s0 + $0x2c] ss:$16 sps:$4 sm:$0xff]   ;;  %v1509_v6 = vld [vmem:[%s1883_s0 + $0x20] ss:$16 sps:$4 sm:$0xff]   ;;  %v1510_v7 = vld [vmem:[%s1883_s0 + $0x28] ss:$16 sps:$4 sm:$0xff]  }
  0x74   : > { %1022 = vmatprep.subr.bf16.mxu0 %v1441_v27  ;;  %s1895_s4 = smov (!%p507_p11, %s1259_s4), 7  ;;  %v589_v10 = vsub.s32 0, %v588_v9  ;;  %v593_v12 = vsub.s32 1, %v588_v9  ;;  %s1852_s9 = scalar_lea.vmem [#allocation3], %s1258_s8 }
  0x75   : > { %s509_s7 = scalar_lea.vmem %s1885_s2, %s1895_s4 }
  0x76   : > { %970 = vmatpush1.bf16.msra.mxu1 %v1443_v28  ;;  %v585_v11 = vld [vmem:[%s509_s7] sm:$0x3] }
  0x77   : > { %1023 = vmatpush1.bf16.msra.mxu0 %v1444_v29  ;;  %971 = vmatprep.subr.bf16.mxu1 %v1445_v30  ;;  %v590_v13 = vrot.slane %v585_v11, %v589_v10  ;;  %v594_v14 = vrot.slane %v585_v11, %v593_v12 }
  0x78   : > { %1024 = vmatprep.subr.bf16.mxu0 %v1447_v31 }
  0x7a   : > { %972 = vmatpush1.bf16.msra.mxu1 %v1449_v32 }
  0x7b   : > { %1025 = vmatpush1.bf16.msra.mxu0 %v1450_v33  ;;  %973 = vmatprep.subr.bf16.mxu1 %v1451_v34 }
  0x7c   : > { %1026 = vmatprep.subr.bf16.mxu0 %v1453_v35 }
  0x7e   : > { %974 = vmatpush1.bf16.msra.mxu1 %v1455_v36 }
  0x7f   : > { %1027 = vmatpush1.bf16.msra.mxu0 %v1456_v37  ;;  %975 = vmatprep.subr.bf16.mxu1 %v1457_v38 }
  0x80   : > { %1028 = vmatprep.subr.bf16.mxu0 %v1459_v39 }
  0x82   : > { %976 = vmatpush1.bf16.msra.mxu1 %v1461_v40 }
  0x83   : > { %1029 = vmatpush1.bf16.msra.mxu0 %v1462_v41  ;;  %977 = vmatprep.subr.bf16.mxu1 %v1463_v42 }
  0x84   : > { %1030 = vmatprep.subr.bf16.mxu0 %v1465_v43 }
  0x86   : > { %978 = vmatpush1.bf16.msra.mxu1 %v1467_v44 }
  0x87   : > { %1031 = vmatpush1.bf16.msra.mxu0 %v1468_v45  ;;  %979 = vmatprep.subr.bf16.mxu1 %v1469_v46 }
  0x88   : > { %1032 = vmatprep.subr.bf16.mxu0 %v1471_v47 }
  0x8a   : > { %980 = vmatpush1.bf16.msra.mxu1 %v1473_v48 }
  0x8b   : > { %1033 = vmatpush1.bf16.msra.mxu0 %v1474_v49  ;;  %981 = vmatprep.subr.bf16.mxu1 %v1475_v50 }
  0x8c   : > { %1034 = vmatprep.subr.bf16.mxu0 %v1477_v51 }
  0x8e   : > { %982 = vmatpush1.bf16.msra.mxu1 %v1479_v52 }
  0x8f   : > { %1035 = vmatpush1.bf16.msra.mxu0 %v1480_v53  ;;  %983 = vmatprep.subr.bf16.mxu1 %v1481_v54 }
  0x90   : > { %1036 = vmatprep.subr.bf16.mxu0 %v1483_v55 }
  0x92   : > { %984 = vmatpush1.bf16.msra.mxu1 %v1485_v56 }
  0x93   : > { %1037 = vmatpush1.bf16.msra.mxu0 %v1486_v57  ;;  %985 = vmatprep.subr.bf16.mxu1 %v1487_v58 }
  0x94   : > { %1038 = vmatprep.subr.bf16.mxu0 %v1489_v59 }
  0x96   : > { %986 = vmatpush1.bf16.msra.mxu1 %v1491_v60 }
  0x97   : > { %1039 = vmatpush1.bf16.msra.mxu0 %v1492_v61  ;;  %987 = vmatprep.subr.bf16.mxu1 %v1493_v62 }
  0x98   : > { %1040 = vmatprep.subr.bf16.mxu0 %v1495_v63 }
  0x9a   : > { %988 = vmatpush1.bf16.msra.mxu1 %v1497_v0 }
  0x9b   : > { %1041 = vmatpush1.bf16.msra.mxu0 %v1498_v1 }
  0x9d   : > { %990 = vmatmul.mubr.bf16.vlgmr.msra.gmra.mrb[0].mxu1 %v1499_v2 }
  0x9e   : > { %1043 = vmatmul.mubr.bf16.vlgmr.msra.gmra.mrb[0].mxu0 %v1502_v3  ;;  %999 = vmatprep.mubr.bf16.mxu1 %v1505_v4 }
  0x9f   : > { %1052 = vmatprep.mubr.bf16.mxu0 %v1507_v5 }
  0xa5   : > { %1000 = vmatmul.mubr.bf16.gmra.mrb[4].mxu1 %v1509_v6 }
  0xa6   : > { %1053 = vmatmul.mubr.bf16.gmra.mrb[4].mxu0 %v1510_v7 }
 0x170   : > { %v991_v15 = vpop.f32.mrb[0].mxu1 }
 0x171   : > { %v1044_v16 = vpop.f32.mrb[0].mxu0  ;;  %v992_v17 = vadd.f32 %v991_v15, %v590_v13  ;;  %v993_v18 = vpop.f32.mrb[1].mxu1 }
 0x172   : > { %v1046_v19 = vpop.f32.mrb[1].mxu0  ;;  %v994_v20 = vadd.f32 %v993_v18, %v594_v14  ;;  %v995_v21 = vpop.f32.mrb[2].mxu1 }
 0x173   : > { %v1048_v22 = vpop.f32.mrb[2].mxu0  ;;  %v1045_v23 = vadd.f32 %v1044_v16, %v992_v17  ;;  %v996_v24 = vadd.f32 %v995_v21, %v590_v13  ;;  %v997_v25 = vpop.f32.mrb[3].mxu1 }
 0x174   : > { %v1050_v26 = vpop.f32.mrb[3].mxu0  ;;  %v1047_v27 = vadd.f32 %v1046_v19, %v994_v20  ;;  %v998_v28 = vadd.f32 %v997_v25, %v594_v14 }
 0x175   : > { %v1063_v29 = vmax.f32 %v1045_v23, 0.0  ;;  %v1049_v30 = vadd.f32 %v1048_v22, %v996_v24 }
 0x176   : > { %v1064_v31 = vmax.f32 %v1047_v27, 0.0  ;;  %v1051_v32 = vadd.f32 %v1050_v26, %v998_v28 }
 0x177   : > { %v1065_v33 = vmax.f32 %v1049_v30, 0.0 }
 0x178   : > { %v1342_v34 = vpack.c.bf16 %v1064_v31, %v1063_v29  ;;  %v1066_v35 = vmax.f32 %v1051_v32, 0.0  ;;  %v1001_v36 = vpop.f32.mrb[4].mxu1 }
 0x179   : > { %v1054_v37 = vpop.f32.mrb[4].mxu0  ;;  %v1002_v38 = vadd.f32 %v1001_v36, %v590_v13  ;;  %v1003_v39 = vpop.f32.mrb[5].mxu1 }
 0x17a   : > { %v1056_v40 = vpop.f32.mrb[5].mxu0  ;;  %1095 = vst [vmem:[%s1852_s9] sm:$0xff] %v1342_v34  ;;  %v1343_v41 = vpack.c.bf16 %v1066_v35, %v1065_v33  ;;  %v1004_v42 = vadd.f32 %v1003_v39, %v594_v14  ;;  %v1005_v43 = vpop.f32.mrb[6].mxu1 }
 0x17b   : > { %v1058_v44 = vpop.f32.mrb[6].mxu0  ;;  %v1055_v45 = vadd.f32 %v1054_v37, %v1002_v38  ;;  %v1006_v46 = vadd.f32 %v1005_v43, %v590_v13  ;;  %v1007_v47 = vpop.f32.mrb[7].mxu1 }
 0x17c   : > { %v1060_v48 = vpop.f32.mrb[7].mxu0  ;;  %1096 = vst [vmem:[%s1852_s9 + $0x8] sm:$0xff] %v1343_v41  ;;  %v1057_v49 = vadd.f32 %v1056_v40, %v1004_v42  ;;  %v1008_v50 = vadd.f32 %v1007_v47, %v594_v14 }
 0x17d   : > { %v1067_v51 = vmax.f32 %v1055_v45, 0.0  ;;  %v1059_v52 = vadd.f32 %v1058_v44, %v1006_v46 }
 0x17e   : > { %v1068_v53 = vmax.f32 %v1057_v49, 0.0  ;;  %v1061_v54 = vadd.f32 %v1060_v48, %v1008_v50  ;;  %1105 = sbr.rel (!%p1606_p6) target bundleno = 397 (0x18d), region = 74 }
 0x17f   : > { %v1069_v55 = vmax.f32 %v1059_v52, 0.0 }
 0x180   : > { %v1344_v56 = vpack.c.bf16 %v1068_v53, %v1067_v51  ;;  %v1070_v57 = vmax.f32 %v1061_v54, 0.0 }
 0x181   : > { %v1145_v59 = vld [vmem:[%s1852_s9] sm:$0xff] (%p1606_p6) }
 0x182   : > { %1097 = vst [vmem:[%s1852_s9 + $0x10] sm:$0xff] %v1344_v56  ;;  %v1345_v58 = vpack.c.bf16 %v1070_v57, %v1069_v55  ;;  %1146 = vst [vmem:[%s1111_s11] sm:$0xff] (%p1606_p6), %v1145_v59 }
 0x183   : > { %v1147_v60 = vld [vmem:[%s1852_s9 + $0x8] sm:$0xff] (%p1606_p6) }
 0x184   : > { %1098 = vst [vmem:[%s1852_s9 + $0x18] sm:$0xff] %v1345_v58  ;;  %1148 = vst [vmem:[%s1111_s11 + $0x20] sm:$0xff] (%p1606_p6), %v1147_v60 }
 0x189   : > { %v1149_v61 = vld [vmem:[%s1852_s9 + $0x10] sm:$0xff] }
 0x18a   : > { %1150 = vst [vmem:[%s1111_s11 + $0x40] sm:$0xff] %v1149_v61 }
 0x18b   : > { %v1151_v62 = vld [vmem:[%s1852_s9 + $0x18] sm:$0xff] }
 0x18c   : > { %1152 = vst [vmem:[%s1111_s11 + $0x60] sm:$0xff] %v1151_v62 }
 0x18d PF: > { %s13_s16 = sadd.s32 1, %s1549_s16   ;;  %s1888_s12 = smov %s1537_s13 }
 0x18e   : > { %p10_p12 = scmp.ge.s32.totalorder %s13_s16, 6   ;;  %s1889_s13 = smov %s1611_s22 }
 0x18f   : > { %s1890_s14 = smov %s1545_s15  ;;  %s1891_s15 = smov %s1893_s17 }
 0x190   :  { %12 = sbr.rel (!%p10_p12) target bundleno = 3 (0x3), region = 149 }

// kernel: forward_fn.53
= control target key start
LH: loop header
LB: loop body
LE: loop exit
PB: predicated region body
PF: predicated region fallthrough
CT: control target
= control target key end

     0   :  { %s1442_s12 = smov 0   ;;  %s1444_s13 = smov 0   ;;  %s1742_s0 = inlined_call_operand.vmem [shape: bf16[128,256], index: 0, kind: input, shape index: {}]   ;;  %s1743_s1 = inlined_call_operand.vmem [shape: bf16[256,512], index: 1, kind: input, shape index: {}]   ;;  %s1744_s2 = inlined_call_operand.vmem [shape: f32[1,512], index: 2, kind: input, shape index: {}]   ;;  %s1745_s3 = inlined_call_operand.vmem [shape: bf16[128,512], index: 3, kind: output, shape index: {}]  }
   0x1   :  { %s1446_s14 = smov 0   ;;  %s1448_s15 = smov 0  }
   0x2   :  { %s1450_s16 = smov 0  }
   0x3 LB: > { %s22_s17 = sadd.s32 1, %s1416_s15  ;;  %s1139_s18 = sadd.s32 4294967295, %s1420_s16   ;;  %s1420_s16 = sphi %s1450_s16, %s13_s16   ;;  %s1416_s15 = sphi %s1448_s15, %s1750_s15   ;;  %s1412_s14 = sphi %s1446_s14, %s1749_s14   ;;  %s1408_s13 = sphi %s1444_s13, %s1748_s13   ;;  %s1404_s12 = sphi %s1442_s12, %s1747_s12  }
   0x4   : > { %p23_p0 = scmp.ge.s32.totalorder %s22_s17, 2  ;;  %p65_p1 = scmp.ne.s32.totalorder %s1408_s13, %s1404_s12 }
   0x5   : > { %p66_p2 = scmp.eq.s32.totalorder %s1420_s16, 0  ;;  %p123_p4 = scmp.eq.s32.totalorder %s1139_s18, 1 }
   0x6   : > { %s1752_s17 = smov (%p23_p0, %s22_s17), 0  ;;  %s58_s20 = sadd.s32 1, %s1408_s13 }
   0x7   : > { %p67_p3 = por %p66_p2, %p65_p1  ;;  %s55_s19 = ssub.s32 %s1416_s15, %s1752_s17 }
   0x8   : > { %p56_p5 = scmp.eq.s32.totalorder %s55_s19, 0  ;;  %p1477_p6 = por %p123_p4, %p65_p1 }
   0x9   : > { %p1143_p7 = scmp.ge.s32.totalorder %s1420_s16, 2 }
   0xa   : > { %s1482_s22 = scalar_select %p56_p5, %s1408_s13, %s58_s20  }
   0xb   : > { %155 = sbr.rel (%p1143_p7) target bundleno = 38 (0x26), region = 20 }
  0x12   : > { %158 = sbr.rel (!%p67_p3) target bundleno = 38 (0x26), region = 24  ;;  %s160_s23 = sand.u32 (%p67_p3), 1, %s1408_s13  }
  0x13   : > { %s1220_s24 = sshll.u32 (%p67_p3), %s1416_s15, 3  ;;  %s1144_s25 = sshll.u32 (%p67_p3), %s160_s23, 8 }
  0x14   : > { %s1490_s28 = scalar_lea.vmem (%p67_p3), %s1743_s1, %s1220_s24  ;;  %s1495_s29 = scalar_lea.vmem (%p67_p3), [#allocation2], %s1144_s25 }
  0x15   : > { %v255_v0 = vld [vmem:[%s1490_s28] sm:$0xff] (%p67_p3)  ;;  %v257_v1 = vld [vmem:[%s1490_s28 + $0x10] sm:$0xff] (%p67_p3) }
  0x16   : > { %v259_v2 = vld [vmem:[%s1490_s28 + $0x20] sm:$0xff] (%p67_p3)  ;;  %256 = vst [vmem:[%s1495_s29] sm:$0xff] (%p67_p3), %v255_v0  ;;  %258 = vst [vmem:[%s1495_s29 + $0x8] sm:$0xff] (%p67_p3), %v257_v1  ;;  %v261_v3 = vld [vmem:[%s1490_s28 + $0x30] sm:$0xff] (%p67_p3) }
  0x17   : > { %260 = vst [vmem:[%s1495_s29 + $0x10] sm:$0xff] (%p67_p3), %v259_v2  ;;  %v263_v4 = vld [vmem:[%s1490_s28 + $0x40] sm:$0xff] (%p67_p3)  ;;  %v265_v5 = vld [vmem:[%s1490_s28 + $0x50] sm:$0xff] (%p67_p3)  ;;  %262 = vst [vmem:[%s1495_s29 + $0x18] sm:$0xff] (%p67_p3), %v261_v3 }
  0x18   : > { %264 = vst [vmem:[%s1495_s29 + $0x20] sm:$0xff] (%p67_p3), %v263_v4  ;;  %266 = vst [vmem:[%s1495_s29 + $0x28] sm:$0xff] (%p67_p3), %v265_v5  ;;  %v267_v6 = vld [vmem:[%s1490_s28 + $0x60] sm:$0xff] (%p67_p3)  ;;  %v269_v7 = vld [vmem:[%s1490_s28 + $0x70] sm:$0xff] (%p67_p3) }
  0x19   : > { %v271_v8 = vld [vmem:[%s1490_s28 + $0x80] sm:$0xff]  ;;  %268 = vst [vmem:[%s1495_s29 + $0x30] sm:$0xff] %v267_v6  ;;  %270 = vst [vmem:[%s1495_s29 + $0x38] sm:$0xff] %v269_v7  ;;  %v273_v9 = vld [vmem:[%s1490_s28 + $0x90] sm:$0xff] }
  0x1a   : > { %272 = vst [vmem:[%s1495_s29 + $0x40] sm:$0xff] %v271_v8  ;;  %v275_v10 = vld [vmem:[%s1490_s28 + $0xa0] sm:$0xff]  ;;  %v277_v11 = vld [vmem:[%s1490_s28 + $0xb0] sm:$0xff]  ;;  %274 = vst [vmem:[%s1495_s29 + $0x48] sm:$0xff] %v273_v9 }
  0x1b   : > { %276 = vst [vmem:[%s1495_s29 + $0x50] sm:$0xff] %v275_v10  ;;  %278 = vst [vmem:[%s1495_s29 + $0x58] sm:$0xff] %v277_v11  ;;  %v279_v12 = vld [vmem:[%s1490_s28 + $0xc0] sm:$0xff]  ;;  %v281_v13 = vld [vmem:[%s1490_s28 + $0xd0] sm:$0xff] }
  0x1c   : > { %v283_v14 = vld [vmem:[%s1490_s28 + $0xe0] sm:$0xff]  ;;  %280 = vst [vmem:[%s1495_s29 + $0x60] sm:$0xff] %v279_v12  ;;  %282 = vst [vmem:[%s1495_s29 + $0x68] sm:$0xff] %v281_v13  ;;  %v285_v15 = vld [vmem:[%s1490_s28 + $0xf0] sm:$0xff] }
  0x1d   : > { %284 = vst [vmem:[%s1495_s29 + $0x70] sm:$0xff] %v283_v14  ;;  %v287_v16 = vld [vmem:[%s1490_s28 + $0x100] sm:$0xff]  ;;  %v289_v17 = vld [vmem:[%s1490_s28 + $0x110] sm:$0xff]  ;;  %286 = vst [vmem:[%s1495_s29 + $0x78] sm:$0xff] %v285_v15 }
  0x1e   : > { %288 = vst [vmem:[%s1495_s29 + $0x80] sm:$0xff] %v287_v16  ;;  %290 = vst [vmem:[%s1495_s29 + $0x88] sm:$0xff] %v289_v17  ;;  %v291_v18 = vld [vmem:[%s1490_s28 + $0x120] sm:$0xff]  ;;  %v293_v19 = vld [vmem:[%s1490_s28 + $0x130] sm:$0xff] }
  0x1f   : > { %v295_v20 = vld [vmem:[%s1490_s28 + $0x140] sm:$0xff]  ;;  %292 = vst [vmem:[%s1495_s29 + $0x90] sm:$0xff] %v291_v18  ;;  %294 = vst [vmem:[%s1495_s29 + $0x98] sm:$0xff] %v293_v19  ;;  %v297_v21 = vld [vmem:[%s1490_s28 + $0x150] sm:$0xff] }
  0x20   : > { %296 = vst [vmem:[%s1495_s29 + $0xa0] sm:$0xff] %v295_v20  ;;  %v299_v22 = vld [vmem:[%s1490_s28 + $0x160] sm:$0xff]  ;;  %v301_v23 = vld [vmem:[%s1490_s28 + $0x170] sm:$0xff]  ;;  %298 = vst [vmem:[%s1495_s29 + $0xa8] sm:$0xff] %v297_v21 }
  0x21   : > { %300 = vst [vmem:[%s1495_s29 + $0xb0] sm:$0xff] %v299_v22  ;;  %302 = vst [vmem:[%s1495_s29 + $0xb8] sm:$0xff] %v301_v23  ;;  %v303_v24 = vld [vmem:[%s1490_s28 + $0x180] sm:$0xff]  ;;  %v305_v25 = vld [vmem:[%s1490_s28 + $0x190] sm:$0xff] }
  0x22   : > { %v307_v26 = vld [vmem:[%s1490_s28 + $0x1a0] sm:$0xff]  ;;  %304 = vst [vmem:[%s1495_s29 + $0xc0] sm:$0xff] %v303_v24  ;;  %306 = vst [vmem:[%s1495_s29 + $0xc8] sm:$0xff] %v305_v25  ;;  %v309_v27 = vld [vmem:[%s1490_s28 + $0x1b0] sm:$0xff] }
  0x23   : > { %308 = vst [vmem:[%s1495_s29 + $0xd0] sm:$0xff] %v307_v26  ;;  %v311_v28 = vld [vmem:[%s1490_s28 + $0x1c0] sm:$0xff]  ;;  %v313_v29 = vld [vmem:[%s1490_s28 + $0x1d0] sm:$0xff]  ;;  %310 = vst [vmem:[%s1495_s29 + $0xd8] sm:$0xff] %v309_v27 }
  0x24   : > { %312 = vst [vmem:[%s1495_s29 + $0xe0] sm:$0xff] %v311_v28  ;;  %314 = vst [vmem:[%s1495_s29 + $0xe8] sm:$0xff] %v313_v29  ;;  %v315_v30 = vld [vmem:[%s1490_s28 + $0x1e0] sm:$0xff]  ;;  %v317_v31 = vld [vmem:[%s1490_s28 + $0x1f0] sm:$0xff] }
  0x25   : > { %316 = vst [vmem:[%s1495_s29 + $0xf0] sm:$0xff] %v315_v30  ;;  %318 = vst [vmem:[%s1495_s29 + $0xf8] sm:$0xff] %v317_v31 }
  0x26 PF: > { %p1147_p8 = scmp.ge.s32.totalorder %s1420_s16, 1  ;;  %p331_p9 = scmp.lt.s32.totalorder %s1420_s16, 3 }
  0x28   : > { %p332_p10 = pnand %p1147_p8, %p331_p9 }
  0x29   : > { %s338_s30 = sand.u32 (!%p332_p10), 1, %s1404_s12   ;;  %v1360_v32 = vld [vmem:[%s1742_s0 + $0x4] ss:$8 sps:$4 sm:$0xff] (!%p332_p10)   ;;  %v1358_v2 = vld [vmem:[%s1742_s0] ss:$8 sps:$4 sm:$0xff] (!%p332_p10)   ;;  %s1150_s28 = sshll.u32 (!%p332_p10), %s1412_s14, 1  ;;  %v435_v16 = vlaneseq (!%p332_p10) }
  0x2a   : > { %335 = sbr.rel (%p332_p10) target bundleno = 364 (0x16c), region = 66  ;;  %s1148_s4 = sshll.u32 (!%p332_p10), %s338_s30, 8  ;;  %v1363_v33 = vld [vmem:[%s1742_s0 + $0x44] ss:$8 sps:$4 sm:$0xff] (!%p332_p10)   ;;  %717 = vmatprep.mubr.bf16.mxu0 (!%p332_p10), %v1360_v32  ;;  %v1361_v3 = vld [vmem:[%s1742_s0 + $0x40] ss:$8 sps:$4 sm:$0xff] (!%p332_p10)  }
  0x2b   : > { %s1569_s9 = scalar_lea.vmem (!%p332_p10), [#allocation2], %s1148_s4  ;;  %757 = vmatprep.mubr.bf16.mxu1 (!%p332_p10), %v1363_v33  ;;  %v1364_v4 = vld [vmem:[%s1742_s0 + $0x14] ss:$8 sps:$4 sm:$0xff] (!%p332_p10)   ;;  %v1368_v6 = vld [vmem:[%s1742_s0 + $0x10] ss:$8 sps:$4 sm:$0xff] (!%p332_p10)   ;;  %p379_p11 = scmp.lt.s32.totalorder (!%p332_p10), %s1150_s28, 3 }
  0x2c   : > { %v1310_v34 = vld [vmem:[%s1569_s9 + $0x4] ss:$8 sps:$4 sm:$0xff] (!%p332_p10)   ;;  %v1312_v35 = vld [vmem:[%s1569_s9] ss:$8 sps:$4 sm:$0xff] (!%p332_p10)   ;;  %v1313_v36 = vld [vmem:[%s1569_s9 + $0x14] ss:$8 sps:$4 sm:$0xff] (!%p332_p10)  }
  0x2d   : > { %685 = vmatprep.subr.bf16.mxu0 (!%p332_p10), %v1310_v34  ;;  %1238 = vmatprep.subr.bf16.mxu1 (!%p332_p10), %v1310_v34  ;;  %v1315_v37 = vld [vmem:[%s1569_s9 + $0x10] ss:$8 sps:$4 sm:$0xff] (!%p332_p10)   ;;  %v1316_v38 = vld [vmem:[%s1569_s9 + $0x24] ss:$8 sps:$4 sm:$0xff] (!%p332_p10)   ;;  %v1318_v39 = vld [vmem:[%s1569_s9 + $0x20] ss:$8 sps:$4 sm:$0xff] (!%p332_p10)  }
  0x2e   : > { %686 = vmatpush1.bf16.msra.mxu0 (!%p332_p10), %v1312_v35  ;;  %1254 = vmatpush1.bf16.msra.mxu1 (!%p332_p10), %v1312_v35  ;;  %v1319_v40 = vld [vmem:[%s1569_s9 + $0x34] ss:$8 sps:$4 sm:$0xff] (!%p332_p10)   ;;  %v1321_v41 = vld [vmem:[%s1569_s9 + $0x30] ss:$8 sps:$4 sm:$0xff] (!%p332_p10)   ;;  %v1322_v42 = vld [vmem:[%s1569_s9 + $0x44] ss:$8 sps:$4 sm:$0xff] (!%p332_p10)  }
  0x2f   : > { %687 = vmatprep.subr.bf16.mxu0 (!%p332_p10), %v1313_v36  ;;  %1239 = vmatprep.subr.bf16.mxu1 (!%p332_p10), %v1313_v36  ;;  %v1324_v43 = vld [vmem:[%s1569_s9 + $0x40] ss:$8 sps:$4 sm:$0xff] (!%p332_p10)   ;;  %v1325_v44 = vld [vmem:[%s1569_s9 + $0x54] ss:$8 sps:$4 sm:$0xff] (!%p332_p10)   ;;  %v1327_v45 = vld [vmem:[%s1569_s9 + $0x50] ss:$8 sps:$4 sm:$0xff] (!%p332_p10)  }
  0x30   : > { %v1328_v46 = vld [vmem:[%s1569_s9 + $0x64] ss:$8 sps:$4 sm:$0xff] (!%p332_p10)   ;;  %v1330_v47 = vld [vmem:[%s1569_s9 + $0x60] ss:$8 sps:$4 sm:$0xff] (!%p332_p10)   ;;  %v1331_v48 = vld [vmem:[%s1569_s9 + $0x74] ss:$8 sps:$4 sm:$0xff] (!%p332_p10)  }
  0x31   : > { %v1333_v49 = vld [vmem:[%s1569_s9 + $0x70] ss:$8 sps:$4 sm:$0xff]   ;;  %v1334_v50 = vld [vmem:[%s1569_s9 + $0x84] ss:$8 sps:$4 sm:$0xff]   ;;  %v1336_v51 = vld [vmem:[%s1569_s9 + $0x80] ss:$8 sps:$4 sm:$0xff]  }
  0x32   : > { %688 = vmatpush1.bf16.msra.mxu0 %v1315_v37  ;;  %1255 = vmatpush1.bf16.msra.mxu1 %v1315_v37  ;;  %v1337_v52 = vld [vmem:[%s1569_s9 + $0x94] ss:$8 sps:$4 sm:$0xff]   ;;  %v1339_v53 = vld [vmem:[%s1569_s9 + $0x90] ss:$8 sps:$4 sm:$0xff]   ;;  %v1340_v54 = vld [vmem:[%s1569_s9 + $0xa4] ss:$8 sps:$4 sm:$0xff]  }
  0x33   : > { %689 = vmatprep.subr.bf16.mxu0 %v1316_v38  ;;  %1240 = vmatprep.subr.bf16.mxu1 %v1316_v38  ;;  %v1342_v55 = vld [vmem:[%s1569_s9 + $0xa0] ss:$8 sps:$4 sm:$0xff]   ;;  %v1343_v56 = vld [vmem:[%s1569_s9 + $0xb4] ss:$8 sps:$4 sm:$0xff]   ;;  %v1345_v57 = vld [vmem:[%s1569_s9 + $0xb0] ss:$8 sps:$4 sm:$0xff]  }
  0x34   : > { %v1346_v58 = vld [vmem:[%s1569_s9 + $0xc4] ss:$8 sps:$4 sm:$0xff]   ;;  %v1348_v59 = vld [vmem:[%s1569_s9 + $0xc0] ss:$8 sps:$4 sm:$0xff]   ;;  %v1349_v60 = vld [vmem:[%s1569_s9 + $0xd4] ss:$8 sps:$4 sm:$0xff]  }
  0x35   : > { %v1351_v61 = vld [vmem:[%s1569_s9 + $0xd0] ss:$8 sps:$4 sm:$0xff]   ;;  %v1352_v62 = vld [vmem:[%s1569_s9 + $0xe4] ss:$8 sps:$4 sm:$0xff]   ;;  %v1354_v63 = vld [vmem:[%s1569_s9 + $0xe0] ss:$8 sps:$4 sm:$0xff]  }
  0x36   : > { %690 = vmatpush1.bf16.msra.mxu0 %v1318_v39  ;;  %1256 = vmatpush1.bf16.msra.mxu1 %v1318_v39  ;;  %v1355_v0 = vld [vmem:[%s1569_s9 + $0xf4] ss:$8 sps:$4 sm:$0xff]   ;;  %v1357_v1 = vld [vmem:[%s1569_s9 + $0xf0] ss:$8 sps:$4 sm:$0xff]   ;;  %v1370_v8 = vld [vmem:[%s1742_s0 + $0x24] ss:$8 sps:$4 sm:$0xff]  }
  0x37   : > { %691 = vmatprep.subr.bf16.mxu0 %v1319_v40  ;;  %1241 = vmatprep.subr.bf16.mxu1 %v1319_v40  ;;  %v1366_v5 = vld [vmem:[%s1742_s0 + $0x54] ss:$8 sps:$4 sm:$0xff]   ;;  %v1369_v7 = vld [vmem:[%s1742_s0 + $0x50] ss:$8 sps:$4 sm:$0xff]   ;;  %v1372_v9 = vld [vmem:[%s1742_s0 + $0x64] ss:$8 sps:$4 sm:$0xff]  }
  0x38   : > { %v1374_v10 = vld [vmem:[%s1742_s0 + $0x20] ss:$8 sps:$4 sm:$0xff]   ;;  %v1376_v12 = vld [vmem:[%s1742_s0 + $0x34] ss:$8 sps:$4 sm:$0xff]   ;;  %v1380_v14 = vld [vmem:[%s1742_s0 + $0x30] ss:$8 sps:$4 sm:$0xff]  }
  0x39   : > { %v1375_v11 = vld [vmem:[%s1742_s0 + $0x60] ss:$8 sps:$4 sm:$0xff]   ;;  %v1378_v13 = vld [vmem:[%s1742_s0 + $0x74] ss:$8 sps:$4 sm:$0xff]   ;;  %v1381_v15 = vld [vmem:[%s1742_s0 + $0x70] ss:$8 sps:$4 sm:$0xff]  }
  0x3a   : > { %692 = vmatpush1.bf16.msra.mxu0 %v1321_v41  ;;  %1257 = vmatpush1.bf16.msra.mxu1 %v1321_v41  ;;  %s1754_s28 = smov (!%p379_p11, %s1150_s28), 3  ;;  %v436_v17 = vshrl.u32 %v435_v16, 7  ;;  %s1149_s6 = sshll.u32 %s338_s30, 7 }
  0x3b   : > { %693 = vmatprep.subr.bf16.mxu0 %v1322_v42  ;;  %1242 = vmatprep.subr.bf16.mxu1 %v1322_v42  ;;  %s381_s5 = scalar_lea.vmem %s1744_s2, %s1754_s28  ;;  %s1663_s12 = scalar_lea.vmem [#allocation3], %s1149_s6 }
  0x3c   : > { %v437_v18 = vsub.s32 0, %v436_v17  ;;  %v433_v19 = vld [vmem:[%s381_s5] sm:$0x3]  ;;  %v441_v20 = vsub.s32 1, %v436_v17  ;;  %s1237_s30 = sshll.u32 (%p1477_p6), %s1412_s14, 3 }
  0x3d   : > { %s954_s9 = scalar_lea.vmem (%p1477_p6), %s1745_s3, %s1237_s30 }
  0x3e   : > { %694 = vmatpush1.bf16.msra.mxu0 %v1324_v43  ;;  %1258 = vmatpush1.bf16.msra.mxu1 %v1324_v43  ;;  %v1649_v21 = vrot.slane %v433_v19, %v437_v18  ;;  %v1651_v22 = vrot.slane %v433_v19, %v441_v20 }
  0x3f   : > { %695 = vmatprep.subr.bf16.mxu0 %v1325_v44  ;;  %1243 = vmatprep.subr.bf16.mxu1 %v1325_v44 }
  0x42   : > { %696 = vmatpush1.bf16.msra.mxu0 %v1327_v45  ;;  %1259 = vmatpush1.bf16.msra.mxu1 %v1327_v45 }
  0x43   : > { %697 = vmatprep.subr.bf16.mxu0 %v1328_v46  ;;  %1244 = vmatprep.subr.bf16.mxu1 %v1328_v46 }
  0x46   : > { %698 = vmatpush1.bf16.msra.mxu0 %v1330_v47  ;;  %1260 = vmatpush1.bf16.msra.mxu1 %v1330_v47 }
  0x47   : > { %699 = vmatprep.subr.bf16.mxu0 %v1331_v48  ;;  %1245 = vmatprep.subr.bf16.mxu1 %v1331_v48 }
  0x4a   : > { %700 = vmatpush1.bf16.msra.mxu0 %v1333_v49  ;;  %1261 = vmatpush1.bf16.msra.mxu1 %v1333_v49 }
  0x4b   : > { %701 = vmatprep.subr.bf16.mxu0 %v1334_v50  ;;  %1246 = vmatprep.subr.bf16.mxu1 %v1334_v50 }
  0x4e   : > { %702 = vmatpush1.bf16.msra.mxu0 %v1336_v51  ;;  %1262 = vmatpush1.bf16.msra.mxu1 %v1336_v51 }
  0x4f   : > { %703 = vmatprep.subr.bf16.mxu0 %v1337_v52  ;;  %1247 = vmatprep.subr.bf16.mxu1 %v1337_v52 }
  0x52   : > { %704 = vmatpush1.bf16.msra.mxu0 %v1339_v53  ;;  %1263 = vmatpush1.bf16.msra.mxu1 %v1339_v53 }
  0x53   : > { %705 = vmatprep.subr.bf16.mxu0 %v1340_v54  ;;  %1248 = vmatprep.subr.bf16.mxu1 %v1340_v54 }
  0x56   : > { %706 = vmatpush1.bf16.msra.mxu0 %v1342_v55  ;;  %1264 = vmatpush1.bf16.msra.mxu1 %v1342_v55 }
  0x57   : > { %707 = vmatprep.subr.bf16.mxu0 %v1343_v56  ;;  %1249 = vmatprep.subr.bf16.mxu1 %v1343_v56 }
  0x5a   : > { %708 = vmatpush1.bf16.msra.mxu0 %v1345_v57  ;;  %1265 = vmatpush1.bf16.msra.mxu1 %v1345_v57 }
  0x5b   : > { %709 = vmatprep.subr.bf16.mxu0 %v1346_v58  ;;  %1250 = vmatprep.subr.bf16.mxu1 %v1346_v58 }
  0x5e   : > { %710 = vmatpush1.bf16.msra.mxu0 %v1348_v59  ;;  %1266 = vmatpush1.bf16.msra.mxu1 %v1348_v59 }
  0x5f   : > { %711 = vmatprep.subr.bf16.mxu0 %v1349_v60  ;;  %1251 = vmatprep.subr.bf16.mxu1 %v1349_v60 }
  0x62   : > { %712 = vmatpush1.bf16.msra.mxu0 %v1351_v61  ;;  %1267 = vmatpush1.bf16.msra.mxu1 %v1351_v61 }
  0x63   : > { %713 = vmatprep.subr.bf16.mxu0 %v1352_v62  ;;  %1252 = vmatprep.subr.bf16.mxu1 %v1352_v62 }
  0x66   : > { %714 = vmatpush1.bf16.msra.mxu0 %v1354_v63  ;;  %1268 = vmatpush1.bf16.msra.mxu1 %v1354_v63 }
  0x67   : > { %715 = vmatprep.subr.bf16.mxu0 %v1355_v0  ;;  %1253 = vmatprep.subr.bf16.mxu1 %v1355_v0 }
  0x6a   : > { %716 = vmatpush1.bf16.msra.mxu0 %v1357_v1  ;;  %1269 = vmatpush1.bf16.msra.mxu1 %v1357_v1 }
  0x6d   : > { %718 = vmatmul.mubr.bf16.vlgmr.msra.gmra.mrb[0].mxu0 %v1358_v2  ;;  %758 = vmatmul.mubr.bf16.vlgmr.msra.gmra.mrb[0].mxu1 %v1361_v3 }
  0x6e   : > { %727 = vmatprep.mubr.bf16.mxu0 %v1364_v4  ;;  %767 = vmatprep.mubr.bf16.mxu1 %v1366_v5 }
  0x75   : > { %728 = vmatmul.mubr.bf16.gmra.mrb[4].mxu0 %v1368_v6  ;;  %768 = vmatmul.mubr.bf16.gmra.mrb[4].mxu1 %v1369_v7 }
  0x76   : > { %737 = vmatprep.mubr.bf16.mxu0 %v1370_v8  ;;  %777 = vmatprep.mubr.bf16.mxu1 %v1372_v9 }
  0x7d   : > { %738 = vmatmul.mubr.bf16.gmra.mrb[8].mxu0 %v1374_v10  ;;  %778 = vmatmul.mubr.bf16.gmra.mrb[8].mxu1 %v1375_v11 }
  0x7e   : > { %747 = vmatprep.mubr.bf16.mxu0 %v1376_v12  ;;  %787 = vmatprep.mubr.bf16.mxu1 %v1378_v13 }
  0x85   : > { %748 = vmatmul.mubr.bf16.gmra.mrb[12].mxu0 %v1380_v14  ;;  %788 = vmatmul.mubr.bf16.gmra.mrb[12].mxu1 %v1381_v15 }
 0x140   : > { %v719_v23 = vpop.f32.mrb[0].mxu0  ;;  %v759_v24 = vpop.f32.mrb[0].mxu1 }
 0x141   : > { %v720_v25 = vadd.f32 %v719_v23, %v1649_v21  ;;  %v760_v26 = vadd.f32 %v759_v24, %v1649_v21  ;;  %v721_v27 = vpop.f32.mrb[1].mxu0  ;;  %v761_v28 = vpop.f32.mrb[1].mxu1 }
 0x142   : > { %v722_v29 = vadd.f32 %v721_v27, %v1651_v22  ;;  %v762_v30 = vadd.f32 %v761_v28, %v1651_v22  ;;  %v723_v31 = vpop.f32.mrb[2].mxu0  ;;  %v763_v32 = vpop.f32.mrb[2].mxu1 }
 0x143   : > { %v798_v33 = vmax.f32 %v720_v25, 0.0  ;;  %v814_v34 = vmax.f32 %v760_v26, 0.0  ;;  %v724_v35 = vadd.f32 %v723_v31, %v1649_v21  ;;  %v764_v36 = vadd.f32 %v763_v32, %v1649_v21  ;;  %v725_v37 = vpop.f32.mrb[3].mxu0  ;;  %v765_v38 = vpop.f32.mrb[3].mxu1 }
 0x144   : > { %v799_v39 = vmax.f32 %v722_v29, 0.0  ;;  %v815_v40 = vmax.f32 %v762_v30, 0.0  ;;  %v726_v41 = vadd.f32 %v725_v37, %v1651_v22  ;;  %v766_v42 = vadd.f32 %v765_v38, %v1651_v22 }
 0x145   : > { %v800_v43 = vmax.f32 %v724_v35, 0.0  ;;  %v816_v44 = vmax.f32 %v764_v36, 0.0 }
 0x146   : > { %v1221_v45 = vpack.c.bf16 %v799_v39, %v798_v33  ;;  %v1229_v46 = vpack.c.bf16 %v815_v40, %v814_v34  ;;  %v801_v47 = vmax.f32 %v726_v41, 0.0  ;;  %v817_v48 = vmax.f32 %v766_v42, 0.0 }
 0x148   : > { %926 = vst [vmem:[%s1663_s12] sm:$0xff] %v1221_v45  ;;  %934 = vst [vmem:[%s1663_s12 + $0x40] sm:$0xff] %v1229_v46  ;;  %v1222_v49 = vpack.c.bf16 %v801_v47, %v800_v43  ;;  %v1230_v50 = vpack.c.bf16 %v817_v48, %v816_v44  ;;  %v729_v51 = vpop.f32.mrb[4].mxu0  ;;  %v769_v52 = vpop.f32.mrb[4].mxu1 }
 0x149   : > { %v730_v53 = vadd.f32 %v729_v51, %v1649_v21  ;;  %v770_v54 = vadd.f32 %v769_v52, %v1649_v21  ;;  %v731_v55 = vpop.f32.mrb[5].mxu0  ;;  %v771_v56 = vpop.f32.mrb[5].mxu1 }
 0x14a   : > { %927 = vst [vmem:[%s1663_s12 + $0x8] sm:$0xff] %v1222_v49  ;;  %935 = vst [vmem:[%s1663_s12 + $0x48] sm:$0xff] %v1230_v50  ;;  %v732_v57 = vadd.f32 %v731_v55, %v1651_v22  ;;  %v772_v58 = vadd.f32 %v771_v56, %v1651_v22  ;;  %v733_v59 = vpop.f32.mrb[6].mxu0  ;;  %v773_v60 = vpop.f32.mrb[6].mxu1 }
 0x14b   : > { %v802_v61 = vmax.f32 %v730_v53, 0.0  ;;  %v818_v62 = vmax.f32 %v770_v54, 0.0  ;;  %v734_v63 = vadd.f32 %v733_v59, %v1649_v21  ;;  %v774_v0 = vadd.f32 %v773_v60, %v1649_v21  ;;  %v735_v1 = vpop.f32.mrb[7].mxu0  ;;  %v775_v2 = vpop.f32.mrb[7].mxu1 }
 0x14c   : > { %v803_v3 = vmax.f32 %v732_v57, 0.0  ;;  %v819_v4 = vmax.f32 %v772_v58, 0.0  ;;  %v736_v5 = vadd.f32 %v735_v1, %v1651_v22  ;;  %v776_v6 = vadd.f32 %v775_v2, %v1651_v22 }
 0x14d   : > { %v804_v7 = vmax.f32 %v734_v63, 0.0  ;;  %v820_v8 = vmax.f32 %v774_v0, 0.0 }
 0x14e   : > { %v1223_v9 = vpack.c.bf16 %v803_v3, %v802_v61  ;;  %v1231_v10 = vpack.c.bf16 %v819_v4, %v818_v62  ;;  %v805_v11 = vmax.f32 %v736_v5, 0.0  ;;  %v821_v12 = vmax.f32 %v776_v6, 0.0 }
 0x150   : > { %928 = vst [vmem:[%s1663_s12 + $0x10] sm:$0xff] %v1223_v9  ;;  %936 = vst [vmem:[%s1663_s12 + $0x50] sm:$0xff] %v1231_v10  ;;  %v1224_v13 = vpack.c.bf16 %v805_v11, %v804_v7  ;;  %v1232_v14 = vpack.c.bf16 %v821_v12, %v820_v8  ;;  %v739_v15 = vpop.f32.mrb[8].mxu0  ;;  %v779_v16 = vpop.f32.mrb[8].mxu1 }
 0x151   : > { %v740_v17 = vadd.f32 %v739_v15, %v1649_v21  ;;  %v780_v18 = vadd.f32 %v779_v16, %v1649_v21  ;;  %v741_v19 = vpop.f32.mrb[9].mxu0  ;;  %v781_v20 = vpop.f32.mrb[9].mxu1  ;;  %v1014_v8 = vld [vmem:[%s1663_s12 + $0x8] sm:$0xff] (%p1477_p6)  ;;  %v1028_v15 = vld [vmem:[%s1663_s12 + $0x40] sm:$0xff] (%p1477_p6) }
 0x152   : > { %929 = vst [vmem:[%s1663_s12 + $0x18] sm:$0xff] %v1224_v13  ;;  %937 = vst [vmem:[%s1663_s12 + $0x58] sm:$0xff] %v1232_v14  ;;  %v742_v23 = vadd.f32 %v741_v19, %v1651_v22  ;;  %v782_v24 = vadd.f32 %v781_v20, %v1651_v22  ;;  %v743_v25 = vpop.f32.mrb[10].mxu0  ;;  %v783_v26 = vpop.f32.mrb[10].mxu1  ;;  %v1030_v16 = vld [vmem:[%s1663_s12 + $0x48] sm:$0xff] (%p1477_p6) }
 0x153   : > { %v806_v27 = vmax.f32 %v740_v17, 0.0  ;;  %v822_v28 = vmax.f32 %v780_v18, 0.0  ;;  %v744_v29 = vadd.f32 %v743_v25, %v1649_v21  ;;  %v784_v30 = vadd.f32 %v783_v26, %v1649_v21  ;;  %v745_v31 = vpop.f32.mrb[11].mxu0  ;;  %v785_v32 = vpop.f32.mrb[11].mxu1  ;;  %1015 = vst [vmem:[%s954_s9 + $0x10] sm:$0xff] (%p1477_p6), %v1014_v8  ;;  %1029 = vst [vmem:[%s954_s9 + $0x80] sm:$0xff] (%p1477_p6), %v1028_v15 }
 0x154   : > { %v807_v33 = vmax.f32 %v742_v23, 0.0  ;;  %v823_v34 = vmax.f32 %v782_v24, 0.0  ;;  %v746_v35 = vadd.f32 %v745_v31, %v1651_v22  ;;  %v786_v36 = vadd.f32 %v785_v32, %v1651_v22  ;;  %1031 = vst [vmem:[%s954_s9 + $0x90] sm:$0xff] (%p1477_p6), %v1030_v16 }
 0x155   : > { %v808_v37 = vmax.f32 %v744_v29, 0.0  ;;  %v824_v38 = vmax.f32 %v784_v30, 0.0 }
 0x156   : > { %v1225_v39 = vpack.c.bf16 %v807_v33, %v806_v27  ;;  %v1233_v40 = vpack.c.bf16 %v823_v34, %v822_v28  ;;  %v809_v41 = vmax.f32 %v746_v35, 0.0  ;;  %v825_v42 = vmax.f32 %v786_v36, 0.0 }
 0x157   : > { %v1016_v9 = vld [vmem:[%s1663_s12 + $0x10] sm:$0xff] (%p1477_p6) }
 0x158   : > { %930 = vst [vmem:[%s1663_s12 + $0x20] sm:$0xff] %v1225_v39  ;;  %938 = vst [vmem:[%s1663_s12 + $0x60] sm:$0xff] %v1233_v40  ;;  %v1226_v43 = vpack.c.bf16 %v809_v41, %v808_v37  ;;  %v1234_v44 = vpack.c.bf16 %v825_v42, %v824_v38  ;;  %v749_v45 = vpop.f32.mrb[12].mxu0  ;;  %v789_v46 = vpop.f32.mrb[12].mxu1  ;;  %v1032_v17 = vld [vmem:[%s1663_s12 + $0x50] sm:$0xff] (%p1477_p6) }
 0x159   : > { %v750_v47 = vadd.f32 %v749_v45, %v1649_v21  ;;  %v790_v48 = vadd.f32 %v789_v46, %v1649_v21  ;;  %v751_v49 = vpop.f32.mrb[13].mxu0  ;;  %v791_v50 = vpop.f32.mrb[13].mxu1  ;;  %v1018_v10 = vld [vmem:[%s1663_s12 + $0x18] sm:$0xff] (%p1477_p6)  ;;  %1017 = vst [vmem:[%s954_s9 + $0x20] sm:$0xff] (%p1477_p6), %v1016_v9  ;;  %1033 = vst [vmem:[%s954_s9 + $0xa0] sm:$0xff] (%p1477_p6), %v1032_v17 }
 0x15a   : > { %931 = vst [vmem:[%s1663_s12 + $0x28] sm:$0xff] %v1226_v43  ;;  %939 = vst [vmem:[%s1663_s12 + $0x68] sm:$0xff] %v1234_v44  ;;  %v752_v51 = vadd.f32 %v751_v49, %v1651_v22  ;;  %v792_v52 = vadd.f32 %v791_v50, %v1651_v22  ;;  %v753_v53 = vpop.f32.mrb[14].mxu0  ;;  %v793_v54 = vpop.f32.mrb[14].mxu1  ;;  %v1034_v18 = vld [vmem:[%s1663_s12 + $0x58] sm:$0xff] (%p1477_p6) }
 0x15b   : > { %v810_v55 = vmax.f32 %v750_v47, 0.0  ;;  %v826_v56 = vmax.f32 %v790_v48, 0.0  ;;  %v754_v57 = vadd.f32 %v753_v53, %v1649_v21  ;;  %v794_v58 = vadd.f32 %v793_v54, %v1649_v21  ;;  %v755_v59 = vpop.f32.mrb[15].mxu0  ;;  %v795_v60 = vpop.f32.mrb[15].mxu1  ;;  %1019 = vst [vmem:[%s954_s9 + $0x30] sm:$0xff] (%p1477_p6), %v1018_v10  ;;  %1035 = vst [vmem:[%s954_s9 + $0xb0] sm:$0xff] (%p1477_p6), %v1034_v18 }
 0x15c   : > { %v811_v61 = vmax.f32 %v752_v51, 0.0  ;;  %v827_v62 = vmax.f32 %v792_v52, 0.0  ;;  %v756_v63 = vadd.f32 %v755_v59, %v1651_v22  ;;  %v796_v0 = vadd.f32 %v795_v60, %v1651_v22  ;;  %948 = sbr.rel (!%p1477_p6) target bundleno = 364 (0x16c), region = 74  ;;  %v1012_v22 = vld [vmem:[%s1663_s12] sm:$0xff] (%p1477_p6) }
 0x15d   : > { %v812_v1 = vmax.f32 %v754_v57, 0.0  ;;  %v828_v2 = vmax.f32 %v794_v58, 0.0  ;;  %1013 = vst [vmem:[%s954_s9] sm:$0xff] (%p1477_p6), %v1012_v22 }
 0x15e   : > { %v1227_v3 = vpack.c.bf16 %v811_v61, %v810_v55  ;;  %v1235_v4 = vpack.c.bf16 %v827_v62, %v826_v56  ;;  %v813_v5 = vmax.f32 %v756_v63, 0.0  ;;  %v829_v6 = vmax.f32 %v796_v0, 0.0 }
 0x15f   : > { %v1020_v11 = vld [vmem:[%s1663_s12 + $0x20] sm:$0xff] (%p1477_p6) }
 0x160   : > { %932 = vst [vmem:[%s1663_s12 + $0x30] sm:$0xff] %v1227_v3  ;;  %940 = vst [vmem:[%s1663_s12 + $0x70] sm:$0xff] %v1235_v4  ;;  %v1228_v7 = vpack.c.bf16 %v813_v5, %v812_v1  ;;  %v1236_v21 = vpack.c.bf16 %v829_v6, %v828_v2  ;;  %v1036_v19 = vld [vmem:[%s1663_s12 + $0x60] sm:$0xff] (%p1477_p6) }
 0x161   : > { %v1022_v12 = vld [vmem:[%s1663_s12 + $0x28] sm:$0xff] (%p1477_p6)  ;;  %1021 = vst [vmem:[%s954_s9 + $0x40] sm:$0xff] (%p1477_p6), %v1020_v11  ;;  %1037 = vst [vmem:[%s954_s9 + $0xc0] sm:$0xff] (%p1477_p6), %v1036_v19 }
 0x162   : > { %933 = vst [vmem:[%s1663_s12 + $0x38] sm:$0xff] %v1228_v7  ;;  %941 = vst [vmem:[%s1663_s12 + $0x78] sm:$0xff] %v1236_v21  ;;  %v1038_v20 = vld [vmem:[%s1663_s12 + $0x68] sm:$0xff] (%p1477_p6) }
 0x163   : > { %1023 = vst [vmem:[%s954_s9 + $0x50] sm:$0xff] %v1022_v12  ;;  %1039 = vst [vmem:[%s954_s9 + $0xd0] sm:$0xff] %v1038_v20 }
 0x167   : > { %v1024_v13 = vld [vmem:[%s1663_s12 + $0x30] sm:$0xff] }
 0x168   : > { %1025 = vst [vmem:[%s954_s9 + $0x60] sm:$0xff] %v1024_v13  ;;  %v1040_v23 = vld [vmem:[%s1663_s12 + $0x70] sm:$0xff] }
 0x169   : > { %v1026_v14 = vld [vmem:[%s1663_s12 + $0x38] sm:$0xff]  ;;  %1041 = vst [vmem:[%s954_s9 + $0xe0] sm:$0xff] %v1040_v23 }
 0x16a   : > { %1027 = vst [vmem:[%s954_s9 + $0x70] sm:$0xff] %v1026_v14  ;;  %v1042_v24 = vld [vmem:[%s1663_s12 + $0x78] sm:$0xff] }
 0x16b   : > { %1043 = vst [vmem:[%s954_s9 + $0xf0] sm:$0xff] %v1042_v24 }
 0x16c PF: > { %s13_s16 = sadd.s32 1, %s1420_s16   ;;  %s1747_s12 = smov %s1408_s13 }
 0x16d   : > { %p10_p12 = scmp.ge.s32.totalorder %s13_s16, 4   ;;  %s1748_s13 = smov %s1482_s22 }
 0x16e   : > { %s1749_s14 = smov %s1416_s15  ;;  %s1750_s15 = smov %s1752_s17 }
 0x16f   :  { %12 = sbr.rel (!%p10_p12) target bundleno = 3 (0x3), region = 149 }

// kernel: forward_fn.54
= control target key start
LH: loop header
LB: loop body
LE: loop exit
PB: predicated region body
PF: predicated region fallthrough
CT: control target
= control target key end

     0   :  { %s1614_s12 = smov 0   ;;  %s1616_s13 = smov 0   ;;  %s1905_s0 = inlined_call_operand.vmem [shape: bf16[512,128], index: 0, kind: input, shape index: {}]   ;;  %s1906_s1 = inlined_call_operand.vmem [shape: bf16[128,256], index: 1, kind: input, shape index: {}]   ;;  %s1907_s2 = inlined_call_operand.vmem [shape: f32[1,256], index: 2, kind: input, shape index: {}]   ;;  %s1908_s3 = inlined_call_operand.vmem [shape: bf16[512,256], index: 3, kind: output, shape index: {}]  }
   0x1   :  { %s1618_s14 = smov 0   ;;  %s1620_s15 = smov 0  }
   0x2   :  { %s1622_s16 = smov 0   ;;  %s1624_s17 = smov 0  }
   0x3   :  { %s1626_s18 = smov 0   ;;  %s1628_s19 = smov 0  }
   0x4   :  { %s1630_s20 = smov 0  }
   0x5 LB: > { %s1136_s21 = sadd.s32 4294967295, %s1592_s20   ;;  %s22_s22 = sadd.s32 1, %s1584_s18  ;;  %s1592_s20 = sphi %s1630_s20, %s13_s20   ;;  %s1588_s19 = sphi %s1628_s19, %s1917_s19   ;;  %s1584_s18 = sphi %s1626_s18, %s1916_s18   ;;  %s1580_s17 = sphi %s1624_s17, %s1915_s17   ;;  %s1576_s16 = sphi %s1622_s16, %s1914_s16   ;;  %s1572_s15 = sphi %s1620_s15, %s1913_s15   ;;  %s1568_s14 = sphi %s1618_s14, %s1912_s14   ;;  %s1564_s13 = sphi %s1616_s13, %s1911_s13   ;;  %s1560_s12 = sphi %s1614_s12, %s1910_s12  }
   0x6   : > { %p23_p0 = scmp.ge.s32.totalorder %s22_s22, 2  ;;  %s25_s23 = sadd.s32 1, %s1588_s19 }
   0x7   : > { %s58_s24 = sadd.s32 1, %s1572_s15  ;;  %p65_p1 = scmp.ne.s32.totalorder %s1572_s15, %s1568_s14 }
   0x8   : > { %s1919_s22 = smov (%p23_p0, %s22_s22), 0  ;;  %s1921_s23 = smov (!%p23_p0, %s25_s23), %s1588_s19 }
   0x9   : > { %s55_s25 = ssub.s32 %s1584_s18, %s1919_s22  ;;  %p66_p2 = scmp.eq.s32.totalorder %s1592_s20, 0 }
   0xa   : > { %p27_p3 = scmp.ge.s32.totalorder %s1921_s23, 2  ;;  %p56_p4 = scmp.eq.s32.totalorder %s55_s25, 0 }
   0xb   : > { %p67_p5 = por %p66_p2, %p65_p1  ;;  %s112_s26 = sadd.s32 1, %s1564_s13 }
   0xc   : > { %s1923_s23 = smov (%p27_p3, %s1921_s23), 0  ;;  %p122_p6 = scmp.ne.s32.totalorder %s1564_s13, %s1560_s12 }
   0xd   : > { %s1675_s27 = scalar_select %p56_p4, %s1572_s15, %s58_s24  }
   0xe   : > { %s107_s28 = ssub.s32 %s1588_s19, %s1923_s23  ;;  %p123_p7 = scmp.eq.s32.totalorder %s1136_s21, 3 }
   0xf   : > { %s109_s29 = sor.u32 %s107_s28, %s55_s25  ;;  %p1139_p10 = scmp.ge.s32.totalorder %s1592_s20, 4 }
  0x10   : > { %p110_p8 = scmp.eq.s32.totalorder %s109_s29, 0  ;;  %p1681_p9 = por %p123_p7, %p122_p6 }
  0x11   : > { %145 = sbr.rel (%p1139_p10) target bundleno = 38 (0x26), region = 16 }
  0x12   : > { %s1686_s4 = scalar_select %p110_p8, %s1564_s13, %s112_s26  }
  0x18   : > { %157 = sbr.rel (!%p67_p5) target bundleno = 38 (0x26), region = 24  ;;  %s159_s5 = sand.u32 (%p67_p5), 1, %s1572_s15  }
  0x19   : > { %s1141_s6 = sshll.u32 (%p67_p5), %s1584_s18, 2  ;;  %s1140_s7 = sshll.u32 (%p67_p5), %s159_s5, 6 }
  0x1a   : > { %s1694_s10 = scalar_lea.vmem (%p67_p5), %s1906_s1, %s1141_s6  ;;  %s161_s11 = scalar_lea.vmem (%p67_p5), [#allocation2], %s1140_s7 }
  0x1b   : > { %v179_v0 = vld [vmem:[%s1694_s10] sm:$0xf] (%p67_p5)  ;;  %v181_v1 = vld [vmem:[%s1694_s10 + $0x8] sm:$0xf] (%p67_p5)  ;;  %v183_v2 = vld [vmem:[%s1694_s10 + $0x10] sm:$0xf] (%p67_p5) }
  0x1c   : > { %180 = vst [vmem:[%s161_s11] sm:$0xf] (%p67_p5), %v179_v0  ;;  %182 = vst [vmem:[%s161_s11 + $0x4] sm:$0xf] (%p67_p5), %v181_v1  ;;  %v185_v3 = vld [vmem:[%s1694_s10 + $0x18] sm:$0xf] (%p67_p5) }
  0x1d   : > { %v187_v4 = vld [vmem:[%s1694_s10 + $0x20] sm:$0xf] (%p67_p5)  ;;  %184 = vst [vmem:[%s161_s11 + $0x8] sm:$0xf] (%p67_p5), %v183_v2  ;;  %186 = vst [vmem:[%s161_s11 + $0xc] sm:$0xf] (%p67_p5), %v185_v3 }
  0x1e   : > { %188 = vst [vmem:[%s161_s11 + $0x10] sm:$0xf] (%p67_p5), %v187_v4  ;;  %v189_v5 = vld [vmem:[%s1694_s10 + $0x28] sm:$0xf] (%p67_p5)  ;;  %v191_v6 = vld [vmem:[%s1694_s10 + $0x30] sm:$0xf] (%p67_p5) }
  0x1f   : > { %v193_v7 = vld [vmem:[%s1694_s10 + $0x38] sm:$0xf]  ;;  %190 = vst [vmem:[%s161_s11 + $0x14] sm:$0xf] %v189_v5  ;;  %192 = vst [vmem:[%s161_s11 + $0x18] sm:$0xf] %v191_v6 }
  0x20   : > { %194 = vst [vmem:[%s161_s11 + $0x1c] sm:$0xf] %v193_v7  ;;  %v195_v8 = vld [vmem:[%s1694_s10 + $0x40] sm:$0xf]  ;;  %v197_v9 = vld [vmem:[%s1694_s10 + $0x48] sm:$0xf] }
  0x21   : > { %v199_v10 = vld [vmem:[%s1694_s10 + $0x50] sm:$0xf]  ;;  %196 = vst [vmem:[%s161_s11 + $0x20] sm:$0xf] %v195_v8  ;;  %198 = vst [vmem:[%s161_s11 + $0x24] sm:$0xf] %v197_v9 }
  0x22   : > { %200 = vst [vmem:[%s161_s11 + $0x28] sm:$0xf] %v199_v10  ;;  %v201_v11 = vld [vmem:[%s1694_s10 + $0x58] sm:$0xf]  ;;  %v203_v12 = vld [vmem:[%s1694_s10 + $0x60] sm:$0xf] }
  0x23   : > { %v205_v13 = vld [vmem:[%s1694_s10 + $0x68] sm:$0xf]  ;;  %202 = vst [vmem:[%s161_s11 + $0x2c] sm:$0xf] %v201_v11  ;;  %204 = vst [vmem:[%s161_s11 + $0x30] sm:$0xf] %v203_v12 }
  0x24   : > { %206 = vst [vmem:[%s161_s11 + $0x34] sm:$0xf] %v205_v13  ;;  %v207_v14 = vld [vmem:[%s1694_s10 + $0x70] sm:$0xf]  ;;  %v209_v15 = vld [vmem:[%s1694_s10 + $0x78] sm:$0xf] }
  0x25   : > { %208 = vst [vmem:[%s161_s11 + $0x38] sm:$0xf] %v207_v14  ;;  %210 = vst [vmem:[%s161_s11 + $0x3c] sm:$0xf] %v209_v15 }
  0x26 PF: > { %p1142_p11 = scmp.ge.s32.totalorder %s1592_s20, 1  ;;  %p270_p12 = scmp.lt.s32.totalorder %s1592_s20, 5 }
  0x28   : > { %p271_p13 = pnand %p1142_p11, %p270_p12 }
  0x29   : > { %s277_s21 = sand.u32 (!%p271_p13), 1, %s1568_s14   ;;  %s1145_s24 = sshll.u32 (!%p271_p13), %s1580_s17, 5 }
  0x2a   : > { %274 = sbr.rel (%p271_p13) target bundleno = 334 (0x14e), region = 69  ;;  %s1143_s25 = sshll.u32 (!%p271_p13), %s277_s21, 6 }
  0x2b   : > { %p308_p0 = scmp.lt.s32.totalorder (!%p271_p13), %s1145_s24, 63  ;;  %s1716_s26 = scalar_lea.vmem (!%p271_p13), [#allocation2], %s1143_s25 }
  0x2c   : > { %v1498_v16 = vld [vmem:[%s1716_s26] sm:$0xff] (!%p271_p13)   ;;  %v1499_v17 = vld [vmem:[%s1716_s26 + $0x8] sm:$0xff] (!%p271_p13)   ;;  %v1500_v18 = vld [vmem:[%s1716_s26 + $0x10] sm:$0xff] (!%p271_p13)   ;;  %p313_p1 = scmp.lt.s32.totalorder (!%p271_p13), %s1576_s16, 1  ;;  %s304_s10 = sand.u32 (!%p271_p13), 1, %s1560_s12  }
  0x2d   : > { %1362 = vmatprep.subr.bf16.mxu0 (!%p271_p13), %v1498_v16  ;;  %1410 = vmatprep.subr.bf16.mxu1 (!%p271_p13), %v1498_v16  ;;  %v1501_v19 = vld [vmem:[%s1716_s26 + $0x18] sm:$0xff] (!%p271_p13)   ;;  %v1502_v22 = vld [vmem:[%s1716_s26 + $0x20] sm:$0xff] (!%p271_p13)   ;;  %v1503_v23 = vld [vmem:[%s1716_s26 + $0x28] sm:$0xff] (!%p271_p13)   ;;  %s1144_s11 = sshll.u32 (!%p271_p13), %s304_s10, 7 }
  0x2e   : > { %1363 = vmatpush3.bf16.msra.mxu0 (!%p271_p13), %v1498_v16  ;;  %1418 = vmatpush3.bf16.msra.mxu1 (!%p271_p13), %v1498_v16  ;;  %v1504_v24 = vld [vmem:[%s1716_s26 + $0x30] sm:$0xff] (!%p271_p13)   ;;  %v1505_v25 = vld [vmem:[%s1716_s26 + $0x38] sm:$0xff] (!%p271_p13)   ;;  %s1763_s12 = scalar_lea.vmem (!%p271_p13), [#allocation3], %s1144_s11 }
  0x2f   : > { %1364 = vmatprep.subr.bf16.mxu0 (!%p271_p13), %v1499_v17  ;;  %1411 = vmatprep.subr.bf16.mxu1 (!%p271_p13), %v1499_v17 }
  0x31   : > { %s1925_s24 = smov (!%p308_p0, %s1145_s24), 63  ;;  %s1242_s21 = sshll.u32 (%p1681_p9), %s1580_s17, 6 }
  0x32   : > { %s1146_s28 = sshll.u32 %s1925_s24, 2  ;;  %1365 = vmatpush3.bf16.msra.mxu0 %v1499_v17  ;;  %1419 = vmatpush3.bf16.msra.mxu1 %v1499_v17  ;;  %s879_s24 = sadd.s32 (%p1681_p9), %s1576_s16, %s1242_s21 }
  0x33   : > { %s1724_s5 = scalar_lea.vmem %s1905_s0, %s1146_s28  ;;  %1366 = vmatprep.subr.bf16.mxu0 %v1500_v18  ;;  %1412 = vmatprep.subr.bf16.mxu1 %v1500_v18  ;;  %s1207_s30 = sshll.u32 (%p1681_p9), %s879_s24, 2 }
  0x34   : > { %v1506_v20 = vld [vmem:[%s1724_s5] sm:$0xff]   ;;  %v1508_v26 = vld [vmem:[%s1724_s5 + $0x8] sm:$0xff]   ;;  %v1510_v28 = vld [vmem:[%s1724_s5 + $0x10] sm:$0xff]   ;;  %s314_s6 = scalar_select %p313_p1, %s1576_s16, 1 }
  0x35   : > { %v1507_v21 = vld [vmem:[%s1724_s5 + $0x40] sm:$0xff]   ;;  %1378 = vmatprep.mubr.bf16.mxu0 %v1506_v20  ;;  %v1509_v27 = vld [vmem:[%s1724_s5 + $0x48] sm:$0xff]   ;;  %v1511_v29 = vld [vmem:[%s1724_s5 + $0x50] sm:$0xff]   ;;  %s1819_s28 = scalar_lea.vmem (%p1681_p9), %s1908_s3, %s1207_s30 }
  0x36   : > { %1367 = vmatpush3.bf16.msra.mxu0 %v1500_v18  ;;  %1420 = vmatpush3.bf16.msra.mxu1 %v1500_v18  ;;  %v1512_v30 = vld [vmem:[%s1724_s5 + $0x18] sm:$0xff]   ;;  %v1514_v32 = vld [vmem:[%s1724_s5 + $0x20] sm:$0xff]   ;;  %v1516_v34 = vld [vmem:[%s1724_s5 + $0x28] sm:$0xff]   ;;  %s315_s9 = scalar_lea.vmem %s1907_s2, %s314_s6 }
  0x37   : > { %1368 = vmatprep.subr.bf16.mxu0 %v1501_v19  ;;  %1413 = vmatprep.subr.bf16.mxu1 %v1501_v19  ;;  %v1513_v31 = vld [vmem:[%s1724_s5 + $0x58] sm:$0xff]   ;;  %v1515_v33 = vld [vmem:[%s1724_s5 + $0x60] sm:$0xff]   ;;  %v1517_v35 = vld [vmem:[%s1724_s5 + $0x68] sm:$0xff]  }
  0x38   : > { %1394 = vmatprep.mubr.bf16.mxu1 %v1507_v21  ;;  %v1518_v36 = vld [vmem:[%s1724_s5 + $0x30] sm:$0xff]   ;;  %v1520_v38 = vld [vmem:[%s1724_s5 + $0x38] sm:$0xff]   ;;  %v1752_v40 = vld [vmem:[%s315_s9] ss:$0 sm:$0xff] }
  0x39   : > { %v1519_v37 = vld [vmem:[%s1724_s5 + $0x70] sm:$0xff]   ;;  %v1521_v39 = vld [vmem:[%s1724_s5 + $0x78] sm:$0xff]  }
  0x3a   : > { %1369 = vmatpush3.bf16.msra.mxu0 %v1501_v19  ;;  %1421 = vmatpush3.bf16.msra.mxu1 %v1501_v19 }
  0x3b   : > { %1370 = vmatprep.subr.bf16.mxu0 %v1502_v22  ;;  %1414 = vmatprep.subr.bf16.mxu1 %v1502_v22 }
  0x3e   : > { %1371 = vmatpush3.bf16.msra.mxu0 %v1502_v22  ;;  %1422 = vmatpush3.bf16.msra.mxu1 %v1502_v22 }
  0x3f   : > { %1372 = vmatprep.subr.bf16.mxu0 %v1503_v23  ;;  %1415 = vmatprep.subr.bf16.mxu1 %v1503_v23 }
  0x42   : > { %1373 = vmatpush3.bf16.msra.mxu0 %v1503_v23  ;;  %1423 = vmatpush3.bf16.msra.mxu1 %v1503_v23 }
  0x43   : > { %1374 = vmatprep.subr.bf16.mxu0 %v1504_v24  ;;  %1416 = vmatprep.subr.bf16.mxu1 %v1504_v24 }
  0x46   : > { %1375 = vmatpush3.bf16.msra.mxu0 %v1504_v24  ;;  %1424 = vmatpush3.bf16.msra.mxu1 %v1504_v24 }
  0x47   : > { %1376 = vmatprep.subr.bf16.mxu0 %v1505_v25  ;;  %1417 = vmatprep.subr.bf16.mxu1 %v1505_v25 }
  0x4a   : > { %1377 = vmatpush3.bf16.msra.mxu0 %v1505_v25  ;;  %1425 = vmatpush3.bf16.msra.mxu1 %v1505_v25 }
  0x4d   : > { %1379 = vmatmul.mubr.bf16.vlgmr.msra.gmra.mrb[0].mxu0 %v1508_v26  ;;  %1395 = vmatmul.mubr.bf16.vlgmr.msra.gmra.mrb[0].mxu1 %v1509_v27 }
  0x4e   : > { %1382 = vmatprep.mubr.bf16.mxu0 %v1510_v28  ;;  %1398 = vmatprep.mubr.bf16.mxu1 %v1511_v29 }
  0x55   : > { %1383 = vmatmul.mubr.bf16.gmra.mrb[4].mxu0 %v1512_v30  ;;  %1399 = vmatmul.mubr.bf16.gmra.mrb[4].mxu1 %v1513_v31 }
  0x56   : > { %1386 = vmatprep.mubr.bf16.mxu0 %v1514_v32  ;;  %1402 = vmatprep.mubr.bf16.mxu1 %v1515_v33 }
  0x5d   : > { %1387 = vmatmul.mubr.bf16.gmra.mrb[8].mxu0 %v1516_v34  ;;  %1403 = vmatmul.mubr.bf16.gmra.mrb[8].mxu1 %v1517_v35 }
  0x5e   : > { %1390 = vmatprep.mubr.bf16.mxu0 %v1518_v36  ;;  %1406 = vmatprep.mubr.bf16.mxu1 %v1519_v37 }
  0x65   : > { %1391 = vmatmul.mubr.bf16.gmra.mrb[12].mxu0 %v1520_v38  ;;  %1407 = vmatmul.mubr.bf16.gmra.mrb[12].mxu1 %v1521_v39 }
 0x120   : > { %v1380_v41 = vpop.f32.mrb[0].mxu0  ;;  %v1396_v42 = vpop.f32.mrb[0].mxu1 }
 0x121   : > { %v560_v43 = vadd.f32 %v1380_v41, %v1752_v40  ;;  %v624_v44 = vadd.f32 %v1396_v42, %v1752_v40  ;;  %v551_v45 = vpop.f32.mrb[1].mxu0  ;;  %v615_v46 = vpop.f32.mrb[1].mxu1 }
 0x122   : > { %v552_v47 = vadd.f32 %v1752_v40, %v551_v45  ;;  %v616_v48 = vadd.f32 %v1752_v40, %v615_v46  ;;  %v1381_v49 = vpop.f32.mrb[2].mxu0  ;;  %v1397_v50 = vpop.f32.mrb[2].mxu1 }
 0x123   : > { %v563_v51 = vadd.f32 %v1381_v49, %v1752_v40  ;;  %v627_v52 = vadd.f32 %v1397_v50, %v1752_v40  ;;  %v554_v53 = vpop.f32.mrb[3].mxu0  ;;  %v618_v54 = vpop.f32.mrb[3].mxu1  ;;  %v680_v57 = vmax.f32 %v560_v43, 0.0  ;;  %v696_v58 = vmax.f32 %v624_v44, 0.0 }
 0x124   : > { %v555_v55 = vadd.f32 %v1752_v40, %v554_v53  ;;  %v619_v56 = vadd.f32 %v1752_v40, %v618_v54  ;;  %v678_v61 = vmax.f32 %v552_v47, 0.0  ;;  %v694_v62 = vmax.f32 %v616_v48, 0.0 }
 0x125   : > { %v681_v59 = vmax.f32 %v563_v51, 0.0  ;;  %v697_v60 = vmax.f32 %v627_v52, 0.0 }
 0x126   : > { %v679_v63 = vmax.f32 %v555_v55, 0.0  ;;  %v695_v0 = vmax.f32 %v619_v56, 0.0 }
 0x127   : > { %v1251_v1 = vpack.c.bf16 %v681_v59, %v680_v57  ;;  %v1291_v2 = vpack.c.bf16 %v697_v60, %v696_v58 }
 0x128   : > { %v1246_v3 = vpack.c.bf16 %v679_v63, %v678_v61  ;;  %v1286_v4 = vpack.c.bf16 %v695_v0, %v694_v62  ;;  %v1384_v5 = vpop.f32.mrb[4].mxu0  ;;  %v1400_v6 = vpop.f32.mrb[4].mxu1 }
 0x129   : > { %1323 = vst [vmem:[%s1763_s12 + $0x8] sm:$0xff] %v1251_v1   ;;  %1331 = vst [vmem:[%s1763_s12 + $0x48] sm:$0xff] %v1291_v2   ;;  %v576_v7 = vadd.f32 %v1384_v5, %v1752_v40  ;;  %v640_v8 = vadd.f32 %v1400_v6, %v1752_v40  ;;  %v567_v9 = vpop.f32.mrb[5].mxu0  ;;  %v631_v10 = vpop.f32.mrb[5].mxu1 }
 0x12a   : > { %1247 = vst [vmem:[%s1763_s12] sm:$0xff] %v1246_v3   ;;  %1330 = vst [vmem:[%s1763_s12 + $0x40] sm:$0xff] %v1286_v4   ;;  %v568_v11 = vadd.f32 %v1752_v40, %v567_v9  ;;  %v632_v12 = vadd.f32 %v1752_v40, %v631_v10  ;;  %v1385_v13 = vpop.f32.mrb[6].mxu0  ;;  %v1401_v14 = vpop.f32.mrb[6].mxu1 }
 0x12b   : > { %v579_v15 = vadd.f32 %v1385_v13, %v1752_v40  ;;  %v643_v16 = vadd.f32 %v1401_v14, %v1752_v40  ;;  %v570_v17 = vpop.f32.mrb[7].mxu0  ;;  %v634_v18 = vpop.f32.mrb[7].mxu1  ;;  %v684_v21 = vmax.f32 %v576_v7, 0.0  ;;  %v700_v22 = vmax.f32 %v640_v8, 0.0 }
 0x12c   : > { %v571_v19 = vadd.f32 %v1752_v40, %v570_v17  ;;  %v635_v20 = vadd.f32 %v1752_v40, %v634_v18  ;;  %v682_v25 = vmax.f32 %v568_v11, 0.0  ;;  %v698_v26 = vmax.f32 %v632_v12, 0.0 }
 0x12d   : > { %v685_v23 = vmax.f32 %v579_v15, 0.0  ;;  %v701_v24 = vmax.f32 %v643_v16, 0.0 }
 0x12e   : > { %v683_v27 = vmax.f32 %v571_v19, 0.0  ;;  %v699_v28 = vmax.f32 %v635_v20, 0.0 }
 0x12f   : > { %v1261_v29 = vpack.c.bf16 %v685_v23, %v684_v21  ;;  %v1301_v30 = vpack.c.bf16 %v701_v24, %v700_v22 }
 0x130   : > { %v1256_v31 = vpack.c.bf16 %v683_v27, %v682_v25  ;;  %v1296_v32 = vpack.c.bf16 %v699_v28, %v698_v26  ;;  %v1388_v33 = vpop.f32.mrb[8].mxu0  ;;  %v1404_v34 = vpop.f32.mrb[8].mxu1  ;;  %v901_v27 = vld [vmem:[%s1763_s12 + $0x8] sm:$0xf] (%p1681_p9)  ;;  %v903_v28 = vld [vmem:[%s1763_s12 + $0xc] sm:$0xf] (%p1681_p9) }
 0x131   : > { %1325 = vst [vmem:[%s1763_s12 + $0x18] sm:$0xff] %v1261_v29   ;;  %1333 = vst [vmem:[%s1763_s12 + $0x58] sm:$0xff] %v1301_v30   ;;  %v592_v35 = vadd.f32 %v1388_v33, %v1752_v40  ;;  %v656_v36 = vadd.f32 %v1404_v34, %v1752_v40  ;;  %v583_v37 = vpop.f32.mrb[9].mxu0  ;;  %v647_v38 = vpop.f32.mrb[9].mxu1  ;;  %v899_v26 = vld [vmem:[%s1763_s12 + $0x4] sm:$0xf] (%p1681_p9) }
 0x132   : > { %1324 = vst [vmem:[%s1763_s12 + $0x10] sm:$0xff] %v1256_v31   ;;  %1332 = vst [vmem:[%s1763_s12 + $0x50] sm:$0xff] %v1296_v32   ;;  %v584_v39 = vadd.f32 %v1752_v40, %v583_v37  ;;  %v648_v41 = vadd.f32 %v1752_v40, %v647_v38  ;;  %v1389_v42 = vpop.f32.mrb[10].mxu0  ;;  %v1405_v43 = vpop.f32.mrb[10].mxu1 }
 0x133   : > { %v595_v44 = vadd.f32 %v1389_v42, %v1752_v40  ;;  %v659_v45 = vadd.f32 %v1405_v43, %v1752_v40  ;;  %v586_v46 = vpop.f32.mrb[11].mxu0  ;;  %v650_v47 = vpop.f32.mrb[11].mxu1  ;;  %v688_v50 = vmax.f32 %v592_v35, 0.0  ;;  %v704_v51 = vmax.f32 %v656_v36, 0.0  ;;  %900 = vst [vmem:[%s1819_s28 + $0x8] sm:$0xf] (%p1681_p9), %v899_v26 }
 0x134   : > { %v587_v48 = vadd.f32 %v1752_v40, %v586_v46  ;;  %v651_v49 = vadd.f32 %v1752_v40, %v650_v47  ;;  %v686_v54 = vmax.f32 %v584_v39, 0.0  ;;  %v702_v55 = vmax.f32 %v648_v41, 0.0  ;;  %902 = vst [vmem:[%s1819_s28 + $0x10] sm:$0xf] (%p1681_p9), %v901_v27  ;;  %904 = vst [vmem:[%s1819_s28 + $0x18] sm:$0xf] (%p1681_p9), %v903_v28 }
 0x135   : > { %v689_v52 = vmax.f32 %v595_v44, 0.0  ;;  %v705_v53 = vmax.f32 %v659_v45, 0.0  ;;  %v929_v42 = vld [vmem:[%s1763_s12 + $0x40] sm:$0xf] (%p1681_p9)  ;;  %v931_v43 = vld [vmem:[%s1763_s12 + $0x44] sm:$0xf] (%p1681_p9) }
 0x136   : > { %v687_v56 = vmax.f32 %v587_v48, 0.0  ;;  %v703_v57 = vmax.f32 %v651_v49, 0.0  ;;  %v933_v44 = vld [vmem:[%s1763_s12 + $0x48] sm:$0xf] (%p1681_p9)  ;;  %930 = vst [vmem:[%s1819_s28 + $0x80] sm:$0xf] (%p1681_p9), %v929_v42 }
 0x137   : > { %v1271_v58 = vpack.c.bf16 %v689_v52, %v688_v50  ;;  %v1311_v59 = vpack.c.bf16 %v705_v53, %v704_v51  ;;  %932 = vst [vmem:[%s1819_s28 + $0x88] sm:$0xf] (%p1681_p9), %v931_v43  ;;  %934 = vst [vmem:[%s1819_s28 + $0x90] sm:$0xf] (%p1681_p9), %v933_v44  ;;  %v935_v45 = vld [vmem:[%s1763_s12 + $0x4c] sm:$0xf] (%p1681_p9) }
 0x138   : > { %v1266_v60 = vpack.c.bf16 %v687_v56, %v686_v54  ;;  %v1306_v61 = vpack.c.bf16 %v703_v57, %v702_v55  ;;  %v1392_v62 = vpop.f32.mrb[12].mxu0  ;;  %v1408_v63 = vpop.f32.mrb[12].mxu1  ;;  %v909_v31 = vld [vmem:[%s1763_s12 + $0x18] sm:$0xf] (%p1681_p9)  ;;  %v911_v32 = vld [vmem:[%s1763_s12 + $0x1c] sm:$0xf] (%p1681_p9) }
 0x139   : > { %1327 = vst [vmem:[%s1763_s12 + $0x28] sm:$0xff] %v1271_v58   ;;  %1335 = vst [vmem:[%s1763_s12 + $0x68] sm:$0xff] %v1311_v59   ;;  %v608_v0 = vadd.f32 %v1392_v62, %v1752_v40  ;;  %v672_v1 = vadd.f32 %v1408_v63, %v1752_v40  ;;  %v599_v2 = vpop.f32.mrb[13].mxu0  ;;  %v663_v3 = vpop.f32.mrb[13].mxu1  ;;  %v905_v29 = vld [vmem:[%s1763_s12 + $0x10] sm:$0xf] (%p1681_p9) }
 0x13a   : > { %1326 = vst [vmem:[%s1763_s12 + $0x20] sm:$0xff] %v1266_v60   ;;  %1334 = vst [vmem:[%s1763_s12 + $0x60] sm:$0xff] %v1306_v61   ;;  %v600_v4 = vadd.f32 %v1752_v40, %v599_v2  ;;  %v664_v5 = vadd.f32 %v1752_v40, %v663_v3  ;;  %v1393_v6 = vpop.f32.mrb[14].mxu0  ;;  %v1409_v7 = vpop.f32.mrb[14].mxu1  ;;  %v907_v30 = vld [vmem:[%s1763_s12 + $0x14] sm:$0xf] (%p1681_p9) }
 0x13b   : > { %v611_v8 = vadd.f32 %v1393_v6, %v1752_v40  ;;  %v675_v9 = vadd.f32 %v1409_v7, %v1752_v40  ;;  %v602_v10 = vpop.f32.mrb[15].mxu0  ;;  %v666_v11 = vpop.f32.mrb[15].mxu1  ;;  %v692_v14 = vmax.f32 %v608_v0, 0.0  ;;  %v708_v15 = vmax.f32 %v672_v1, 0.0  ;;  %906 = vst [vmem:[%s1819_s28 + $0x20] sm:$0xf] (%p1681_p9), %v905_v29 }
 0x13c   : > { %v603_v12 = vadd.f32 %v1752_v40, %v602_v10  ;;  %v667_v13 = vadd.f32 %v1752_v40, %v666_v11  ;;  %v690_v18 = vmax.f32 %v600_v4, 0.0  ;;  %v706_v19 = vmax.f32 %v664_v5, 0.0  ;;  %876 = sbr.rel (!%p1681_p9) target bundleno = 334 (0x14e), region = 77  ;;  %v897_v40 = vld [vmem:[%s1763_s12] sm:$0xf] (%p1681_p9) }
 0x13d   : > { %v693_v16 = vmax.f32 %v611_v8, 0.0  ;;  %v709_v17 = vmax.f32 %v675_v9, 0.0  ;;  %898 = vst [vmem:[%s1819_s28] sm:$0xf] (%p1681_p9), %v897_v40  ;;  %908 = vst [vmem:[%s1819_s28 + $0x28] sm:$0xf] (%p1681_p9), %v907_v30 }
 0x13e   : > { %v691_v20 = vmax.f32 %v603_v12, 0.0  ;;  %v707_v21 = vmax.f32 %v667_v13, 0.0  ;;  %910 = vst [vmem:[%s1819_s28 + $0x30] sm:$0xf] (%p1681_p9), %v909_v31  ;;  %912 = vst [vmem:[%s1819_s28 + $0x38] sm:$0xf] (%p1681_p9), %v911_v32 }
 0x13f   : > { %v1281_v22 = vpack.c.bf16 %v693_v16, %v692_v14  ;;  %v1321_v23 = vpack.c.bf16 %v709_v17, %v708_v15  ;;  %v937_v46 = vld [vmem:[%s1763_s12 + $0x50] sm:$0xf] (%p1681_p9)  ;;  %v939_v47 = vld [vmem:[%s1763_s12 + $0x54] sm:$0xf] (%p1681_p9)  ;;  %936 = vst [vmem:[%s1819_s28 + $0x98] sm:$0xf] (%p1681_p9), %v935_v45 }
 0x140   : > { %v1276_v24 = vpack.c.bf16 %v691_v20, %v690_v18  ;;  %v1316_v25 = vpack.c.bf16 %v707_v21, %v706_v19  ;;  %v917_v35 = vld [vmem:[%s1763_s12 + $0x28] sm:$0xf] (%p1681_p9)  ;;  %v919_v36 = vld [vmem:[%s1763_s12 + $0x2c] sm:$0xf] (%p1681_p9)  ;;  %938 = vst [vmem:[%s1819_s28 + $0xa0] sm:$0xf] (%p1681_p9), %v937_v46 }
 0x141   : > { %1329 = vst [vmem:[%s1763_s12 + $0x38] sm:$0xff] %v1281_v22   ;;  %1337 = vst [vmem:[%s1763_s12 + $0x78] sm:$0xff] %v1321_v23   ;;  %v913_v33 = vld [vmem:[%s1763_s12 + $0x20] sm:$0xf] (%p1681_p9)  ;;  %v915_v34 = vld [vmem:[%s1763_s12 + $0x24] sm:$0xf] (%p1681_p9) }
 0x142   : > { %1328 = vst [vmem:[%s1763_s12 + $0x30] sm:$0xff] %v1276_v24   ;;  %1336 = vst [vmem:[%s1763_s12 + $0x70] sm:$0xff] %v1316_v25   ;;  %v941_v48 = vld [vmem:[%s1763_s12 + $0x58] sm:$0xf] (%p1681_p9)  ;;  %v943_v49 = vld [vmem:[%s1763_s12 + $0x5c] sm:$0xf] (%p1681_p9) }
 0x143   : > { %914 = vst [vmem:[%s1819_s28 + $0x40] sm:$0xf] %v913_v33  ;;  %916 = vst [vmem:[%s1819_s28 + $0x48] sm:$0xf] %v915_v34  ;;  %v945_v50 = vld [vmem:[%s1763_s12 + $0x60] sm:$0xf] }
 0x144   : > { %918 = vst [vmem:[%s1819_s28 + $0x50] sm:$0xf] %v917_v35  ;;  %920 = vst [vmem:[%s1819_s28 + $0x58] sm:$0xf] %v919_v36  ;;  %v947_v51 = vld [vmem:[%s1763_s12 + $0x64] sm:$0xf] }
 0x145   : > { %940 = vst [vmem:[%s1819_s28 + $0xa8] sm:$0xf] %v939_v47  ;;  %942 = vst [vmem:[%s1819_s28 + $0xb0] sm:$0xf] %v941_v48  ;;  %v949_v52 = vld [vmem:[%s1763_s12 + $0x68] sm:$0xf] }
 0x146   : > { %944 = vst [vmem:[%s1819_s28 + $0xb8] sm:$0xf] %v943_v49  ;;  %946 = vst [vmem:[%s1819_s28 + $0xc0] sm:$0xf] %v945_v50  ;;  %v951_v53 = vld [vmem:[%s1763_s12 + $0x6c] sm:$0xf] }
 0x147   : > { %948 = vst [vmem:[%s1819_s28 + $0xc8] sm:$0xf] %v947_v51  ;;  %950 = vst [vmem:[%s1819_s28 + $0xd0] sm:$0xf] %v949_v52 }
 0x148   : > { %v925_v39 = vld [vmem:[%s1763_s12 + $0x38] sm:$0xf]  ;;  %v927_v41 = vld [vmem:[%s1763_s12 + $0x3c] sm:$0xf]  ;;  %952 = vst [vmem:[%s1819_s28 + $0xd8] sm:$0xf] %v951_v53 }
 0x149   : > { %v921_v37 = vld [vmem:[%s1763_s12 + $0x30] sm:$0xf]  ;;  %v923_v38 = vld [vmem:[%s1763_s12 + $0x34] sm:$0xf]  ;;  %926 = vst [vmem:[%s1819_s28 + $0x70] sm:$0xf] %v925_v39 }
 0x14a   : > { %922 = vst [vmem:[%s1819_s28 + $0x60] sm:$0xf] %v921_v37  ;;  %924 = vst [vmem:[%s1819_s28 + $0x68] sm:$0xf] %v923_v38  ;;  %v953_v54 = vld [vmem:[%s1763_s12 + $0x70] sm:$0xf] }
 0x14b   : > { %928 = vst [vmem:[%s1819_s28 + $0x78] sm:$0xf] %v927_v41  ;;  %v955_v55 = vld [vmem:[%s1763_s12 + $0x74] sm:$0xf]  ;;  %v957_v56 = vld [vmem:[%s1763_s12 + $0x78] sm:$0xf] }
 0x14c   : > { %954 = vst [vmem:[%s1819_s28 + $0xe0] sm:$0xf] %v953_v54  ;;  %956 = vst [vmem:[%s1819_s28 + $0xe8] sm:$0xf] %v955_v55  ;;  %v959_v57 = vld [vmem:[%s1763_s12 + $0x7c] sm:$0xf] }
 0x14d   : > { %958 = vst [vmem:[%s1819_s28 + $0xf0] sm:$0xf] %v957_v56  ;;  %960 = vst [vmem:[%s1819_s28 + $0xf8] sm:$0xf] %v959_v57 }
 0x14e PF: > { %s13_s20 = sadd.s32 1, %s1592_s20   ;;  %s1910_s12 = smov %s1564_s13 }
 0x14f   : > { %p10_p2 = scmp.ge.s32.totalorder %s13_s20, 6   ;;  %s1911_s13 = smov %s1686_s4 }
 0x150   : > { %s1912_s14 = smov %s1572_s15  ;;  %s1913_s15 = smov %s1675_s27 }
 0x151   : > { %s1914_s16 = smov %s1584_s18  ;;  %s1915_s17 = smov %s1588_s19 }
 0x152   : > { %s1916_s18 = smov %s1919_s22  ;;  %s1917_s19 = smov %s1923_s23 }
 0x153   :  { %12 = sbr.rel (!%p10_p2) target bundleno = 5 (0x5), region = 155 }

// kernel: forward_fn.55
= control target key start
LH: loop header
LB: loop body
LE: loop exit
PB: predicated region body
PF: predicated region fallthrough
CT: control target
= control target key end

     0   :  { %s2733_s12 = smov 0   ;;  %s2735_s13 = smov 0   ;;  %s3167_s0 = inlined_call_operand.vmem [shape: bf16[2048,576], index: 0, kind: input, shape index: {}]   ;;  %s3168_s1 = inlined_call_operand.vmem [shape: bf16[576,128], index: 1, kind: input, shape index: {}]   ;;  %s3169_s2 = inlined_call_operand.vmem [shape: f32[1,128], index: 2, kind: input, shape index: {}]   ;;  %s3170_s3 = inlined_call_operand.vmem [shape: f32[2048,128], index: 3, kind: output, shape index: {}]  }
   0x1   :  { %s2737_s14 = smov 0  }
   0x2 LB: > { %s22_s15 = sadd.s32 1, %s2707_s13  ;;  %p1916_p0 = scmp.ge.s32.totalorder %s2711_s14, 1  ;;  %s2711_s14 = sphi %s2737_s14, %s13_s14   ;;  %s2707_s13 = sphi %s2735_s13, %s3172_s13   ;;  %s2703_s12 = sphi %s2733_s12, %s3171_s12  }
   0x3   : > { %p23_p1 = scmp.ge.s32.totalorder %s22_s15, 8  ;;  %p170_p2 = scmp.lt.s32.totalorder %s2711_s14, 9 }
   0x5   : > { %s3174_s15 = smov (%p23_p1, %s22_s15), 0  ;;  %p171_p3 = pnand %p1916_p0, %p170_p2 }
   0x6   : > { %v2413_v0 = vld [vmem:[%s3168_s1 + $0x40] sm:$0xff] (!%p171_p3)   ;;  %s1917_s18 = sshll.u32 (!%p171_p3), %s2703_s12, 5  ;;  %v2415_v2 = vld [vmem:[%s3168_s1 + $0x48] sm:$0xff] (!%p171_p3)   ;;  %v2417_v4 = vld [vmem:[%s3168_s1 + $0x50] sm:$0xff] (!%p171_p3)   ;;  %vm1020_vm0 = vcmask (!%p171_p3), 523264  }
   0x7   : > { %174 = sbr.rel (%p171_p3) target bundleno = 444 (0x1bc), region = 32  ;;  %v2414_v1 = vld [vmem:[%s3168_s1] sm:$0xff] (!%p171_p3)   ;;  %2088 = vmatprep.subr.bf16.mxu0 (!%p171_p3), %v2413_v0  ;;  %2372 = vmatprep.subr.bf16.mxu1 (!%p171_p3), %v2413_v0  ;;  %p206_p4 = scmp.lt.s32.totalorder (!%p171_p3), %s1917_s18, 255  ;;  %v2416_v3 = vld [vmem:[%s3168_s1 + $0x8] sm:$0xff] (!%p171_p3)   ;;  %v2418_v5 = vld [vmem:[%s3168_s1 + $0x10] sm:$0xff] (!%p171_p3)  }
   0x8   : > { %2089 = vmatpush3.bf16.msra.mxu0 (!%p171_p3), %v2414_v1  ;;  %2380 = vmatpush3.bf16.msra.mxu1 (!%p171_p3), %v2414_v1  ;;  %v2419_v6 = vld [vmem:[%s3168_s1 + $0x58] sm:$0xff] (!%p171_p3)   ;;  %v2421_v8 = vld [vmem:[%s3168_s1 + $0x60] sm:$0xff] (!%p171_p3)   ;;  %v2423_v10 = vld [vmem:[%s3168_s1 + $0x68] sm:$0xff] (!%p171_p3)  }
   0x9   : > { %2090 = vmatprep.subr.bf16.mxu0 (!%p171_p3), %v2415_v2  ;;  %2373 = vmatprep.subr.bf16.mxu1 (!%p171_p3), %v2415_v2  ;;  %v2420_v7 = vld [vmem:[%s3168_s1 + $0x18] sm:$0xff] (!%p171_p3)   ;;  %v2422_v9 = vld [vmem:[%s3168_s1 + $0x20] sm:$0xff] (!%p171_p3)   ;;  %v2424_v13 = vld [vmem:[%s3168_s1 + $0x28] sm:$0xff] (!%p171_p3)  }
   0xa   : > { %v2425_v14 = vld [vmem:[%s3168_s1 + $0x70] sm:$0xff] (!%p171_p3)   ;;  %v2427_v16 = vld [vmem:[%s3168_s1 + $0x78] sm:$0xff] (!%p171_p3)   ;;  %v2435_v18 = vld [vmem:[%s3168_s1 + $0xc0] sm:$0xff] (!%p171_p3)  }
   0xb   : > { %v2426_v15 = vld [vmem:[%s3168_s1 + $0x30] sm:$0xff] (!%p171_p3)   ;;  %v2428_v17 = vld [vmem:[%s3168_s1 + $0x38] sm:$0xff] (!%p171_p3)   ;;  %v2438_v19 = vld [vmem:[%s3168_s1 + $0x100] sm:$0xff] (!%p171_p3)  }
   0xc   : > { %2091 = vmatpush3.bf16.msra.mxu0 (!%p171_p3), %v2416_v3  ;;  %2381 = vmatpush3.bf16.msra.mxu1 (!%p171_p3), %v2416_v3  ;;  %v2436_v22 = vld [vmem:[%s3168_s1 + $0x80] sm:$0xff] (!%p171_p3)   ;;  %v2437_v23 = vld [vmem:[%s3168_s1 + $0xc8] sm:$0xff] (!%p171_p3)   ;;  %v2446_v28 = vld [vmem:[%s3168_s1 + $0xd0] sm:$0xff] (!%p171_p3)  }
   0xd   : > { %2092 = vmatprep.subr.bf16.mxu0 (!%p171_p3), %v2417_v4  ;;  %2374 = vmatprep.subr.bf16.mxu1 (!%p171_p3), %v2417_v4  ;;  %v2439_v26 = vld [vmem:[%s3168_s1 + $0x88] sm:$0xff] (!%p171_p3)   ;;  %v2447_v30 = vld [vmem:[%s3168_s1 + $0x90] sm:$0xff] (!%p171_p3)   ;;  %v2448_v31 = vld [vmem:[%s3168_s1 + $0xd8] sm:$0xff] (!%p171_p3)  }
   0xe   : > { %s3176_s18 = smov (!%p206_p4, %s1917_s18), 255  ;;  %v2449_v34 = vld [vmem:[%s3168_s1 + $0x98] sm:$0xff]   ;;  %v2469_v35 = vld [vmem:[%s3168_s1 + $0x108] sm:$0xff]   ;;  %v2456_v37 = vld [vmem:[%s3168_s1 + $0xe0] sm:$0xff]  }
   0xf   : > { %s2388_s4 = smul.u32 20, %s3176_s18  ;;  %v2457_v39 = vld [vmem:[%s3168_s1 + $0xa0] sm:$0xff]   ;;  %v2458_v40 = vld [vmem:[%s3168_s1 + $0xe8] sm:$0xff]   ;;  %v2466_v46 = vld [vmem:[%s3168_s1 + $0xf0] sm:$0xff]   ;;  %s1920_s27 = sshll.u32 %s3176_s18, 3 }
  0x10   : > { %2093 = vmatpush3.bf16.msra.mxu0 %v2418_v5  ;;  %2382 = vmatpush3.bf16.msra.mxu1 %v2418_v5  ;;  %v2459_v43 = vld [vmem:[%s3168_s1 + $0xa8] sm:$0xff]   ;;  %v2489_v47 = vld [vmem:[%s3168_s1 + $0x110] sm:$0xff]   ;;  %v2468_v49 = vld [vmem:[%s3168_s1 + $0xf8] sm:$0xff]   ;;  %s3089_s29 = scalar_lea.vmem %s3170_s3, %s1920_s27 }
  0x11   : > { %2094 = vmatprep.subr.bf16.mxu0 %v2419_v6  ;;  %2375 = vmatprep.subr.bf16.mxu1 %v2419_v6  ;;  %s2784_s11 = scalar_lea.vmem %s3167_s0, %s2388_s4  ;;  %v2467_v48 = vld [vmem:[%s3168_s1 + $0xb0] sm:$0xff]   ;;  %v2470_v52 = vld [vmem:[%s3168_s1 + $0xb8] sm:$0xff]  }
  0x12   : > { %v2431_v11 = vld [vmem:[%s2784_s11 + $0x4] ss:$20 sps:$4 sm:$0xff]   ;;  %v2429_v20 = vld [vmem:[%s2784_s11] ss:$20 sps:$4 sm:$0xff]   ;;  %v2444_v27 = vld [vmem:[%s2784_s11 + $0x28] ss:$20 sps:$4 sm:$0xff]  }
  0x13   : > { %v2434_v12 = vld [vmem:[%s2784_s11 + $0x1e4] ss:$20 sps:$4 sm:$0xff]   ;;  %1101 = vmatprep.mubr.bf16.mxu0 %v2431_v11  ;;  %v2432_v21 = vld [vmem:[%s2784_s11 + $0x1e0] ss:$20 sps:$4 sm:$0xff]   ;;  %v2445_v29 = vld [vmem:[%s2784_s11 + $0x208] ss:$20 sps:$4 sm:$0xff]  }
  0x14   : > { %2095 = vmatpush3.bf16.msra.mxu0 %v2420_v7  ;;  %2383 = vmatpush3.bf16.msra.mxu1 %v2420_v7  ;;  %v2440_v24 = vld [vmem:[%s2784_s11 + $0x2c] ss:$20 sps:$4 sm:$0xff]   ;;  %v2450_v32 = vld [vmem:[%s2784_s11 + $0x54] ss:$20 sps:$4 sm:$0xff]   ;;  %v2454_v36 = vld [vmem:[%s2784_s11 + $0x50] ss:$20 sps:$4 sm:$0xff]  }
  0x15   : > { %2096 = vmatprep.subr.bf16.mxu0 %v2421_v8  ;;  %2376 = vmatprep.subr.bf16.mxu1 %v2421_v8  ;;  %v2442_v25 = vld [vmem:[%s2784_s11 + $0x20c] ss:$20 sps:$4 sm:$0xff]   ;;  %v2452_v33 = vld [vmem:[%s2784_s11 + $0x234] ss:$20 sps:$4 sm:$0xff]   ;;  %v2455_v38 = vld [vmem:[%s2784_s11 + $0x230] ss:$20 sps:$4 sm:$0xff]  }
  0x16   : > { %1197 = vmatprep.mubr.bf16.mxu1 %v2434_v12  ;;  %v2460_v41 = vld [vmem:[%s2784_s11 + $0x7c] ss:$20 sps:$4 sm:$0xff]   ;;  %v2464_v44 = vld [vmem:[%s2784_s11 + $0x78] ss:$20 sps:$4 sm:$0xff]   ;;  %v2476_v54 = vld [vmem:[%s2784_s11 + $0xa0] ss:$20 sps:$4 sm:$0xff]  }
  0x17   : > { %v2462_v42 = vld [vmem:[%s2784_s11 + $0x25c] ss:$20 sps:$4 sm:$0xff]   ;;  %v2465_v45 = vld [vmem:[%s2784_s11 + $0x258] ss:$20 sps:$4 sm:$0xff]   ;;  %v2479_v57 = vld [vmem:[%s2784_s11 + $0x34] ss:$20 sps:$4 sm:$0xff]  }
  0x18   : > { %2097 = vmatpush3.bf16.msra.mxu0 %v2422_v9  ;;  %2384 = vmatpush3.bf16.msra.mxu1 %v2422_v9  ;;  %v2471_v50 = vld [vmem:[%s2784_s11 + $0xa4] ss:$20 sps:$4 sm:$0xff]   ;;  %v2475_v51 = vld [vmem:[%s2784_s11 + $0xc] ss:$20 sps:$4 sm:$0xff]   ;;  %v2473_v53 = vld [vmem:[%s2784_s11 + $0x8] ss:$20 sps:$4 sm:$0xff]  }
  0x19   : > { %2098 = vmatprep.subr.bf16.mxu0 %v2423_v10  ;;  %2377 = vmatprep.subr.bf16.mxu1 %v2423_v10  ;;  %v2477_v55 = vld [vmem:[%s2784_s11 + $0xcc] ss:$20 sps:$4 sm:$0xff]   ;;  %v2508_v56 = vld [vmem:[%s3168_s1 + $0x118] sm:$0xff]   ;;  %v2482_v59 = vld [vmem:[%s2784_s11 + $0x30] ss:$20 sps:$4 sm:$0xff]  }
  0x1a   : > { %v2481_v58 = vld [vmem:[%s2784_s11 + $0xc8] ss:$20 sps:$4 sm:$0xff]   ;;  %v2487_v62 = vld [vmem:[%s2784_s11 + $0xf0] ss:$20 sps:$4 sm:$0xff]   ;;  %v2488_v63 = vld [vmem:[%s2784_s11 + $0x58] ss:$20 sps:$4 sm:$0xff]  }
  0x1b   : > { %v2483_v60 = vld [vmem:[%s2784_s11 + $0xf4] ss:$20 sps:$4 sm:$0xff]   ;;  %v2485_v61 = vld [vmem:[%s2784_s11 + $0x5c] ss:$20 sps:$4 sm:$0xff]   ;;  %v2492_v1 = vld [vmem:[%s2784_s11 + $0x84] ss:$20 sps:$4 sm:$0xff]  }
  0x1c   : > { %2099 = vmatpush3.bf16.msra.mxu0 %v2424_v13  ;;  %2385 = vmatpush3.bf16.msra.mxu1 %v2424_v13  ;;  %v2490_v0 = vld [vmem:[%s2784_s11 + $0x11c] ss:$20 sps:$4 sm:$0xff]   ;;  %v2494_v2 = vld [vmem:[%s2784_s11 + $0x118] ss:$20 sps:$4 sm:$0xff]   ;;  %v2495_v3 = vld [vmem:[%s2784_s11 + $0x80] ss:$20 sps:$4 sm:$0xff]  }
  0x1d   : > { %2100 = vmatprep.subr.bf16.mxu0 %v2425_v14  ;;  %2378 = vmatprep.subr.bf16.mxu1 %v2425_v14  ;;  %v2496_v4 = vld [vmem:[%s2784_s11 + $0x144] ss:$20 sps:$4 sm:$0xff]   ;;  %v2498_v5 = vld [vmem:[%s2784_s11 + $0xac] ss:$20 sps:$4 sm:$0xff]   ;;  %v2501_v7 = vld [vmem:[%s2784_s11 + $0xa8] ss:$20 sps:$4 sm:$0xff]  }
  0x1e   : > { %v2500_v6 = vld [vmem:[%s2784_s11 + $0x140] ss:$20 sps:$4 sm:$0xff]   ;;  %v2506_v10 = vld [vmem:[%s2784_s11 + $0x168] ss:$20 sps:$4 sm:$0xff]   ;;  %v2507_v11 = vld [vmem:[%s2784_s11 + $0xd0] ss:$20 sps:$4 sm:$0xff]  }
  0x1f   : > { %v2502_v8 = vld [vmem:[%s2784_s11 + $0x16c] ss:$20 sps:$4 sm:$0xff]   ;;  %v2504_v9 = vld [vmem:[%s2784_s11 + $0xd4] ss:$20 sps:$4 sm:$0xff]   ;;  %v2511_v13 = vld [vmem:[%s2784_s11 + $0xfc] ss:$20 sps:$4 sm:$0xff]  }
  0x20   : > { %2101 = vmatpush3.bf16.msra.mxu0 %v2426_v15  ;;  %2386 = vmatpush3.bf16.msra.mxu1 %v2426_v15  ;;  %v2509_v12 = vld [vmem:[%s2784_s11 + $0x194] ss:$20 sps:$4 sm:$0xff]   ;;  %v2513_v14 = vld [vmem:[%s2784_s11 + $0x190] ss:$20 sps:$4 sm:$0xff]   ;;  %v2514_v15 = vld [vmem:[%s2784_s11 + $0xf8] ss:$20 sps:$4 sm:$0xff]  }
  0x21   : > { %2102 = vmatprep.subr.bf16.mxu0 %v2427_v16  ;;  %2379 = vmatprep.subr.bf16.mxu1 %v2427_v16  ;;  %v2515_v16 = vld [vmem:[%s2784_s11 + $0x1bc] ss:$20 sps:$4 sm:$0xff]  }
  0x24   : > { %2103 = vmatpush3.bf16.msra.mxu0 %v2428_v17  ;;  %2387 = vmatpush3.bf16.msra.mxu1 %v2428_v17  ;;  %v2517_v17 = vld [vmem:[%s2784_s11 + $0x124] ss:$20 sps:$4 sm:$0xff]  }
  0x25   : > { %2200 = vmatprep.subr.bf16.mxu1 %v2435_v18  ;;  %2332 = vmatprep.subr.bf16.mxu0 %v2438_v19  ;;  %v2519_v18 = vld [vmem:[%s2784_s11 + $0x1b8] ss:$20 sps:$4 sm:$0xff]  }
  0x27   : > { %1102 = vmatmul.mubr.bf16.vlgmr.msra.gmra.mrb[0].mxu0 %v2429_v20  ;;  %1198 = vmatmul.mubr.bf16.vlgmr.msra.gmra.mrb[0].mxu1 %v2432_v21  ;;  %v2521_v20 = vld [vmem:[%s2784_s11 + $0x14c] ss:$20 sps:$4 sm:$0xff]   ;;  %v2523_v21 = vld [vmem:[%s2784_s11 + $0x10] ss:$20 sps:$4 sm:$0xff]  }
  0x28   : > { %2201 = vmatpush3.bf16.msra.mxu1 %v2436_v22  ;;  %2333 = vmatpush3.bf16.msra.mxu0 %v2438_v19  ;;  %v2520_v19 = vld [vmem:[%s2784_s11 + $0x120] ss:$20 sps:$4 sm:$0xff]   ;;  %v2524_v22 = vld [vmem:[%s2784_s11 + $0x148] ss:$20 sps:$4 sm:$0xff]  }
  0x29   : > { %2202 = vmatprep.subr.bf16.mxu1 %v2437_v23  ;;  %1109 = vmatprep.mubr.bf16.mxu0 %v2440_v24  ;;  %v2525_v23 = vld [vmem:[%s2784_s11 + $0x38] ss:$20 sps:$4 sm:$0xff]   ;;  %v2526_v24 = vld [vmem:[%s2784_s11 + $0x174] ss:$20 sps:$4 sm:$0xff]  }
  0x2a   : > { %1205 = vmatprep.mubr.bf16.mxu1 %v2442_v25  ;;  %2334 = vmatprep.subr.bf16.mxu0 %v2469_v35  ;;  %v2528_v25 = vld [vmem:[%s2784_s11 + $0x60] ss:$20 sps:$4 sm:$0xff]  }
  0x2c   : > { %2203 = vmatpush3.bf16.msra.mxu1 %v2439_v26  ;;  %2335 = vmatpush3.bf16.msra.mxu0 %v2469_v35  ;;  %v2529_v26 = vld [vmem:[%s2784_s11 + $0x170] ss:$20 sps:$4 sm:$0xff]   ;;  %v2540_v35 = vld [vmem:[%s2784_s11 + $0x128] ss:$20 sps:$4 sm:$0xff]  }
  0x2d   : > { %2204 = vmatprep.subr.bf16.mxu1 %v2446_v28  ;;  %2336 = vmatprep.subr.bf16.mxu0 %v2489_v47  ;;  %v2531_v28 = vld [vmem:[%s2784_s11 + $0x19c] ss:$20 sps:$4 sm:$0xff]  }
  0x2f   : > { %1110 = vmatmul.mubr.bf16.gmra.mrb[4].mxu0 %v2444_v27  ;;  %1206 = vmatmul.mubr.bf16.gmra.mrb[4].mxu1 %v2445_v29  ;;  %v2530_v27 = vld [vmem:[%s2784_s11 + $0x88] ss:$20 sps:$4 sm:$0xff]   ;;  %v2533_v29 = vld [vmem:[%s2784_s11 + $0xb0] ss:$20 sps:$4 sm:$0xff]  }
  0x30   : > { %2205 = vmatpush3.bf16.msra.mxu1 %v2447_v30  ;;  %1117 = vmatprep.mubr.bf16.mxu0 %v2450_v32  ;;  %v2534_v30 = vld [vmem:[%s2784_s11 + $0x198] ss:$20 sps:$4 sm:$0xff]  }
  0x31   : > { %2206 = vmatprep.subr.bf16.mxu1 %v2448_v31  ;;  %1213 = vmatprep.mubr.bf16.mxu1 %v2452_v33  ;;  %v2535_v31 = vld [vmem:[%s2784_s11 + $0xd8] ss:$20 sps:$4 sm:$0xff]   ;;  %v2538_v33 = vld [vmem:[%s2784_s11 + $0x100] ss:$20 sps:$4 sm:$0xff]  }
  0x32   : > { %2337 = vmatpush3.bf16.msra.mxu0 %v2489_v47  ;;  %v2536_v32 = vld [vmem:[%s2784_s11 + $0x1c4] ss:$20 sps:$4 sm:$0xff]  }
  0x33   : > { %2338 = vmatprep.subr.bf16.mxu0 %v2508_v56  ;;  %v2555_v47 = vld [vmem:[%s2784_s11 + $0x218] ss:$20 sps:$4 sm:$0xff]  }
  0x34   : > { %2207 = vmatpush3.bf16.msra.mxu1 %v2449_v34  ;;  %v2539_v34 = vld [vmem:[%s2784_s11 + $0x1c0] ss:$20 sps:$4 sm:$0xff]  }
  0x35   : > { %2208 = vmatprep.subr.bf16.mxu1 %v2456_v37  ;;  %v2543_v37 = vld [vmem:[%s2784_s11 + $0x150] ss:$20 sps:$4 sm:$0xff]  }
  0x36   : > { %2339 = vmatpush3.bf16.msra.mxu0 %v2508_v56 }
  0x37   : > { %1118 = vmatmul.mubr.bf16.gmra.mrb[8].mxu0 %v2454_v36  ;;  %1214 = vmatmul.mubr.bf16.gmra.mrb[8].mxu1 %v2455_v38  ;;  %v2541_v36 = vld [vmem:[%s2784_s11 + $0x1ec] ss:$20 sps:$4 sm:$0xff]   ;;  %v2544_v38 = vld [vmem:[%s2784_s11 + $0x1e8] ss:$20 sps:$4 sm:$0xff]  }
  0x38   : > { %2209 = vmatpush3.bf16.msra.mxu1 %v2457_v39  ;;  %1125 = vmatprep.mubr.bf16.mxu0 %v2460_v41  ;;  %v2545_v39 = vld [vmem:[%s2784_s11 + $0x178] ss:$20 sps:$4 sm:$0xff]   ;;  %v2548_v41 = vld [vmem:[%s2784_s11 + $0x1a0] ss:$20 sps:$4 sm:$0xff]  }
  0x39   : > { %2210 = vmatprep.subr.bf16.mxu1 %v2458_v40  ;;  %1221 = vmatprep.mubr.bf16.mxu1 %v2462_v42  ;;  %v2546_v40 = vld [vmem:[%s2784_s11 + $0x214] ss:$20 sps:$4 sm:$0xff]   ;;  %v2549_v42 = vld [vmem:[%s2784_s11 + $0x210] ss:$20 sps:$4 sm:$0xff]  }
  0x3c   : > { %2211 = vmatpush3.bf16.msra.mxu1 %v2459_v43  ;;  %v2550_v43 = vld [vmem:[%s2784_s11 + $0x1c8] ss:$20 sps:$4 sm:$0xff]  }
  0x3d   : > { %2212 = vmatprep.subr.bf16.mxu1 %v2466_v46  ;;  %v2554_v46 = vld [vmem:[%s2784_s11 + $0x238] ss:$20 sps:$4 sm:$0xff]  }
  0x3f   : > { %1126 = vmatmul.mubr.bf16.gmra.mrb[12].mxu0 %v2464_v44  ;;  %1222 = vmatmul.mubr.bf16.gmra.mrb[12].mxu1 %v2465_v45  ;;  %v2551_v44 = vld [vmem:[%s2784_s11 + $0x23c] ss:$20 sps:$4 sm:$0xff]  }
  0x40   : > { %2213 = vmatpush3.bf16.msra.mxu1 %v2467_v48  ;;  %1133 = vmatprep.mubr.bf16.mxu0 %v2471_v50  ;;  %v2553_v45 = vld [vmem:[%s2784_s11 + $0x1f0] ss:$20 sps:$4 sm:$0xff]   ;;  %v2559_v50 = vld [vmem:[%s2784_s11 + $0x260] ss:$20 sps:$4 sm:$0xff]  }
  0x41   : > { %2214 = vmatprep.subr.bf16.mxu1 %v2468_v49  ;;  %1262 = vmatprep.mubr.bf16.mxu1 %v2475_v51  ;;  %v2556_v48 = vld [vmem:[%s2784_s11 + $0x264] ss:$20 sps:$4 sm:$0xff]   ;;  %v2558_v49 = vld [vmem:[%s2784_s11 + $0x240] ss:$20 sps:$4 sm:$0xff]   ;;  %v2560_v51 = vld [vmem:[%s2784_s11 + $0x268] ss:$20 sps:$4 sm:$0xff]  }
  0x44   : > { %2215 = vmatpush3.bf16.msra.mxu1 %v2470_v52 }
  0x47   : > { %1134 = vmatmul.mubr.bf16.gmra.mrb[16].mxu0 %v2476_v54  ;;  %1263 = vmatmul.mubr.bf16.vlgmr.msra.gmra.mrb[16].mxu1 %v2473_v53 }
  0x48   : > { %1141 = vmatprep.mubr.bf16.mxu0 %v2477_v55  ;;  %1270 = vmatprep.mubr.bf16.mxu1 %v2479_v57 }
  0x4f   : > { %1142 = vmatmul.mubr.bf16.gmra.mrb[20].mxu0 %v2481_v58  ;;  %1271 = vmatmul.mubr.bf16.gmra.mrb[20].mxu1 %v2482_v59 }
  0x50   : > { %1149 = vmatprep.mubr.bf16.mxu0 %v2483_v60  ;;  %1278 = vmatprep.mubr.bf16.mxu1 %v2485_v61 }
  0x57   : > { %1150 = vmatmul.mubr.bf16.gmra.mrb[24].mxu0 %v2487_v62  ;;  %1279 = vmatmul.mubr.bf16.gmra.mrb[24].mxu1 %v2488_v63 }
  0x58   : > { %1157 = vmatprep.mubr.bf16.mxu0 %v2490_v0  ;;  %1286 = vmatprep.mubr.bf16.mxu1 %v2492_v1 }
  0x5f   : > { %1158 = vmatmul.mubr.bf16.gmra.mrb[28].mxu0 %v2494_v2  ;;  %1287 = vmatmul.mubr.bf16.gmra.mrb[28].mxu1 %v2495_v3 }
  0x60   : > { %1165 = vmatprep.mubr.bf16.mxu0 %v2496_v4  ;;  %1294 = vmatprep.mubr.bf16.mxu1 %v2498_v5 }
  0x67   : > { %1166 = vmatmul.mubr.bf16.gmra.mrb[32].mxu0 %v2500_v6  ;;  %1295 = vmatmul.mubr.bf16.gmra.mrb[32].mxu1 %v2501_v7 }
  0x68   : > { %1173 = vmatprep.mubr.bf16.mxu0 %v2502_v8  ;;  %1302 = vmatprep.mubr.bf16.mxu1 %v2504_v9 }
  0x6f   : > { %1174 = vmatmul.mubr.bf16.gmra.mrb[36].mxu0 %v2506_v10  ;;  %1303 = vmatmul.mubr.bf16.gmra.mrb[36].mxu1 %v2507_v11 }
  0x70   : > { %1181 = vmatprep.mubr.bf16.mxu0 %v2509_v12  ;;  %1310 = vmatprep.mubr.bf16.mxu1 %v2511_v13 }
  0x77   : > { %1182 = vmatmul.mubr.bf16.gmra.mrb[40].mxu0 %v2513_v14  ;;  %1311 = vmatmul.mubr.bf16.gmra.mrb[40].mxu1 %v2514_v15 }
  0x78   : > { %1189 = vmatprep.mubr.bf16.mxu0 %v2515_v16  ;;  %1318 = vmatprep.mubr.bf16.mxu1 %v2517_v17 }
  0x7f   : > { %1190 = vmatmul.mubr.bf16.gmra.mrb[44].mxu0 %v2519_v18  ;;  %1319 = vmatmul.mubr.bf16.gmra.mrb[44].mxu1 %v2520_v19 }
  0x80   : > { %1326 = vmatprep.mubr.bf16.mxu1 %v2521_v20  ;;  %2340 = vmatprep.mubr.msk.bf16.mxu0 %vm1020_vm0, %v2523_v21 }
  0x87   : > { %1327 = vmatmul.mubr.bf16.gmra.mrb[48].mxu1 %v2524_v22  ;;  %2341 = vmatmul.mubr.msk.bf16.vlgmr.msra.gmra.mrb[48].mxu0 %vm1020_vm0, %v2525_v23 }
  0x88   : > { %1334 = vmatprep.mubr.bf16.mxu1 %v2526_v24  ;;  %2344 = vmatprep.mubr.msk.bf16.mxu0 %vm1020_vm0, %v2528_v25 }
  0x8f   : > { %1335 = vmatmul.mubr.bf16.gmra.mrb[52].mxu1 %v2529_v26  ;;  %2345 = vmatmul.mubr.msk.bf16.gmra.mrb[52].mxu0 %vm1020_vm0, %v2530_v27 }
  0x90   : > { %1342 = vmatprep.mubr.bf16.mxu1 %v2531_v28  ;;  %2348 = vmatprep.mubr.msk.bf16.mxu0 %vm1020_vm0, %v2533_v29 }
  0x97   : > { %1343 = vmatmul.mubr.bf16.gmra.mrb[56].mxu1 %v2534_v30  ;;  %2349 = vmatmul.mubr.msk.bf16.gmra.mrb[56].mxu0 %vm1020_vm0, %v2535_v31 }
  0x98   : > { %1350 = vmatprep.mubr.bf16.mxu1 %v2536_v32  ;;  %2352 = vmatprep.mubr.msk.bf16.mxu0 %vm1020_vm0, %v2538_v33 }
  0x9f   : > { %1351 = vmatmul.mubr.bf16.gmra.mrb[60].mxu1 %v2539_v34  ;;  %2353 = vmatmul.mubr.msk.bf16.gmra.mrb[60].mxu0 %vm1020_vm0, %v2540_v35 }
  0xa0   : > { %1358 = vmatprep.mubr.bf16.mxu1 %v2541_v36  ;;  %2356 = vmatprep.mubr.msk.bf16.mxu0 %vm1020_vm0, %v2543_v37 }
  0xa7   : > { %1359 = vmatmul.mubr.bf16.gmra.mrb[64].mxu1 %v2544_v38  ;;  %2357 = vmatmul.mubr.msk.bf16.gmra.mrb[64].mxu0 %vm1020_vm0, %v2545_v39  ;;  %v2982_v38 = vld [vmem:[%s3169_s2] ss:$0 sm:$0xff] }
  0xa8   : > { %1366 = vmatprep.mubr.bf16.mxu1 %v2546_v40  ;;  %2360 = vmatprep.mubr.msk.bf16.mxu0 %vm1020_vm0, %v2548_v41 }
  0xaf   : > { %1367 = vmatmul.mubr.bf16.gmra.mrb[68].mxu1 %v2549_v42  ;;  %2361 = vmatmul.mubr.msk.bf16.gmra.mrb[68].mxu0 %vm1020_vm0, %v2550_v43 }
  0xb0   : > { %1374 = vmatprep.mubr.bf16.mxu1 %v2551_v44  ;;  %2364 = vmatprep.mubr.msk.bf16.mxu0 %vm1020_vm0, %v2553_v45 }
  0xb7   : > { %1375 = vmatmul.mubr.bf16.gmra.mrb[72].mxu1 %v2554_v46  ;;  %2365 = vmatmul.mubr.msk.bf16.gmra.mrb[72].mxu0 %vm1020_vm0, %v2555_v47 }
  0xb8   : > { %1382 = vmatprep.mubr.bf16.mxu1 %v2556_v48  ;;  %2368 = vmatprep.mubr.msk.bf16.mxu0 %vm1020_vm0, %v2558_v49 }
  0xbf   : > { %1383 = vmatmul.mubr.bf16.gmra.mrb[76].mxu1 %v2559_v50  ;;  %2369 = vmatmul.mubr.msk.bf16.gmra.mrb[76].mxu0 %vm1020_vm0, %v2560_v51 }
  0xfa   : > { %v2176_v52 = vpop.f32.mrb[0].mxu1  ;;  %v2104_v53 = vpop.f32.mrb[0].mxu0 }
  0xfb   : > { %v2177_v54 = vpop.f32.mrb[1].mxu1  ;;  %v2105_v55 = vpop.f32.mrb[1].mxu0 }
  0xfc   : > { %v2963_v56 = vadd.f32 %v2177_v54, %v2176_v52  ;;  %v2179_v57 = vpop.f32.mrb[2].mxu1  ;;  %v2106_v58 = vadd.f32 %v2105_v55, %v2104_v53  ;;  %v2107_v59 = vpop.f32.mrb[2].mxu0 }
  0xfd   : > { %v2180_v60 = vpop.f32.mrb[3].mxu1  ;;  %v2108_v61 = vpop.f32.mrb[3].mxu0 }
  0xfe   : > { %v2965_v62 = vadd.f32 %v2180_v60, %v2179_v57  ;;  %v2109_v63 = vadd.f32 %v2108_v61, %v2107_v59  ;;  %v1104_v41 = vadd.f32 %v2106_v58, %v2982_v38 }
 0x100   : > { %v1107_v48 = vadd.f32 %v2109_v63, %v2982_v38 }
 0x102   : > { %v2182_v0 = vpop.f32.mrb[4].mxu1  ;;  %v2110_v1 = vpop.f32.mrb[4].mxu0 }
 0x103   : > { %v2183_v2 = vpop.f32.mrb[5].mxu1  ;;  %v2111_v3 = vpop.f32.mrb[5].mxu0 }
 0x104   : > { %v2967_v4 = vadd.f32 %v2183_v2, %v2182_v0  ;;  %v2185_v5 = vpop.f32.mrb[6].mxu1  ;;  %v2112_v6 = vadd.f32 %v2111_v3, %v2110_v1  ;;  %v2113_v7 = vpop.f32.mrb[6].mxu0 }
 0x105   : > { %v2186_v8 = vpop.f32.mrb[7].mxu1  ;;  %v2114_v9 = vpop.f32.mrb[7].mxu0 }
 0x106   : > { %v2969_v10 = vadd.f32 %v2186_v8, %v2185_v5  ;;  %v2115_v11 = vadd.f32 %v2114_v9, %v2113_v7  ;;  %v1112_v58 = vadd.f32 %v2112_v6, %v2982_v38 }
 0x108   : > { %v1115_v63 = vadd.f32 %v2115_v11, %v2982_v38 }
 0x10a   : > { %v2188_v12 = vpop.f32.mrb[8].mxu1  ;;  %v2116_v13 = vpop.f32.mrb[8].mxu0 }
 0x10b   : > { %v2189_v14 = vpop.f32.mrb[9].mxu1  ;;  %v2117_v15 = vpop.f32.mrb[9].mxu0 }
 0x10c   : > { %v2971_v16 = vadd.f32 %v2189_v14, %v2188_v12  ;;  %v2191_v17 = vpop.f32.mrb[10].mxu1  ;;  %v2118_v18 = vadd.f32 %v2117_v15, %v2116_v13  ;;  %v2119_v19 = vpop.f32.mrb[10].mxu0 }
 0x10d   : > { %v2192_v20 = vpop.f32.mrb[11].mxu1  ;;  %v2120_v21 = vpop.f32.mrb[11].mxu0 }
 0x10e   : > { %v2973_v22 = vadd.f32 %v2192_v20, %v2191_v17  ;;  %v2121_v23 = vadd.f32 %v2120_v21, %v2119_v19  ;;  %v1120_v6 = vadd.f32 %v2118_v18, %v2982_v38 }
 0x110   : > { %v1123_v11 = vadd.f32 %v2121_v23, %v2982_v38 }
 0x112   : > { %v2194_v24 = vpop.f32.mrb[12].mxu1  ;;  %v2122_v25 = vpop.f32.mrb[12].mxu0 }
 0x113   : > { %v2195_v26 = vpop.f32.mrb[13].mxu1  ;;  %v2123_v27 = vpop.f32.mrb[13].mxu0 }
 0x114   : > { %v2975_v28 = vadd.f32 %v2195_v26, %v2194_v24  ;;  %v2197_v29 = vpop.f32.mrb[14].mxu1  ;;  %v2124_v30 = vadd.f32 %v2123_v27, %v2122_v25  ;;  %v2125_v31 = vpop.f32.mrb[14].mxu0 }
 0x115   : > { %v2198_v32 = vpop.f32.mrb[15].mxu1  ;;  %v2126_v33 = vpop.f32.mrb[15].mxu0 }
 0x116   : > { %v2977_v34 = vadd.f32 %v2198_v32, %v2197_v29  ;;  %v2127_v35 = vadd.f32 %v2126_v33, %v2125_v31  ;;  %v1128_v18 = vadd.f32 %v2124_v30, %v2982_v38 }
 0x118   : > { %v1131_v23 = vadd.f32 %v2127_v35, %v2982_v38 }
 0x11a   : > { %v2216_v36 = vpop.f32.mrb[16].mxu1  ;;  %v2128_v37 = vpop.f32.mrb[16].mxu0 }
 0x11b   : > { %v2217_v39 = vpop.f32.mrb[17].mxu1  ;;  %v2129_v40 = vpop.f32.mrb[17].mxu0 }
 0x11c   : > { %v2218_v42 = vadd.f32 %v2217_v39, %v2216_v36  ;;  %v2219_v43 = vpop.f32.mrb[18].mxu1  ;;  %v2130_v44 = vadd.f32 %v2129_v40, %v2128_v37  ;;  %v2131_v45 = vpop.f32.mrb[18].mxu0 }
 0x11d   : > { %v2220_v46 = vpop.f32.mrb[19].mxu1  ;;  %v2132_v47 = vpop.f32.mrb[19].mxu0 }
 0x11e   : > { %v2221_v49 = vadd.f32 %v2220_v46, %v2219_v43  ;;  %v2133_v50 = vadd.f32 %v2132_v47, %v2131_v45  ;;  %v2986_v51 = vadd.f32 %v2218_v42, %v1104_v41  ;;  %v1136_v30 = vadd.f32 %v2130_v44, %v2982_v38 }
 0x120   : > { %v2988_v52 = vadd.f32 %v2221_v49, %v1107_v48  ;;  %v1139_v35 = vadd.f32 %v2133_v50, %v2982_v38 }
 0x122   : > { %v2222_v53 = vpop.f32.mrb[20].mxu1  ;;  %v2134_v54 = vpop.f32.mrb[20].mxu0 }
 0x123   : > { %v2223_v55 = vpop.f32.mrb[21].mxu1  ;;  %v2135_v57 = vpop.f32.mrb[21].mxu0 }
 0x124   : > { %v2224_v59 = vadd.f32 %v2223_v55, %v2222_v53  ;;  %v2225_v60 = vpop.f32.mrb[22].mxu1  ;;  %v2136_v61 = vadd.f32 %v2135_v57, %v2134_v54  ;;  %v2137_v0 = vpop.f32.mrb[22].mxu0 }
 0x125   : > { %v2226_v1 = vpop.f32.mrb[23].mxu1  ;;  %v2138_v2 = vpop.f32.mrb[23].mxu0 }
 0x126   : > { %v2227_v3 = vadd.f32 %v2226_v1, %v2225_v60  ;;  %v2139_v5 = vadd.f32 %v2138_v2, %v2137_v0  ;;  %v2992_v7 = vadd.f32 %v2224_v59, %v1112_v58  ;;  %v1144_v44 = vadd.f32 %v2136_v61, %v2982_v38 }
 0x128   : > { %v2994_v8 = vadd.f32 %v2227_v3, %v1115_v63  ;;  %v1147_v50 = vadd.f32 %v2139_v5, %v2982_v38 }
 0x12a   : > { %v2228_v9 = vpop.f32.mrb[24].mxu1  ;;  %v2140_v12 = vpop.f32.mrb[24].mxu0 }
 0x12b   : > { %v2229_v13 = vpop.f32.mrb[25].mxu1  ;;  %v2141_v14 = vpop.f32.mrb[25].mxu0 }
 0x12c   : > { %v2230_v15 = vadd.f32 %v2229_v13, %v2228_v9  ;;  %v2231_v17 = vpop.f32.mrb[26].mxu1  ;;  %v2142_v19 = vadd.f32 %v2141_v14, %v2140_v12  ;;  %v2143_v20 = vpop.f32.mrb[26].mxu0 }
 0x12d   : > { %v2232_v21 = vpop.f32.mrb[27].mxu1  ;;  %v2144_v24 = vpop.f32.mrb[27].mxu0 }
 0x12e   : > { %v2233_v25 = vadd.f32 %v2232_v21, %v2231_v17  ;;  %v2145_v26 = vadd.f32 %v2144_v24, %v2143_v20  ;;  %v2998_v27 = vadd.f32 %v2230_v15, %v1120_v6 }
 0x130   : > { %v3000_v29 = vadd.f32 %v2233_v25, %v1123_v11 }
 0x132   : > { %v2234_v31 = vpop.f32.mrb[28].mxu1  ;;  %v2146_v32 = vpop.f32.mrb[28].mxu0 }
 0x133   : > { %v2235_v33 = vpop.f32.mrb[29].mxu1  ;;  %v2147_v36 = vpop.f32.mrb[29].mxu0 }
 0x134   : > { %v2236_v37 = vadd.f32 %v2235_v33, %v2234_v31  ;;  %v2237_v39 = vpop.f32.mrb[30].mxu1  ;;  %v2148_v40 = vadd.f32 %v2147_v36, %v2146_v32  ;;  %v2149_v41 = vpop.f32.mrb[30].mxu0 }
 0x135   : > { %v2238_v42 = vpop.f32.mrb[31].mxu1  ;;  %v2150_v43 = vpop.f32.mrb[31].mxu0 }
 0x136   : > { %v2239_v45 = vadd.f32 %v2238_v42, %v2237_v39  ;;  %v2151_v46 = vadd.f32 %v2150_v43, %v2149_v41  ;;  %v3004_v47 = vadd.f32 %v2236_v37, %v1128_v18  ;;  %v1152_v39 = vadd.f32 %v2142_v19, %v2982_v38 }
 0x138   : > { %v3006_v48 = vadd.f32 %v2239_v45, %v1131_v23 }
 0x13a   : > { %v2240_v49 = vpop.f32.mrb[32].mxu1  ;;  %v2152_v53 = vpop.f32.mrb[32].mxu0 }
 0x13b   : > { %v2241_v54 = vpop.f32.mrb[33].mxu1  ;;  %v2153_v55 = vpop.f32.mrb[33].mxu0 }
 0x13c   : > { %v2242_v57 = vadd.f32 %v2241_v54, %v2240_v49  ;;  %v2243_v58 = vpop.f32.mrb[34].mxu1  ;;  %v2154_v59 = vadd.f32 %v2153_v55, %v2152_v53  ;;  %v2155_v60 = vpop.f32.mrb[34].mxu0  ;;  %v1155_v49 = vadd.f32 %v2145_v26, %v2982_v38 }
 0x13d   : > { %v2244_v0 = vpop.f32.mrb[35].mxu1  ;;  %v2156_v1 = vpop.f32.mrb[35].mxu0 }
 0x13e   : > { %v2245_v2 = vadd.f32 %v2244_v0, %v2243_v58  ;;  %v2157_v63 = vadd.f32 %v2156_v1, %v2155_v60  ;;  %v3010_v3 = vadd.f32 %v2242_v57, %v1136_v30  ;;  %v1160_v0 = vadd.f32 %v2148_v40, %v2982_v38 }
 0x140   : > { %v3012_v9 = vadd.f32 %v2245_v2, %v1139_v35 }
 0x142   : > { %v2246_v12 = vpop.f32.mrb[36].mxu1  ;;  %v2158_v13 = vpop.f32.mrb[36].mxu0 }
 0x143   : > { %v2247_v14 = vpop.f32.mrb[37].mxu1  ;;  %v2159_v6 = vpop.f32.mrb[37].mxu0 }
 0x144   : > { %v2248_v15 = vadd.f32 %v2247_v14, %v2246_v12  ;;  %v2249_v17 = vpop.f32.mrb[38].mxu1  ;;  %v3015_v20 = vadd.f32 %v2159_v6, %v2158_v13  ;;  %v2161_v21 = vpop.f32.mrb[38].mxu0  ;;  %v1163_v14 = vadd.f32 %v2151_v46, %v2982_v38 }
 0x145   : > { %v2250_v24 = vpop.f32.mrb[39].mxu1  ;;  %v2162_v11 = vpop.f32.mrb[39].mxu0 }
 0x146   : > { %v2251_v25 = vadd.f32 %v2250_v24, %v2249_v17  ;;  %v3018_v31 = vadd.f32 %v2162_v11, %v2161_v21  ;;  %v3020_v32 = vadd.f32 %v2248_v15, %v1144_v44 }
 0x148   : > { %v3022_v33 = vadd.f32 %v2251_v25, %v1147_v50  ;;  %v1168_v25 = vadd.f32 %v2154_v59, %v2982_v38 }
 0x14a   : > { %v2252_v36 = vpop.f32.mrb[40].mxu1  ;;  %v2164_v18 = vpop.f32.mrb[40].mxu0 }
 0x14b   : > { %v2253_v37 = vpop.f32.mrb[41].mxu1  ;;  %v2165_v61 = vpop.f32.mrb[41].mxu0 }
 0x14c   : > { %v2254_v41 = vadd.f32 %v2253_v37, %v2252_v36  ;;  %v2255_v42 = vpop.f32.mrb[42].mxu1  ;;  %v3025_v43 = vadd.f32 %v2165_v61, %v2164_v18  ;;  %v2167_v23 = vpop.f32.mrb[42].mxu0  ;;  %v1171_v61 = vadd.f32 %v2157_v63, %v2982_v38 }
 0x14d   : > { %v2256_v45 = vpop.f32.mrb[43].mxu1  ;;  %v2168_v5 = vpop.f32.mrb[43].mxu0 }
 0x14e   : > { %v2257_v53 = vadd.f32 %v2256_v45, %v2255_v42  ;;  %v3028_v54 = vadd.f32 %v2168_v5, %v2167_v23  ;;  %v3030_v55 = vadd.f32 %v2254_v41, %v1152_v39 }
 0x150   : > { %v3032_v30 = vadd.f32 %v2257_v53, %v1155_v49 }
 0x152   : > { %v2258_v57 = vpop.f32.mrb[44].mxu1  ;;  %v2170_v58 = vpop.f32.mrb[44].mxu0 }
 0x153   : > { %v2259_v60 = vpop.f32.mrb[45].mxu1  ;;  %v2171_v19 = vpop.f32.mrb[45].mxu0 }
 0x154   : > { %v2260_v1 = vadd.f32 %v2259_v60, %v2258_v57  ;;  %v2261_v35 = vpop.f32.mrb[46].mxu1  ;;  %v3035_v2 = vadd.f32 %v2171_v19, %v2170_v58  ;;  %v2173_v12 = vpop.f32.mrb[46].mxu0 }
 0x155   : > { %v2262_v13 = vpop.f32.mrb[47].mxu1  ;;  %v2174_v26 = vpop.f32.mrb[47].mxu0 }
 0x156   : > { %v2263_v6 = vadd.f32 %v2262_v13, %v2261_v35  ;;  %v3038_v44 = vadd.f32 %v2174_v26, %v2173_v12  ;;  %v3040_v15 = vadd.f32 %v2260_v1, %v1160_v0 }
 0x158   : > { %v3042_v17 = vadd.f32 %v2263_v6, %v1163_v14  ;;  %v1179_v6 = vadd.f32 %v3018_v31, %v2982_v38 }
 0x15a   : > { %v2264_v21 = vpop.f32.mrb[48].mxu1  ;;  %v2342_v24 = vpop.f32.mrb[48].mxu0 }
 0x15b   : > { %v1434_v40 = vadd.f32 %v2342_v24, %v2992_v7  ;;  %v2265_v11 = vpop.f32.mrb[49].mxu1  ;;  %v1425_v50 = vpop.f32.mrb[49].mxu0 }
 0x15c   : > { %v2266_v36 = vadd.f32 %v2265_v11, %v2264_v21  ;;  %v1426_v18 = vadd.f32 %v1425_v50, %v2986_v51  ;;  %v2267_v37 = vpop.f32.mrb[50].mxu1  ;;  %v2343_v46 = vpop.f32.mrb[50].mxu0 }
 0x15d   : > { %v1554_v39 = vmax.f32 %v1434_v40, 0.0  ;;  %v1437_v41 = vadd.f32 %v2343_v46, %v2994_v8  ;;  %v2268_v42 = vpop.f32.mrb[51].mxu1  ;;  %v1428_v23 = vpop.f32.mrb[51].mxu0 }
 0x15e   : > { %v1552_v45 = vmax.f32 %v1426_v18, 0.0  ;;  %v2269_v5 = vadd.f32 %v2268_v42, %v2267_v37  ;;  %v1429_v7 = vadd.f32 %v1428_v23, %v2988_v52  ;;  %v3050_v49 = vadd.f32 %v2266_v36, %v1168_v25 }
 0x15f   : > { %v2056_v53 = vmul.f32 -1.442695, %v1554_v39  ;;  %v1555_v59 = vmax.f32 %v1437_v41, 0.0  ;;  %v1176_v52 = vadd.f32 %v3015_v20, %v2982_v38  ;;  %v1184_v42 = vadd.f32 %v3025_v43, %v2982_v38 }
 0x160   : > { %v2054_v57 = vmul.f32 -1.442695, %v1552_v45  ;;  %v1553_v58 = vmax.f32 %v1429_v7, 0.0  ;;  %v3052_v51 = vadd.f32 %v2269_v5, %v1171_v61 }
 0x161   : > { %2561 = vpow2.f32 %v2056_v53  ;;  %v2057_v60 = vmul.f32 -1.442695, %v1555_v59 }
 0x162   : > { %2563 = vpow2.f32 %v2054_v57  ;;  %v2055_v63 = vmul.f32 -1.442695, %v1553_v58  ;;  %v2270_v19 = vpop.f32.mrb[52].mxu1  ;;  %v2346_v8 = vpop.f32.mrb[52].mxu0 }
 0x163   : > { %2565 = vpow2.f32 %v2057_v60  ;;  %v1450_v0 = vadd.f32 %v2346_v8, %v3004_v47  ;;  %v2271_v1 = vpop.f32.mrb[53].mxu1  ;;  %v1441_v35 = vpop.f32.mrb[53].mxu0 }
 0x164   : > { %2567 = vpow2.f32 %v2055_v63  ;;  %v2272_v12 = vadd.f32 %v2271_v1, %v2270_v19  ;;  %v1442_v13 = vadd.f32 %v1441_v35, %v2998_v27  ;;  %v2273_v26 = vpop.f32.mrb[54].mxu1  ;;  %v2347_v14 = vpop.f32.mrb[54].mxu0  ;;  %v1187_v63 = vadd.f32 %v3028_v54, %v2982_v38 }
 0x165   : > { %v1558_v21 = vmax.f32 %v1450_v0, 0.0  ;;  %v1453_v24 = vadd.f32 %v2347_v14, %v3006_v48  ;;  %v2274_v40 = vpop.f32.mrb[55].mxu1  ;;  %v1444_v11 = vpop.f32.mrb[55].mxu0 }
 0x166   : > { %v1556_v47 = vmax.f32 %v1442_v13, 0.0  ;;  %v2275_v50 = vadd.f32 %v2274_v40, %v2273_v26  ;;  %v1445_v25 = vadd.f32 %v1444_v11, %v3000_v29  ;;  %v3062_v36 = vadd.f32 %v2272_v12, %v1176_v52 }
 0x167   : > { %v2060_v20 = vmul.f32 -1.442695, %v1558_v21  ;;  %v1559_v18 = vmax.f32 %v1453_v24, 0.0 }
 0x168   : > { %v2058_v37 = vmul.f32 -1.442695, %v1556_v47  ;;  %v1557_v27 = vmax.f32 %v1445_v25, 0.0  ;;  %v3064_v46 = vadd.f32 %v2275_v50, %v1179_v6  ;;  %v1192_v50 = vadd.f32 %v3035_v2, %v2982_v38 }
 0x169   : > { %2569 = vpow2.f32 %v2060_v20  ;;  %v2061_v61 = vmul.f32 -1.442695, %v1559_v18  ;;  %v1195_v25 = vadd.f32 %v3038_v44, %v2982_v38 }
 0x16a   : > { %2571 = vpow2.f32 %v2058_v37  ;;  %v2059_v31 = vmul.f32 -1.442695, %v1557_v27  ;;  %v2276_v39 = vpop.f32.mrb[56].mxu1  ;;  %v2350_v48 = vpop.f32.mrb[56].mxu0 }
 0x16b   : > { %v2562_v41 = vpop.eup %2561  ;;  %2573 = vpow2.f32 %v2061_v61  ;;  %v1466_v29 = vadd.f32 %v2350_v48, %v3020_v32  ;;  %v2277_v23 = vpop.f32.mrb[57].mxu1 }
 0x16c   : > { %v1457_v45 = vpop.f32.mrb[57].mxu0  ;;  %v2564_v5 = vpop.eup %2563  ;;  %v1682_v7 = vadd.f32 1.0, %v2562_v41  ;;  %2575 = vpow2.f32 %v2059_v31  ;;  %v2278_v53 = vadd.f32 %v2277_v23, %v2276_v39 }
 0x16d   : > { %v1458_v59 = vadd.f32 %v1457_v45, %v3010_v3  ;;  %v2279_v57 = vpop.f32.mrb[58].mxu1  ;;  %v2351_v58 = vpop.f32.mrb[58].mxu0  ;;  %v1680_v19 = vadd.f32 1.0, %v2564_v5  ;;  %v1562_v8 = vmax.f32 %v1466_v29, 0.0 }
 0x16e   : > { %v2566_v60 = vpop.eup %2565  ;;  %v1469_v43 = vadd.f32 %v2351_v58, %v3022_v33  ;;  %v2280_v0 = vpop.f32.mrb[59].mxu1  ;;  %2577 = vrcp.f32 %v1682_v7  ;;  %v3074_v6 = vadd.f32 %v2278_v53, %v1184_v42 }
 0x16f   : > { %v1460_v32 = vpop.f32.mrb[59].mxu0  ;;  %v2568_v1 = vpop.eup %2567  ;;  %v1683_v35 = vadd.f32 1.0, %v2566_v60  ;;  %v1560_v52 = vmax.f32 %v1458_v59, 0.0  ;;  %v2281_v12 = vadd.f32 %v2280_v0, %v2279_v57  ;;  %2579 = vrcp.f32 %v1680_v19 }
 0x170   : > { %v1681_v13 = vadd.f32 1.0, %v2568_v1  ;;  %v2064_v3 = vmul.f32 -1.442695, %v1562_v8  ;;  %v1563_v26 = vmax.f32 %v1469_v43, 0.0  ;;  %v1461_v54 = vadd.f32 %v1460_v32, %v3012_v9 }
 0x171   : > { %2581 = vrcp.f32 %v1683_v35  ;;  %v2062_v14 = vmul.f32 -1.442695, %v1560_v52  ;;  %v3076_v21 = vadd.f32 %v2281_v12, %v1187_v63  ;;  %v1200_v12 = vadd.f32 %v2963_v56, %v2982_v38 }
 0x172   : > { %2583 = vrcp.f32 %v1681_v13  ;;  %v2065_v33 = vmul.f32 -1.442695, %v1563_v26  ;;  %v1561_v24 = vmax.f32 %v1461_v54, 0.0  ;;  %v2282_v40 = vpop.f32.mrb[60].mxu1  ;;  %v2354_v11 = vpop.f32.mrb[60].mxu0  ;;  %v1203_v54 = vadd.f32 %v2965_v62, %v2982_v38 }
 0x173   : > { %2585 = vpow2.f32 %v2064_v3  ;;  %v2570_v47 = vpop.eup %2569  ;;  %v1482_v9 = vadd.f32 %v2354_v11, %v3040_v15  ;;  %v2283_v20 = vpop.f32.mrb[61].mxu1 }
 0x174   : > { %2587 = vpow2.f32 %v2062_v14  ;;  %v1473_v18 = vpop.f32.mrb[61].mxu0  ;;  %v2572_v37 = vpop.eup %2571  ;;  %v1686_v27 = vadd.f32 1.0, %v2570_v47  ;;  %v2063_v61 = vmul.f32 -1.442695, %v1561_v24  ;;  %v2284_v31 = vadd.f32 %v2283_v20, %v2282_v40 }
 0x175   : > { %2589 = vpow2.f32 %v2065_v33  ;;  %v2285_v39 = vpop.f32.mrb[62].mxu1  ;;  %v2355_v48 = vpop.f32.mrb[62].mxu0  ;;  %v1684_v42 = vadd.f32 1.0, %v2572_v37  ;;  %v1566_v29 = vmax.f32 %v1482_v9, 0.0  ;;  %v1474_v2 = vadd.f32 %v1473_v18, %v3030_v55 }
 0x176   : > { %v2574_v41 = vpop.eup %2573  ;;  %v1485_v44 = vadd.f32 %v2355_v48, %v3042_v17  ;;  %v2286_v23 = vpop.f32.mrb[63].mxu1  ;;  %2591 = vrcp.f32 %v1686_v27  ;;  %v3092_v63 = vadd.f32 %v2284_v31, %v1192_v50 }
 0x177   : > { %v1476_v45 = vpop.f32.mrb[63].mxu0  ;;  %v2576_v5 = vpop.eup %2575  ;;  %v1687_v15 = vadd.f32 1.0, %v2574_v41  ;;  %v2287_v7 = vadd.f32 %v2286_v23, %v2285_v39  ;;  %2593 = vrcp.f32 %v1684_v42  ;;  %v2068_v55 = vmul.f32 -1.442695, %v1566_v29 }
 0x178   : > { %v1477_v53 = vadd.f32 %v1476_v45, %v3032_v30  ;;  %v1685_v59 = vadd.f32 1.0, %v2576_v5  ;;  %v1564_v57 = vmax.f32 %v1474_v2, 0.0  ;;  %v2578_v17 = vpop.eup %2577  ;;  %v1567_v58 = vmax.f32 %v1485_v44, 0.0 }
 0x179   : > { %2595 = vrcp.f32 %v1687_v15  ;;  %v2580_v19 = vpop.eup %2579  ;;  %1778 = vst [vmem:[%s3089_s29 + $0x10] sm:$0xff] %v2578_v17  ;;  %v3095_v43 = vadd.f32 %v2287_v7, %v1195_v25 }
 0x17a   : > { %v1565_v60 = vmax.f32 %v1477_v53, 0.0  ;;  %2597 = vrcp.f32 %v1685_v59  ;;  %v2066_v8 = vmul.f32 -1.442695, %v1564_v57  ;;  %1776 = vst [vmem:[%s3089_s29] sm:$0xff] %v2580_v19  ;;  %v2069_v30 = vmul.f32 -1.442695, %v1567_v58  ;;  %v2288_v1 = vpop.f32.mrb[64].mxu1 }
 0x17b   : > { %v2582_v0 = vpop.eup %2581  ;;  %2599 = vpow2.f32 %v2063_v61  ;;  %v2358_v35 = vpop.f32.mrb[64].mxu0  ;;  %v1208_v19 = vadd.f32 %v2967_v4, %v2982_v38 }
 0x17c   : > { %v2067_v32 = vmul.f32 -1.442695, %v1565_v60  ;;  %v2584_v52 = vpop.eup %2583  ;;  %1779 = vst [vmem:[%s3089_s29 + $0x18] sm:$0xff] %v2582_v0  ;;  %2601 = vpow2.f32 %v2068_v55  ;;  %v1498_v13 = vadd.f32 %v2358_v35, %v3062_v36  ;;  %v2289_v3 = vpop.f32.mrb[65].mxu1 }
 0x17d   : > { %v1489_v26 = vpop.f32.mrb[65].mxu0  ;;  %v2586_v14 = vpop.eup %2585  ;;  %1777 = vst [vmem:[%s3089_s29 + $0x8] sm:$0xff] %v2584_v52  ;;  %2603 = vpow2.f32 %v2066_v8  ;;  %v2290_v33 = vadd.f32 %v2289_v3, %v2288_v1 }
 0x17e   : > { %v1490_v24 = vadd.f32 %v1489_v26, %v3050_v49  ;;  %v2291_v40 = vpop.f32.mrb[66].mxu1  ;;  %v2359_v11 = vpop.f32.mrb[66].mxu0  ;;  %v1690_v50 = vadd.f32 1.0, %v2586_v14  ;;  %2605 = vpow2.f32 %v2069_v30  ;;  %v1570_v56 = vmax.f32 %v1498_v13, 0.0 }
 0x17f   : > { %v2588_v47 = vpop.eup %2587  ;;  %v1501_v25 = vadd.f32 %v2359_v11, %v3064_v46  ;;  %v2292_v36 = vpop.f32.mrb[67].mxu1  ;;  %2607 = vpow2.f32 %v2067_v32  ;;  %v3108_v46 = vadd.f32 %v2290_v33, %v1200_v12 }
 0x180   : > { %v1492_v9 = vpop.f32.mrb[67].mxu0  ;;  %v2590_v20 = vpop.eup %2589  ;;  %v1688_v18 = vadd.f32 1.0, %v2588_v47  ;;  %v1568_v62 = vmax.f32 %v1490_v24, 0.0  ;;  %v2293_v37 = vadd.f32 %v2292_v36, %v2291_v40  ;;  %2609 = vrcp.f32 %v1690_v50 }
 0x181   : > { %v1691_v27 = vadd.f32 1.0, %v2590_v20  ;;  %v2072_v49 = vmul.f32 -1.442695, %v1570_v56  ;;  %v1571_v61 = vmax.f32 %v1501_v25, 0.0  ;;  %v2592_v31 = vpop.eup %2591  ;;  %v1493_v48 = vadd.f32 %v1492_v9, %v3052_v51 }
 0x182   : > { %2611 = vrcp.f32 %v1688_v18  ;;  %v2070_v39 = vmul.f32 -1.442695, %v1568_v62  ;;  %v2594_v41 = vpop.eup %2593  ;;  %1782 = vst [vmem:[%s3089_s29 + $0x30] sm:$0xff] %v2592_v31  ;;  %v3111_v29 = vadd.f32 %v2293_v37, %v1203_v54  ;;  %v2294_v23 = vpop.f32.mrb[68].mxu1  ;;  %v1216_v20 = vadd.f32 %v2971_v16, %v2982_v38 }
 0x183   : > { %2613 = vrcp.f32 %v1691_v27  ;;  %v2073_v42 = vmul.f32 -1.442695, %v1571_v61  ;;  %v2596_v2 = vpop.eup %2595  ;;  %1780 = vst [vmem:[%s3089_s29 + $0x20] sm:$0xff] %v2594_v41  ;;  %v1569_v44 = vmax.f32 %v1493_v48, 0.0  ;;  %v2362_v45 = vpop.f32.mrb[68].mxu0 }
 0x184   : > { %2615 = vpow2.f32 %v2072_v49  ;;  %v2598_v5 = vpop.eup %2597  ;;  %1783 = vst [vmem:[%s3089_s29 + $0x38] sm:$0xff] %v2596_v2  ;;  %v1514_v51 = vadd.f32 %v2362_v45, %v3092_v63  ;;  %v2295_v15 = vpop.f32.mrb[69].mxu1 }
 0x185   : > { %2617 = vpow2.f32 %v2070_v39  ;;  %v1505_v7 = vpop.f32.mrb[69].mxu0  ;;  %v2600_v53 = vpop.eup %2599  ;;  %1781 = vst [vmem:[%s3089_s29 + $0x28] sm:$0xff] %v2598_v5  ;;  %v2071_v59 = vmul.f32 -1.442695, %v1569_v44  ;;  %v2296_v55 = vadd.f32 %v2295_v15, %v2294_v23  ;;  %v1219_v15 = vadd.f32 %v2973_v22, %v2982_v38 }
 0x186   : > { %2619 = vpow2.f32 %v2073_v42  ;;  %v1506_v57 = vadd.f32 %v1505_v7, %v3074_v6  ;;  %v2297_v17 = vpop.f32.mrb[70].mxu1  ;;  %v2363_v58 = vpop.f32.mrb[70].mxu0  ;;  %v1689_v8 = vadd.f32 1.0, %v2600_v53  ;;  %v1574_v0 = vmax.f32 %v1514_v51, 0.0 }
 0x187   : > { %v2602_v60 = vpop.eup %2601  ;;  %v1517_v30 = vadd.f32 %v2363_v58, %v3095_v43  ;;  %v2298_v63 = vpop.f32.mrb[71].mxu1  ;;  %2621 = vpow2.f32 %v2071_v59  ;;  %v1211_v6 = vadd.f32 %v2969_v10, %v2982_v38  ;;  %v1369_v11 = vadd.f32 %v2296_v55, %v1208_v19 }
 0x188   : > { %v1508_v32 = vpop.f32.mrb[71].mxu0  ;;  %v2604_v1 = vpop.eup %2603  ;;  %v1694_v35 = vadd.f32 1.0, %v2602_v60  ;;  %v1572_v52 = vmax.f32 %v1506_v57, 0.0  ;;  %v2299_v12 = vadd.f32 %v2298_v63, %v2297_v17  ;;  %2623 = vrcp.f32 %v1689_v8 }
 0x189   : > { %v2606_v13 = vpop.eup %2605  ;;  %v1692_v3 = vadd.f32 1.0, %v2604_v1  ;;  %v1575_v26 = vmax.f32 %v1517_v30, 0.0  ;;  %v2076_v54 = vmul.f32 -1.442695, %v1574_v0  ;;  %v1509_v43 = vadd.f32 %v1508_v32, %v3076_v21 }
 0x18a   : > { %v2608_v4 = vpop.eup %2607  ;;  %2625 = vrcp.f32 %v1694_v35  ;;  %v1695_v14 = vadd.f32 1.0, %v2606_v13  ;;  %v2074_v40 = vmul.f32 -1.442695, %v1572_v52  ;;  %v2300_v56 = vpop.f32.mrb[72].mxu1  ;;  %v1372_v36 = vadd.f32 %v2299_v12, %v1211_v6 }
 0x18b   : > { %v2610_v33 = vpop.eup %2609  ;;  %2627 = vrcp.f32 %v1692_v3  ;;  %v1693_v24 = vadd.f32 1.0, %v2608_v4  ;;  %v2077_v10 = vmul.f32 -1.442695, %v1575_v26  ;;  %v1573_v50 = vmax.f32 %v1509_v43, 0.0  ;;  %v2366_v25 = vpop.f32.mrb[72].mxu0 }
 0x18c   : > { %v2612_v47 = vpop.eup %2611  ;;  %1786 = vst [vmem:[%s3089_s29 + $0x50] sm:$0xff] %v2610_v33  ;;  %2629 = vrcp.f32 %v1695_v14  ;;  %v1530_v21 = vadd.f32 %v2366_v25, %v1369_v11  ;;  %v2301_v18 = vpop.f32.mrb[73].mxu1  ;;  %v1227_v14 = vadd.f32 %v2977_v34, %v2982_v38 }
 0x18d   : > { %v2614_v9 = vpop.eup %2613  ;;  %1784 = vst [vmem:[%s3089_s29 + $0x40] sm:$0xff] %v2612_v47  ;;  %2631 = vrcp.f32 %v1693_v24  ;;  %v1521_v62 = vpop.f32.mrb[73].mxu0  ;;  %v2075_v27 = vmul.f32 -1.442695, %v1573_v50  ;;  %v2302_v49 = vadd.f32 %v2301_v18, %v2300_v56 }
 0x18e   : > { %v2616_v37 = vpop.eup %2615  ;;  %1787 = vst [vmem:[%s3089_s29 + $0x58] sm:$0xff] %v2614_v9  ;;  %2633 = vpow2.f32 %v2076_v54  ;;  %v1522_v61 = vadd.f32 %v1521_v62, %v3108_v46  ;;  %v2303_v31 = vpop.f32.mrb[74].mxu1  ;;  %v1578_v42 = vmax.f32 %v1530_v21, 0.0 }
 0x18f   : > { %v2367_v39 = vpop.f32.mrb[74].mxu0  ;;  %v2618_v48 = vpop.eup %2617  ;;  %v1698_v41 = vadd.f32 1.0, %v2616_v37  ;;  %2635 = vpow2.f32 %v2074_v40  ;;  %v1377_v57 = vadd.f32 %v2302_v49, %v1216_v20 }
 0x190   : > { %v1533_v2 = vadd.f32 %v2367_v39, %v1372_v36  ;;  %v2304_v16 = vpop.f32.mrb[75].mxu1  ;;  %v1524_v44 = vpop.f32.mrb[75].mxu0  ;;  %v1696_v45 = vadd.f32 1.0, %v2618_v48  ;;  %2637 = vpow2.f32 %v2077_v10  ;;  %v1576_v5 = vmax.f32 %v1522_v61, 0.0 }
 0x191   : > { %v2620_v23 = vpop.eup %2619  ;;  %v2305_v51 = vadd.f32 %v2304_v16, %v2303_v31  ;;  %2639 = vrcp.f32 %v1698_v41  ;;  %v2080_v59 = vmul.f32 -1.442695, %v1578_v42  ;;  %v1525_v55 = vadd.f32 %v1524_v44, %v3111_v29 }
 0x192   : > { %v1699_v46 = vadd.f32 1.0, %v2620_v23  ;;  %v1579_v7 = vmax.f32 %v1533_v2, 0.0  ;;  %v2622_v53 = vpop.eup %2621  ;;  %2641 = vrcp.f32 %v1696_v45  ;;  %v2078_v60 = vmul.f32 -1.442695, %v1576_v5  ;;  %v2306_v30 = vpop.f32.mrb[76].mxu1 }
 0x193   : > { %v2624_v17 = vpop.eup %2623  ;;  %v1697_v58 = vadd.f32 1.0, %v2622_v53  ;;  %v1380_v19 = vadd.f32 %v2305_v51, %v1219_v15  ;;  %v1577_v0 = vmax.f32 %v1525_v55, 0.0  ;;  %v2370_v63 = vpop.f32.mrb[76].mxu0  ;;  %v1224_v29 = vadd.f32 %v2975_v28, %v2982_v38 }
 0x194   : > { %2643 = vrcp.f32 %v1699_v46  ;;  %v2626_v8 = vpop.eup %2625  ;;  %1785 = vst [vmem:[%s3089_s29 + $0x48] sm:$0xff] %v2624_v17  ;;  %v2081_v22 = vmul.f32 -1.442695, %v1579_v7  ;;  %v2307_v1 = vpop.f32.mrb[77].mxu1 }
 0x195   : > { %2645 = vpow2.f32 %v2075_v27  ;;  %v2628_v32 = vpop.eup %2627  ;;  %1790 = vst [vmem:[%s3089_s29 + $0x70] sm:$0xff] %v2626_v8  ;;  %v1537_v35 = vpop.f32.mrb[77].mxu0  ;;  %v2079_v12 = vmul.f32 -1.442695, %v1577_v0  ;;  %v2308_v13 = vadd.f32 %v2307_v1, %v2306_v30 }
 0x196   : > { %2647 = vrcp.f32 %v1697_v58  ;;  %v2630_v52 = vpop.eup %2629  ;;  %1788 = vst [vmem:[%s3089_s29 + $0x60] sm:$0xff] %v2628_v32  ;;  %v1538_v6 = vadd.f32 %v1537_v35, %v1377_v57  ;;  %v2309_v3 = vpop.f32.mrb[78].mxu1 }
 0x197   : > { %2649 = vpow2.f32 %v2080_v59  ;;  %v2371_v26 = vpop.f32.mrb[78].mxu0  ;;  %v2632_v4 = vpop.eup %2631  ;;  %1791 = vst [vmem:[%s3089_s29 + $0x78] sm:$0xff] %v2630_v52  ;;  %v1385_v33 = vadd.f32 %v2308_v13, %v1224_v29 }
 0x198   : > { %2651 = vpow2.f32 %v2078_v60  ;;  %v2310_v28 = vpop.f32.mrb[79].mxu1  ;;  %v1540_v54 = vpop.f32.mrb[79].mxu0  ;;  %1789 = vst [vmem:[%s3089_s29 + $0x68] sm:$0xff] %v2632_v4  ;;  %v1580_v24 = vmax.f32 %v1538_v6, 0.0 }
 0x199   : > { %v2634_v43 = vpop.eup %2633  ;;  %2653 = vpow2.f32 %v2081_v22  ;;  %v2311_v40 = vadd.f32 %v2310_v28, %v2309_v3  ;;  %v1541_v10 = vadd.f32 %v1540_v54, %v1380_v19  ;;  %v1546_v25 = vadd.f32 %v2370_v63, %v1385_v33 }
 0x19a   : > { %v2636_v11 = vpop.eup %2635  ;;  %v1702_v47 = vadd.f32 1.0, %v2634_v43  ;;  %2655 = vpow2.f32 %v2079_v12  ;;  %v2082_v34 = vmul.f32 -1.442695, %v1580_v24 }
 0x19b   : > { %v2638_v50 = vpop.eup %2637  ;;  %v1700_v56 = vadd.f32 1.0, %v2636_v11  ;;  %v1388_v38 = vadd.f32 %v2311_v40, %v1227_v14  ;;  %v1581_v20 = vmax.f32 %v1541_v10, 0.0  ;;  %v1582_v18 = vmax.f32 %v1546_v25, 0.0 }
 0x19c   : > { %v2640_v36 = vpop.eup %2639  ;;  %2657 = vrcp.f32 %v1702_v47  ;;  %v1703_v9 = vadd.f32 1.0, %v2638_v50 }
 0x19d   : > { %v2642_v21 = vpop.eup %2641  ;;  %1794 = vst [vmem:[%s3089_s29 + $0x90] sm:$0xff] %v2640_v36  ;;  %2659 = vrcp.f32 %v1700_v56  ;;  %v1549_v62 = vadd.f32 %v2371_v26, %v1388_v38  ;;  %v2083_v27 = vmul.f32 -1.442695, %v1581_v20  ;;  %v2084_v61 = vmul.f32 -1.442695, %v1582_v18 }
 0x19e   : > { %v2644_v37 = vpop.eup %2643  ;;  %1792 = vst [vmem:[%s3089_s29 + $0x80] sm:$0xff] %v2642_v21  ;;  %2661 = vrcp.f32 %v1703_v9 }
 0x19f   : > { %v2646_v49 = vpop.eup %2645  ;;  %1795 = vst [vmem:[%s3089_s29 + $0x98] sm:$0xff] %v2644_v37  ;;  %2663 = vpow2.f32 %v2082_v34  ;;  %v1583_v31 = vmax.f32 %v1549_v62, 0.0 }
 0x1a0   : > { %v2648_v39 = vpop.eup %2647  ;;  %v1701_v48 = vadd.f32 1.0, %v2646_v49  ;;  %2665 = vpow2.f32 %v2083_v27 }
 0x1a1   : > { %v2650_v41 = vpop.eup %2649  ;;  %1793 = vst [vmem:[%s3089_s29 + $0x88] sm:$0xff] %v2648_v39  ;;  %2667 = vpow2.f32 %v2084_v61  ;;  %v2085_v42 = vmul.f32 -1.442695, %v1583_v31 }
 0x1a2   : > { %v2652_v2 = vpop.eup %2651  ;;  %2669 = vrcp.f32 %v1701_v48  ;;  %v1706_v16 = vadd.f32 1.0, %v2650_v41 }
 0x1a3   : > { %v2654_v44 = vpop.eup %2653  ;;  %v1704_v23 = vadd.f32 1.0, %v2652_v2  ;;  %2671 = vpow2.f32 %v2085_v42 }
 0x1a4   : > { %v2656_v45 = vpop.eup %2655  ;;  %2673 = vrcp.f32 %v1706_v16  ;;  %v1707_v5 = vadd.f32 1.0, %v2654_v44 }
 0x1a5   : > { %2675 = vrcp.f32 %v1704_v23  ;;  %v1705_v51 = vadd.f32 1.0, %v2656_v45 }
 0x1a6   : > { %v2658_v15 = vpop.eup %2657  ;;  %2677 = vrcp.f32 %v1707_v5 }
 0x1a7   : > { %v2660_v46 = vpop.eup %2659  ;;  %1798 = vst [vmem:[%s3089_s29 + $0xb0] sm:$0xff] %v2658_v15  ;;  %2679 = vrcp.f32 %v1705_v51 }
 0x1a8   : > { %v2662_v7 = vpop.eup %2661  ;;  %1796 = vst [vmem:[%s3089_s29 + $0xa0] sm:$0xff] %v2660_v46 }
 0x1a9   : > { %v2664_v53 = vpop.eup %2663  ;;  %1799 = vst [vmem:[%s3089_s29 + $0xb8] sm:$0xff] %v2662_v7 }
 0x1aa   : > { %v2666_v59 = vpop.eup %2665  ;;  %v1708_v55 = vadd.f32 1.0, %v2664_v53 }
 0x1ab   : > { %v2668_v57 = vpop.eup %2667  ;;  %v1709_v17 = vadd.f32 1.0, %v2666_v59 }
 0x1ac   : > { %v2670_v58 = vpop.eup %2669  ;;  %v1710_v60 = vadd.f32 1.0, %v2668_v57  ;;  %2681 = vrcp.f32 %v1708_v55 }
 0x1ad   : > { %v2672_v19 = vpop.eup %2671  ;;  %1797 = vst [vmem:[%s3089_s29 + $0xa8] sm:$0xff] %v2670_v58  ;;  %2683 = vrcp.f32 %v1709_v17 }
 0x1ae   : > { %v2674_v8 = vpop.eup %2673  ;;  %2685 = vrcp.f32 %v1710_v60  ;;  %v1711_v22 = vadd.f32 1.0, %v2672_v19 }
 0x1af   : > { %v2676_v0 = vpop.eup %2675  ;;  %1802 = vst [vmem:[%s3089_s29 + $0xd0] sm:$0xff] %v2674_v8 }
 0x1b0   : > { %v2678_v30 = vpop.eup %2677  ;;  %1800 = vst [vmem:[%s3089_s29 + $0xc0] sm:$0xff] %v2676_v0  ;;  %2687 = vrcp.f32 %v1711_v22 }
 0x1b1   : > { %v2680_v63 = vpop.eup %2679  ;;  %1803 = vst [vmem:[%s3089_s29 + $0xd8] sm:$0xff] %v2678_v30 }
 0x1b2   : > { %1801 = vst [vmem:[%s3089_s29 + $0xc8] sm:$0xff] %v2680_v63 }
 0x1b6   : > { %v2682_v32 = vpop.eup %2681 }
 0x1b7   : > { %v2684_v29 = vpop.eup %2683  ;;  %1804 = vst [vmem:[%s3089_s29 + $0xe0] sm:$0xff] %v2682_v32 }
 0x1b8   : > { %v2686_v1 = vpop.eup %2685  ;;  %1805 = vst [vmem:[%s3089_s29 + $0xe8] sm:$0xff] %v2684_v29 }
 0x1b9   : > { %1806 = vst [vmem:[%s3089_s29 + $0xf0] sm:$0xff] %v2686_v1 }
 0x1ba   : > { %v2688_v35 = vpop.eup %2687 }
 0x1bb   : > { %1807 = vst [vmem:[%s3089_s29 + $0xf8] sm:$0xff] %v2688_v35 }
 0x1bc PF: > { %s13_s14 = sadd.s32 1, %s2711_s14   ;;  %s3171_s12 = smov %s2707_s13 }
 0x1bd   : > { %p10_p5 = scmp.ge.s32.totalorder %s13_s14, 10   ;;  %s3172_s13 = smov %s3174_s15 }
 0x1bf   :  { %12 = sbr.rel (!%p10_p5) target bundleno = 2 (0x2), region = 68 }

</bundles_post_ra>
